<compile_context>
chip_gen: v5e
topology: v5e:2x2
jax: 0.10.0
libtpu: 0.0.40
codegen_flags: <defaults>
</compile_context>

<pallas_src>
import numpy as np
import jax
import jax.numpy as jnp
from jax.experimental import pallas as pl
from jax.experimental.pallas import tpu as pltpu  # noqa: F401  (not required at this footprint)


def _nearest_indices(in_size, out_size, scale_factor=None):
    """PyTorch 'nearest' source indices: min(floor(dst * scale), in - 1)."""
    s = (1.0 / scale_factor) if scale_factor is not None else (in_size / out_size)
    idx = np.minimum(np.floor(np.arange(out_size) * s).astype(np.int64), in_size - 1)
    return tuple(int(v) for v in idx)


def _gather_rows(a, idx):
    """Static gather along the sublane axis (axis=-2) of a (B, H, W) tile."""
    return jnp.concatenate([a[:, i:i + 1, :] for i in idx], axis=1)


def _gather_cols(a, idx):
    """Static gather along the lane axis (axis=-1) of a (B, H, W) tile."""
    return jnp.concatenate([a[:, :, j:j + 1] for j in idx], axis=2)


def _make_kernel(rx, cx, rw, cw):
    def kernel(x_ref, w_ref, xo_ref, wo_ref):
        # x path: fused (16->12->24) row/col gather, pure copy.
        x = x_ref[...]                                  # (Bx, Hx, Wx)
        xo_ref[...] = _gather_cols(_gather_rows(x, rx), cx)
        # w path: 8 -> 23 row/col gather, pure copy.
        w = w_ref[...]                                  # (Bw, Hw, Ww)
        wo_ref[...] = _gather_cols(_gather_rows(w, rw), cw)
    return kernel


def fused_upsample(x, w, rx, cx, rw, cw):
    """Both nearest-neighbour upsamples in one pallas_call.

    x: (N, C, Hx, Wx)   -> (N, C, len(rx), len(cx))
    w: (Nw, Cw, Hw, Ww) -> (Nw, Cw, len(rw), len(cw))
    """
    N, C, Hx, Wx = x.shape
    Nw, Cw, Hw, Ww = w.shape
    Bx, Bw = N * C, Nw * Cw
    Hxo, Wxo = len(rx), len(cx)
    Hwo, Wwo = len(rw), len(cw)

    # Contiguous reshapes only (no HBM round trips): (N, C, H, W) -> (N*C, H, W).
    x2 = x.reshape(Bx, Hx, Wx)
    w2 = w.reshape(Bw, Hw, Ww)

    kernel = _make_kernel(rx, cx, rw, cw)

    xo2, wo2 = pl.pallas_call(
        kernel,
        out_shape=(
            jax.ShapeDtypeStruct((Bx, Hxo, Wxo), x.dtype),
            jax.ShapeDtypeStruct((Bw, Hwo, Wwo), w.dtype),
        ),
        grid=(1,),  # single step: launch-bound problem, one TC is optimal
        in_specs=[
            pl.BlockSpec((Bx, Hx, Wx), lambda i: (0, 0, 0)),
            pl.BlockSpec((Bw, Hw, Ww), lambda i: (0, 0, 0)),
        ],
        out_specs=(
            pl.BlockSpec((Bx, Hxo, Wxo), lambda i: (0, 0, 0)),
            pl.BlockSpec((Bw, Hwo, Wwo), lambda i: (0, 0, 0)),
        ),
    )(x2, w2)

    # Contiguous reshapes back to NCHW.
    return xo2.reshape(N, C, Hxo, Wxo), wo2.reshape(Nw, Cw, Hwo, Wwo)


def model_forward(x, w):
    """Pallas equivalent of Model.forward."""
    # x path: size=(12, 12) then scale_factor=2, fused into one composite map.
    _, _, Hx, Wx = x.shape
    r1 = _nearest_indices(Hx, 12)
    c1 = _nearest_indices(Wx, 12)
    r2 = _nearest_indices(12, 24, scale_factor=2.0)
    c2 = _nearest_indices(12, 24, scale_factor=2.0)
    rx = tuple(r1[i] for i in r2)
    cx = tuple(c1[j] for j in c2)

    # w path: scale_factor = 2.976744 on both spatial dims.
    _, _, Hw, Ww = w.shape
    sf = 2.976744
    rw = _nearest_indices(Hw, int(np.floor(Hw * sf)), scale_factor=sf)
    cw = _nearest_indices(Ww, int(np.floor(Ww * sf)), scale_factor=sf)

    return fused_upsample(x, w, rx, cx, rw, cw)


if __name__ == "__main__":
    key = jax.random.PRNGKey(0)
    kx, kw = jax.random.split(key)
    x = jax.random.uniform(kx, (2, 4, 16, 16), dtype=jnp.float32)
    w = jax.random.uniform(kw, (2, 4, 8, 8), dtype=jnp.float32)

    x_out, w_out = model_forward(x, w)
    x_out = jax.block_until_ready(x_out)
    w_out = jax.block_until_ready(w_out)

    assert x_out.shape == (2, 4, 24, 24), x_out.shape
    assert w_out.shape == (2, 4, 23, 23), w_out.shape

    # plain-numpy reference for the same composite index maps (bit-exact:
    # the kernel is a static-index copy, no arithmetic is performed).
    r1 = _nearest_indices(16, 12)
    c1 = _nearest_indices(16, 12)
    r2 = _nearest_indices(12, 24, scale_factor=2.0)
    c2 = _nearest_indices(12, 24, scale_factor=2.0)
    rx = tuple(r1[i] for i in r2)
    cx = tuple(c1[j] for j in c2)
    xn = np.asarray(x)
    ref_x = xn[:, :, np.array(rx), :][:, :, :, np.array(cx)]
    np.testing.assert_array_equal(np.asarray(x_out), ref_x)

    sf = 2.976744
    rw = _nearest_indices(8, int(np.floor(8 * sf)), scale_factor=sf)
    cw = _nearest_indices(8, int(np.floor(8 * sf)), scale_factor=sf)
    wn = np.asarray(w)
    ref_w = wn[:, :, np.array(rw), :][:, :, :, np.array(cw)]
    np.testing.assert_array_equal(np.asarray(w_out), ref_w)

    print("KERNEL_OK")
</pallas_src>

<mosaic_0001>
module attributes {stable_mosaic.version = 11 : i64} {
  func.func @kernel(%arg0: i32, %arg1: memref<8x16x16xf32, #tpu.memory_space<vmem>>, %arg2: memref<8x8x8xf32, #tpu.memory_space<vmem>>, %arg3: memref<8x24x24xf32, #tpu.memory_space<vmem>>, %arg4: memref<8x23x23xf32, #tpu.memory_space<vmem>>) attributes {dimension_semantics = [#tpu.dimension_semantics<arbitrary>], iteration_bounds = array<i64: 1>, scalar_prefetch = 0 : i64, scratch_operands = 0 : i64, tpu.core_type = #tpu.core_type<tc>, window_params = [{pipeline_mode = #tpu.pipeline_mode<synchronous>, transform_indices = @transform_0, window_bounds = array<i64: 8, 16, 16>}, {pipeline_mode = #tpu.pipeline_mode<synchronous>, transform_indices = @transform_1, window_bounds = array<i64: 8, 8, 8>}, {pipeline_mode = #tpu.pipeline_mode<synchronous>, transform_indices = @transform_2, window_bounds = array<i64: 8, 24, 24>}, {pipeline_mode = #tpu.pipeline_mode<synchronous>, transform_indices = @transform_3, window_bounds = array<i64: 8, 23, 23>}]} {
    %c0 = arith.constant 0 : index
    %c0_0 = arith.constant 0 : index
    %c0_1 = arith.constant 0 : index
    %0 = vector.load %arg1[%c0, %c0_0, %c0_1] : memref<8x16x16xf32, #tpu.memory_space<vmem>>, vector<8x16x16xf32>
    %1 = vector.extract_strided_slice %0 {offsets = [0, 0, 0], sizes = [8, 1, 16], strides = [1, 1, 1]} : vector<8x16x16xf32> to vector<8x1x16xf32>
    %2 = vector.extract_strided_slice %0 {offsets = [0, 0, 0], sizes = [8, 1, 16], strides = [1, 1, 1]} : vector<8x16x16xf32> to vector<8x1x16xf32>
    %3 = vector.extract_strided_slice %0 {offsets = [0, 1, 0], sizes = [8, 1, 16], strides = [1, 1, 1]} : vector<8x16x16xf32> to vector<8x1x16xf32>
    %4 = vector.extract_strided_slice %0 {offsets = [0, 1, 0], sizes = [8, 1, 16], strides = [1, 1, 1]} : vector<8x16x16xf32> to vector<8x1x16xf32>
    %5 = vector.extract_strided_slice %0 {offsets = [0, 2, 0], sizes = [8, 1, 16], strides = [1, 1, 1]} : vector<8x16x16xf32> to vector<8x1x16xf32>
    %6 = vector.extract_strided_slice %0 {offsets = [0, 2, 0], sizes = [8, 1, 16], strides = [1, 1, 1]} : vector<8x16x16xf32> to vector<8x1x16xf32>
    %7 = vector.extract_strided_slice %0 {offsets = [0, 4, 0], sizes = [8, 1, 16], strides = [1, 1, 1]} : vector<8x16x16xf32> to vector<8x1x16xf32>
    %8 = vector.extract_strided_slice %0 {offsets = [0, 4, 0], sizes = [8, 1, 16], strides = [1, 1, 1]} : vector<8x16x16xf32> to vector<8x1x16xf32>
    %9 = vector.extract_strided_slice %0 {offsets = [0, 5, 0], sizes = [8, 1, 16], strides = [1, 1, 1]} : vector<8x16x16xf32> to vector<8x1x16xf32>
    %10 = vector.extract_strided_slice %0 {offsets = [0, 5, 0], sizes = [8, 1, 16], strides = [1, 1, 1]} : vector<8x16x16xf32> to vector<8x1x16xf32>
    %11 = vector.extract_strided_slice %0 {offsets = [0, 6, 0], sizes = [8, 1, 16], strides = [1, 1, 1]} : vector<8x16x16xf32> to vector<8x1x16xf32>
    %12 = vector.extract_strided_slice %0 {offsets = [0, 6, 0], sizes = [8, 1, 16], strides = [1, 1, 1]} : vector<8x16x16xf32> to vector<8x1x16xf32>
    %13 = vector.extract_strided_slice %0 {offsets = [0, 8, 0], sizes = [8, 1, 16], strides = [1, 1, 1]} : vector<8x16x16xf32> to vector<8x1x16xf32>
    %14 = vector.extract_strided_slice %0 {offsets = [0, 8, 0], sizes = [8, 1, 16], strides = [1, 1, 1]} : vector<8x16x16xf32> to vector<8x1x16xf32>
    %15 = vector.extract_strided_slice %0 {offsets = [0, 9, 0], sizes = [8, 1, 16], strides = [1, 1, 1]} : vector<8x16x16xf32> to vector<8x1x16xf32>
    %16 = vector.extract_strided_slice %0 {offsets = [0, 9, 0], sizes = [8, 1, 16], strides = [1, 1, 1]} : vector<8x16x16xf32> to vector<8x1x16xf32>
    %17 = vector.extract_strided_slice %0 {offsets = [0, 10, 0], sizes = [8, 1, 16], strides = [1, 1, 1]} : vector<8x16x16xf32> to vector<8x1x16xf32>
    %18 = vector.extract_strided_slice %0 {offsets = [0, 10, 0], sizes = [8, 1, 16], strides = [1, 1, 1]} : vector<8x16x16xf32> to vector<8x1x16xf32>
    %19 = vector.extract_strided_slice %0 {offsets = [0, 12, 0], sizes = [8, 1, 16], strides = [1, 1, 1]} : vector<8x16x16xf32> to vector<8x1x16xf32>
    %20 = vector.extract_strided_slice %0 {offsets = [0, 12, 0], sizes = [8, 1, 16], strides = [1, 1, 1]} : vector<8x16x16xf32> to vector<8x1x16xf32>
    %21 = vector.extract_strided_slice %0 {offsets = [0, 13, 0], sizes = [8, 1, 16], strides = [1, 1, 1]} : vector<8x16x16xf32> to vector<8x1x16xf32>
    %22 = vector.extract_strided_slice %0 {offsets = [0, 13, 0], sizes = [8, 1, 16], strides = [1, 1, 1]} : vector<8x16x16xf32> to vector<8x1x16xf32>
    %23 = vector.extract_strided_slice %0 {offsets = [0, 14, 0], sizes = [8, 1, 16], strides = [1, 1, 1]} : vector<8x16x16xf32> to vector<8x1x16xf32>
    %24 = vector.extract_strided_slice %0 {offsets = [0, 14, 0], sizes = [8, 1, 16], strides = [1, 1, 1]} : vector<8x16x16xf32> to vector<8x1x16xf32>
    %25 = tpu.concatenate %1, %2, %3, %4, %5, %6, %7, %8, %9, %10, %11, %12, %13, %14, %15, %16 in 1 : vector<8x1x16xf32>, vector<8x1x16xf32>, vector<8x1x16xf32>, vector<8x1x16xf32>, vector<8x1x16xf32>, vector<8x1x16xf32>, vector<8x1x16xf32>, vector<8x1x16xf32>, vector<8x1x16xf32>, vector<8x1x16xf32>, vector<8x1x16xf32>, vector<8x1x16xf32>, vector<8x1x16xf32>, vector<8x1x16xf32>, vector<8x1x16xf32>, vector<8x1x16xf32> -> vector<8x16x16xf32>
    %26 = tpu.concatenate %17, %18, %19, %20, %21, %22, %23, %24 in 1 : vector<8x1x16xf32>, vector<8x1x16xf32>, vector<8x1x16xf32>, vector<8x1x16xf32>, vector<8x1x16xf32>, vector<8x1x16xf32>, vector<8x1x16xf32>, vector<8x1x16xf32> -> vector<8x8x16xf32>
    %27 = tpu.concatenate %25, %26 in 1 : vector<8x16x16xf32>, vector<8x8x16xf32> -> vector<8x24x16xf32>
    %28 = vector.extract_strided_slice %27 {offsets = [0, 0, 0], sizes = [8, 24, 1], strides = [1, 1, 1]} : vector<8x24x16xf32> to vector<8x24x1xf32>
    %29 = vector.extract_strided_slice %27 {offsets = [0, 0, 0], sizes = [8, 24, 1], strides = [1, 1, 1]} : vector<8x24x16xf32> to vector<8x24x1xf32>
    %30 = vector.extract_strided_slice %27 {offsets = [0, 0, 1], sizes = [8, 24, 1], strides = [1, 1, 1]} : vector<8x24x16xf32> to vector<8x24x1xf32>
    %31 = vector.extract_strided_slice %27 {offsets = [0, 0, 1], sizes = [8, 24, 1], strides = [1, 1, 1]} : vector<8x24x16xf32> to vector<8x24x1xf32>
    %32 = vector.extract_strided_slice %27 {offsets = [0, 0, 2], sizes = [8, 24, 1], strides = [1, 1, 1]} : vector<8x24x16xf32> to vector<8x24x1xf32>
    %33 = vector.extract_strided_slice %27 {offsets = [0, 0, 2], sizes = [8, 24, 1], strides = [1, 1, 1]} : vector<8x24x16xf32> to vector<8x24x1xf32>
    %34 = vector.extract_strided_slice %27 {offsets = [0, 0, 4], sizes = [8, 24, 1], strides = [1, 1, 1]} : vector<8x24x16xf32> to vector<8x24x1xf32>
    %35 = vector.extract_strided_slice %27 {offsets = [0, 0, 4], sizes = [8, 24, 1], strides = [1, 1, 1]} : vector<8x24x16xf32> to vector<8x24x1xf32>
    %36 = vector.extract_strided_slice %27 {offsets = [0, 0, 5], sizes = [8, 24, 1], strides = [1, 1, 1]} : vector<8x24x16xf32> to vector<8x24x1xf32>
    %37 = vector.extract_strided_slice %27 {offsets = [0, 0, 5], sizes = [8, 24, 1], strides = [1, 1, 1]} : vector<8x24x16xf32> to vector<8x24x1xf32>
    %38 = vector.extract_strided_slice %27 {offsets = [0, 0, 6], sizes = [8, 24, 1], strides = [1, 1, 1]} : vector<8x24x16xf32> to vector<8x24x1xf32>
    %39 = vector.extract_strided_slice %27 {offsets = [0, 0, 6], sizes = [8, 24, 1], strides = [1, 1, 1]} : vector<8x24x16xf32> to vector<8x24x1xf32>
    %40 = vector.extract_strided_slice %27 {offsets = [0, 0, 8], sizes = [8, 24, 1], strides = [1, 1, 1]} : vector<8x24x16xf32> to vector<8x24x1xf32>
    %41 = vector.extract_strided_slice %27 {offsets = [0, 0, 8], sizes = [8, 24, 1], strides = [1, 1, 1]} : vector<8x24x16xf32> to vector<8x24x1xf32>
    %42 = vector.extract_strided_slice %27 {offsets = [0, 0, 9], sizes = [8, 24, 1], strides = [1, 1, 1]} : vector<8x24x16xf32> to vector<8x24x1xf32>
    %43 = vector.extract_strided_slice %27 {offsets = [0, 0, 9], sizes = [8, 24, 1], strides = [1, 1, 1]} : vector<8x24x16xf32> to vector<8x24x1xf32>
    %44 = vector.extract_strided_slice %27 {offsets = [0, 0, 10], sizes = [8, 24, 1], strides = [1, 1, 1]} : vector<8x24x16xf32> to vector<8x24x1xf32>
    %45 = vector.extract_strided_slice %27 {offsets = [0, 0, 10], sizes = [8, 24, 1], strides = [1, 1, 1]} : vector<8x24x16xf32> to vector<8x24x1xf32>
    %46 = vector.extract_strided_slice %27 {offsets = [0, 0, 12], sizes = [8, 24, 1], strides = [1, 1, 1]} : vector<8x24x16xf32> to vector<8x24x1xf32>
    %47 = vector.extract_strided_slice %27 {offsets = [0, 0, 12], sizes = [8, 24, 1], strides = [1, 1, 1]} : vector<8x24x16xf32> to vector<8x24x1xf32>
    %48 = vector.extract_strided_slice %27 {offsets = [0, 0, 13], sizes = [8, 24, 1], strides = [1, 1, 1]} : vector<8x24x16xf32> to vector<8x24x1xf32>
    %49 = vector.extract_strided_slice %27 {offsets = [0, 0, 13], sizes = [8, 24, 1], strides = [1, 1, 1]} : vector<8x24x16xf32> to vector<8x24x1xf32>
    %50 = vector.extract_strided_slice %27 {offsets = [0, 0, 14], sizes = [8, 24, 1], strides = [1, 1, 1]} : vector<8x24x16xf32> to vector<8x24x1xf32>
    %51 = vector.extract_strided_slice %27 {offsets = [0, 0, 14], sizes = [8, 24, 1], strides = [1, 1, 1]} : vector<8x24x16xf32> to vector<8x24x1xf32>
    %52 = tpu.concatenate %28, %29, %30, %31, %32, %33, %34, %35, %36, %37, %38, %39, %40, %41, %42, %43 in 2 : vector<8x24x1xf32>, vector<8x24x1xf32>, vector<8x24x1xf32>, vector<8x24x1xf32>, vector<8x24x1xf32>, vector<8x24x1xf32>, vector<8x24x1xf32>, vector<8x24x1xf32>, vector<8x24x1xf32>, vector<8x24x1xf32>, vector<8x24x1xf32>, vector<8x24x1xf32>, vector<8x24x1xf32>, vector<8x24x1xf32>, vector<8x24x1xf32>, vector<8x24x1xf32> -> vector<8x24x16xf32>
    %53 = tpu.concatenate %44, %45, %46, %47, %48, %49, %50, %51 in 2 : vector<8x24x1xf32>, vector<8x24x1xf32>, vector<8x24x1xf32>, vector<8x24x1xf32>, vector<8x24x1xf32>, vector<8x24x1xf32>, vector<8x24x1xf32>, vector<8x24x1xf32> -> vector<8x24x8xf32>
    %54 = tpu.concatenate %52, %53 in 2 : vector<8x24x16xf32>, vector<8x24x8xf32> -> vector<8x24x24xf32>
    %c0_2 = arith.constant 0 : index
    %c0_3 = arith.constant 0 : index
    %c0_4 = arith.constant 0 : index
    %55 = vector.load %arg3[%c0_2, %c0_3, %c0_4] : memref<8x24x24xf32, #tpu.memory_space<vmem>>, vector<8x24x24xf32>
    tpu.vector_store %arg3[%c0_2, %c0_3, %c0_4], %54 {strides = array<i32>} : memref<8x24x24xf32, #tpu.memory_space<vmem>>, vector<8x24x24xf32>,
    %c0_5 = arith.constant 0 : index
    %c0_6 = arith.constant 0 : index
    %c0_7 = arith.constant 0 : index
    %56 = vector.load %arg2[%c0_5, %c0_6, %c0_7] : memref<8x8x8xf32, #tpu.memory_space<vmem>>, vector<8x8x8xf32>
    %57 = vector.extract_strided_slice %56 {offsets = [0, 0, 0], sizes = [8, 1, 8], strides = [1, 1, 1]} : vector<8x8x8xf32> to vector<8x1x8xf32>
    %58 = vector.extract_strided_slice %56 {offsets = [0, 0, 0], sizes = [8, 1, 8], strides = [1, 1, 1]} : vector<8x8x8xf32> to vector<8x1x8xf32>
    %59 = vector.extract_strided_slice %56 {offsets = [0, 0, 0], sizes = [8, 1, 8], strides = [1, 1, 1]} : vector<8x8x8xf32> to vector<8x1x8xf32>
    %60 = vector.extract_strided_slice %56 {offsets = [0, 1, 0], sizes = [8, 1, 8], strides = [1, 1, 1]} : vector<8x8x8xf32> to vector<8x1x8xf32>
    %61 = vector.extract_strided_slice %56 {offsets = [0, 1, 0], sizes = [8, 1, 8], strides = [1, 1, 1]} : vector<8x8x8xf32> to vector<8x1x8xf32>
    %62 = vector.extract_strided_slice %56 {offsets = [0, 1, 0], sizes = [8, 1, 8], strides = [1, 1, 1]} : vector<8x8x8xf32> to vector<8x1x8xf32>
    %63 = vector.extract_strided_slice %56 {offsets = [0, 2, 0], sizes = [8, 1, 8], strides = [1, 1, 1]} : vector<8x8x8xf32> to vector<8x1x8xf32>
    %64 = vector.extract_strided_slice %56 {offsets = [0, 2, 0], sizes = [8, 1, 8], strides = [1, 1, 1]} : vector<8x8x8xf32> to vector<8x1x8xf32>
    %65 = vector.extract_strided_slice %56 {offsets = [0, 2, 0], sizes = [8, 1, 8], strides = [1, 1, 1]} : vector<8x8x8xf32> to vector<8x1x8xf32>
    %66 = vector.extract_strided_slice %56 {offsets = [0, 3, 0], sizes = [8, 1, 8], strides = [1, 1, 1]} : vector<8x8x8xf32> to vector<8x1x8xf32>
    %67 = vector.extract_strided_slice %56 {offsets = [0, 3, 0], sizes = [8, 1, 8], strides = [1, 1, 1]} : vector<8x8x8xf32> to vector<8x1x8xf32>
    %68 = vector.extract_strided_slice %56 {offsets = [0, 3, 0], sizes = [8, 1, 8], strides = [1, 1, 1]} : vector<8x8x8xf32> to vector<8x1x8xf32>
    %69 = vector.extract_strided_slice %56 {offsets = [0, 4, 0], sizes = [8, 1, 8], strides = [1, 1, 1]} : vector<8x8x8xf32> to vector<8x1x8xf32>
    %70 = vector.extract_strided_slice %56 {offsets = [0, 4, 0], sizes = [8, 1, 8], strides = [1, 1, 1]} : vector<8x8x8xf32> to vector<8x1x8xf32>
    %71 = vector.extract_strided_slice %56 {offsets = [0, 4, 0], sizes = [8, 1, 8], strides = [1, 1, 1]} : vector<8x8x8xf32> to vector<8x1x8xf32>
    %72 = vector.extract_strided_slice %56 {offsets = [0, 5, 0], sizes = [8, 1, 8], strides = [1, 1, 1]} : vector<8x8x8xf32> to vector<8x1x8xf32>
    %73 = vector.extract_strided_slice %56 {offsets = [0, 5, 0], sizes = [8, 1, 8], strides = [1, 1, 1]} : vector<8x8x8xf32> to vector<8x1x8xf32>
    %74 = vector.extract_strided_slice %56 {offsets = [0, 5, 0], sizes = [8, 1, 8], strides = [1, 1, 1]} : vector<8x8x8xf32> to vector<8x1x8xf32>
    %75 = vector.extract_strided_slice %56 {offsets = [0, 6, 0], sizes = [8, 1, 8], strides = [1, 1, 1]} : vector<8x8x8xf32> to vector<8x1x8xf32>
    %76 = vector.extract_strided_slice %56 {offsets = [0, 6, 0], sizes = [8, 1, 8], strides = [1, 1, 1]} : vector<8x8x8xf32> to vector<8x1x8xf32>
    %77 = vector.extract_strided_slice %56 {offsets = [0, 6, 0], sizes = [8, 1, 8], strides = [1, 1, 1]} : vector<8x8x8xf32> to vector<8x1x8xf32>
    %78 = vector.extract_strided_slice %56 {offsets = [0, 7, 0], sizes = [8, 1, 8], strides = [1, 1, 1]} : vector<8x8x8xf32> to vector<8x1x8xf32>
    %79 = vector.extract_strided_slice %56 {offsets = [0, 7, 0], sizes = [8, 1, 8], strides = [1, 1, 1]} : vector<8x8x8xf32> to vector<8x1x8xf32>
    %80 = tpu.concatenate %57, %58, %59, %60, %61, %62, %63, %64, %65, %66, %67, %68, %69, %70, %71, %72 in 1 : vector<8x1x8xf32>, vector<8x1x8xf32>, vector<8x1x8xf32>, vector<8x1x8xf32>, vector<8x1x8xf32>, vector<8x1x8xf32>, vector<8x1x8xf32>, vector<8x1x8xf32>, vector<8x1x8xf32>, vector<8x1x8xf32>, vector<8x1x8xf32>, vector<8x1x8xf32>, vector<8x1x8xf32>, vector<8x1x8xf32>, vector<8x1x8xf32>, vector<8x1x8xf32> -> vector<8x16x8xf32>
    %81 = tpu.concatenate %73, %74, %75, %76, %77, %78, %79 in 1 : vector<8x1x8xf32>, vector<8x1x8xf32>, vector<8x1x8xf32>, vector<8x1x8xf32>, vector<8x1x8xf32>, vector<8x1x8xf32>, vector<8x1x8xf32> -> vector<8x7x8xf32>
    %82 = tpu.concatenate %80, %81 in 1 : vector<8x16x8xf32>, vector<8x7x8xf32> -> vector<8x23x8xf32>
    %83 = vector.extract_strided_slice %82 {offsets = [0, 0, 0], sizes = [8, 23, 1], strides = [1, 1, 1]} : vector<8x23x8xf32> to vector<8x23x1xf32>
    %84 = vector.extract_strided_slice %82 {offsets = [0, 0, 0], sizes = [8, 23, 1], strides = [1, 1, 1]} : vector<8x23x8xf32> to vector<8x23x1xf32>
    %85 = vector.extract_strided_slice %82 {offsets = [0, 0, 0], sizes = [8, 23, 1], strides = [1, 1, 1]} : vector<8x23x8xf32> to vector<8x23x1xf32>
    %86 = vector.extract_strided_slice %82 {offsets = [0, 0, 1], sizes = [8, 23, 1], strides = [1, 1, 1]} : vector<8x23x8xf32> to vector<8x23x1xf32>
    %87 = vector.extract_strided_slice %82 {offsets = [0, 0, 1], sizes = [8, 23, 1], strides = [1, 1, 1]} : vector<8x23x8xf32> to vector<8x23x1xf32>
    %88 = vector.extract_strided_slice %82 {offsets = [0, 0, 1], sizes = [8, 23, 1], strides = [1, 1, 1]} : vector<8x23x8xf32> to vector<8x23x1xf32>
    %89 = vector.extract_strided_slice %82 {offsets = [0, 0, 2], sizes = [8, 23, 1], strides = [1, 1, 1]} : vector<8x23x8xf32> to vector<8x23x1xf32>
    %90 = vector.extract_strided_slice %82 {offsets = [0, 0, 2], sizes = [8, 23, 1], strides = [1, 1, 1]} : vector<8x23x8xf32> to vector<8x23x1xf32>
    %91 = vector.extract_strided_slice %82 {offsets = [0, 0, 2], sizes = [8, 23, 1], strides = [1, 1, 1]} : vector<8x23x8xf32> to vector<8x23x1xf32>
    %92 = vector.extract_strided_slice %82 {offsets = [0, 0, 3], sizes = [8, 23, 1], strides = [1, 1, 1]} : vector<8x23x8xf32> to vector<8x23x1xf32>
    %93 = vector.extract_strided_slice %82 {offsets = [0, 0, 3], sizes = [8, 23, 1], strides = [1, 1, 1]} : vector<8x23x8xf32> to vector<8x23x1xf32>
    %94 = vector.extract_strided_slice %82 {offsets = [0, 0, 3], sizes = [8, 23, 1], strides = [1, 1, 1]} : vector<8x23x8xf32> to vector<8x23x1xf32>
    %95 = vector.extract_strided_slice %82 {offsets = [0, 0, 4], sizes = [8, 23, 1], strides = [1, 1, 1]} : vector<8x23x8xf32> to vector<8x23x1xf32>
    %96 = vector.extract_strided_slice %82 {offsets = [0, 0, 4], sizes = [8, 23, 1], strides = [1, 1, 1]} : vector<8x23x8xf32> to vector<8x23x1xf32>
    %97 = vector.extract_strided_slice %82 {offsets = [0, 0, 4], sizes = [8, 23, 1], strides = [1, 1, 1]} : vector<8x23x8xf32> to vector<8x23x1xf32>
    %98 = vector.extract_strided_slice %82 {offsets = [0, 0, 5], sizes = [8, 23, 1], strides = [1, 1, 1]} : vector<8x23x8xf32> to vector<8x23x1xf32>
    %99 = vector.extract_strided_slice %82 {offsets = [0, 0, 5], sizes = [8, 23, 1], strides = [1, 1, 1]} : vector<8x23x8xf32> to vector<8x23x1xf32>
    %100 = vector.extract_strided_slice %82 {offsets = [0, 0, 5], sizes = [8, 23, 1], strides = [1, 1, 1]} : vector<8x23x8xf32> to vector<8x23x1xf32>
    %101 = vector.extract_strided_slice %82 {offsets = [0, 0, 6], sizes = [8, 23, 1], strides = [1, 1, 1]} : vector<8x23x8xf32> to vector<8x23x1xf32>
    %102 = vector.extract_strided_slice %82 {offsets = [0, 0, 6], sizes = [8, 23, 1], strides = [1, 1, 1]} : vector<8x23x8xf32> to vector<8x23x1xf32>
    %103 = vector.extract_strided_slice %82 {offsets = [0, 0, 6], sizes = [8, 23, 1], strides = [1, 1, 1]} : vector<8x23x8xf32> to vector<8x23x1xf32>
    %104 = vector.extract_strided_slice %82 {offsets = [0, 0, 7], sizes = [8, 23, 1], strides = [1, 1, 1]} : vector<8x23x8xf32> to vector<8x23x1xf32>
    %105 = vector.extract_strided_slice %82 {offsets = [0, 0, 7], sizes = [8, 23, 1], strides = [1, 1, 1]} : vector<8x23x8xf32> to vector<8x23x1xf32>
    %106 = tpu.concatenate %83, %84, %85, %86, %87, %88, %89, %90, %91, %92, %93, %94, %95, %96, %97, %98 in 2 : vector<8x23x1xf32>, vector<8x23x1xf32>, vector<8x23x1xf32>, vector<8x23x1xf32>, vector<8x23x1xf32>, vector<8x23x1xf32>, vector<8x23x1xf32>, vector<8x23x1xf32>, vector<8x23x1xf32>, vector<8x23x1xf32>, vector<8x23x1xf32>, vector<8x23x1xf32>, vector<8x23x1xf32>, vector<8x23x1xf32>, vector<8x23x1xf32>, vector<8x23x1xf32> -> vector<8x23x16xf32>
    %107 = tpu.concatenate %99, %100, %101, %102, %103, %104, %105 in 2 : vector<8x23x1xf32>, vector<8x23x1xf32>, vector<8x23x1xf32>, vector<8x23x1xf32>, vector<8x23x1xf32>, vector<8x23x1xf32>, vector<8x23x1xf32> -> vector<8x23x7xf32>
    %108 = tpu.concatenate %106, %107 in 2 : vector<8x23x16xf32>, vector<8x23x7xf32> -> vector<8x23x23xf32>
    %c0_8 = arith.constant 0 : index
    %c0_9 = arith.constant 0 : index
    %c0_10 = arith.constant 0 : index
    %109 = vector.load %arg4[%c0_8, %c0_9, %c0_10] : memref<8x23x23xf32, #tpu.memory_space<vmem>>, vector<8x23x23xf32>
    tpu.vector_store %arg4[%c0_8, %c0_9, %c0_10], %108 {strides = array<i32>} : memref<8x23x23xf32, #tpu.memory_space<vmem>>, vector<8x23x23xf32>,
    return
  }
  func.func @transform_0(%arg0: i32) -> (i32, i32, i32) {
    %c0_i32 = arith.constant 0 : i32
    %c0_i32_0 = arith.constant 0 : i32
    %c0_i32_1 = arith.constant 0 : i32
    %c0_i32_2 = arith.constant 0 : i32
    return %c0_i32, %c0_i32_0, %c0_i32_1 : i32, i32, i32
  }
  func.func @transform_1(%arg0: i32) -> (i32, i32, i32) {
    %c0_i32 = arith.constant 0 : i32
    %c0_i32_0 = arith.constant 0 : i32
    %c0_i32_1 = arith.constant 0 : i32
    %c0_i32_2 = arith.constant 0 : i32
    return %c0_i32, %c0_i32_0, %c0_i32_1 : i32, i32, i32
  }
  func.func @transform_2(%arg0: i32) -> (i32, i32, i32) {
    %c0_i32 = arith.constant 0 : i32
    %c0_i32_0 = arith.constant 0 : i32
    %c0_i32_1 = arith.constant 0 : i32
    %c0_i32_2 = arith.constant 0 : i32
    return %c0_i32, %c0_i32_0, %c0_i32_1 : i32, i32, i32
  }
  func.func @transform_3(%arg0: i32) -> (i32, i32, i32) {
    %c0_i32 = arith.constant 0 : i32
    %c0_i32_0 = arith.constant 0 : i32
    %c0_i32_1 = arith.constant 0 : i32
    %c0_i32_2 = arith.constant 0 : i32
    return %c0_i32, %c0_i32_0, %c0_i32_1 : i32, i32, i32
  }
}

</mosaic_0001>

<bundles_post_ra>
// kernel: tpu_custom_call.1
= control target key start
LH: loop header
LB: loop body
LE: loop exit
PB: predicated region body
PF: predicated region fallthrough
CT: control target
= control target key end

     0   :  { %9 = vsyncpa [#allocation3], 0  ;;  %s9557_s0 = inlined_call_operand.hbm [shape: f32[8,16,16], index: 0, kind: input, shape index: {}]   ;;  %s9558_s1 = inlined_call_operand.hbm [shape: f32[8,8,8], index: 1, kind: input, shape index: {}]   ;;  %s9559_s2 = inlined_call_operand.hbm [shape: f32[8,24,24], index: 2, kind: output, shape index: {0}]   ;;  %s9560_s3 = inlined_call_operand.vmem [shape: f32[8,23,23], index: 3, kind: output, shape index: {1}]  }
   0x1   :  { %10 = vsyncpa [#allocation6], 0 }
   0x2   :  { %11 = vsyncpa [#allocation4], 0  ;;  %s16_s14 = sshll.u32 %s9557_s0, 4  ;;  %s4006_s15 = smov [#allocation2]   ;;  %s17_s14 = int_to_ptr.hbm [resolvable:$true] %s16_s14 }
   0x3   :  { %s18_s16 = sshll.u32 %s4006_s15, 4  ;;  %s29_s19 = sshll.u32 %s9558_s1, 4  ;;  %s19_s16 = int_to_ptr.vmem [resolvable:$true] %s18_s16  ;;  %s30_s19 = int_to_ptr.hbm [resolvable:$true] %s29_s19 }
   0x4   :  { %s4007_s20 = smov 128   ;;  %s4008_s21 = smov 8  }
   0x5   :  { %24 = dma.hbm_to_vmem [thread:$0]  %s17_s14, 2048, %s19_s16, [#allocation3], %s4007_s20, %s4007_s20, %s4008_s21  }
   0x6   :  { %s4009_s22 = smov [#allocation5]  }
   0x7   :  { %s31_s23 = sshll.u32 %s4009_s22, 4  ;;  %s32_s23 = int_to_ptr.vmem [resolvable:$true] %s31_s23 }
   0x8   :  { %37 = dma.hbm_to_vmem [thread:$0]  %s30_s19, 1024, %s32_s23, [#allocation6], %s4007_s20, %s4007_s20, %s4008_s21  }
   0x9   :  { %4000 = dma.done.wait [#allocation3], 2048  }
   0xa   :  { %4001 = vsyncadd [#allocation3], 4294965248 }
   0xb   :  { %4002 = dma.done.wait [#allocation6], 1024  }
   0xc   :  { %4003 = vsyncadd [#allocation6], 4294966272  ;;  %vm206_vm0 = vcmask 1040384   ;;  %vm215_vm1 = vcmask 1041408   ;;  %vm224_vm2 = vcmask 1042432   ;;  %vm233_vm3 = vcmask 1043456  }
   0xd   :  { %v4062_v0 = vld [vmem:[#allocation2 + $0x10] sm:$0xff]  ;;  %v49_v1 = vld [vmem:[#allocation2 + $0x18] sm:$0xff]  ;;  %vm242_vm4 = vcmask 1044480   ;;  %vm251_vm5 = vcmask 1045504   ;;  %vm9716_vm6 = vcmask 1046528   ;;  %v4064_v2 = vld [vmem:[#allocation2 + $0x8] sm:$0xff] }
   0xe   :  { %v4067_v3 = vrot.slane %v4062_v0, 5  ;;  %v119_v4 = vrot.slane %v4062_v0, 4  ;;  %v135_v5 = vrot.slane %v4062_v0, 3  ;;  %v159_v6 = vrot.slane %v49_v1, 4  ;;  %v46_v7 = vld [vmem:[#allocation2] sm:$0xff]  ;;  %s4010_s0 = smov 1  }
   0xf   :  { %v175_v8 = vrot.slane %v49_v1, 3  ;;  %v191_v9 = vrot.slane %v49_v1, 2  ;;  %v326_v10 = vrot.slane %v49_v1, 1  ;;  %v4072_v11 = vrot.slane %v4064_v2, 2  ;;  %v51_v48 = vld [vmem:[#allocation2 + $0x28] sm:$0xff]  ;;  %v50_v53 = vld [vmem:[#allocation2 + $0x20] sm:$0xff] }
  0x10   :  { %v270_v12 = vsel %vm206_vm0, %v4067_v3, %v119_v4  ;;  %v325_v13 = vrot.slane %v4064_v2, 1  ;;  %v341_v14 = vrot.slane %v4064_v2, 7  ;;  %v70_v15 = vrot.slane %v46_v7, 7  ;;  %s4011_s1 = smov 2   ;;  %s4012_s24 = smov 3  }
  0x11   :  { %v278_v16 = vsel %vm215_vm1, %v270_v12, %v119_v4  ;;  %v358_v17 = vsel %vm206_vm0, %v191_v9, %v326_v10  ;;  %v86_v18 = vrot.slane %v46_v7, 6  ;;  %v102_v19 = vrot.slane %v46_v7, 5  ;;  %v4143_v12 = vld [vmem:[#allocation2 + $0x38] sm:$0xff]  ;;  %s4013_s25 = smov 4   ;;  %s4014_s26 = smov 5  }
  0x12   :  { %v286_v20 = vsel %vm224_vm2, %v278_v16, %v135_v5  ;;  %v366_v21 = vsel %vm215_vm1, %v358_v17, %v191_v9  ;;  %v357_v22 = vsel %vm206_vm0, %v4072_v11, %v325_v13  ;;  %v118_v23 = vrot.slane %v46_v7, 4  ;;  %s4015_s27 = smov 6   ;;  %s4016_s28 = smov 118  }
  0x13   :  { %v294_v24 = vsel %vm233_vm3, %v286_v20, %v159_v6  ;;  %v365_v25 = vsel %vm215_vm1, %v357_v22, %v4072_v11  ;;  %v207_v26 = vsel %vm206_vm0, %v46_v7, %v70_v15  ;;  %v342_v27 = vrot.slane %v49_v1, 7  ;;  %s4017_s29 = smov 119   ;;  %s4018_s30 = smov 120  }
  0x14   :  { %v302_v28 = vsel %vm242_vm4, %v294_v24, %v175_v8  ;;  %v373_v29 = vsel %vm224_vm2, %v365_v25, %v325_v13  ;;  %v216_v30 = vsel %vm215_vm1, %v207_v26, %v70_v15  ;;  %v269_v31 = vsel %vm206_vm0, %v102_v19, %v118_v23  ;;  %s4019_s4 = smov 121   ;;  %s4020_s5 = smov 16  }
  0x15   :  { %v310_v32 = vsel %vm251_vm5, %v302_v28, %v175_v8  ;;  %v381_v33 = vsel %vm233_vm3, %v373_v29, %v325_v13  ;;  %v225_v34 = vsel %vm224_vm2, %v216_v30, %v86_v18  ;;  %v374_v35 = vsel %vm224_vm2, %v366_v21, %v326_v10  ;;  %s4021_s6 = smov 7   ;;  %s4022_s7 = smov 9  }
  0x16   :  { %v4097_v36 = vsel %vm9716_vm6, %v310_v32, %v191_v9  ;;  %v389_v37 = vsel %vm242_vm4, %v381_v33, %v4064_v2  ;;  %v234_v38 = vsel %vm233_vm3, %v225_v34, %v86_v18  ;;  %v382_v39 = vsel %vm233_vm3, %v374_v35, %v326_v10  ;;  %s4023_s8 = smov 10   ;;  %s4024_s9 = smov 123  }
  0x17   :  { %445 = vrot.lane.b32.xlu2 %v4097_v36, %s4010_s0  ;;  %v397_v40 = vsel %vm251_vm5, %v389_v37, %v4064_v2  ;;  %v243_v41 = vsel %vm242_vm4, %v234_v38, %v102_v19  ;;  %v390_v42 = vsel %vm242_vm4, %v382_v39, %v49_v1  ;;  %v71_v43 = vrot.slane %v4062_v0, 7  ;;  %s4025_s10 = smov 124   ;;  %s4026_s11 = smov 125  }
  0x18   :  { %v4111_v44 = vsel %vm9716_vm6, %v397_v40, %v341_v14  ;;  %v252_v45 = vsel %vm251_vm5, %v243_v41, %v86_v18  ;;  %v398_v46 = vsel %vm251_vm5, %v390_v42, %v49_v1  ;;  %v87_v47 = vrot.slane %v4062_v0, 6  ;;  %s4027_s12 = smov 126   ;;  %s4028_s13 = smov 127  }
  0x19   :  { %441 = vrot.lane.b32.xlu1 %v4111_v44, %s4010_s0  ;;  %v4119_v49 = vsel %vm9716_vm6, %v252_v45, %v102_v19  ;;  %v4122_v50 = vsel %vm9716_vm6, %v398_v46, %v342_v27  ;;  %v208_v51 = vsel %vm206_vm0, %v4062_v0, %v71_v43  ;;  %v134_v52 = vrot.slane %v46_v7, 3  ;;  %v4186_v46 = vld [vmem:[#allocation2 + $0x48] sm:$0xff]  ;;  %s4029_s16 = smov [#allocation7]   ;;  %s3886_s22 = sshll.u32 %s9559_s2, 4  ;;  %s3887_s22 = int_to_ptr.hbm [resolvable:$true] %s3886_s22 }
  0x1a   :  { %437 = vrot.lane.b32.xlu0 %v4119_v49, %s4010_s0  ;;  %v217_v54 = vsel %vm215_vm1, %v208_v51, %v71_v43  ;;  %v158_v55 = vrot.slane %v4064_v2, 4  ;;  %v174_v56 = vrot.slane %v4064_v2, 3  ;;  %v277_v57 = vsel %vm215_vm1, %v269_v31, %v118_v23  ;;  %v52_v23 = vld [vmem:[#allocation2 + $0x30] sm:$0xff]  ;;  %s3884_s17 = sshll.u32 %s4029_s16, 4  ;;  %s3885_s17 = int_to_ptr.vmem [resolvable:$true] %s3884_s17 }
  0x1b   :  { %v226_v58 = vsel %vm224_vm2, %v217_v54, %v87_v47  ;;  %v285_v59 = vsel %vm224_vm2, %v277_v57, %v134_v52  ;;  %v192_v60 = vrot.slane %v51_v48, 2  ;;  %v327_v61 = vrot.slane %v51_v48, 1  ;;  %v54_v57 = vld [vmem:[#allocation2 + $0x40] sm:$0xff] }
  0x1c   :  { %v235_v62 = vsel %vm233_vm3, %v226_v58, %v87_v47  ;;  %v293_v63 = vsel %vm233_vm3, %v285_v59, %v158_v55  ;;  %v343_v0 = vrot.slane %v51_v48, 7  ;;  %v104_v1 = vrot.slane %v50_v53, 5 }
  0x1d   :  { %v244_v4 = vsel %vm242_vm4, %v235_v62, %v4067_v3  ;;  %v301_v5 = vsel %vm242_vm4, %v293_v63, %v174_v56  ;;  %v359_v2 = vsel %vm206_vm0, %v192_v60, %v327_v61  ;;  %v120_v6 = vrot.slane %v50_v53, 4 }
  0x1e   :  { %v253_v7 = vsel %vm251_vm5, %v244_v4, %v87_v47  ;;  %v309_v8 = vsel %vm251_vm5, %v301_v5, %v174_v56  ;;  %v367_v9 = vsel %vm215_vm1, %v359_v2, %v192_v60  ;;  %v136_v10 = vrot.slane %v50_v53, 3 }
  0x1f   :  { %447 = vrot.lane.b32.xlu2 %v4122_v50, %s4010_s0  ;;  %v4149_v13 = vsel %vm9716_vm6, %v253_v7, %v4067_v3  ;;  %v4153_v14 = vsel %vm9716_vm6, %v309_v8, %v4072_v11  ;;  %v375_v15 = vsel %vm224_vm2, %v367_v9, %v327_v61  ;;  %v160_v16 = vrot.slane %v51_v48, 4 }
  0x20   :  { %v383_v17 = vsel %vm233_vm3, %v375_v15, %v327_v61  ;;  %v176_v18 = vrot.slane %v51_v48, 3  ;;  %v271_v19 = vsel %vm206_vm0, %v104_v1, %v120_v6  ;;  %v72_v20 = vrot.slane %v50_v53, 7 }
  0x21   :  { %443 = vrot.lane.b32.xlu1 %v4149_v13, %s4010_s0  ;;  %v391_v21 = vsel %vm242_vm4, %v383_v17, %v51_v48  ;;  %v279_v3 = vsel %vm215_vm1, %v271_v19, %v120_v6  ;;  %v88_v22 = vrot.slane %v50_v53, 6  ;;  %v193_v11 = vrot.slane %v4143_v12, 2 }
  0x22   :  { %439 = vrot.lane.b32.xlu0 %v4153_v14, %s4010_s0  ;;  %v399_v24 = vsel %vm251_vm5, %v391_v21, %v51_v48  ;;  %v287_v25 = vsel %vm224_vm2, %v279_v3, %v136_v10  ;;  %v209_v26 = vsel %vm206_vm0, %v50_v53, %v72_v20  ;;  %v328_v27 = vrot.slane %v4143_v12, 1  ;;  %v4229_v3 = vld [vmem:[#allocation2 + $0x58] sm:$0xff] }
  0x23   :  { %v4170_v28 = vsel %vm9716_vm6, %v399_v24, %v343_v0  ;;  %v295_v29 = vsel %vm233_vm3, %v287_v25, %v160_v16  ;;  %v218_v30 = vsel %vm215_vm1, %v209_v26, %v72_v20  ;;  %v344_v31 = vrot.slane %v4143_v12, 7 }
  0x24   :  { %v303_v32 = vsel %vm242_vm4, %v295_v29, %v176_v18  ;;  %v227_v33 = vsel %vm224_vm2, %v218_v30, %v88_v22  ;;  %v360_v34 = vsel %vm206_vm0, %v193_v11, %v328_v27  ;;  %v105_v35 = vrot.slane %v52_v23, 5  ;;  %v56_v30 = vld [vmem:[#allocation2 + $0x50] sm:$0xff] }
  0x25   :  { %v311_v37 = vsel %vm251_vm5, %v303_v32, %v176_v18  ;;  %v236_v38 = vsel %vm233_vm3, %v227_v33, %v88_v22  ;;  %v368_v39 = vsel %vm215_vm1, %v360_v34, %v193_v11  ;;  %v121_v40 = vrot.slane %v52_v23, 4 }
  0x26   :  { %v4182_v41 = vsel %vm9716_vm6, %v311_v37, %v192_v60  ;;  %v245_v42 = vsel %vm242_vm4, %v236_v38, %v104_v1  ;;  %v376_v43 = vsel %vm224_vm2, %v368_v39, %v328_v27  ;;  %v137_v45 = vrot.slane %v52_v23, 3 }
  0x27   :  { %453 = vrot.lane.b32.xlu2 %v4170_v28, %s4010_s0  ;;  %v254_v47 = vsel %vm251_vm5, %v245_v42, %v88_v22  ;;  %v384_v48 = vsel %vm233_vm3, %v376_v43, %v328_v27  ;;  %v161_v51 = vrot.slane %v4143_v12, 4  ;;  %v177_v52 = vrot.slane %v4143_v12, 3 }
  0x28   :  { %v4195_v53 = vsel %vm9716_vm6, %v254_v47, %v104_v1  ;;  %v392_v54 = vsel %vm242_vm4, %v384_v48, %v4143_v12  ;;  %v272_v55 = vsel %vm206_vm0, %v105_v35, %v121_v40  ;;  %v73_v56 = vrot.slane %v52_v23, 7 }
  0x29   :  { %451 = vrot.lane.b32.xlu1 %v4182_v41, %s4010_s0  ;;  %v400_v58 = vsel %vm251_vm5, %v392_v54, %v4143_v12  ;;  %v280_v59 = vsel %vm215_vm1, %v272_v55, %v121_v40  ;;  %v89_v60 = vrot.slane %v52_v23, 6  ;;  %v194_v61 = vrot.slane %v4186_v46, 2 }
  0x2a   :  { %449 = vrot.lane.b32.xlu0 %v4195_v53, %s4010_s0  ;;  %v4209_v62 = vsel %vm9716_vm6, %v400_v58, %v344_v31  ;;  %v288_v63 = vsel %vm224_vm2, %v280_v59, %v137_v45  ;;  %v210_v0 = vsel %vm206_vm0, %v52_v23, %v73_v56  ;;  %v329_v1 = vrot.slane %v4186_v46, 1 }
  0x2b   :  { %v296_v4 = vsel %vm233_vm3, %v288_v63, %v161_v51  ;;  %v219_v5 = vsel %vm215_vm1, %v210_v0, %v73_v56  ;;  %v345_v2 = vrot.slane %v4186_v46, 7  ;;  %v106_v6 = vrot.slane %v54_v57, 5  ;;  %v4272_v63 = vld [vmem:[#allocation2 + $0x68] sm:$0xff] }
  0x2c   :  { %v304_v7 = vsel %vm242_vm4, %v296_v4, %v177_v52  ;;  %v228_v8 = vsel %vm224_vm2, %v219_v5, %v89_v60  ;;  %v361_v9 = vsel %vm206_vm0, %v194_v61, %v329_v1  ;;  %v122_v10 = vrot.slane %v54_v57, 4 }
  0x2d   :  { %v312_v12 = vsel %vm251_vm5, %v304_v7, %v177_v52  ;;  %v237_v15 = vsel %vm233_vm3, %v228_v8, %v89_v60  ;;  %v369_v16 = vsel %vm215_vm1, %v361_v9, %v194_v61  ;;  %v138_v17 = vrot.slane %v54_v57, 3  ;;  %v58_v9 = vld [vmem:[#allocation2 + $0x60] sm:$0xff] }
  0x2e   :  { %v4224_v18 = vsel %vm9716_vm6, %v312_v12, %v193_v11  ;;  %v246_v19 = vsel %vm242_vm4, %v237_v15, %v105_v35  ;;  %v377_v20 = vsel %vm224_vm2, %v369_v16, %v329_v1  ;;  %v162_v21 = vrot.slane %v4186_v46, 4 }
  0x2f   :  { %459 = vrot.lane.b32.xlu2 %v4209_v62, %s4010_s0  ;;  %v255_v22 = vsel %vm251_vm5, %v246_v19, %v89_v60  ;;  %v385_v23 = vsel %vm233_vm3, %v377_v20, %v329_v1  ;;  %v178_v24 = vrot.slane %v4186_v46, 3  ;;  %v273_v11 = vsel %vm206_vm0, %v106_v6, %v122_v10 }
  0x30   :  { %v4238_v25 = vsel %vm9716_vm6, %v255_v22, %v105_v35  ;;  %v393_v26 = vsel %vm242_vm4, %v385_v23, %v4186_v46  ;;  %v281_v27 = vsel %vm215_vm1, %v273_v11, %v122_v10  ;;  %v74_v29 = vrot.slane %v54_v57, 7 }
  0x31   :  { %457 = vrot.lane.b32.xlu1 %v4224_v18, %s4010_s0  ;;  %v401_v31 = vsel %vm251_vm5, %v393_v26, %v4186_v46  ;;  %v289_v32 = vsel %vm224_vm2, %v281_v27, %v138_v17  ;;  %v90_v33 = vrot.slane %v54_v57, 6  ;;  %v195_v34 = vrot.slane %v4229_v3, 2 }
  0x32   :  { %455 = vrot.lane.b32.xlu0 %v4238_v25, %s4010_s0  ;;  %v4252_v35 = vsel %vm9716_vm6, %v401_v31, %v345_v2  ;;  %v297_v37 = vsel %vm233_vm3, %v289_v32, %v162_v21  ;;  %v211_v38 = vsel %vm206_vm0, %v54_v57, %v74_v29  ;;  %v330_v39 = vrot.slane %v4229_v3, 1 }
  0x33   :  { %v305_v40 = vsel %vm242_vm4, %v297_v37, %v178_v24  ;;  %v220_v42 = vsel %vm215_vm1, %v211_v38, %v74_v29  ;;  %v346_v43 = vrot.slane %v4229_v3, 7  ;;  %v107_v45 = vrot.slane %v56_v30, 5 }
  0x34   :  { %v313_v46 = vsel %vm251_vm5, %v305_v40, %v178_v24  ;;  %v229_v47 = vsel %vm224_vm2, %v220_v42, %v90_v33  ;;  %v362_v48 = vsel %vm206_vm0, %v195_v34, %v330_v39  ;;  %v123_v51 = vrot.slane %v56_v30, 4 }
  0x35   :  { %v4264_v52 = vsel %vm9716_vm6, %v313_v46, %v194_v61  ;;  %v238_v54 = vsel %vm233_vm3, %v229_v47, %v90_v33  ;;  %v370_v55 = vsel %vm215_vm1, %v362_v48, %v195_v34  ;;  %v139_v56 = vrot.slane %v56_v30, 3 }
  0x36   :  { %v247_v57 = vsel %vm242_vm4, %v238_v54, %v106_v6  ;;  %v378_v58 = vsel %vm224_vm2, %v370_v55, %v330_v39  ;;  %v163_v59 = vrot.slane %v4229_v3, 4  ;;  %v179_v60 = vrot.slane %v4229_v3, 3  ;;  %v60_v55 = vld [vmem:[#allocation2 + $0x70] sm:$0xff] }
  0x37   :  { %465 = vrot.lane.b32.xlu2 %v4252_v35, %s4010_s0  ;;  %v256_v61 = vsel %vm251_vm5, %v247_v57, %v90_v33  ;;  %v386_v0 = vsel %vm233_vm3, %v378_v58, %v330_v39  ;;  %v274_v1 = vsel %vm206_vm0, %v107_v45, %v123_v51  ;;  %v75_v4 = vrot.slane %v56_v30, 7  ;;  %v61_v33 = vld [vmem:[#allocation2 + $0x78] sm:$0xff] }
  0x38   :  { %v4280_v5 = vsel %vm9716_vm6, %v256_v61, %v106_v6  ;;  %v394_v2 = vsel %vm242_vm4, %v386_v0, %v4229_v3  ;;  %v282_v7 = vsel %vm215_vm1, %v274_v1, %v123_v51  ;;  %v91_v8 = vrot.slane %v56_v30, 6 }
  0x39   :  { %463 = vrot.lane.b32.xlu1 %v4264_v52, %s4010_s0  ;;  %v402_v10 = vsel %vm251_vm5, %v394_v2, %v4229_v3  ;;  %v290_v12 = vsel %vm224_vm2, %v282_v7, %v139_v56  ;;  %v212_v15 = vsel %vm206_vm0, %v56_v30, %v75_v4  ;;  %v196_v6 = vrot.slane %v4272_v63, 2 }
  0x3a   :  { %461 = vrot.lane.b32.xlu0 %v4280_v5, %s4010_s0  ;;  %v4295_v16 = vsel %vm9716_vm6, %v402_v10, %v346_v43  ;;  %v298_v17 = vsel %vm233_vm3, %v290_v12, %v163_v59  ;;  %v221_v19 = vsel %vm215_vm1, %v212_v15, %v75_v4  ;;  %v331_v20 = vrot.slane %v4272_v63, 1 }
  0x3b   :  { %v306_v21 = vsel %vm242_vm4, %v298_v17, %v179_v60  ;;  %v230_v3 = vsel %vm224_vm2, %v221_v19, %v91_v8  ;;  %v347_v22 = vrot.slane %v4272_v63, 7  ;;  %v108_v23 = vrot.slane %v58_v9, 5 }
  0x3c   :  { %v314_v24 = vsel %vm251_vm5, %v306_v21, %v179_v60  ;;  %v239_v11 = vsel %vm233_vm3, %v230_v3, %v91_v8  ;;  %v363_v26 = vsel %vm206_vm0, %v196_v6, %v331_v20  ;;  %v124_v27 = vrot.slane %v58_v9, 4 }
  0x3d   :  { %v4307_v29 = vsel %vm9716_vm6, %v314_v24, %v195_v34  ;;  %v248_v30 = vsel %vm242_vm4, %v239_v11, %v107_v45  ;;  %v371_v31 = vsel %vm215_vm1, %v363_v26, %v196_v6  ;;  %v140_v32 = vrot.slane %v58_v9, 3 }
  0x3e   :  { %v257_v37 = vsel %vm251_vm5, %v248_v30, %v91_v8  ;;  %v379_v38 = vsel %vm224_vm2, %v371_v31, %v331_v20  ;;  %v164_v39 = vrot.slane %v4272_v63, 4  ;;  %v180_v40 = vrot.slane %v4272_v63, 3 }
  0x3f   :  { %471 = vrot.lane.b32.xlu2 %v4295_v16, %s4010_s0  ;;  %v4318_v34 = vsel %vm9716_vm6, %v257_v37, %v107_v45  ;;  %v387_v42 = vsel %vm233_vm3, %v379_v38, %v331_v20  ;;  %v275_v43 = vsel %vm206_vm0, %v108_v23, %v124_v27  ;;  %v76_v46 = vrot.slane %v58_v9, 7 }
  0x40   :  { %v395_v47 = vsel %vm242_vm4, %v387_v42, %v4272_v63  ;;  %v283_v48 = vsel %vm215_vm1, %v275_v43, %v124_v27  ;;  %v92_v51 = vrot.slane %v58_v9, 6  ;;  %v197_v54 = vrot.slane %v61_v33, 2 }
  0x41   :  { %469 = vrot.lane.b32.xlu1 %v4307_v29, %s4010_s0  ;;  %v403_v45 = vsel %vm251_vm5, %v395_v47, %v4272_v63  ;;  %v291_v56 = vsel %vm224_vm2, %v283_v48, %v140_v32  ;;  %v213_v57 = vsel %vm206_vm0, %v58_v9, %v76_v46  ;;  %v332_v58 = vrot.slane %v61_v33, 1 }
  0x42   :  { %467 = vrot.lane.b32.xlu0 %v4318_v34, %s4010_s0  ;;  %v4334_v59 = vsel %vm9716_vm6, %v403_v45, %v347_v22  ;;  %v299_v60 = vsel %vm233_vm3, %v291_v56, %v164_v39  ;;  %v222_v61 = vsel %vm215_vm1, %v213_v57, %v76_v46  ;;  %v109_v4 = vrot.slane %v60_v55, 5 }
  0x43   :  { %v307_v0 = vsel %vm242_vm4, %v299_v60, %v180_v40  ;;  %v231_v1 = vsel %vm224_vm2, %v222_v61, %v92_v51  ;;  %v364_v63 = vsel %vm206_vm0, %v197_v54, %v332_v58  ;;  %v125_v9 = vrot.slane %v60_v55, 4 }
  0x44   :  { %v315_v2 = vsel %vm251_vm5, %v307_v0, %v180_v40  ;;  %v240_v7 = vsel %vm233_vm3, %v231_v1, %v92_v51  ;;  %v372_v8 = vsel %vm215_vm1, %v364_v63, %v197_v54  ;;  %v141_v17 = vrot.slane %v60_v55, 3 }
  0x45   :  { %v4345_v10 = vsel %vm9716_vm6, %v315_v2, %v196_v6  ;;  %v249_v12 = vsel %vm242_vm4, %v240_v7, %v108_v23  ;;  %v380_v15 = vsel %vm224_vm2, %v372_v8, %v332_v58  ;;  %v165_v21 = vrot.slane %v61_v33, 4 }
  0x46   :  { %9884 = vst [vmem:[#allocation11_spill] sm:$0xff] %v4345_v10  ;;  %v258_v19 = vsel %vm251_vm5, %v249_v12, %v92_v51  ;;  %v388_v20 = vsel %vm233_vm3, %v380_v15, %v332_v58  ;;  %v181_v3 = vrot.slane %v61_v33, 3  ;;  %v276_v24 = vsel %vm206_vm0, %v109_v4, %v125_v9 }
  0x47   :  { %477 = vrot.lane.b32.xlu2 %v4334_v59, %s4010_s0  ;;  %v4354_v22 = vsel %vm9716_vm6, %v258_v19, %v108_v23  ;;  %v396_v6 = vsel %vm242_vm4, %v388_v20, %v61_v33  ;;  %v77_v11 = vrot.slane %v60_v55, 7  ;;  %v348_v26 = vrot.slane %v61_v33, 7 }
  0x48   :  { %9885 = vst [vmem:[#allocation12_spill] sm:$0xff] %v4354_v22  ;;  %v284_v27 = vsel %vm215_vm1, %v276_v24, %v125_v9  ;;  %v93_v30 = vrot.slane %v60_v55, 6  ;;  %v404_v31 = vsel %vm251_vm5, %v396_v6, %v61_v33  ;;  %vm9725_vm7 = vcmask 7168  }
  0x49   :  { %475 = vrot.lane.b32.xlu1 %v4345_v10, %s4010_s0  ;;  %v292_v32 = vsel %vm224_vm2, %v284_v27, %v141_v17  ;;  %v214_v37 = vsel %vm206_vm0, %v60_v55, %v77_v11  ;;  %v4371_v42 = vsel %vm9716_vm6, %v404_v31, %v348_v26  ;;  %vm9726_vm8 = vcmask 15360  }
  0x4a   :  { %473 = vrot.lane.b32.xlu0 %v4354_v22, %s4010_s0  ;;  %v300_v23 = vsel %vm233_vm3, %v292_v32, %v165_v21  ;;  %v223_v38 = vsel %vm215_vm1, %v214_v37, %v77_v11  ;;  %vm9728_vm9 = vcmask 23552   ;;  %vm9733_vm10 = vcmask 31744  }
  0x4b   :  { %v308_v39 = vsel %vm242_vm4, %v300_v23, %v181_v3  ;;  %v232_v40 = vsel %vm224_vm2, %v223_v38, %v93_v30  ;;  %vm9734_vm11 = vcmask 39936   ;;  %vm9752_vm12 = vcmask 48128  }
  0x4c   :  { %v316_v33 = vsel %vm251_vm5, %v308_v39, %v181_v3  ;;  %v241_v43 = vsel %vm233_vm3, %v232_v40, %v93_v30  ;;  %vm9735_vm13 = vcmask 56320   ;;  %vm9718_vm14 = vcmask 64512  }
  0x4d   :  { %v250_v46 = vsel %vm242_vm4, %v241_v43, %v109_v4  ;;  %v4377_v47 = vsel %vm9716_vm6, %v316_v33, %v197_v54  ;;  %vm9719_vm15 = vcmask 72704  }
  0x4e   :  { %9886 = vst [vmem:[#allocation13_spill] sm:$0xff] %v4377_v47  ;;  %v259_v48 = vsel %vm251_vm5, %v250_v46, %v93_v30 }
  0x4f   :  { %483 = vrot.lane.b32.xlu2 %v4371_v42, %s4010_s0  ;;  %v4383_v51 = vsel %vm9716_vm6, %v259_v48, %v109_v4  ;;  %vm1094_vm6 = vcmask 80896  }
  0x50   :  { %9887 = vst [vmem:[#allocation14_spill] sm:$0xff] %v4383_v51 }
  0x51   :  { %481 = vrot.lane.b32.xlu1 %v4377_v47, %s4010_s0 }
  0x52   :  { %479 = vrot.lane.b32.xlu0 %v4383_v51, %s4010_s0 }
  0x57   :  { %513 = vrot.lane.b32.xlu2 %v4111_v44, %s4011_s1 }
  0x59   :  { %511 = vrot.lane.b32.xlu1 %v4153_v14, %s4011_s1 }
  0x5a   :  { %509 = vrot.lane.b32.xlu0 %v4119_v49, %s4011_s1 }
  0x5f   :  { %519 = vrot.lane.b32.xlu2 %v4122_v50, %s4011_s1 }
  0x61   :  { %517 = vrot.lane.b32.xlu1 %v4097_v36, %s4011_s1 }
  0x62   :  { %515 = vrot.lane.b32.xlu0 %v4149_v13, %s4011_s1 }
  0x67   :  { %525 = vrot.lane.b32.xlu2 %v4170_v28, %s4011_s1 }
  0x69   :  { %523 = vrot.lane.b32.xlu1 %v4182_v41, %s4011_s1 }
  0x6a   :  { %521 = vrot.lane.b32.xlu0 %v4195_v53, %s4011_s1 }
  0x6f   :  { %531 = vrot.lane.b32.xlu2 %v4209_v62, %s4011_s1 }
  0x71   :  { %529 = vrot.lane.b32.xlu1 %v4224_v18, %s4011_s1  ;;  %v4411_v54 = vpop.permute.xlu2 %445 }
  0x72   :  { %527 = vrot.lane.b32.xlu0 %v4238_v25, %s4011_s1 }
  0x77   :  { %537 = vrot.lane.b32.xlu2 %v4252_v35, %s4011_s1 }
  0x79   :  { %535 = vrot.lane.b32.xlu1 %v4264_v52, %s4011_s1  ;;  %v4419_v55 = vpop.permute.xlu2 %447 }
  0x7a   :  { %533 = vrot.lane.b32.xlu0 %v4280_v5, %s4011_s1 }
  0x7f   :  { %543 = vrot.lane.b32.xlu2 %v4295_v16, %s4011_s1 }
  0x81   :  { %541 = vrot.lane.b32.xlu1 %v4307_v29, %s4011_s1  ;;  %v4427_v45 = vpop.permute.xlu2 %453 }
  0x82   :  { %539 = vrot.lane.b32.xlu0 %v4318_v34, %s4011_s1 }
  0x87   :  { %549 = vrot.lane.b32.xlu2 %v4334_v59, %s4011_s1 }
  0x89   :  { %547 = vrot.lane.b32.xlu1 %v4345_v10, %s4011_s1  ;;  %v4435_v56 = vpop.permute.xlu2 %459 }
  0x8a   :  { %545 = vrot.lane.b32.xlu0 %v4354_v22, %s4011_s1 }
  0x8b   :  { %v4439_v57 = vpop.permute.xlu1 %441 }
  0x8c   :  { %v4441_v58 = vpop.permute.xlu0 %437 }
  0x8f   :  { %555 = vrot.lane.b32.xlu2 %v4371_v42, %s4011_s1 }
  0x91   :  { %553 = vrot.lane.b32.xlu1 %v4377_v47, %s4011_s1  ;;  %v4447_v60 = vpop.permute.xlu2 %465 }
  0x92   :  { %551 = vrot.lane.b32.xlu0 %v4383_v51, %s4011_s1 }
  0x93   :  { %v4451_v61 = vpop.permute.xlu1 %443 }
  0x94   :  { %v4453_v0 = vpop.permute.xlu0 %439 }
  0x97   :  { %585 = vrot.lane.b32.xlu2 %v4111_v44, %s4012_s24 }
  0x99   :  { %583 = vrot.lane.b32.xlu1 %v4153_v14, %s4012_s24  ;;  %v4459_v1 = vpop.permute.xlu2 %471 }
  0x9a   :  { %581 = vrot.lane.b32.xlu0 %v4119_v49, %s4012_s24 }
  0x9b   :  { %v4463_v63 = vpop.permute.xlu1 %451 }
  0x9c   :  { %v4465_v4 = vpop.permute.xlu0 %449 }
  0x9f   :  { %591 = vrot.lane.b32.xlu2 %v4122_v50, %s4012_s24 }
  0xa1   :  { %589 = vrot.lane.b32.xlu1 %v4097_v36, %s4012_s24  ;;  %v4471_v2 = vpop.permute.xlu2 %477 }
  0xa2   :  { %587 = vrot.lane.b32.xlu0 %v4149_v13, %s4012_s24 }
  0xa3   :  { %v4475_v7 = vpop.permute.xlu1 %457 }
  0xa4   :  { %v4477_v8 = vpop.permute.xlu0 %455 }
  0xa7   :  { %597 = vrot.lane.b32.xlu2 %v4170_v28, %s4012_s24 }
  0xa9   :  { %595 = vrot.lane.b32.xlu1 %v4182_v41, %s4012_s24  ;;  %v4483_v9 = vpop.permute.xlu2 %483 }
  0xaa   :  { %593 = vrot.lane.b32.xlu0 %v4195_v53, %s4012_s24 }
  0xab   :  { %v4487_v12 = vpop.permute.xlu1 %463 }
  0xac   :  { %v4489_v15 = vpop.permute.xlu0 %461 }
  0xaf   :  { %603 = vrot.lane.b32.xlu2 %v4209_v62, %s4012_s24 }
  0xb1   :  { %601 = vrot.lane.b32.xlu1 %v4224_v18, %s4012_s24  ;;  %v4495_v17 = vpop.permute.xlu2 %513 }
  0xb2   :  { %599 = vrot.lane.b32.xlu0 %v4238_v25, %s4012_s24 }
  0xb3   :  { %v4499_v19 = vpop.permute.xlu1 %469 }
  0xb4   :  { %v4501_v20 = vpop.permute.xlu0 %467 }
  0xb7   :  { %609 = vrot.lane.b32.xlu2 %v4252_v35, %s4012_s24 }
  0xb9   :  { %607 = vrot.lane.b32.xlu1 %v4264_v52, %s4012_s24  ;;  %v4507_v21 = vpop.permute.xlu2 %519 }
  0xba   :  { %605 = vrot.lane.b32.xlu0 %v4280_v5, %s4012_s24 }
  0xbb   :  { %v4511_v3 = vpop.permute.xlu1 %475 }
  0xbc   :  { %9888 = vst [vmem:[#allocation15_spill] sm:$0xff] %v4511_v3  ;;  %v4513_v6 = vpop.permute.xlu0 %473 }
  0xbd   :  { %9889 = vst [vmem:[#allocation16_spill] sm:$0xff] %v4513_v6 }
  0xbf   :  { %615 = vrot.lane.b32.xlu2 %v4295_v16, %s4012_s24 }
  0xc1   :  { %613 = vrot.lane.b32.xlu1 %v4307_v29, %s4012_s24  ;;  %v4519_v24 = vpop.permute.xlu2 %525 }
  0xc2   :  { %611 = vrot.lane.b32.xlu0 %v4318_v34, %s4012_s24 }
  0xc3   :  { %v4523_v11 = vpop.permute.xlu1 %481 }
  0xc4   :  { %9890 = vst [vmem:[#allocation17_spill] sm:$0xff] %v4523_v11  ;;  %v4525_v26 = vpop.permute.xlu0 %479 }
  0xc5   :  { %9891 = vst [vmem:[#allocation18_spill] sm:$0xff] %v4525_v26 }
  0xc7   :  { %621 = vrot.lane.b32.xlu2 %v4334_v59, %s4012_s24 }
  0xc9   :  { %619 = vrot.lane.b32.xlu1 %v4345_v10, %s4012_s24  ;;  %v4531_v27 = vpop.permute.xlu2 %531 }
  0xca   :  { %617 = vrot.lane.b32.xlu0 %v4354_v22, %s4012_s24 }
  0xcb   :  { %v4535_v30 = vpop.permute.xlu1 %511 }
  0xcc   :  { %v4537_v31 = vpop.permute.xlu0 %509 }
  0xcf   :  { %627 = vrot.lane.b32.xlu2 %v4371_v42, %s4012_s24 }
  0xd1   :  { %625 = vrot.lane.b32.xlu1 %v4377_v47, %s4012_s24  ;;  %v4543_v32 = vpop.permute.xlu2 %537 }
  0xd2   :  { %9892 = vst [vmem:[#allocation19_spill] sm:$0xff] %v4543_v32  ;;  %623 = vrot.lane.b32.xlu0 %v4383_v51, %s4012_s24 }
  0xd3   :  { %v4547_v37 = vpop.permute.xlu1 %517 }
  0xd4   :  { %9893 = vst [vmem:[#allocation20_spill] sm:$0xff] %v4547_v37  ;;  %v4549_v23 = vpop.permute.xlu0 %515 }
  0xd5   :  { %9894 = vst [vmem:[#allocation21_spill] sm:$0xff] %v4549_v23 }
  0xd7   :  { %657 = vrot.lane.b32.xlu2 %v4111_v44, %s4013_s25 }
  0xd9   :  { %655 = vrot.lane.b32.xlu1 %v4153_v14, %s4013_s25  ;;  %v4555_v38 = vpop.permute.xlu2 %543 }
  0xda   :  { %9895 = vst [vmem:[#allocation22_spill] sm:$0xff] %v4555_v38  ;;  %653 = vrot.lane.b32.xlu0 %v4119_v49, %s4013_s25 }
  0xdb   :  { %v4559_v39 = vpop.permute.xlu1 %523 }
  0xdc   :  { %9896 = vst [vmem:[#allocation23_spill] sm:$0xff] %v4559_v39  ;;  %v4561_v40 = vpop.permute.xlu0 %521 }
  0xdd   :  { %9897 = vst [vmem:[#allocation24_spill] sm:$0xff] %v4561_v40 }
  0xdf   :  { %663 = vrot.lane.b32.xlu2 %v4122_v50, %s4013_s25 }
  0xe1   :  { %661 = vrot.lane.b32.xlu1 %v4097_v36, %s4013_s25  ;;  %v4567_v33 = vpop.permute.xlu2 %549 }
  0xe2   :  { %9898 = vst [vmem:[#allocation25_spill] sm:$0xff] %v4567_v33  ;;  %659 = vrot.lane.b32.xlu0 %v4149_v13, %s4013_s25 }
  0xe3   :  { %v4571_v43 = vpop.permute.xlu1 %529 }
  0xe4   :  { %9899 = vst [vmem:[#allocation26_spill] sm:$0xff] %v4571_v43  ;;  %v4573_v46 = vpop.permute.xlu0 %527 }
  0xe5   :  { %9900 = vst [vmem:[#allocation27_spill] sm:$0xff] %v4573_v46 }
  0xe7   :  { %669 = vrot.lane.b32.xlu2 %v4170_v28, %s4013_s25 }
  0xe9   :  { %667 = vrot.lane.b32.xlu1 %v4182_v41, %s4013_s25  ;;  %v4579_v48 = vpop.permute.xlu2 %555 }
  0xea   :  { %9901 = vst [vmem:[#allocation28_spill] sm:$0xff] %v4579_v48  ;;  %665 = vrot.lane.b32.xlu0 %v4195_v53, %s4013_s25 }
  0xeb   :  { %v4583_v26 = vpop.permute.xlu1 %535 }
  0xec   :  { %9902 = vst [vmem:[#allocation29_spill] sm:$0xff] %v4583_v26  ;;  %v4585_v11 = vpop.permute.xlu0 %533 }
  0xed   :  { %9903 = vst [vmem:[#allocation30_spill] sm:$0xff] %v4585_v11 }
  0xef   :  { %675 = vrot.lane.b32.xlu2 %v4209_v62, %s4013_s25 }
  0xf1   :  { %673 = vrot.lane.b32.xlu1 %v4224_v18, %s4013_s25  ;;  %v4591_v6 = vpop.permute.xlu2 %585 }
  0xf2   :  { %9904 = vst [vmem:[#allocation31_spill] sm:$0xff] %v4591_v6  ;;  %671 = vrot.lane.b32.xlu0 %v4238_v25, %s4013_s25 }
  0xf3   :  { %v4595_v46 = vpop.permute.xlu1 %541 }
  0xf4   :  { %9905 = vst [vmem:[#allocation32_spill] sm:$0xff] %v4595_v46  ;;  %v4597_v48 = vpop.permute.xlu0 %539 }
  0xf5   :  { %9906 = vst [vmem:[#allocation33_spill] sm:$0xff] %v4597_v48 }
  0xf7   :  { %681 = vrot.lane.b32.xlu2 %v4252_v35, %s4013_s25 }
  0xf9   :  { %679 = vrot.lane.b32.xlu1 %v4264_v52, %s4013_s25  ;;  %v4603_v11 = vpop.permute.xlu2 %591 }
  0xfa   :  { %9907 = vst [vmem:[#allocation34_spill] sm:$0xff] %v4603_v11  ;;  %677 = vrot.lane.b32.xlu0 %v4280_v5, %s4013_s25 }
  0xfb   :  { %v4607_v26 = vpop.permute.xlu1 %547 }
  0xfc   :  { %9908 = vst [vmem:[#allocation35_spill] sm:$0xff] %v4607_v26  ;;  %v4609_v6 = vpop.permute.xlu0 %545 }
  0xfd   :  { %9909 = vst [vmem:[#allocation36_spill] sm:$0xff] %v4609_v6 }
  0xff   :  { %687 = vrot.lane.b32.xlu2 %v4295_v16, %s4013_s25 }
 0x101   :  { %685 = vrot.lane.b32.xlu1 %v4307_v29, %s4013_s25  ;;  %v4615_v48 = vpop.permute.xlu2 %597 }
 0x102   :  { %9910 = vst [vmem:[#allocation37_spill] sm:$0xff] %v4615_v48  ;;  %683 = vrot.lane.b32.xlu0 %v4318_v34, %s4013_s25 }
 0x103   :  { %v4619_v46 = vpop.permute.xlu1 %553 }
 0x104   :  { %9911 = vst [vmem:[#allocation38_spill] sm:$0xff] %v4619_v46  ;;  %v4621_v11 = vpop.permute.xlu0 %551 }
 0x105   :  { %9912 = vst [vmem:[#allocation39_spill] sm:$0xff] %v4621_v11 }
 0x107   :  { %693 = vrot.lane.b32.xlu2 %v4334_v59, %s4013_s25 }
 0x109   :  { %691 = vrot.lane.b32.xlu1 %v4345_v10, %s4013_s25  ;;  %v4627_v6 = vpop.permute.xlu2 %603 }
 0x10a   :  { %9913 = vst [vmem:[#allocation40_spill] sm:$0xff] %v4627_v6  ;;  %689 = vrot.lane.b32.xlu0 %v4354_v22, %s4013_s25 }
 0x10b   :  { %v4631_v26 = vpop.permute.xlu1 %583 }
 0x10c   :  { %9914 = vst [vmem:[#allocation41_spill] sm:$0xff] %v4631_v26  ;;  %v4633_v48 = vpop.permute.xlu0 %581 }
 0x10d   :  { %9915 = vst [vmem:[#allocation42_spill] sm:$0xff] %v4633_v48 }
 0x10f   :  { %699 = vrot.lane.b32.xlu2 %v4371_v42, %s4013_s25 }
 0x111   :  { %697 = vrot.lane.b32.xlu1 %v4377_v47, %s4013_s25  ;;  %v4639_v11 = vpop.permute.xlu2 %609 }
 0x112   :  { %9916 = vst [vmem:[#allocation43_spill] sm:$0xff] %v4639_v11  ;;  %695 = vrot.lane.b32.xlu0 %v4383_v51, %s4013_s25 }
 0x113   :  { %v4643_v46 = vpop.permute.xlu1 %589 }
 0x114   :  { %9917 = vst [vmem:[#allocation44_spill] sm:$0xff] %v4643_v46  ;;  %v4645_v6 = vpop.permute.xlu0 %587 }
 0x115   :  { %9918 = vst [vmem:[#allocation45_spill] sm:$0xff] %v4645_v6 }
 0x117   :  { %729 = vrot.lane.b32.xlu2 %v4111_v44, %s4014_s26 }
 0x119   :  { %727 = vrot.lane.b32.xlu1 %v4153_v14, %s4014_s26  ;;  %v4651_v48 = vpop.permute.xlu2 %615 }
 0x11a   :  { %9919 = vst [vmem:[#allocation46_spill] sm:$0xff] %v4651_v48  ;;  %725 = vrot.lane.b32.xlu0 %v4119_v49, %s4014_s26 }
 0x11b   :  { %v4655_v11 = vpop.permute.xlu1 %595 }
 0x11c   :  { %9920 = vst [vmem:[#allocation47_spill] sm:$0xff] %v4655_v11  ;;  %v4657_v26 = vpop.permute.xlu0 %593 }
 0x11d   :  { %9921 = vst [vmem:[#allocation48_spill] sm:$0xff] %v4657_v26 }
 0x11f   :  { %735 = vrot.lane.b32.xlu2 %v4122_v50, %s4014_s26 }
 0x121   :  { %733 = vrot.lane.b32.xlu1 %v4097_v36, %s4014_s26  ;;  %v4663_v6 = vpop.permute.xlu2 %621 }
 0x122   :  { %9922 = vst [vmem:[#allocation49_spill] sm:$0xff] %v4663_v6  ;;  %731 = vrot.lane.b32.xlu0 %v4149_v13, %s4014_s26 }
 0x123   :  { %v4667_v46 = vpop.permute.xlu1 %601 }
 0x124   :  { %9923 = vst [vmem:[#allocation50_spill] sm:$0xff] %v4667_v46  ;;  %v4669_v48 = vpop.permute.xlu0 %599 }
 0x125   :  { %9924 = vst [vmem:[#allocation51_spill] sm:$0xff] %v4669_v48 }
 0x127   :  { %741 = vrot.lane.b32.xlu2 %v4170_v28, %s4014_s26 }
 0x129   :  { %739 = vrot.lane.b32.xlu1 %v4182_v41, %s4014_s26  ;;  %v4675_v26 = vpop.permute.xlu2 %627 }
 0x12a   :  { %9925 = vst [vmem:[#allocation52_spill] sm:$0xff] %v4675_v26  ;;  %737 = vrot.lane.b32.xlu0 %v4195_v53, %s4014_s26 }
 0x12b   :  { %v4679_v11 = vpop.permute.xlu1 %607 }
 0x12c   :  { %9926 = vst [vmem:[#allocation53_spill] sm:$0xff] %v4679_v11  ;;  %v4681_v6 = vpop.permute.xlu0 %605 }
 0x12d   :  { %9927 = vst [vmem:[#allocation54_spill] sm:$0xff] %v4681_v6 }
 0x12f   :  { %747 = vrot.lane.b32.xlu2 %v4209_v62, %s4014_s26 }
 0x131   :  { %745 = vrot.lane.b32.xlu1 %v4224_v18, %s4014_s26  ;;  %v4687_v48 = vpop.permute.xlu2 %657 }
 0x132   :  { %9928 = vst [vmem:[#allocation55_spill] sm:$0xff] %v4687_v48  ;;  %743 = vrot.lane.b32.xlu0 %v4238_v25, %s4014_s26 }
 0x133   :  { %v4691_v46 = vpop.permute.xlu1 %613 }
 0x134   :  { %9929 = vst [vmem:[#allocation56_spill] sm:$0xff] %v4691_v46  ;;  %v4693_v26 = vpop.permute.xlu0 %611 }
 0x135   :  { %9930 = vst [vmem:[#allocation57_spill] sm:$0xff] %v4693_v26 }
 0x137   :  { %753 = vrot.lane.b32.xlu2 %v4252_v35, %s4014_s26 }
 0x139   :  { %751 = vrot.lane.b32.xlu1 %v4264_v52, %s4014_s26  ;;  %v4699_v6 = vpop.permute.xlu2 %663 }
 0x13a   :  { %9931 = vst [vmem:[#allocation58_spill] sm:$0xff] %v4699_v6  ;;  %749 = vrot.lane.b32.xlu0 %v4280_v5, %s4014_s26 }
 0x13b   :  { %v4703_v11 = vpop.permute.xlu1 %619 }
 0x13c   :  { %9932 = vst [vmem:[#allocation59_spill] sm:$0xff] %v4703_v11  ;;  %v4705_v48 = vpop.permute.xlu0 %617 }
 0x13d   :  { %9933 = vst [vmem:[#allocation60_spill] sm:$0xff] %v4705_v48 }
 0x13f   :  { %759 = vrot.lane.b32.xlu2 %v4295_v16, %s4014_s26 }
 0x141   :  { %757 = vrot.lane.b32.xlu1 %v4307_v29, %s4014_s26  ;;  %v4711_v26 = vpop.permute.xlu2 %669 }
 0x142   :  { %9934 = vst [vmem:[#allocation61_spill] sm:$0xff] %v4711_v26  ;;  %755 = vrot.lane.b32.xlu0 %v4318_v34, %s4014_s26 }
 0x143   :  { %v4715_v46 = vpop.permute.xlu1 %625 }
 0x144   :  { %9935 = vst [vmem:[#allocation62_spill] sm:$0xff] %v4715_v46  ;;  %v4717_v6 = vpop.permute.xlu0 %623 }
 0x145   :  { %9936 = vst [vmem:[#allocation63_spill] sm:$0xff] %v4717_v6 }
 0x147   :  { %765 = vrot.lane.b32.xlu2 %v4334_v59, %s4014_s26 }
 0x149   :  { %763 = vrot.lane.b32.xlu1 %v4345_v10, %s4014_s26  ;;  %v4723_v48 = vpop.permute.xlu2 %675 }
 0x14a   :  { %9937 = vst [vmem:[#allocation64_spill] sm:$0xff] %v4723_v48  ;;  %761 = vrot.lane.b32.xlu0 %v4354_v22, %s4014_s26 }
 0x14b   :  { %v4727_v11 = vpop.permute.xlu1 %655 }
 0x14c   :  { %9938 = vst [vmem:[#allocation65_spill] sm:$0xff] %v4727_v11  ;;  %v4729_v26 = vpop.permute.xlu0 %653 }
 0x14d   :  { %9939 = vst [vmem:[#allocation66_spill] sm:$0xff] %v4729_v26 }
 0x14f   :  { %771 = vrot.lane.b32.xlu2 %v4371_v42, %s4014_s26 }
 0x151   :  { %769 = vrot.lane.b32.xlu1 %v4377_v47, %s4014_s26  ;;  %v4735_v6 = vpop.permute.xlu2 %681 }
 0x152   :  { %9940 = vst [vmem:[#allocation67_spill] sm:$0xff] %v4735_v6  ;;  %767 = vrot.lane.b32.xlu0 %v4383_v51, %s4014_s26 }
 0x153   :  { %v4739_v46 = vpop.permute.xlu1 %661 }
 0x154   :  { %9941 = vst [vmem:[#allocation68_spill] sm:$0xff] %v4739_v46  ;;  %v4741_v48 = vpop.permute.xlu0 %659 }
 0x155   :  { %9942 = vst [vmem:[#allocation69_spill] sm:$0xff] %v4741_v48 }
 0x157   :  { %801 = vrot.lane.b32.xlu2 %v4111_v44, %s4015_s27 }
 0x159   :  { %799 = vrot.lane.b32.xlu1 %v4153_v14, %s4015_s27  ;;  %v4747_v26 = vpop.permute.xlu2 %687 }
 0x15a   :  { %9943 = vst [vmem:[#allocation70_spill] sm:$0xff] %v4747_v26  ;;  %797 = vrot.lane.b32.xlu0 %v4119_v49, %s4015_s27 }
 0x15b   :  { %v4751_v11 = vpop.permute.xlu1 %667 }
 0x15c   :  { %9944 = vst [vmem:[#allocation71_spill] sm:$0xff] %v4751_v11  ;;  %v4753_v6 = vpop.permute.xlu0 %665 }
 0x15d   :  { %9945 = vst [vmem:[#allocation72_spill] sm:$0xff] %v4753_v6 }
 0x15f   :  { %807 = vrot.lane.b32.xlu2 %v4122_v50, %s4015_s27 }
 0x161   :  { %805 = vrot.lane.b32.xlu1 %v4097_v36, %s4015_s27  ;;  %v4759_v48 = vpop.permute.xlu2 %693 }
 0x162   :  { %9946 = vst [vmem:[#allocation73_spill] sm:$0xff] %v4759_v48  ;;  %803 = vrot.lane.b32.xlu0 %v4149_v13, %s4015_s27 }
 0x163   :  { %v4763_v46 = vpop.permute.xlu1 %673 }
 0x164   :  { %9947 = vst [vmem:[#allocation74_spill] sm:$0xff] %v4763_v46  ;;  %v4765_v26 = vpop.permute.xlu0 %671 }
 0x165   :  { %9948 = vst [vmem:[#allocation75_spill] sm:$0xff] %v4765_v26 }
 0x167   :  { %813 = vrot.lane.b32.xlu2 %v4170_v28, %s4015_s27 }
 0x169   :  { %811 = vrot.lane.b32.xlu1 %v4182_v41, %s4015_s27  ;;  %v4771_v6 = vpop.permute.xlu2 %699 }
 0x16a   :  { %9949 = vst [vmem:[#allocation76_spill] sm:$0xff] %v4771_v6  ;;  %809 = vrot.lane.b32.xlu0 %v4195_v53, %s4015_s27 }
 0x16b   :  { %v4775_v11 = vpop.permute.xlu1 %679 }
 0x16c   :  { %9950 = vst [vmem:[#allocation77_spill] sm:$0xff] %v4775_v11  ;;  %v4777_v48 = vpop.permute.xlu0 %677 }
 0x16d   :  { %9951 = vst [vmem:[#allocation78_spill] sm:$0xff] %v4777_v48 }
 0x16f   :  { %819 = vrot.lane.b32.xlu2 %v4209_v62, %s4015_s27 }
 0x171   :  { %817 = vrot.lane.b32.xlu1 %v4224_v18, %s4015_s27  ;;  %v4783_v26 = vpop.permute.xlu2 %729 }
 0x172   :  { %9952 = vst [vmem:[#allocation79_spill] sm:$0xff] %v4783_v26  ;;  %815 = vrot.lane.b32.xlu0 %v4238_v25, %s4015_s27 }
 0x173   :  { %v4787_v46 = vpop.permute.xlu1 %685 }
 0x174   :  { %9953 = vst [vmem:[#allocation80_spill] sm:$0xff] %v4787_v46  ;;  %v4789_v6 = vpop.permute.xlu0 %683 }
 0x175   :  { %9954 = vst [vmem:[#allocation81_spill] sm:$0xff] %v4789_v6 }
 0x177   :  { %825 = vrot.lane.b32.xlu2 %v4252_v35, %s4015_s27 }
 0x179   :  { %823 = vrot.lane.b32.xlu1 %v4264_v52, %s4015_s27  ;;  %v4795_v48 = vpop.permute.xlu2 %735 }
 0x17a   :  { %9955 = vst [vmem:[#allocation82_spill] sm:$0xff] %v4795_v48  ;;  %821 = vrot.lane.b32.xlu0 %v4280_v5, %s4015_s27 }
 0x17b   :  { %v4799_v11 = vpop.permute.xlu1 %691 }
 0x17c   :  { %9956 = vst [vmem:[#allocation83_spill] sm:$0xff] %v4799_v11  ;;  %v4801_v26 = vpop.permute.xlu0 %689 }
 0x17d   :  { %9957 = vst [vmem:[#allocation84_spill] sm:$0xff] %v4801_v26 }
 0x17f   :  { %831 = vrot.lane.b32.xlu2 %v4295_v16, %s4015_s27 }
 0x181   :  { %829 = vrot.lane.b32.xlu1 %v4307_v29, %s4015_s27  ;;  %v4807_v6 = vpop.permute.xlu2 %741 }
 0x182   :  { %9958 = vst [vmem:[#allocation85_spill] sm:$0xff] %v4807_v6  ;;  %827 = vrot.lane.b32.xlu0 %v4318_v34, %s4015_s27 }
 0x183   :  { %v4811_v46 = vpop.permute.xlu1 %697 }
 0x184   :  { %9959 = vst [vmem:[#allocation86_spill] sm:$0xff] %v4811_v46  ;;  %v4813_v48 = vpop.permute.xlu0 %695 }
 0x185   :  { %9960 = vst [vmem:[#allocation87_spill] sm:$0xff] %v4813_v48 }
 0x187   :  { %837 = vrot.lane.b32.xlu2 %v4334_v59, %s4015_s27 }
 0x189   :  { %835 = vrot.lane.b32.xlu1 %v4345_v10, %s4015_s27  ;;  %v4819_v26 = vpop.permute.xlu2 %747 }
 0x18a   :  { %9961 = vst [vmem:[#allocation88_spill] sm:$0xff] %v4819_v26  ;;  %833 = vrot.lane.b32.xlu0 %v4354_v22, %s4015_s27 }
 0x18b   :  { %v4823_v11 = vpop.permute.xlu1 %727 }
 0x18c   :  { %9962 = vst [vmem:[#allocation89_spill] sm:$0xff] %v4823_v11  ;;  %v4825_v6 = vpop.permute.xlu0 %725 }
 0x18d   :  { %9963 = vst [vmem:[#allocation90_spill] sm:$0xff] %v4825_v6 }
 0x18f   :  { %843 = vrot.lane.b32.xlu2 %v4371_v42, %s4015_s27 }
 0x191   :  { %841 = vrot.lane.b32.xlu1 %v4377_v47, %s4015_s27  ;;  %v4831_v48 = vpop.permute.xlu2 %753 }
 0x192   :  { %9964 = vst [vmem:[#allocation91_spill] sm:$0xff] %v4831_v48  ;;  %839 = vrot.lane.b32.xlu0 %v4383_v51, %s4015_s27 }
 0x193   :  { %v4835_v46 = vpop.permute.xlu1 %733 }
 0x194   :  { %9965 = vst [vmem:[#allocation92_spill] sm:$0xff] %v4835_v46  ;;  %v4837_v26 = vpop.permute.xlu0 %731 }
 0x195   :  { %9966 = vst [vmem:[#allocation93_spill] sm:$0xff] %v4837_v26 }
 0x197   :  { %1248 = vrot.lane.b32.xlu2 %v4111_v44, %s4016_s28 }
 0x199   :  { %1246 = vrot.lane.b32.xlu1 %v4153_v14, %s4016_s28  ;;  %v4843_v6 = vpop.permute.xlu2 %759 }
 0x19a   :  { %9967 = vst [vmem:[#allocation94_spill] sm:$0xff] %v4843_v6  ;;  %1244 = vrot.lane.b32.xlu0 %v4119_v49, %s4016_s28 }
 0x19b   :  { %v4847_v11 = vpop.permute.xlu1 %739 }
 0x19c   :  { %9968 = vst [vmem:[#allocation95_spill] sm:$0xff] %v4847_v11  ;;  %v4849_v48 = vpop.permute.xlu0 %737 }
 0x19d   :  { %9969 = vst [vmem:[#allocation96_spill] sm:$0xff] %v4849_v48 }
 0x19f   :  { %1254 = vrot.lane.b32.xlu2 %v4122_v50, %s4016_s28 }
 0x1a1   :  { %1252 = vrot.lane.b32.xlu1 %v4097_v36, %s4016_s28  ;;  %v4855_v26 = vpop.permute.xlu2 %765 }
 0x1a2   :  { %9970 = vst [vmem:[#allocation97_spill] sm:$0xff] %v4855_v26  ;;  %1250 = vrot.lane.b32.xlu0 %v4149_v13, %s4016_s28 }
 0x1a3   :  { %v4859_v46 = vpop.permute.xlu1 %745 }
 0x1a4   :  { %9971 = vst [vmem:[#allocation98_spill] sm:$0xff] %v4859_v46  ;;  %v4861_v6 = vpop.permute.xlu0 %743 }
 0x1a5   :  { %9972 = vst [vmem:[#allocation99_spill] sm:$0xff] %v4861_v6 }
 0x1a7   :  { %1260 = vrot.lane.b32.xlu2 %v4170_v28, %s4016_s28 }
 0x1a9   :  { %1258 = vrot.lane.b32.xlu1 %v4182_v41, %s4016_s28  ;;  %v4867_v48 = vpop.permute.xlu2 %771 }
 0x1aa   :  { %9973 = vst [vmem:[#allocation100_spill] sm:$0xff] %v4867_v48  ;;  %1256 = vrot.lane.b32.xlu0 %v4195_v53, %s4016_s28 }
 0x1ab   :  { %v4871_v11 = vpop.permute.xlu1 %751 }
 0x1ac   :  { %9974 = vst [vmem:[#allocation101_spill] sm:$0xff] %v4871_v11  ;;  %v4873_v26 = vpop.permute.xlu0 %749 }
 0x1ad   :  { %9975 = vst [vmem:[#allocation102_spill] sm:$0xff] %v4873_v26 }
 0x1af   :  { %1266 = vrot.lane.b32.xlu2 %v4209_v62, %s4016_s28 }
 0x1b1   :  { %1264 = vrot.lane.b32.xlu1 %v4224_v18, %s4016_s28  ;;  %v4879_v6 = vpop.permute.xlu2 %801 }
 0x1b2   :  { %9976 = vst [vmem:[#allocation103_spill] sm:$0xff] %v4879_v6  ;;  %1262 = vrot.lane.b32.xlu0 %v4238_v25, %s4016_s28 }
 0x1b3   :  { %v4883_v46 = vpop.permute.xlu1 %757 }
 0x1b4   :  { %9977 = vst [vmem:[#allocation104_spill] sm:$0xff] %v4883_v46  ;;  %v4885_v48 = vpop.permute.xlu0 %755 }
 0x1b5   :  { %9978 = vst [vmem:[#allocation105_spill] sm:$0xff] %v4885_v48 }
 0x1b7   :  { %1272 = vrot.lane.b32.xlu2 %v4252_v35, %s4016_s28 }
 0x1b9   :  { %1270 = vrot.lane.b32.xlu1 %v4264_v52, %s4016_s28  ;;  %v4891_v26 = vpop.permute.xlu2 %807 }
 0x1ba   :  { %9979 = vst [vmem:[#allocation106_spill] sm:$0xff] %v4891_v26  ;;  %1268 = vrot.lane.b32.xlu0 %v4280_v5, %s4016_s28 }
 0x1bb   :  { %v4895_v11 = vpop.permute.xlu1 %763 }
 0x1bc   :  { %9980 = vst [vmem:[#allocation107_spill] sm:$0xff] %v4895_v11  ;;  %v4897_v6 = vpop.permute.xlu0 %761 }
 0x1bd   :  { %9981 = vst [vmem:[#allocation108_spill] sm:$0xff] %v4897_v6 }
 0x1bf   :  { %1278 = vrot.lane.b32.xlu2 %v4295_v16, %s4016_s28 }
 0x1c1   :  { %1276 = vrot.lane.b32.xlu1 %v4307_v29, %s4016_s28  ;;  %v4903_v48 = vpop.permute.xlu2 %813 }
 0x1c2   :  { %9982 = vst [vmem:[#allocation109_spill] sm:$0xff] %v4903_v48  ;;  %1274 = vrot.lane.b32.xlu0 %v4318_v34, %s4016_s28 }
 0x1c3   :  { %v4907_v46 = vpop.permute.xlu1 %769 }
 0x1c4   :  { %9983 = vst [vmem:[#allocation110_spill] sm:$0xff] %v4907_v46  ;;  %v4909_v26 = vpop.permute.xlu0 %767 }
 0x1c5   :  { %9984 = vst [vmem:[#allocation111_spill] sm:$0xff] %v4909_v26 }
 0x1c7   :  { %1284 = vrot.lane.b32.xlu2 %v4334_v59, %s4016_s28 }
 0x1c9   :  { %1282 = vrot.lane.b32.xlu1 %v4345_v10, %s4016_s28  ;;  %v4915_v6 = vpop.permute.xlu2 %819 }
 0x1ca   :  { %9985 = vst [vmem:[#allocation112_spill] sm:$0xff] %v4915_v6  ;;  %1280 = vrot.lane.b32.xlu0 %v4354_v22, %s4016_s28 }
 0x1cb   :  { %v4919_v11 = vpop.permute.xlu1 %799 }
 0x1cc   :  { %9986 = vst [vmem:[#allocation113_spill] sm:$0xff] %v4919_v11  ;;  %v4921_v48 = vpop.permute.xlu0 %797 }
 0x1cd   :  { %9987 = vst [vmem:[#allocation114_spill] sm:$0xff] %v4921_v48 }
 0x1cf   :  { %1290 = vrot.lane.b32.xlu2 %v4371_v42, %s4016_s28 }
 0x1d1   :  { %1288 = vrot.lane.b32.xlu1 %v4377_v47, %s4016_s28  ;;  %v4927_v26 = vpop.permute.xlu2 %825 }
 0x1d2   :  { %9988 = vst [vmem:[#allocation115_spill] sm:$0xff] %v4927_v26  ;;  %1286 = vrot.lane.b32.xlu0 %v4383_v51, %s4016_s28 }
 0x1d3   :  { %v4931_v46 = vpop.permute.xlu1 %805 }
 0x1d4   :  { %9989 = vst [vmem:[#allocation116_spill] sm:$0xff] %v4931_v46  ;;  %v4933_v6 = vpop.permute.xlu0 %803 }
 0x1d5   :  { %9990 = vst [vmem:[#allocation117_spill] sm:$0xff] %v4933_v6 }
 0x1d7   :  { %1320 = vrot.lane.b32.xlu2 %v4111_v44, %s4017_s29 }
 0x1d9   :  { %1318 = vrot.lane.b32.xlu1 %v4153_v14, %s4017_s29  ;;  %v4939_v48 = vpop.permute.xlu2 %831 }
 0x1da   :  { %9991 = vst [vmem:[#allocation118_spill] sm:$0xff] %v4939_v48  ;;  %1316 = vrot.lane.b32.xlu0 %v4119_v49, %s4017_s29 }
 0x1db   :  { %v4943_v11 = vpop.permute.xlu1 %811 }
 0x1dc   :  { %9992 = vst [vmem:[#allocation119_spill] sm:$0xff] %v4943_v11  ;;  %v4945_v26 = vpop.permute.xlu0 %809 }
 0x1dd   :  { %9993 = vst [vmem:[#allocation120_spill] sm:$0xff] %v4945_v26 }
 0x1df   :  { %1326 = vrot.lane.b32.xlu2 %v4122_v50, %s4017_s29 }
 0x1e1   :  { %1324 = vrot.lane.b32.xlu1 %v4097_v36, %s4017_s29  ;;  %v4951_v6 = vpop.permute.xlu2 %837 }
 0x1e2   :  { %9994 = vst [vmem:[#allocation121_spill] sm:$0xff] %v4951_v6  ;;  %1322 = vrot.lane.b32.xlu0 %v4149_v13, %s4017_s29 }
 0x1e3   :  { %v4955_v46 = vpop.permute.xlu1 %817 }
 0x1e4   :  { %9995 = vst [vmem:[#allocation122_spill] sm:$0xff] %v4955_v46  ;;  %v4957_v48 = vpop.permute.xlu0 %815 }
 0x1e5   :  { %9996 = vst [vmem:[#allocation123_spill] sm:$0xff] %v4957_v48 }
 0x1e7   :  { %1332 = vrot.lane.b32.xlu2 %v4170_v28, %s4017_s29 }
 0x1e9   :  { %1330 = vrot.lane.b32.xlu1 %v4182_v41, %s4017_s29  ;;  %v4963_v26 = vpop.permute.xlu2 %843 }
 0x1ea   :  { %9997 = vst [vmem:[#allocation124_spill] sm:$0xff] %v4963_v26  ;;  %1328 = vrot.lane.b32.xlu0 %v4195_v53, %s4017_s29 }
 0x1eb   :  { %v4967_v11 = vpop.permute.xlu1 %823 }
 0x1ec   :  { %9998 = vst [vmem:[#allocation125_spill] sm:$0xff] %v4967_v11  ;;  %v4969_v6 = vpop.permute.xlu0 %821 }
 0x1ed   :  { %9999 = vst [vmem:[#allocation126_spill] sm:$0xff] %v4969_v6 }
 0x1ef   :  { %1338 = vrot.lane.b32.xlu2 %v4209_v62, %s4017_s29 }
 0x1f1   :  { %1336 = vrot.lane.b32.xlu1 %v4224_v18, %s4017_s29  ;;  %v4975_v48 = vpop.permute.xlu2 %1248 }
 0x1f2   :  { %1334 = vrot.lane.b32.xlu0 %v4238_v25, %s4017_s29 }
 0x1f3   :  { %v4979_v46 = vpop.permute.xlu1 %829 }
 0x1f4   :  { %10000 = vst [vmem:[#allocation127_spill] sm:$0xff] %v4979_v46  ;;  %v4981_v26 = vpop.permute.xlu0 %827 }
 0x1f5   :  { %10001 = vst [vmem:[#allocation128_spill] sm:$0xff] %v4981_v26 }
 0x1f7   :  { %1344 = vrot.lane.b32.xlu2 %v4252_v35, %s4017_s29 }
 0x1f9   :  { %1342 = vrot.lane.b32.xlu1 %v4264_v52, %s4017_s29  ;;  %v4987_v6 = vpop.permute.xlu2 %1254 }
 0x1fa   :  { %1340 = vrot.lane.b32.xlu0 %v4280_v5, %s4017_s29 }
 0x1fb   :  { %v4991_v11 = vpop.permute.xlu1 %835 }
 0x1fc   :  { %10002 = vst [vmem:[#allocation129_spill] sm:$0xff] %v4991_v11  ;;  %v4993_v43 = vpop.permute.xlu0 %833 }
 0x1fd   :  { %10003 = vst [vmem:[#allocation130_spill] sm:$0xff] %v4993_v43 }
 0x1ff   :  { %1350 = vrot.lane.b32.xlu2 %v4295_v16, %s4017_s29 }
 0x201   :  { %1348 = vrot.lane.b32.xlu1 %v4307_v29, %s4017_s29  ;;  %v4999_v26 = vpop.permute.xlu2 %1260 }
 0x202   :  { %1346 = vrot.lane.b32.xlu0 %v4318_v34, %s4017_s29 }
 0x203   :  { %v5003_v46 = vpop.permute.xlu1 %841 }
 0x204   :  { %10004 = vst [vmem:[#allocation131_spill] sm:$0xff] %v5003_v46  ;;  %v5005_v33 = vpop.permute.xlu0 %839 }
 0x205   :  { %10005 = vst [vmem:[#allocation132_spill] sm:$0xff] %v5005_v33 }
 0x207   :  { %1356 = vrot.lane.b32.xlu2 %v4334_v59, %s4017_s29 }
 0x209   :  { %1354 = vrot.lane.b32.xlu1 %v4345_v10, %s4017_s29  ;;  %v5011_v43 = vpop.permute.xlu2 %1266 }
 0x20a   :  { %10006 = vst [vmem:[#allocation133_spill] sm:$0xff] %v5011_v43  ;;  %1352 = vrot.lane.b32.xlu0 %v4354_v22, %s4017_s29 }
 0x20b   :  { %v5015_v11 = vpop.permute.xlu1 %1246 }
 0x20c   :  { %10007 = vst [vmem:[#allocation134_spill] sm:$0xff] %v5015_v11  ;;  %v5017_v40 = vpop.permute.xlu0 %1244 }
 0x20d   :  { %10008 = vst [vmem:[#allocation135_spill] sm:$0xff] %v5017_v40 }
 0x20f   :  { %1362 = vrot.lane.b32.xlu2 %v4371_v42, %s4017_s29 }
 0x211   :  { %1360 = vrot.lane.b32.xlu1 %v4377_v47, %s4017_s29  ;;  %v5023_v33 = vpop.permute.xlu2 %1272 }
 0x212   :  { %10009 = vst [vmem:[#allocation136_spill] sm:$0xff] %v5023_v33  ;;  %1358 = vrot.lane.b32.xlu0 %v4383_v51, %s4017_s29 }
 0x213   :  { %v5027_v46 = vpop.permute.xlu1 %1252 }
 0x214   :  { %10010 = vst [vmem:[#allocation137_spill] sm:$0xff] %v5027_v46  ;;  %v5029_v39 = vpop.permute.xlu0 %1250 }
 0x215   :  { %10011 = vst [vmem:[#allocation138_spill] sm:$0xff] %v5029_v39 }
 0x217   :  { %1392 = vrot.lane.b32.xlu2 %v4111_v44, %s4018_s30 }
 0x219   :  { %1390 = vrot.lane.b32.xlu1 %v4153_v14, %s4018_s30  ;;  %v5035_v40 = vpop.permute.xlu2 %1278 }
 0x21a   :  { %10012 = vst [vmem:[#allocation139_spill] sm:$0xff] %v5035_v40  ;;  %1388 = vrot.lane.b32.xlu0 %v4119_v49, %s4018_s30 }
 0x21b   :  { %v5039_v33 = vpop.permute.xlu1 %1258 }
 0x21c   :  { %10013 = vst [vmem:[#allocation140_spill] sm:$0xff] %v5039_v33  ;;  %v5041_v38 = vpop.permute.xlu0 %1256 }
 0x21d   :  { %10014 = vst [vmem:[#allocation141_spill] sm:$0xff] %v5041_v38 }
 0x21f   :  { %1398 = vrot.lane.b32.xlu2 %v4122_v50, %s4018_s30 }
 0x221   :  { %1396 = vrot.lane.b32.xlu1 %v4097_v36, %s4018_s30  ;;  %v5047_v39 = vpop.permute.xlu2 %1284 }
 0x222   :  { %10015 = vst [vmem:[#allocation142_spill] sm:$0xff] %v5047_v39  ;;  %1394 = vrot.lane.b32.xlu0 %v4149_v13, %s4018_s30 }
 0x223   :  { %v5051_v46 = vpop.permute.xlu1 %1264 }
 0x224   :  { %10016 = vst [vmem:[#allocation143_spill] sm:$0xff] %v5051_v46  ;;  %v5053_v40 = vpop.permute.xlu0 %1262 }
 0x225   :  { %10017 = vst [vmem:[#allocation144_spill] sm:$0xff] %v5053_v40 }
 0x227   :  { %1404 = vrot.lane.b32.xlu2 %v4170_v28, %s4018_s30 }
 0x229   :  { %1402 = vrot.lane.b32.xlu1 %v4182_v41, %s4018_s30  ;;  %v5059_v38 = vpop.permute.xlu2 %1290 }
 0x22a   :  { %10018 = vst [vmem:[#allocation145_spill] sm:$0xff] %v5059_v38  ;;  %1400 = vrot.lane.b32.xlu0 %v4195_v53, %s4018_s30 }
 0x22b   :  { %v5063_v33 = vpop.permute.xlu1 %1270 }
 0x22c   :  { %10019 = vst [vmem:[#allocation146_spill] sm:$0xff] %v5063_v33  ;;  %v5065_v39 = vpop.permute.xlu0 %1268 }
 0x22d   :  { %10020 = vst [vmem:[#allocation147_spill] sm:$0xff] %v5065_v39 }
 0x22f   :  { %1410 = vrot.lane.b32.xlu2 %v4209_v62, %s4018_s30 }
 0x231   :  { %1408 = vrot.lane.b32.xlu1 %v4224_v18, %s4018_s30  ;;  %v5071_v40 = vpop.permute.xlu2 %1320 }
 0x232   :  { %1406 = vrot.lane.b32.xlu0 %v4238_v25, %s4018_s30 }
 0x233   :  { %v5075_v46 = vpop.permute.xlu1 %1276 }
 0x234   :  { %10021 = vst [vmem:[#allocation148_spill] sm:$0xff] %v5075_v46  ;;  %v5077_v38 = vpop.permute.xlu0 %1274 }
 0x235   :  { %10022 = vst [vmem:[#allocation149_spill] sm:$0xff] %v5077_v38 }
 0x237   :  { %1416 = vrot.lane.b32.xlu2 %v4252_v35, %s4018_s30 }
 0x239   :  { %1414 = vrot.lane.b32.xlu1 %v4264_v52, %s4018_s30  ;;  %v5083_v39 = vpop.permute.xlu2 %1326 }
 0x23a   :  { %1412 = vrot.lane.b32.xlu0 %v4280_v5, %s4018_s30 }
 0x23b   :  { %v5087_v33 = vpop.permute.xlu1 %1282 }
 0x23c   :  { %10023 = vst [vmem:[#allocation150_spill] sm:$0xff] %v5087_v33  ;;  %v5089_v11 = vpop.permute.xlu0 %1280 }
 0x23d   :  { %10024 = vst [vmem:[#allocation151_spill] sm:$0xff] %v5089_v11 }
 0x23f   :  { %1422 = vrot.lane.b32.xlu2 %v4295_v16, %s4018_s30 }
 0x241   :  { %1420 = vrot.lane.b32.xlu1 %v4307_v29, %s4018_s30  ;;  %v5095_v38 = vpop.permute.xlu2 %1332 }
 0x242   :  { %1418 = vrot.lane.b32.xlu0 %v4318_v34, %s4018_s30 }
 0x243   :  { %v5099_v46 = vpop.permute.xlu1 %1288 }
 0x244   :  { %10025 = vst [vmem:[#allocation152_spill] sm:$0xff] %v5099_v46  ;;  %v5101_v23 = vpop.permute.xlu0 %1286 }
 0x245   :  { %10026 = vst [vmem:[#allocation153_spill] sm:$0xff] %v5101_v23 }
 0x247   :  { %1428 = vrot.lane.b32.xlu2 %v4334_v59, %s4018_s30 }
 0x249   :  { %1426 = vrot.lane.b32.xlu1 %v4345_v10, %s4018_s30  ;;  %v5107_v11 = vpop.permute.xlu2 %1338 }
 0x24a   :  { %10027 = vst [vmem:[#allocation154_spill] sm:$0xff] %v5107_v11  ;;  %1424 = vrot.lane.b32.xlu0 %v4354_v22, %s4018_s30 }
 0x24b   :  { %v5111_v33 = vpop.permute.xlu1 %1318 }
 0x24c   :  { %10028 = vst [vmem:[#allocation155_spill] sm:$0xff] %v5111_v33  ;;  %v5113_v43 = vpop.permute.xlu0 %1316 }
 0x24d   :  { %10029 = vst [vmem:[#allocation156_spill] sm:$0xff] %v5113_v43 }
 0x24f   :  { %1434 = vrot.lane.b32.xlu2 %v4371_v42, %s4018_s30 }
 0x251   :  { %1432 = vrot.lane.b32.xlu1 %v4377_v47, %s4018_s30  ;;  %v5119_v23 = vpop.permute.xlu2 %1344 }
 0x252   :  { %10030 = vst [vmem:[#allocation157_spill] sm:$0xff] %v5119_v23  ;;  %1430 = vrot.lane.b32.xlu0 %v4383_v51, %s4018_s30 }
 0x253   :  { %v5123_v46 = vpop.permute.xlu1 %1324 }
 0x254   :  { %10031 = vst [vmem:[#allocation158_spill] sm:$0xff] %v5123_v46  ;;  %v5125_v11 = vpop.permute.xlu0 %1322 }
 0x255   :  { %10032 = vst [vmem:[#allocation159_spill] sm:$0xff] %v5125_v11 }
 0x257   :  { %1464 = vrot.lane.b32.xlu2 %v4111_v44, %s4019_s4 }
 0x259   :  { %1462 = vrot.lane.b32.xlu1 %v4153_v14, %s4019_s4  ;;  %v5131_v43 = vpop.permute.xlu2 %1350 }
 0x25a   :  { %10033 = vst [vmem:[#allocation160_spill] sm:$0xff] %v5131_v43  ;;  %1460 = vrot.lane.b32.xlu0 %v4119_v49, %s4019_s4 }
 0x25b   :  { %v5135_v23 = vpop.permute.xlu1 %1330 }
 0x25c   :  { %10034 = vst [vmem:[#allocation161_spill] sm:$0xff] %v5135_v23  ;;  %v5137_v33 = vpop.permute.xlu0 %1328 }
 0x25d   :  { %10035 = vst [vmem:[#allocation162_spill] sm:$0xff] %v5137_v33 }
 0x25f   :  { %1470 = vrot.lane.b32.xlu2 %v4122_v50, %s4019_s4 }
 0x261   :  { %1468 = vrot.lane.b32.xlu1 %v4097_v36, %s4019_s4  ;;  %v5143_v11 = vpop.permute.xlu2 %1356 }
 0x262   :  { %10036 = vst [vmem:[#allocation163_spill] sm:$0xff] %v5143_v11  ;;  %1466 = vrot.lane.b32.xlu0 %v4149_v13, %s4019_s4 }
 0x263   :  { %v5147_v46 = vpop.permute.xlu1 %1336 }
 0x264   :  { %10037 = vst [vmem:[#allocation164_spill] sm:$0xff] %v5147_v46  ;;  %v5149_v43 = vpop.permute.xlu0 %1334 }
 0x265   :  { %10038 = vst [vmem:[#allocation165_spill] sm:$0xff] %v5149_v43 }
 0x267   :  { %1476 = vrot.lane.b32.xlu2 %v4170_v28, %s4019_s4 }
 0x269   :  { %1474 = vrot.lane.b32.xlu1 %v4182_v41, %s4019_s4  ;;  %v5155_v33 = vpop.permute.xlu2 %1362 }
 0x26a   :  { %10039 = vst [vmem:[#allocation166_spill] sm:$0xff] %v5155_v33  ;;  %1472 = vrot.lane.b32.xlu0 %v4195_v53, %s4019_s4 }
 0x26b   :  { %v5159_v23 = vpop.permute.xlu1 %1342 }
 0x26c   :  { %10040 = vst [vmem:[#allocation167_spill] sm:$0xff] %v5159_v23  ;;  %v5161_v11 = vpop.permute.xlu0 %1340 }
 0x26d   :  { %10041 = vst [vmem:[#allocation168_spill] sm:$0xff] %v5161_v11 }
 0x26f   :  { %1482 = vrot.lane.b32.xlu2 %v4209_v62, %s4019_s4 }
 0x271   :  { %1480 = vrot.lane.b32.xlu1 %v4224_v18, %s4019_s4  ;;  %v5167_v43 = vpop.permute.xlu2 %1392 }
 0x272   :  { %1478 = vrot.lane.b32.xlu0 %v4238_v25, %s4019_s4 }
 0x273   :  { %v5171_v46 = vpop.permute.xlu1 %1348 }
 0x274   :  { %10042 = vst [vmem:[#allocation169_spill] sm:$0xff] %v5171_v46  ;;  %v5173_v33 = vpop.permute.xlu0 %1346 }
 0x275   :  { %10043 = vst [vmem:[#allocation170_spill] sm:$0xff] %v5173_v33 }
 0x277   :  { %1488 = vrot.lane.b32.xlu2 %v4252_v35, %s4019_s4 }
 0x279   :  { %1486 = vrot.lane.b32.xlu1 %v4264_v52, %s4019_s4  ;;  %v5179_v11 = vpop.permute.xlu2 %1398 }
 0x27a   :  { %1484 = vrot.lane.b32.xlu0 %v4280_v5, %s4019_s4 }
 0x27b   :  { %v5183_v23 = vpop.permute.xlu1 %1354 }
 0x27c   :  { %10044 = vst [vmem:[#allocation171_spill] sm:$0xff] %v5183_v23  ;;  %v5185_v37 = vpop.permute.xlu0 %1352 }
 0x27d   :  { %10045 = vst [vmem:[#allocation172_spill] sm:$0xff] %v5185_v37 }
 0x27f   :  { %1494 = vrot.lane.b32.xlu2 %v4295_v16, %s4019_s4 }
 0x281   :  { %1492 = vrot.lane.b32.xlu1 %v4307_v29, %s4019_s4  ;;  %v5191_v33 = vpop.permute.xlu2 %1404 }
 0x282   :  { %10046 = vst [vmem:[#allocation173_spill] sm:$0xff] %v5191_v33  ;;  %1490 = vrot.lane.b32.xlu0 %v4318_v34, %s4019_s4 }
 0x283   :  { %v5195_v46 = vpop.permute.xlu1 %1360 }
 0x284   :  { %10047 = vst [vmem:[#allocation174_spill] sm:$0xff] %v5195_v46  ;;  %v5197_v3 = vpop.permute.xlu0 %1358 }
 0x285   :  { %10048 = vst [vmem:[#allocation175_spill] sm:$0xff] %v5197_v3 }
 0x287   :  { %1500 = vrot.lane.b32.xlu2 %v4334_v59, %s4019_s4 }
 0x289   :  { %1498 = vrot.lane.b32.xlu1 %v4345_v10, %s4019_s4  ;;  %v5203_v37 = vpop.permute.xlu2 %1410 }
 0x28a   :  { %10049 = vst [vmem:[#allocation176_spill] sm:$0xff] %v5203_v37  ;;  %1496 = vrot.lane.b32.xlu0 %v4354_v22, %s4019_s4 }
 0x28b   :  { %v5207_v23 = vpop.permute.xlu1 %1390 }
 0x28c   :  { %10050 = vst [vmem:[#allocation177_spill] sm:$0xff] %v5207_v23  ;;  %v5209_v33 = vpop.permute.xlu0 %1388 }
 0x28d   :  { %10051 = vst [vmem:[#allocation178_spill] sm:$0xff] %v5209_v33 }
 0x28f   :  { %1506 = vrot.lane.b32.xlu2 %v4371_v42, %s4019_s4 }
 0x291   :  { %1504 = vrot.lane.b32.xlu1 %v4377_v47, %s4019_s4  ;;  %v5215_v3 = vpop.permute.xlu2 %1416  ;;  %v1534_v47 = vsel %vm9725_vm7, %v4975_v48, %v5071_v40 }
 0x292   :  { %1502 = vrot.lane.b32.xlu0 %v4383_v51, %s4019_s4 }
 0x293   :  { %v5219_v46 = vpop.permute.xlu1 %1396 }
 0x294   :  { %v5221_v37 = vpop.permute.xlu0 %1394 }
 0x295   :  { %10052 = vst [vmem:[#allocation179_spill] sm:$0xff] %v5221_v37  ;;  %v1558_v37 = vsel %vm9726_vm8, %v1534_v47, %v4975_v48  ;;  %v881_v47 = vsel %vm9725_vm7, %v4209_v62, %v4435_v56 }
 0x299   :  { %v5223_v22 = vpop.permute.xlu2 %1422 }
 0x29a   :  { %10053 = vst [vmem:[#allocation180_spill] sm:$0xff] %v5223_v22 }
 0x29b   :  { %v5225_v23 = vpop.permute.xlu1 %1402 }
 0x29c   :  { %10054 = vst [vmem:[#allocation181_spill] sm:$0xff] %v5225_v23  ;;  %v5227_v33 = vpop.permute.xlu0 %1400 }
 0x29d   :  { %10055 = vst [vmem:[#allocation182_spill] sm:$0xff] %v5227_v33  ;;  %v1582_v33 = vsel %vm9728_vm9, %v1558_v37, %v5071_v40 }
 0x29e   :  { %v1606_v62 = vsel %vm9733_vm10, %v1582_v33, %v5071_v40 }
 0x2a1   :  { %v5229_v10 = vpop.permute.xlu2 %1428 }
 0x2a2   :  { %10056 = vst [vmem:[#allocation183_spill] sm:$0xff] %v5229_v10  ;;  %v874_v10 = vsel %vm9725_vm7, %v4097_v36, %v4411_v54  ;;  %v872_v36 = vsel %vm9725_vm7, %v4111_v44, %v4439_v57 }
 0x2a3   :  { %v5231_v32 = vpop.permute.xlu1 %1408 }
 0x2a4   :  { %10057 = vst [vmem:[#allocation184_spill] sm:$0xff] %v5231_v32  ;;  %v5236_v51 = vpop.permute.xlu0 %1406  ;;  %v875_v32 = vsel %vm9725_vm7, %v4122_v50, %v4419_v55  ;;  %v1537_v50 = vsel %vm9725_vm7, %v4987_v6, %v5083_v39 }
 0x2a5   :  { %10058 = vst [vmem:[#allocation185_spill] sm:$0xff] %v5236_v51  ;;  %v878_v51 = vsel %vm9725_vm7, %v4170_v28, %v4427_v45  ;;  %v5268_v28 = vsel %vm9726_vm8, %v874_v10, %v4411_v54  ;;  %v900_v48 = vsel %vm9726_vm8, %v875_v32, %v4419_v55  ;;  %v1630_v10 = vsel %vm9734_vm11, %v1606_v62, %v5167_v43 }
 0x2a6   :  { %v903_v44 = vsel %vm9726_vm8, %v878_v51, %v4427_v45  ;;  %v906_v54 = vsel %vm9726_vm8, %v881_v47, %v4435_v56  ;;  %v897_v55 = vsel %vm9726_vm8, %v872_v36, %v4439_v57  ;;  %v873_v51 = vsel %vm9725_vm7, %v4149_v13, %v4451_v61 }
 0x2a7   :  { %v887_v45 = vsel %vm9725_vm7, %v4295_v16, %v4459_v1  ;;  %v877_v56 = vsel %vm9725_vm7, %v4182_v41, %v4463_v63  ;;  %v898_v32 = vsel %vm9726_vm8, %v873_v51, %v4451_v61  ;;  %v876_v16 = vsel %vm9725_vm7, %v4195_v53, %v4465_v4  ;;  %v10063_v51 = vld [vmem:[#allocation19_spill] sm:$0xff] }
 0x2a8   :  { %v902_v40 = vsel %vm9726_vm8, %v877_v56, %v4463_v63  ;;  %v890_v61 = vsel %vm9725_vm7, %v4334_v59, %v4471_v2  ;;  %v880_v53 = vsel %vm9725_vm7, %v4224_v18, %v4475_v7  ;;  %v1540_v59 = vsel %vm9725_vm7, %v4999_v26, %v5095_v38 }
 0x2a9   :  { %v5240_v22 = vpop.permute.xlu2 %1434  ;;  %v883_v18 = vsel %vm9725_vm7, %v4264_v52, %v4487_v12  ;;  %v915_v47 = vsel %vm9726_vm8, %v890_v61, %v4471_v2  ;;  %v922_v36 = vsel %vm9728_vm9, %v897_v55, %v4495_v17  ;;  %v1564_v2 = vsel %vm9726_vm8, %v1540_v59, %v4999_v26  ;;  %v10070_v61 = vld [vmem:[#allocation21_spill] sm:$0xff]  ;;  %v10071_v59 = vld [vmem:[#allocation155_spill] sm:$0xff] }
 0x2ab   :  { %v5253_v23 = vpop.permute.xlu1 %1414 }
 0x2ac   :  { %10059 = vst [vmem:[#allocation186_spill] sm:$0xff] %v5253_v23  ;;  %v5264_v37 = vpop.permute.xlu0 %1412  ;;  %v870_v23 = vsel %vm9725_vm7, %v4119_v49, %v4441_v58  ;;  %v1561_v49 = vsel %vm9726_vm8, %v1537_v50, %v4987_v6  ;;  %v1654_v6 = vsel %vm9752_vm12, %v1630_v10, %v5167_v43  ;;  %v901_v43 = vsel %vm9726_vm8, %v876_v16, %v4465_v4  ;;  %v10069_v16 = vld [vmem:[#allocation133_spill] sm:$0xff] }
 0x2ad   :  { %10060 = vst [vmem:[#allocation187_spill] sm:$0xff] %v5264_v37  ;;  %v884_v37 = vsel %vm9725_vm7, %v4252_v35, %v4447_v60  ;;  %v871_v35 = vsel %vm9725_vm7, %v4153_v14, %v4453_v0  ;;  %v895_v57 = vsel %vm9726_vm8, %v870_v23, %v4441_v58  ;;  %v1585_v41 = vsel %vm9728_vm9, %v1561_v49, %v5083_v39 }
 0x2ae   :  { %v909_v13 = vsel %vm9726_vm8, %v884_v37, %v4447_v60  ;;  %v896_v60 = vsel %vm9726_vm8, %v871_v35, %v4453_v0  ;;  %v912_v23 = vsel %vm9726_vm8, %v887_v45, %v4459_v1  ;;  %v879_v0 = vsel %vm9725_vm7, %v4238_v25, %v4477_v8  ;;  %v10064_v35 = vld [vmem:[#allocation15_spill] sm:$0xff] }
 0x2af   :  { %v893_v1 = vsel %vm9725_vm7, %v4371_v42, %v4483_v9  ;;  %v882_v25 = vsel %vm9725_vm7, %v4280_v5, %v4489_v15  ;;  %v1609_v42 = vsel %vm9733_vm10, %v1585_v41, %v5083_v39  ;;  %v886_v4 = vsel %vm9725_vm7, %v4307_v29, %v4499_v19  ;;  %v10065_v45 = vld [vmem:[#allocation11_spill] sm:$0xff] }
 0x2b0   :  { %v1633_v52 = vsel %vm9734_vm11, %v1609_v42, %v5179_v11  ;;  %v905_v50 = vsel %vm9726_vm8, %v880_v53, %v4475_v7  ;;  %v904_v5 = vsel %vm9726_vm8, %v879_v0, %v4477_v8  ;;  %v918_v39 = vsel %vm9726_vm8, %v893_v1, %v4483_v9  ;;  %v10073_v42 = vld [vmem:[#allocation173_spill] sm:$0xff] }
 0x2b1   :  { %v1465_v14 = vpop.permute.xlu2 %1464  ;;  %v5371_v37 = vsel %vm9726_vm8, %v883_v18, %v4487_v12  ;;  %v5375_v29 = vsel %vm9726_vm8, %v882_v25, %v4489_v15  ;;  %v885_v7 = vsel %vm9725_vm7, %v4318_v34, %v4501_v20  ;;  %v925_v8 = vsel %vm9728_vm9, %v900_v48, %v4507_v21  ;;  %v10072_v18 = vld [vmem:[#allocation134_spill] sm:$0xff] }
 0x2b2   :  { %v1678_v58 = vsel %vm9735_vm13, %v1654_v6, %v1465_v14  ;;  %v947_v9 = vsel %vm9733_vm10, %v922_v36, %v4495_v17  ;;  %v5386_v26 = vsel %vm9726_vm8, %v886_v4, %v4499_v19  ;;  %v928_v12 = vsel %vm9728_vm9, %v903_v44, %v4519_v24  ;;  %v10067_v6 = vld [vmem:[#allocation20_spill] sm:$0xff] }
 0x2b3   :  { %v5325_v33 = vpop.permute.xlu1 %1420  ;;  %1728 = vrot.lane.b32.xlu2 %v1678_v58, %s4020_s5  ;;  %10061 = vst [vmem:[#allocation188_spill] sm:$0xff] %v5386_v26  ;;  %v1657_v15 = vsel %vm9752_vm12, %v1633_v52, %v5179_v11  ;;  %v931_v34 = vsel %vm9728_vm9, %v906_v54, %v4531_v27  ;;  %v921_v48 = vsel %vm9728_vm9, %v896_v60, %v4535_v30 }
 0x2b4   :  { %v5340_v63 = vpop.permute.xlu0 %1418  ;;  %v1588_v10 = vsel %vm9728_vm9, %v1564_v2, %v5095_v38  ;;  %v5401_v19 = vsel %vm9726_vm8, %v885_v7, %v4501_v20  ;;  %v950_v44 = vsel %vm9733_vm10, %v925_v8, %v4507_v21  ;;  %v920_v11 = vsel %vm9728_vm9, %v895_v57, %v4537_v31  ;;  %v10068_v57 = vld [vmem:[#allocation154_spill] sm:$0xff]  ;;  %v10075_v2 = vld [vmem:[#allocation156_spill] sm:$0xff]  ;;  %v10076_v7 = vld [vmem:[#allocation135_spill] sm:$0xff] }
 0x2b5   :  { %10062 = vst [vmem:[#allocation189_spill] sm:$0xff] %v5401_v19  ;;  %v934_v54 = vsel %vm9728_vm9, %v909_v13, %v10063_v51  ;;  %v5415_v56 = vsel %vm9725_vm7, %v10065_v45, %v10064_v35  ;;  %v953_v20 = vsel %vm9733_vm10, %v928_v12, %v4519_v24  ;;  %v924_v14 = vsel %vm9728_vm9, %v5268_v28, %v10067_v6  ;;  %v10090_v35 = vld [vmem:[#allocation158_spill] sm:$0xff] }
 0x2b6   :  { %10066 = vst [vmem:[#allocation19_spill] sm:$0xff] %v5415_v56  ;;  %v1543_v13 = vsel %vm9725_vm7, %v10069_v16, %v10068_v57  ;;  %v5429_v58 = vsel %vm9733_vm10, %v931_v34, %v4531_v27  ;;  %v5433_v60 = vsel %vm9733_vm10, %v921_v48, %v4535_v30  ;;  %v923_v53 = vsel %vm9728_vm9, %v898_v32, %v10070_v61  ;;  %v10078_v34 = vld [vmem:[#allocation24_spill] sm:$0xff] }
 0x2b7   :  { %v1612_v28 = vsel %vm9733_vm10, %v1588_v10, %v5095_v38  ;;  %v5441_v0 = vsel %vm9733_vm10, %v920_v11, %v4537_v31  ;;  %v5445_v1 = vsel %vm9733_vm10, %v934_v54, %v10063_v51  ;;  %v1533_v25 = vsel %vm9725_vm7, %v10072_v18, %v10071_v59  ;;  %v10074_v38 = vld [vmem:[#allocation22_spill] sm:$0xff]  ;;  %v10079_v10 = vld [vmem:[#allocation25_spill] sm:$0xff]  ;;  %v10081_v54 = vld [vmem:[#allocation27_spill] sm:$0xff] }
 0x2b8   :  { %v1636_v36 = vsel %vm9734_vm11, %v1612_v28, %v10073_v42  ;;  %v5454_v32 = vsel %vm9733_vm10, %v924_v14, %v10067_v6  ;;  %v937_v4 = vsel %vm9728_vm9, %v912_v23, %v10074_v38  ;;  %v1567_v52 = vsel %vm9726_vm8, %v1543_v13, %v10069_v16 }
 0x2b9   :  { %v1471_v62 = vpop.permute.xlu2 %1470  ;;  %v1532_v8 = vsel %vm9725_vm7, %v10076_v7, %v10075_v2  ;;  %v5465_v12 = vsel %vm9733_vm10, %v923_v53, %v10070_v61  ;;  %v926_v48 = vsel %vm9728_vm9, %v901_v43, %v10078_v34  ;;  %v940_v23 = vsel %vm9728_vm9, %v915_v47, %v10079_v10 }
 0x2ba   :  { %v1681_v55 = vsel %vm9735_vm13, %v1657_v15, %v1471_v62  ;;  %v10077_v15 = vld [vmem:[#allocation23_spill] sm:$0xff]  ;;  %v929_v45 = vsel %vm9728_vm9, %v904_v5, %v10081_v54  ;;  %v1557_v14 = vsel %vm9726_vm8, %v1533_v25, %v10072_v18  ;;  %v1660_v16 = vsel %vm9752_vm12, %v1636_v36, %v10073_v42  ;;  %v10082_v18 = vld [vmem:[#allocation28_spill] sm:$0xff] }
 0x2bb   :  { %v5409_v49 = vpop.permute.xlu1 %1426  ;;  %1734 = vrot.lane.b32.xlu2 %v1681_v55, %s4020_s5  ;;  %v927_v62 = vsel %vm9728_vm9, %v902_v40, %v10077_v15  ;;  %v10080_v55 = vld [vmem:[#allocation26_spill] sm:$0xff]  ;;  %v5483_v40 = vsel %vm9733_vm10, %v937_v4, %v10074_v38  ;;  %v1591_v43 = vsel %vm9728_vm9, %v1567_v52, %v10068_v57  ;;  %v1556_v47 = vsel %vm9726_vm8, %v1532_v8, %v10076_v7  ;;  %v10084_v7 = vld [vmem:[#allocation157_spill] sm:$0xff]  ;;  %v10085_v8 = vld [vmem:[#allocation136_spill] sm:$0xff] }
 0x2bc   :  { %v5425_v41 = vpop.permute.xlu0 %1424  ;;  %v930_v11 = vsel %vm9728_vm9, %v905_v50, %v10080_v55  ;;  %v5492_v5 = vsel %vm9733_vm10, %v927_v62, %v10077_v15  ;;  %v5496_v53 = vsel %vm9733_vm10, %v926_v48, %v10078_v34  ;;  %v5500_v28 = vsel %vm9733_vm10, %v940_v23, %v10079_v10  ;;  %v10086_v48 = vld [vmem:[#allocation31_spill] sm:$0xff] }
 0x2bd   :  { %v943_v25 = vsel %vm9728_vm9, %v918_v39, %v10082_v18  ;;  %v5509_v36 = vsel %vm9733_vm10, %v930_v11, %v10080_v55  ;;  %v5513_v4 = vsel %vm9733_vm10, %v929_v45, %v10081_v54  ;;  %v1581_v52 = vsel %vm9728_vm9, %v1557_v14, %v10071_v59 }
 0x2be   :  { %10083 = vst [vmem:[#allocation11_spill] sm:$0xff] %v5513_v4  ;;  %v1546_v39 = vsel %vm9725_vm7, %v10085_v8, %v10084_v7  ;;  %v972_v23 = vsel %vm9734_vm11, %v947_v9, %v10086_v48  ;;  %v1615_v45 = vsel %vm9733_vm10, %v1591_v43, %v10068_v57  ;;  %v5532_v14 = vsel %vm9733_vm10, %v943_v25, %v10082_v18  ;;  %v10091_v9 = vld [vmem:[#allocation137_spill] sm:$0xff]  ;;  %v10094_v43 = vld [vmem:[#allocation159_spill] sm:$0xff]  ;;  %v10095_v25 = vld [vmem:[#allocation138_spill] sm:$0xff] }
 0x2bf   :  { %v1536_v19 = vsel %vm9725_vm7, %v10091_v9, %v10090_v35  ;;  %v1570_v57 = vsel %vm9726_vm8, %v1546_v39, %v10085_v8  ;;  %v1535_v4 = vsel %vm9725_vm7, %v10095_v25, %v10094_v43  ;;  %v10097_v8 = vld [vmem:[#allocation30_spill] sm:$0xff] }
 0x2c0   :  { %v5564_v39 = vsel %vm9728_vm9, %v5375_v29, %v10097_v8  ;;  %v1559_v29 = vsel %vm9726_vm8, %v1535_v4, %v10095_v25 }
 0x2c1   :  { %v1477_v13 = vpop.permute.xlu2 %1476 }
 0x2c2   :  { %v1684_v50 = vsel %vm9735_vm13, %v1660_v16, %v1477_v13  ;;  %v10087_v16 = vld [vmem:[#allocation34_spill] sm:$0xff]  ;;  %v1580_v13 = vsel %vm9728_vm9, %v1556_v47, %v10075_v2  ;;  %v10093_v47 = vld [vmem:[#allocation37_spill] sm:$0xff] }
 0x2c3   :  { %v5504_v42 = vpop.permute.xlu1 %1432  ;;  %1740 = vrot.lane.b32.xlu2 %v1684_v50, %s4020_s5  ;;  %v975_v11 = vsel %vm9734_vm11, %v950_v44, %v10087_v16  ;;  %v10088_v50 = vld [vmem:[#allocation29_spill] sm:$0xff]  ;;  %v10092_v44 = vld [vmem:[#allocation176_spill] sm:$0xff]  ;;  %v978_v54 = vsel %vm9734_vm11, %v953_v20, %v10093_v47  ;;  %v1604_v20 = vsel %vm9733_vm10, %v1580_v13, %v10075_v2  ;;  %v1594_v2 = vsel %vm9728_vm9, %v1570_v57, %v10084_v7 }
 0x2c4   :  { %v5520_v62 = vpop.permute.xlu0 %1430  ;;  %v5537_v56 = vsel %vm9728_vm9, %v5371_v37, %v10088_v50  ;;  %v1639_v26 = vsel %vm9734_vm11, %v1615_v45, %v10092_v44  ;;  %v1605_v37 = vsel %vm9733_vm10, %v1581_v52, %v10071_v59  ;;  %v1000_v50 = vsel %vm9752_vm12, %v975_v11, %v4507_v21  ;;  %v10096_v45 = vld [vmem:[#allocation177_spill] sm:$0xff]  ;;  %v10098_v52 = vld [vmem:[#allocation178_spill] sm:$0xff]  ;;  %v10101_v57 = vld [vmem:[#allocation40_spill] sm:$0xff] }
 0x2c5   :  { %10089 = vst [vmem:[#allocation20_spill] sm:$0xff] %v5537_v56  ;;  %v997_v56 = vsel %vm9752_vm12, %v972_v23, %v4495_v17  ;;  %v1629_v55 = vsel %vm9734_vm11, %v1605_v37, %v10096_v45  ;;  %v1560_v59 = vsel %vm9726_vm8, %v1536_v19, %v10091_v9  ;;  %v1663_v17 = vsel %vm9752_vm12, %v1639_v26, %v10092_v44  ;;  %v10099_v9 = vld [vmem:[#allocation160_spill] sm:$0xff]  ;;  %v10100_v44 = vld [vmem:[#allocation139_spill] sm:$0xff] }
 0x2c6   :  { %v1628_v21 = vsel %vm9734_vm11, %v1604_v20, %v10098_v52  ;;  %v1003_v11 = vsel %vm9752_vm12, %v978_v54, %v4519_v24  ;;  %v1022_v19 = vsel %vm9735_vm13, %v997_v56, %v10086_v48  ;;  %v1025_v26 = vsel %vm9735_vm13, %v1000_v50, %v10087_v16 }
 0x2c7   :  { %v1549_v37 = vsel %vm9725_vm7, %v10100_v44, %v10099_v9  ;;  %v1653_v24 = vsel %vm9752_vm12, %v1629_v55, %v10096_v45  ;;  %v981_v4 = vsel %vm9734_vm11, %v5429_v58, %v10101_v57  ;;  %v1584_v56 = vsel %vm9728_vm9, %v1560_v59, %v10090_v35 }
 0x2c8   :  { %v1652_v50 = vsel %vm9752_vm12, %v1628_v21, %v10098_v52  ;;  %v1583_v55 = vsel %vm9728_vm9, %v1559_v29, %v10094_v43  ;;  %v1618_v45 = vsel %vm9733_vm10, %v1594_v2, %v10084_v7  ;;  %v5607_v59 = vsel %vm9718_vm14, %v1022_v19, %v10086_v48  ;;  %v10102_v21 = vld [vmem:[#allocation161_spill] sm:$0xff]  ;;  %v10104_v2 = vld [vmem:[#allocation162_spill] sm:$0xff] }
 0x2c9   :  { %v1483_v23 = vpop.permute.xlu2 %1482  ;;  %v1573_v52 = vsel %vm9726_vm8, %v1549_v37, %v10100_v44  ;;  %v1642_v29 = vsel %vm9734_vm11, %v1618_v45, %v5215_v3  ;;  %v5619_v7 = vsel %vm9718_vm14, %v1025_v26, %v10087_v16  ;;  %v1006_v48 = vsel %vm9752_vm12, %v981_v4, %v4531_v27  ;;  %v10107_v4 = vld [vmem:[#allocation179_spill] sm:$0xff] }
 0x2ca   :  { %v1687_v13 = vsel %vm9735_vm13, %v1663_v17, %v1483_v23  ;;  %v1028_v17 = vsel %vm9735_vm13, %v1003_v11, %v10093_v47  ;;  %v10103_v23 = vld [vmem:[#allocation140_spill] sm:$0xff]  ;;  %v1608_v44 = vsel %vm9733_vm10, %v1584_v56, %v10090_v35  ;;  %v1607_v27 = vsel %vm9733_vm10, %v1583_v55, %v10094_v43  ;;  %v10108_v43 = vld [vmem:[#allocation163_spill] sm:$0xff] }
 0x2cb   :  { %v1463_v54 = vpop.permute.xlu1 %1462  ;;  %1746 = vrot.lane.b32.xlu2 %v1687_v13, %s4020_s5  ;;  %v1539_v11 = vsel %vm9725_vm7, %v10103_v23, %v10102_v21  ;;  %v10105_v13 = vld [vmem:[#allocation141_spill] sm:$0xff]  ;;  %v5630_v37 = vsel %vm9718_vm14, %v1028_v17, %v10093_v47  ;;  %v1632_v16 = vsel %vm9734_vm11, %v1608_v44, %v5219_v46  ;;  %v1597_v26 = vsel %vm9728_vm9, %v1573_v52, %v10099_v9  ;;  %v10111_v52 = vld [vmem:[#allocation43_spill] sm:$0xff]  ;;  %v10112_v44 = vld [vmem:[#allocation164_spill] sm:$0xff] }
 0x2cc   :  { %v1677_v25 = vsel %vm9735_vm13, %v1653_v24, %v1463_v54  ;;  %v1461_v20 = vpop.permute.xlu0 %1460  ;;  %v1538_v19 = vsel %vm9725_vm7, %v10105_v13, %v10104_v2  ;;  %v10106_v24 = vld [vmem:[#allocation41_spill] sm:$0xff]  ;;  %v1563_v35 = vsel %vm9726_vm8, %v1539_v11, %v10103_v23  ;;  %v1666_v47 = vsel %vm9752_vm12, %v1642_v29, %v5215_v3  ;;  %v10110_v3 = vld [vmem:[#allocation42_spill] sm:$0xff] }
 0x2cd   :  { %v1676_v58 = vsel %vm9735_vm13, %v1652_v50, %v1461_v20  ;;  %1726 = vrot.lane.b32.xlu1 %v1677_v25, %s4020_s5  ;;  %v971_v54 = vsel %vm9734_vm11, %v5433_v60, %v10106_v24  ;;  %v1631_v56 = vsel %vm9734_vm11, %v1607_v27, %v10107_v4  ;;  %v1031_v60 = vsel %vm9735_vm13, %v1006_v48, %v10101_v57  ;;  %v10109_v20 = vld [vmem:[#allocation142_spill] sm:$0xff] }
 0x2ce   :  { %1724 = vrot.lane.b32.xlu0 %v1676_v58, %s4020_s5  ;;  %v1562_v25 = vsel %vm9726_vm8, %v1538_v19, %v10105_v13  ;;  %v1552_v17 = vsel %vm9725_vm7, %v10109_v20, %v10108_v43  ;;  %v996_v45 = vsel %vm9752_vm12, %v971_v54, %v4535_v30  ;;  %v970_v58 = vsel %vm9734_vm11, %v5441_v0, %v10110_v3  ;;  %v10113_v54 = vld [vmem:[#allocation143_spill] sm:$0xff] }
 0x2cf   :  { %v984_v23 = vsel %vm9734_vm11, %v5445_v1, %v10111_v52  ;;  %v1656_v11 = vsel %vm9752_vm12, %v1632_v16, %v5219_v46  ;;  %v1587_v48 = vsel %vm9728_vm9, %v1563_v35, %v10102_v21  ;;  %v1655_v30 = vsel %vm9752_vm12, %v1631_v56, %v10107_v4 }
 0x2d0   :  { %v1621_v13 = vsel %vm9733_vm10, %v1597_v26, %v10099_v9  ;;  %v1586_v1 = vsel %vm9728_vm9, %v1562_v25, %v10104_v2  ;;  %v1576_v46 = vsel %vm9726_vm8, %v1552_v17, %v10109_v20  ;;  %v1542_v16 = vsel %vm9725_vm7, %v10113_v54, %v10112_v44 }
 0x2d1   :  { %v1489_v50 = vpop.permute.xlu2 %1488  ;;  %v5684_v9 = vsel %vm9718_vm14, %v1031_v60, %v10101_v57  ;;  %v1021_v26 = vsel %vm9735_vm13, %v996_v45, %v10106_v24  ;;  %v995_v35 = vsel %vm9752_vm12, %v970_v58, %v4537_v31  ;;  %v1009_v56 = vsel %vm9752_vm12, %v984_v23, %v10063_v51  ;;  %v10116_v57 = vld [vmem:[#allocation165_spill] sm:$0xff]  ;;  %v10117_v60 = vld [vmem:[#allocation144_spill] sm:$0xff] }
 0x2d2   :  { %v1690_v55 = vsel %vm9735_vm13, %v1666_v47, %v1489_v50  ;;  %v10114_v47 = vld [vmem:[#allocation180_spill] sm:$0xff]  ;;  %v1541_v20 = vsel %vm9725_vm7, %v10117_v60, %v10116_v57  ;;  %v1611_v17 = vsel %vm9733_vm10, %v1587_v48, %v10102_v21  ;;  %v1600_v31 = vsel %vm9728_vm9, %v1576_v46, %v10108_v43  ;;  %v10118_v45 = vld [vmem:[#allocation181_spill] sm:$0xff] }
 0x2d3   :  { %v1469_v29 = vpop.permute.xlu1 %1468  ;;  %1752 = vrot.lane.b32.xlu2 %v1690_v55, %s4020_s5  ;;  %v1645_v4 = vsel %vm9734_vm11, %v1621_v13, %v10114_v47  ;;  %v10115_v50 = vld [vmem:[#allocation44_spill] sm:$0xff]  ;;  %v1566_v55 = vsel %vm9726_vm8, %v1542_v16, %v10113_v54  ;;  %v1635_v51 = vsel %vm9734_vm11, %v1611_v17, %v10118_v45  ;;  %v1610_v58 = vsel %vm9733_vm10, %v1586_v1, %v10104_v2 }
 0x2d4   :  { %v1680_v0 = vsel %vm9735_vm13, %v1656_v11, %v1469_v29  ;;  %v1467_v19 = vpop.permute.xlu0 %1466  ;;  %v974_v25 = vsel %vm9734_vm11, %v5454_v32, %v10115_v50  ;;  %v5713_v32 = vsel %vm9718_vm14, %v1021_v26, %v10106_v24  ;;  %v1020_v23 = vsel %vm9735_vm13, %v995_v35, %v10110_v3  ;;  %v10119_v11 = vld [vmem:[#allocation182_spill] sm:$0xff]  ;;  %v10122_v26 = vld [vmem:[#allocation145_spill] sm:$0xff] }
 0x2d5   :  { %v1679_v27 = vsel %vm9735_vm13, %v1655_v30, %v1467_v19  ;;  %1732 = vrot.lane.b32.xlu1 %v1680_v0, %s4020_s5  ;;  %v1669_v21 = vsel %vm9752_vm12, %v1645_v4, %v10114_v47  ;;  %v1634_v29 = vsel %vm9734_vm11, %v1610_v58, %v10119_v11  ;;  %v1034_v30 = vsel %vm9735_vm13, %v1009_v56, %v10111_v52  ;;  %v5728_v0 = vld [vmem:[#allocation5] sm:$0xff]  ;;  %v10120_v19 = vld [vmem:[#allocation45_spill] sm:$0xff]  ;;  %v10124_v4 = vld [vmem:[#allocation146_spill] sm:$0xff] }
 0x2d6   :  { %1730 = vrot.lane.b32.xlu0 %v1679_v27, %s4020_s5  ;;  %v999_v2 = vsel %vm9752_vm12, %v974_v25, %v10067_v6  ;;  %v1565_v24 = vsel %vm9726_vm8, %v1541_v20, %v10117_v60  ;;  %v973_v1 = vsel %vm9734_vm11, %v5465_v12, %v10120_v19  ;;  %v1590_v46 = vsel %vm9728_vm9, %v1566_v55, %v10112_v44  ;;  %v10121_v27 = vld [vmem:[#allocation166_spill] sm:$0xff]  ;;  %v10123_v47 = vld [vmem:[#allocation167_spill] sm:$0xff] }
 0x2d7   :  { %v1659_v54 = vsel %vm9752_vm12, %v1635_v51, %v10118_v45  ;;  %v1624_v6 = vsel %vm9733_vm10, %v1600_v31, %v10108_v43  ;;  %v1555_v35 = vsel %vm9725_vm7, %v10122_v26, %v10121_v27  ;;  %v1545_v12 = vsel %vm9725_vm7, %v10124_v4, %v10123_v47  ;;  %v10125_v45 = vld [vmem:[#allocation168_spill] sm:$0xff]  ;;  %v10126_v51 = vld [vmem:[#allocation147_spill] sm:$0xff] }
 0x2d8   :  { %v1658_v56 = vsel %vm9752_vm12, %v1634_v29, %v10119_v11  ;;  %v1589_v43 = vsel %vm9728_vm9, %v1565_v24, %v10116_v57  ;;  %v9723_v17 = vrot.slane %v5728_v0, 5  ;;  %v5755_v31 = vrot.slane %v5728_v0, 4 }
 0x2d9   :  { %v1495_v48 = vpop.permute.xlu2 %1494  ;;  %v5759_v55 = vsel %vm9718_vm14, %v1020_v23, %v10110_v3  ;;  %v1544_v58 = vsel %vm9725_vm7, %v10126_v51, %v10125_v45  ;;  %v998_v29 = vsel %vm9752_vm12, %v973_v1, %v10070_v61  ;;  %v1569_v3 = vsel %vm9726_vm8, %v1545_v12, %v10124_v4  ;;  %v5802_v4 = vld [vmem:[#allocation5 + $0x8] sm:$0xff]  ;;  %v10130_v12 = vld [vmem:[#allocation169_spill] sm:$0xff] }
 0x2da   :  { %v1693_v13 = vsel %vm9735_vm13, %v1669_v21, %v1495_v48  ;;  %v10127_v21 = vld [vmem:[#allocation183_spill] sm:$0xff]  ;;  %v1579_v48 = vsel %vm9726_vm8, %v1555_v35, %v10122_v26  ;;  %v1614_v23 = vsel %vm9733_vm10, %v1590_v46, %v10112_v44  ;;  %v5777_v24 = vsel %vm9718_vm14, %v1034_v30, %v10111_v52  ;;  %v10129_v44 = vld [vmem:[#allocation185_spill] sm:$0xff] }
 0x2db   :  { %v1475_v16 = vpop.permute.xlu1 %1474  ;;  %1758 = vrot.lane.b32.xlu2 %v1693_v13, %s4020_s5  ;;  %v1648_v11 = vsel %vm9734_vm11, %v1624_v6, %v10127_v21  ;;  %v1024_v13 = vsel %vm9735_vm13, %v999_v2, %v10115_v50  ;;  %v1613_v61 = vsel %vm9733_vm10, %v1589_v43, %v10116_v57  ;;  %v1568_v1 = vsel %vm9726_vm8, %v1544_v58, %v10126_v51  ;;  %v10133_v43 = vld [vmem:[#allocation149_spill] sm:$0xff] }
 0x2dc   :  { %v1683_v25 = vsel %vm9735_vm13, %v1659_v54, %v1475_v16  ;;  %v1473_v60 = vpop.permute.xlu0 %1472  ;;  %v10128_v54 = vld [vmem:[#allocation184_spill] sm:$0xff]  ;;  %v1672_v16 = vsel %vm9752_vm12, %v1648_v11, %v10127_v21  ;;  %v1637_v46 = vsel %vm9734_vm11, %v1613_v61, %v10129_v44  ;;  %v2078_v30 = vsel %vm206_vm0, %v9723_v17, %v5755_v31 }
 0x2dd   :  { %v1682_v20 = vsel %vm9735_vm13, %v1658_v56, %v1473_v60  ;;  %1738 = vrot.lane.b32.xlu1 %v1683_v25, %s4020_s5  ;;  %v1638_v6 = vsel %vm9734_vm11, %v1614_v23, %v10128_v54  ;;  %v1023_v2 = vsel %vm9735_vm13, %v998_v29, %v10120_v19  ;;  %v1603_v57 = vsel %vm9728_vm9, %v1579_v48, %v10121_v27  ;;  %v10131_v56 = vld [vmem:[#allocation148_spill] sm:$0xff]  ;;  %v10132_v60 = vld [vmem:[#allocation170_spill] sm:$0xff] }
 0x2de   :  { %1736 = vrot.lane.b32.xlu0 %v1682_v20, %s4020_s5  ;;  %v1593_v26 = vsel %vm9728_vm9, %v1569_v3, %v10123_v47  ;;  %v1548_v25 = vsel %vm9725_vm7, %v10131_v56, %v10130_v12  ;;  %v1547_v20 = vsel %vm9725_vm7, %v10133_v43, %v10132_v60  ;;  %v1662_v51 = vsel %vm9752_vm12, %v1638_v6, %v10128_v54 }
 0x2df   :  { %v9717_v21 = vrot.slane %v5728_v0, 3  ;;  %v1592_v11 = vsel %vm9728_vm9, %v1568_v1, %v10125_v45  ;;  %v1661_v29 = vsel %vm9752_vm12, %v1637_v46, %v10129_v44  ;;  %v2086_v23 = vsel %vm215_vm1, %v2078_v30, %v5755_v31 }
 0x2e0   :  { %v1627_v54 = vsel %vm9733_vm10, %v1603_v57, %v10121_v27  ;;  %v9722_v61 = vrot.slane %v5802_v4, 5  ;;  %v5827_v1 = vrot.slane %v5802_v4, 4  ;;  %v1571_v44 = vsel %vm9726_vm8, %v1547_v20, %v10133_v43  ;;  %v10136_v20 = vld [vmem:[#allocation187_spill] sm:$0xff] }
 0x2e1   :  { %v1501_v52 = vpop.permute.xlu2 %1500  ;;  %v1651_v46 = vsel %vm9734_vm11, %v1627_v54, %v5240_v22  ;;  %v5837_v27 = vrot.slane %v5728_v0, 2  ;;  %v1617_v30 = vsel %vm9733_vm10, %v1593_v26, %v10123_v47  ;;  %v1616_v57 = vsel %vm9733_vm10, %v1592_v11, %v10125_v45  ;;  %v10138_v11 = vld [vmem:[#allocation150_spill] sm:$0xff] }
 0x2e2   :  { %v1696_v35 = vsel %vm9735_vm13, %v1672_v16, %v1501_v52  ;;  %v1572_v16 = vsel %vm9726_vm8, %v1548_v25, %v10131_v56  ;;  %v5841_v52 = vsel %vm9718_vm14, %v1024_v13, %v10115_v50  ;;  %v5852_v56 = vsel %vm9718_vm14, %v1023_v2, %v10120_v19  ;;  %v10134_v25 = vld [vmem:[#allocation55_spill] sm:$0xff]  ;;  %v10135_v50 = vld [vmem:[#allocation186_spill] sm:$0xff] }
 0x2e3   :  { %v1481_v58 = vpop.permute.xlu1 %1480  ;;  %1764 = vrot.lane.b32.xlu2 %v1696_v35, %s4020_s5  ;;  %v2094_v35 = vsel %vm224_vm2, %v2086_v23, %v9717_v21  ;;  %v1072_v43 = vsel %vm9719_vm15, %v5607_v59, %v10134_v25  ;;  %v1641_v13 = vsel %vm9734_vm11, %v1617_v30, %v10135_v50  ;;  %v1640_v47 = vsel %vm9734_vm11, %v1616_v57, %v10136_v20 }
 0x2e4   :  { %v1686_v48 = vsel %vm9735_vm13, %v1662_v51, %v1481_v58  ;;  %v1479_v3 = vpop.permute.xlu0 %1478  ;;  %v1596_v45 = vsel %vm9728_vm9, %v1572_v16, %v10130_v12  ;;  %v1595_v26 = vsel %vm9728_vm9, %v1571_v44, %v10132_v60  ;;  %v1675_v19 = vsel %vm9752_vm12, %v1651_v46, %v5240_v22  ;;  %v5871_v51 = vld [vmem:[#allocation5 + $0x10] sm:$0xff]  ;;  %v10137_v58 = vld [vmem:[#allocation171_spill] sm:$0xff] }
 0x2e5   :  { %v1685_v6 = vsel %vm9735_vm13, %v1661_v29, %v1479_v3  ;;  %1744 = vrot.lane.b32.xlu1 %v1686_v48, %s4020_s5  ;;  %v2079_v59 = vsel %vm206_vm0, %v9722_v61, %v5827_v1  ;;  %v1551_v29 = vsel %vm9725_vm7, %v10138_v11, %v10137_v58  ;;  %v10139_v48 = vld [vmem:[#allocation172_spill] sm:$0xff]  ;;  %v10140_v3 = vld [vmem:[#allocation151_spill] sm:$0xff]  ;;  %v2102_v22 = vsel %vm233_vm3, %v2094_v35, %v5837_v27 }
 0x2e6   :  { %1742 = vrot.lane.b32.xlu0 %v1685_v6, %s4020_s5  ;;  %v1550_v23 = vsel %vm9725_vm7, %v10140_v3, %v10139_v48  ;;  %v1665_v6 = vsel %vm9752_vm12, %v1641_v13, %v10135_v50  ;;  %v1664_v16 = vsel %vm9752_vm12, %v1640_v47, %v10136_v20  ;;  %v9724_v46 = vrot.slane %v5728_v0, 1  ;;  %v10141_v13 = vld [vmem:[#allocation46_spill] sm:$0xff] }
 0x2e7   :  { %v9720_v30 = vrot.slane %v5802_v4, 3  ;;  %v9721_v35 = vrot.slane %v5871_v51, 5  ;;  %v5894_v50 = vrot.slane %v5871_v51, 4  ;;  %v5899_v20 = vsel %vm9734_vm11, %v5483_v40, %v10141_v13  ;;  %v10142_v47 = vld [vmem:[#allocation58_spill] sm:$0xff] }
 0x2e8   :  { %v1620_v40 = vsel %vm9733_vm10, %v1596_v45, %v10130_v12  ;;  %vm1119_vm14 = vcmask 89088  }
 0x2e9   :  { %v1507_v2 = vpop.permute.xlu2 %1506 }
 0x2ea   :  { %v1699_v54 = vsel %vm9735_vm13, %v1675_v19, %v1507_v2  ;;  %v2087_v19 = vsel %vm215_vm1, %v2079_v59, %v5827_v1  ;;  %v1075_v2 = vsel %vm9719_vm15, %v5619_v7, %v10142_v47  ;;  %v2110_v59 = vsel %vm242_vm4, %v2102_v22, %v5837_v27 }
 0x2eb   :  { %v1487_v44 = vpop.permute.xlu1 %1486  ;;  %1770 = vrot.lane.b32.xlu2 %v1699_v54, %s4020_s5  ;;  %v5916_v7 = vrot.slane %v5802_v4, 2  ;;  %v1644_v22 = vsel %vm9734_vm11, %v1620_v40, %v5325_v33  ;;  %v1100_v12 = vsel %vm1094_vm6, %v1075_v2, %v10142_v47  ;;  %vm1144_vm15 = vcmask 97280   ;;  %v10145_v2 = vld [vmem:[#allocation175_spill] sm:$0xff] }
 0x2ec   :  { %v1689_v57 = vsel %vm9735_vm13, %v1665_v6, %v1487_v44  ;;  %v1485_v21 = vpop.permute.xlu0 %1484  ;;  %v1575_v6 = vsel %vm9726_vm8, %v1551_v29, %v10138_v11  ;;  %v1574_v44 = vsel %vm9726_vm8, %v1550_v23, %v10140_v3  ;;  %v1619_v11 = vsel %vm9733_vm10, %v1595_v26, %v10132_v60  ;;  %v5944_v23 = vld [vmem:[#allocation5 + $0x18] sm:$0xff] }
 0x2ed   :  { %v1688_v54 = vsel %vm9735_vm13, %v1664_v16, %v1485_v21  ;;  %1750 = vrot.lane.b32.xlu1 %v1689_v57, %s4020_s5  ;;  %v1097_v21 = vsel %vm1094_vm6, %v1072_v43, %v10134_v25  ;;  %v2095_v29 = vsel %vm224_vm2, %v2087_v19, %v9720_v30  ;;  %v1643_v45 = vsel %vm9734_vm11, %v1619_v11, %v5340_v63  ;;  %v10143_v16 = vld [vmem:[#allocation174_spill] sm:$0xff]  ;;  %v10144_v57 = vld [vmem:[#allocation152_spill] sm:$0xff] }
 0x2ee   :  { %1748 = vrot.lane.b32.xlu0 %v1688_v54, %s4020_s5  ;;  %v5934_v43 = vsel %vm251_vm5, %v2110_v59, %v9724_v46  ;;  %v2080_v60 = vsel %vm206_vm0, %v9721_v35, %v5894_v50  ;;  %v1599_v26 = vsel %vm9728_vm9, %v1575_v6, %v10137_v58  ;;  %v1598_v3 = vsel %vm9728_vm9, %v1574_v44, %v10139_v48  ;;  %v10146_v54 = vld [vmem:[#allocation153_spill] sm:$0xff] }
 0x2ef   :  { %v1554_v19 = vsel %vm9725_vm7, %v10144_v57, %v10143_v16  ;;  %v1553_v59 = vsel %vm9725_vm7, %v10146_v54, %v10145_v2  ;;  %v1668_v40 = vsel %vm9752_vm12, %v1644_v22, %v5325_v33  ;;  %v2103_v11 = vsel %vm233_vm3, %v2095_v29, %v5916_v7 }
 0x2f0   :  { %v1667_v6 = vsel %vm9752_vm12, %v1643_v45, %v5340_v63  ;;  %v2088_v61 = vsel %vm215_vm1, %v2080_v60, %v5894_v50  ;;  %v9727_v22 = vrot.slane %v5944_v23, 5  ;;  %v5967_v29 = vrot.slane %v5944_v23, 4  ;;  %v10147_v45 = vld [vmem:[#allocation79_spill] sm:$0xff] }
 0x2f1   :  { %v1122_v46 = vsel %vm1119_vm14, %v1097_v21, %v10147_v45  ;;  %v1623_v30 = vsel %vm9733_vm10, %v1599_v26, %v10137_v58  ;;  %v2111_v60 = vsel %vm242_vm4, %v2103_v11, %v5916_v7  ;;  %v1622_v63 = vsel %vm9733_vm10, %v1598_v3, %v10139_v48 }
 0x2f2   :  { %v5986_v58 = vrot.slane %v5871_v51, 2  ;;  %v1646_v21 = vsel %vm9734_vm11, %v1622_v63, %v5425_v41  ;;  %v10148_v26 = vrot.slane %v5871_v51, 3  ;;  %vm9736_vm7 = vcmask 105472   ;;  %v6019_v63 = vld [vmem:[#allocation5 + $0x20] sm:$0xff] }
 0x2f3   :  { %v1493_v44 = vpop.permute.xlu1 %1492  ;;  %2154 = vrot.lane.b32.xlu2 %v5934_v43, %s4010_s0  ;;  %v10149_v48 = vrot.slane %v5802_v4, 1  ;;  %v10150_v3 = vrot.slane %v5728_v0, 7 }
 0x2f4   :  { %v1692_v17 = vsel %vm9735_vm13, %v1668_v40, %v1493_v44  ;;  %v1491_v33 = vpop.permute.xlu0 %1490  ;;  %v1578_v40 = vsel %vm9726_vm8, %v1554_v19, %v10144_v57  ;;  %v1577_v44 = vsel %vm9726_vm8, %v1553_v59, %v10146_v54  ;;  %v2096_v57 = vsel %vm224_vm2, %v2088_v61, %v10148_v26  ;;  %v10151_v59 = vld [vmem:[#allocation82_spill] sm:$0xff] }
 0x2f5   :  { %v1691_v35 = vsel %vm9735_vm13, %v1667_v6, %v1491_v33  ;;  %1756 = vrot.lane.b32.xlu1 %v1692_v17, %s4020_s5  ;;  %v1647_v17 = vsel %vm9734_vm11, %v1623_v30, %v5409_v49  ;;  %v5996_v19 = vrot.slane %v5728_v0, 6  ;;  %v2081_v30 = vsel %vm206_vm0, %v9727_v22, %v5967_v29 }
 0x2f6   :  { %1754 = vrot.lane.b32.xlu0 %v1691_v35, %s4020_s5  ;;  %v6001_v35 = vsel %vm251_vm5, %v2111_v60, %v10149_v48  ;;  %v1974_v54 = vsel %vm206_vm0, %v5728_v0, %v10150_v3  ;;  %v1147_v61 = vsel %vm1144_vm15, %v1122_v46, %v10134_v25  ;;  %v1125_v11 = vsel %vm1119_vm14, %v1100_v12, %v10151_v59 }
 0x2f7   :  { %v1602_v6 = vsel %vm9728_vm9, %v1578_v40, %v10143_v16  ;;  %v1601_v33 = vsel %vm9728_vm9, %v1577_v44, %v10145_v2  ;;  %v1671_v60 = vsel %vm9752_vm12, %v1647_v17, %v5409_v49  ;;  %v1670_v26 = vsel %vm9752_vm12, %v1646_v21, %v5425_v41 }
 0x2f8   :  { %v10152_v48 = vrot.slane %v5728_v0, 1  ;;  %v2104_v46 = vsel %vm233_vm3, %v2096_v57, %v5986_v58  ;;  %v9732_v40 = vrot.slane %v5871_v51, 1  ;;  %v9729_v44 = vrot.slane %v5944_v23, 3 }
 0x2f9   :  { %v2089_v49 = vsel %vm215_vm1, %v2081_v30, %v5967_v29  ;;  %v1982_v41 = vsel %vm215_vm1, %v1974_v54, %v5996_v19  ;;  %vm1194_vm8 = vcmask 113664   ;;  %v9730_v21 = vrot.slane %v6019_v63, 5 }
 0x2fa   :  { %v2030_v25 = vsel %vm215_vm1, %v5837_v27, %v10152_v48  ;;  %v6042_v57 = vrot.slane %v6019_v63, 4  ;;  %v9731_v3 = vrot.slane %v5802_v4, 7  ;;  %v1626_v48 = vsel %vm9733_vm10, %v1602_v6, %v10143_v16 }
 0x2fb   :  { %v1499_v12 = vpop.permute.xlu1 %1498  ;;  %2160 = vrot.lane.b32.xlu2 %v6001_v35, %s4010_s0  ;;  %v2112_v30 = vsel %vm242_vm4, %v2104_v46, %v5986_v58  ;;  %v2038_v54 = vsel %vm224_vm2, %v2030_v25, %v5728_v0  ;;  %v6059_v16 = vrot.slane %v5944_v23, 2  ;;  %v1990_v6 = vsel %vm224_vm2, %v1982_v41, %v5996_v19 }
 0x2fc   :  { %v1695_v27 = vsel %vm9735_vm13, %v1671_v60, %v1499_v12  ;;  %v1497_v17 = vpop.permute.xlu0 %1496  ;;  %v1650_v60 = vsel %vm9734_vm11, %v1626_v48, %v5504_v42  ;;  %v1625_v12 = vsel %vm9733_vm10, %v1601_v33, %v10145_v2  ;;  %v2097_v46 = vsel %vm224_vm2, %v2089_v49, %v9729_v44 }
 0x2fd   :  { %v1694_v22 = vsel %vm9735_vm13, %v1670_v26, %v1497_v17  ;;  %1762 = vrot.lane.b32.xlu1 %v1695_v27, %s4020_s5  ;;  %v1172_v26 = vsel %vm9736_vm7, %v1147_v61, %v10147_v45  ;;  %v1649_v25 = vsel %vm9734_vm11, %v1625_v12, %v5520_v62  ;;  %v6071_v2 = vrot.slane %v5802_v4, 6 }
 0x2fe   :  { %1760 = vrot.lane.b32.xlu0 %v1694_v22, %s4020_s5  ;;  %v6076_v22 = vsel %vm251_vm5, %v2112_v30, %v9732_v40  ;;  %v2046_v33 = vsel %vm233_vm3, %v2038_v54, %v5728_v0  ;;  %v2082_v61 = vsel %vm206_vm0, %v9730_v21, %v6042_v57  ;;  %v1975_v49 = vsel %vm206_vm0, %v5802_v4, %v9731_v3  ;;  %v6095_v30 = vld [vmem:[#allocation5 + $0x28] sm:$0xff] }
 0x2ff   :  { %v1150_v41 = vsel %vm1144_vm15, %v1125_v11, %v10142_v47  ;;  %vm1219_vm9 = vcmask 121856   ;;  %v1674_v27 = vsel %vm9752_vm12, %v1650_v60, %v5504_v42  ;;  %v10153_v17 = vrot.slane %v5728_v0, 5 }
 0x300   :  { %v1673_v54 = vsel %vm9752_vm12, %v1649_v25, %v5520_v62  ;;  %v10154_v12 = vrot.slane %v5802_v4, 1  ;;  %v2105_v47 = vsel %vm233_vm3, %v2097_v46, %v6059_v16  ;;  %v9737_v11 = vrot.slane %v6019_v63, 3 }
 0x301   :  { %v1998_v48 = vsel %vm233_vm3, %v1990_v6, %v10153_v17  ;;  %v9740_v60 = vrot.slane %v5944_v23, 1  ;;  %v10155_v6 = vrot.slane %v5728_v0, 7  ;;  %v2090_v25 = vsel %vm215_vm1, %v2082_v61, %v6042_v57 }
 0x302   :  { %v2031_v44 = vsel %vm215_vm1, %v5916_v7, %v10154_v12  ;;  %v1983_v7 = vsel %vm215_vm1, %v1975_v49, %v6071_v2  ;;  %v2006_v12 = vsel %vm242_vm4, %v1998_v48, %v5755_v31  ;;  %v9738_v21 = vrot.slane %v6095_v30, 5 }
 0x303   :  { %v1505_v42 = vpop.permute.xlu1 %1504  ;;  %2166 = vrot.lane.b32.xlu2 %v6076_v22, %s4010_s0  ;;  %v2054_v62 = vsel %vm242_vm4, %v2046_v33, %v10155_v6  ;;  %v6121_v3 = vrot.slane %v6095_v30, 4  ;;  %v2113_v33 = vsel %vm242_vm4, %v2105_v47, %v6059_v16  ;;  %v6128_v61 = vrot.slane %v6019_v63, 2 }
 0x304   :  { %v1698_v46 = vsel %vm9735_vm13, %v1674_v27, %v1505_v42  ;;  %v1503_v17 = vpop.permute.xlu0 %1502  ;;  %v9739_v49 = vrot.slane %v5871_v51, 7  ;;  %v10156_v27 = vld [vmem:[#allocation61_spill] sm:$0xff]  ;;  %vm10157_vm10 = vcmask 72704   ;;  %v2039_v42 = vsel %vm224_vm2, %v2031_v44, %v5802_v4 }
 0x305   :  { %v1697_v40 = vsel %vm9735_vm13, %v1673_v54, %v1503_v17  ;;  %1768 = vrot.lane.b32.xlu1 %v1698_v46, %s4020_s5  ;;  %v1078_v48 = vsel %vm10157_vm10, %v5630_v37, %v10156_v27  ;;  %v2098_v54 = vsel %vm224_vm2, %v2090_v25, %v9737_v11  ;;  %v1991_v47 = vsel %vm224_vm2, %v1983_v7, %v6071_v2  ;;  %v10158_v17 = vld [vmem:[#allocation103_spill] sm:$0xff] }
 0x306   :  { %1766 = vrot.lane.b32.xlu0 %v1697_v40, %s4020_s5  ;;  %v1175_v6 = vsel %vm9736_vm7, %v1150_v41, %v10151_v59  ;;  %v1197_v46 = vsel %vm1194_vm8, %v1172_v26, %v10147_v45  ;;  %v2062_v37 = vsel %vm251_vm5, %v2054_v62, %v5996_v19  ;;  %v2014_v40 = vsel %vm251_vm5, %v2006_v12, %v5755_v31 }
 0x307   :  { %v1222_v25 = vsel %vm1219_vm9, %v1197_v46, %v10158_v17  ;;  %v6155_v44 = vsel %vm251_vm5, %v2113_v33, %v9740_v60  ;;  %v2083_v41 = vsel %vm206_vm0, %v9738_v21, %v6121_v3  ;;  %v6162_v45 = vrot.slane %v5871_v51, 6 }
 0x308   :  { %v2106_v26 = vsel %vm233_vm3, %v2098_v54, %v6128_v61  ;;  %v2047_v31 = vsel %vm233_vm3, %v2039_v42, %v5802_v4  ;;  %v10159_v62 = vrot.slane %v5802_v4, 5  ;;  %v1976_v12 = vsel %vm206_vm0, %v5871_v51, %v9739_v49 }
 0x309   :  { %v10160_v33 = vrot.slane %v5871_v51, 1  ;;  %vm10161_vm10 = vcmask 1046528   ;;  %v10162_v42 = vrot.slane %v5728_v0, 3  ;;  %vm9753_vm13 = vcmask 130048  }
 0x30a   :  { %v1999_v7 = vsel %vm233_vm3, %v1991_v47, %v10159_v62  ;;  %v6181_v54 = vsel %vm10161_vm10, %v2062_v37, %v5996_v19  ;;  %vm10163_vm11 = vmmov %vm10161_vm10  ;;  %v9741_v47 = vrot.slane %v6095_v30, 3  ;;  %v6189_v62 = vld [vmem:[#allocation5 + $0x30] sm:$0xff]  ;;  %vm9748_vm7 = vcmask 195584  }
 0x30b   :  { %v2032_v46 = vsel %vm215_vm1, %v5986_v58, %v10160_v33  ;;  %v6186_v17 = vsel %vm10163_vm11, %v2014_v40, %v10162_v42  ;;  %2172 = vrot.lane.b32.xlu2 %v6155_v44, %s4010_s0  ;;  %v9742_v58 = vrot.slane %v6019_v63, 1  ;;  %v2091_v19 = vsel %vm215_vm1, %v2083_v41, %v6121_v3  ;;  %vm10169_vm11 = vmmov %vm10161_vm10 }
 0x30c   :  { %v2114_v0 = vsel %vm242_vm4, %v2106_v26, %v6128_v61  ;;  %v10164_v37 = vrot.slane %v5802_v4, 7  ;;  %v2007_v33 = vsel %vm242_vm4, %v1999_v7, %v5827_v1  ;;  %v1984_v42 = vsel %vm215_vm1, %v1976_v12, %v6162_v45 }
 0x30d   :  { %2152 = vrot.lane.b32.xlu1 %v6181_v54, %s4010_s0  ;;  %v1729_v11 = vpop.permute.xlu2 %1728  ;;  %v6208_v21 = vrot.slane %v6095_v30, 2  ;;  %v6212_v26 = vrot.slane %v6189_v62, 4  ;;  %v1103_v7 = vsel %vm1094_vm6, %v1078_v48, %v10156_v27  ;;  %v2040_v49 = vsel %vm224_vm2, %v2032_v46, %v5871_v51 }
 0x30e   :  { %v2055_v40 = vsel %vm242_vm4, %v2047_v31, %v10164_v37  ;;  %2150 = vrot.lane.b32.xlu0 %v6186_v17, %s4010_s0  ;;  %v1799_v12 = vsel %vm9753_vm13, %v1222_v25, %v1729_v11  ;;  %v2099_v37 = vsel %vm224_vm2, %v2091_v19, %v9741_v47  ;;  %v1012_v60 = vsel %vm9752_vm12, %v5899_v20, %v10074_v38  ;;  %v10165_v31 = vld [vmem:[#allocation85_spill] sm:$0xff] }
 0x30f   :  { %v1128_v41 = vsel %vm1119_vm14, %v1103_v7, %v10165_v31  ;;  %1824 = vst.msk [vmem:[#allocation7 + $0x10] sm:$0xff] %vm9748_vm7, %v1799_v12  ;;  %v2063_v48 = vsel %vm251_vm5, %v2055_v40, %v6071_v2  ;;  %v1992_v11 = vsel %vm224_vm2, %v1984_v42, %v6162_v45  ;;  %v1200_v25 = vsel %vm1194_vm8, %v1175_v6, %v10151_v59 }
 0x310   :  { %v6240_v46 = vsel %vm251_vm5, %v2114_v0, %v9742_v58  ;;  %v2015_v38 = vsel %vm251_vm5, %v2007_v33, %v5827_v1  ;;  %v6245_v20 = vrot.slane %v5944_v23, 6  ;;  %v2107_v19 = vsel %vm233_vm3, %v2099_v37, %v6208_v21  ;;  %v10168_v33 = vld [vmem:[#allocation106_spill] sm:$0xff] }
 0x311   :  { %v2048_v40 = vsel %vm233_vm3, %v2040_v49, %v5871_v51  ;;  %v10166_v59 = vrot.slane %v6189_v62, 5  ;;  %v10167_v0 = vrot.slane %v5944_v23, 7  ;;  %v1153_v1 = vsel %vm1144_vm15, %v1128_v41, %v10156_v27 }
 0x312   :  { %v1225_v7 = vsel %vm1219_vm9, %v1200_v25, %v10168_v33  ;;  %v6265_v12 = vsel %vm10169_vm11, %v2063_v48, %v6071_v2  ;;  %v10170_v49 = vrot.slane %v5871_v51, 5  ;;  %v10171_v47 = vrot.slane %v5944_v23, 1 }
 0x313   :  { %v2084_v6 = vsel %vm206_vm0, %v10166_v59, %v6212_v26  ;;  %v1977_v42 = vsel %vm206_vm0, %v5944_v23, %v10167_v0  ;;  %v6270_v59 = vld [vmem:[#allocation5 + $0x38] sm:$0xff]  ;;  %2178 = vrot.lane.b32.xlu2 %v6240_v46, %s4010_s0  ;;  %v10172_v27 = vrot.slane %v5802_v4, 3  ;;  %v9745_v2 = vrot.slane %v6095_v30, 1 }
 0x314   :  { %v2000_v37 = vsel %vm233_vm3, %v1992_v11, %v10170_v49  ;;  %v2033_v0 = vsel %vm215_vm1, %v6059_v16, %v10171_v47  ;;  %v9743_v48 = vrot.slane %v6189_v62, 3  ;;  %v2115_v11 = vsel %vm242_vm4, %v2107_v19, %v6208_v21 }
 0x315   :  { %v6281_v41 = vsel %vm10161_vm10, %v2015_v38, %v10172_v27  ;;  %v10174_v25 = vrot.slane %v5871_v51, 7  ;;  %v2092_v16 = vsel %vm215_vm1, %v2084_v6, %v6212_v26  ;;  %v1985_v4 = vsel %vm215_vm1, %v1977_v42, %v6245_v20  ;;  %2158 = vrot.lane.b32.xlu1 %v6265_v12, %s4010_s0  ;;  %v1735_v47 = vpop.permute.xlu2 %1734  ;;  %v10175_v27 = vld [vmem:[#allocation64_spill] sm:$0xff] }
 0x316   :  { %10173 = vst [vmem:[#allocation154_spill] sm:$0xff] %v6281_v41  ;;  %v2008_v38 = vsel %vm242_vm4, %v2000_v37, %v5894_v50  ;;  %v9744_v49 = vrot.slane %v6270_v59, 5  ;;  %v6300_v19 = vrot.slane %v6270_v59, 4  ;;  %vm10176_vm11 = vcmask 72704   ;;  %2156 = vrot.lane.b32.xlu0 %v6281_v41, %s4010_s0 }
 0x317   :  { %v2056_v33 = vsel %vm242_vm4, %v2048_v40, %v10174_v25  ;;  %v1081_v6 = vsel %vm10176_vm11, %v5684_v9, %v10175_v27  ;;  %v1802_v42 = vsel %vm9753_vm13, %v1225_v7, %v1735_v47  ;;  %v6310_v25 = vrot.slane %v6189_v62, 2 }
 0x318   :  { %v2041_v37 = vsel %vm224_vm2, %v2033_v0, %v5944_v23  ;;  %vm10177_vm10 = vcmask 105472   ;;  %1827 = vst.msk [vmem:[#allocation7 + $0x28] sm:$0xff] %vm9748_vm7, %v1802_v42  ;;  %v2064_v40 = vsel %vm251_vm5, %v2056_v33, %v6162_v45  ;;  %v2100_v9 = vsel %vm224_vm2, %v2092_v16, %v9743_v48 }
 0x319   :  { %v1178_v58 = vsel %vm10177_vm10, %v1153_v1, %v10165_v31  ;;  %v1993_v7 = vsel %vm224_vm2, %v1985_v4, %v6245_v20  ;;  %vm10178_vm11 = vcmask 56320   ;;  %v6329_v0 = vsel %vm251_vm5, %v2115_v11, %v9745_v2 }
 0x31a   :  { %v1037_v47 = vsel %vm10178_vm11, %v1012_v60, %v10141_v13  ;;  %v2016_v1 = vsel %vm251_vm5, %v2008_v38, %v5894_v50  ;;  %v6334_v33 = vrot.slane %v6019_v63, 6  ;;  %v1106_v16 = vsel %vm1094_vm6, %v1081_v6, %v10175_v27 }
 0x31b   :  { %v2049_v4 = vsel %vm233_vm3, %v2041_v37, %v5944_v23  ;;  %v2085_v60 = vsel %vm206_vm0, %v9744_v49, %v6300_v19  ;;  %v10179_v11 = vrot.slane %v6019_v63, 7  ;;  %v1203_v50 = vsel %vm1194_vm8, %v1178_v58, %v10165_v31  ;;  %v10183_v49 = vld [vmem:[#allocation88_spill] sm:$0xff]  ;;  %2184 = vrot.lane.b32.xlu2 %v6329_v0, %s4010_s0 }
 0x31c   :  { %vm10180_vm10 = vcmask 1046528   ;;  %v2108_v6 = vsel %vm233_vm3, %v2100_v9, %v6310_v25  ;;  %v10182_v37 = vrot.slane %v5944_v23, 5  ;;  %v1131_v2 = vsel %vm1119_vm14, %v1106_v16, %v10183_v49 }
 0x31d   :  { %v1978_v42 = vsel %vm206_vm0, %v6019_v63, %v10179_v11  ;;  %v6352_v38 = vsel %vm10180_vm10, %v2064_v40, %v6162_v45  ;;  %v10184_v41 = vrot.slane %v6019_v63, 1  ;;  %v10185_v45 = vrot.slane %v5871_v51, 3  ;;  %vm10186_vm11 = vmmov %vm10180_vm10 }
 0x31e   :  { %10181 = vst [vmem:[#allocation133_spill] sm:$0xff] %v6352_v38  ;;  %v2001_v48 = vsel %vm233_vm3, %v1993_v7, %v10182_v37  ;;  %v9749_v31 = vrot.slane %v6270_v59, 3  ;;  %v9751_v40 = vrot.slane %v6189_v62, 1  ;;  %v10188_v9 = vrot.slane %v5944_v23, 7  ;;  %2164 = vrot.lane.b32.xlu1 %v6352_v38, %s4010_s0 }
 0x31f   :  { %v2034_v11 = vsel %vm215_vm1, %v6128_v61, %v10184_v41  ;;  %v6370_v58 = vsel %vm10186_vm11, %v2016_v1, %v10185_v45  ;;  %v2093_v16 = vsel %vm215_vm1, %v2085_v60, %v6300_v19  ;;  %v1986_v61 = vsel %vm215_vm1, %v1978_v42, %v6334_v33  ;;  %v10189_v41 = vld [vmem:[#allocation109_spill] sm:$0xff]  ;;  %v1741_v1 = vpop.permute.xlu2 %1740 }
 0x320   :  { %10187 = vst [vmem:[#allocation21_spill] sm:$0xff] %v6370_v58  ;;  %v2057_v7 = vsel %vm242_vm4, %v2049_v4, %v10188_v9  ;;  %v1228_v51 = vsel %vm1219_vm9, %v1203_v50, %v10189_v41  ;;  %v2116_v37 = vsel %vm242_vm4, %v2108_v6, %v6310_v25  ;;  %v2009_v45 = vsel %vm242_vm4, %v2001_v48, %v5967_v29  ;;  %v10190_v6 = vld [vmem:[#allocation67_spill] sm:$0xff] }
 0x321   :  { %v9750_v4 = vrot.slane %v6095_v30, 7  ;;  %v1156_v60 = vsel %vm1144_vm15, %v1131_v2, %v10175_v27  ;;  %2162 = vrot.lane.b32.xlu0 %v6370_v58, %s4010_s0  ;;  %v1805_v42 = vsel %vm9753_vm13, %v1228_v51, %v1741_v1  ;;  %v6396_v50 = vrot.slane %v6270_v59, 2  ;;  %v10192_v51 = vld [vmem:[#allocation47_spill] sm:$0xff] }
 0x322   :  { %v2042_v9 = vsel %vm224_vm2, %v2034_v11, %v6019_v63  ;;  %vm10191_vm10 = vcmask 72704   ;;  %1830 = vst.msk [vmem:[#allocation7 + $0x40] sm:$0xff] %vm9748_vm7, %v1805_v42  ;;  %v2065_v2 = vsel %vm251_vm5, %v2057_v7, %v6245_v20  ;;  %v2101_v27 = vsel %vm224_vm2, %v2093_v16, %v9749_v31  ;;  %v10199_v42 = vld [vmem:[#allocation49_spill] sm:$0xff]  ;;  %v10201_v31 = vld [vmem:[#allocation91_spill] sm:$0xff] }
 0x323   :  { %v1084_v48 = vsel %vm10191_vm10, %v5777_v24, %v10190_v6  ;;  %v1994_v41 = vsel %vm224_vm2, %v1986_v61, %v6334_v33  ;;  %vm10193_vm11 = vcmask 39936   ;;  %v6417_v24 = vsel %vm251_vm5, %v2116_v37, %v9751_v40 }
 0x324   :  { %v977_v11 = vsel %vm10193_vm11, %v5492_v5, %v10192_v51  ;;  %v2017_v1 = vsel %vm251_vm5, %v2009_v45, %v5967_v29  ;;  %v6422_v7 = vrot.slane %v6095_v30, 6  ;;  %vm10194_vm10 = vcmask 64512   ;;  %2190 = vrot.lane.b32.xlu2 %v6417_v24, %s4010_s0 }
 0x325   :  { %v1062_v16 = vsel %vm10194_vm10, %v1037_v47, %v10141_v13  ;;  %vm10195_vm7 = vcmask 105472   ;;  %v2050_v5 = vsel %vm233_vm3, %v2042_v9, %v6019_v63  ;;  %v1979_v37 = vsel %vm206_vm0, %v6095_v30, %v9750_v4 }
 0x326   :  { %v1181_v61 = vsel %vm10195_vm7, %v1156_v60, %v10183_v49  ;;  %v1109_v29 = vsel %vm1094_vm6, %v1084_v48, %v10190_v6  ;;  %vm10196_vm11 = vcmask 1046528   ;;  %v2109_v13 = vsel %vm233_vm3, %v2101_v27, %v6396_v50 }
 0x327   :  { %v6438_v45 = vsel %vm10196_vm11, %v2065_v2, %v6245_v20  ;;  %v10198_v47 = vrot.slane %v6019_v63, 5  ;;  %vm10200_vm7 = vcmask 39936   ;;  %v1134_v4 = vsel %vm1119_vm14, %v1109_v29, %v10201_v31  ;;  %vm10204_vm10 = vmmov %vm10196_vm11 }
 0x328   :  { %10197 = vst [vmem:[#allocation155_spill] sm:$0xff] %v6438_v45  ;;  %v990_v9 = vsel %vm10200_vm7, %v5500_v28, %v10199_v42  ;;  %v10202_v48 = vrot.slane %v6095_v30, 1  ;;  %v10203_v2 = vrot.slane %v5944_v23, 3  ;;  %v1965_v28 = vrot.slane %v6270_v59, 1  ;;  %2170 = vrot.lane.b32.xlu1 %v6438_v45, %s4010_s0  ;;  %v1747_v23 = vpop.permute.xlu2 %1746  ;;  %vm10209_vm11 = vmmov %vm10200_vm7 }
 0x329   :  { %v2002_v60 = vsel %vm233_vm3, %v1994_v41, %v10198_v47  ;;  %v1206_v41 = vsel %vm1194_vm8, %v1181_v61, %v10183_v49  ;;  %v10206_v29 = vrot.slane %v6019_v63, 7  ;;  %v1868_v61 = vrot.slane %v6189_v62, 7 }
 0x32a   :  { %v2035_v20 = vsel %vm215_vm1, %v6208_v21, %v10202_v48  ;;  %v6459_v27 = vsel %vm10204_vm10, %v2017_v1, %v10203_v2  ;;  %v1987_v21 = vsel %vm215_vm1, %v1979_v37, %v6422_v7  ;;  %v10207_v48 = vld [vmem:[#allocation112_spill] sm:$0xff]  ;;  %v2117_v1 = vsel %vm242_vm4, %v2109_v13, %v6396_v50 }
 0x32b   :  { %10205 = vst [vmem:[#allocation134_spill] sm:$0xff] %v6459_v27  ;;  %v2058_v47 = vsel %vm242_vm4, %v2050_v5, %v10206_v29  ;;  %v1231_v40 = vsel %vm1219_vm9, %v1206_v41, %v10207_v48  ;;  %v2010_v49 = vsel %vm242_vm4, %v2002_v60, %v6042_v57  ;;  %v1002_v5 = vsel %vm9752_vm12, %v977_v11, %v10077_v15  ;;  %v10208_v13 = vld [vmem:[#allocation48_spill] sm:$0xff]  ;;  %v10210_v29 = vld [vmem:[#allocation70_spill] sm:$0xff] }
 0x32c   :  { %v1159_v37 = vsel %vm1144_vm15, %v1134_v4, %v10190_v6  ;;  %2168 = vrot.lane.b32.xlu0 %v6459_v27, %s4010_s0  ;;  %v1808_v2 = vsel %vm9753_vm13, %v1231_v40, %v1747_v23  ;;  %v2043_v41 = vsel %vm224_vm2, %v2035_v20, %v6095_v30  ;;  %v976_v60 = vsel %vm10209_vm11, %v5496_v53, %v10208_v13 }
 0x32d   :  { %vm10211_vm7 = vcmask 72704   ;;  %vm10212_vm10 = vcmask 195584   ;;  %v2066_v15 = vsel %vm251_vm5, %v2058_v47, %v6334_v33  ;;  %v1995_v4 = vsel %vm224_vm2, %v1987_v21, %v6422_v7  ;;  %v10215_v47 = vld [vmem:[#allocation52_spill] sm:$0xff] }
 0x32e   :  { %v1087_v48 = vsel %vm10211_vm7, %v1062_v16, %v10210_v29  ;;  %1833 = vst.msk [vmem:[#allocation7 + $0x58] sm:$0xff] %vm10212_vm10, %v1808_v2  ;;  %v1015_v40 = vsel %vm9752_vm12, %v990_v9, %v10079_v10  ;;  %v6502_v6 = vsel %vm251_vm5, %v2117_v1, %v1965_v28  ;;  %v2018_v53 = vsel %vm251_vm5, %v2010_v49, %v6042_v57 }
 0x32f   :  { %v6507_v11 = vrot.slane %v6189_v62, 6  ;;  %vm10213_vm11 = vcmask 56320   ;;  %vm10214_vm7 = vcmask 105472   ;;  %v2051_v10 = vsel %vm233_vm3, %v2043_v41, %v6095_v30  ;;  %2196 = vrot.lane.b32.xlu2 %v6502_v6, %s4010_s0 }
 0x330   :  { %v6511_v16 = vsel %vm10213_vm11, %v1002_v5, %v10192_v51  ;;  %v1184_v20 = vsel %vm10214_vm7, %v1159_v37, %v10201_v31  ;;  %v1980_v9 = vsel %vm206_vm0, %v6189_v62, %v1868_v61  ;;  %vm10216_vm10 = vcmask 39936   ;;  %v10221_v37 = vld [vmem:[#allocation94_spill] sm:$0xff] }
 0x331   :  { %v993_v57 = vsel %vm10216_vm10, %v5532_v14, %v10215_v47  ;;  %v1112_v21 = vsel %vm1094_vm6, %v1087_v48, %v10210_v29  ;;  %vm10217_vm11 = vcmask 1046528   ;;  %v10219_v1 = vrot.slane %v6095_v30, 5 }
 0x332   :  { %v6528_v23 = vsel %vm10217_vm11, %v2066_v15, %v6334_v33  ;;  %vm10220_vm7 = vcmask 56320   ;;  %v1137_v2 = vsel %vm1119_vm14, %v1112_v21, %v10221_v37  ;;  %v10222_v41 = vrot.slane %v6189_v62, 1  ;;  %vm10224_vm10 = vmmov %vm10217_vm11 }
 0x333   :  { %10218 = vst [vmem:[#allocation173_spill] sm:$0xff] %v6528_v23  ;;  %v2003_v49 = vsel %vm233_vm3, %v1995_v4, %v10219_v1  ;;  %v1040_v5 = vsel %vm10220_vm7, %v1015_v40, %v10199_v42  ;;  %v10223_v33 = vrot.slane %v6019_v63, 3  ;;  %v1001_v15 = vsel %vm9752_vm12, %v976_v60, %v10078_v34  ;;  %v10227_v63 = vld [vmem:[#allocation115_spill] sm:$0xff]  ;;  %2176 = vrot.lane.b32.xlu1 %v6528_v23, %s4010_s0  ;;  %v1753_v34 = vpop.permute.xlu2 %1752 }
 0x334   :  { %v2036_v14 = vsel %vm215_vm1, %v6310_v25, %v10222_v41  ;;  %v1209_v4 = vsel %vm1194_vm8, %v1184_v20, %v10201_v31  ;;  %v10226_v40 = vrot.slane %v6095_v30, 7  ;;  %v1988_v25 = vsel %vm215_vm1, %v1980_v9, %v6507_v11 }
 0x335   :  { %v6546_v48 = vsel %vm10224_vm10, %v2018_v53, %v10223_v33  ;;  %v1018_v1 = vsel %vm9752_vm12, %v993_v57, %v10082_v18  ;;  %v1234_v53 = vsel %vm1219_vm9, %v1209_v4, %v10227_v63  ;;  %v2011_v31 = vsel %vm242_vm4, %v2003_v49, %v6121_v3  ;;  %v10229_v49 = vld [vmem:[#allocation73_spill] sm:$0xff] }
 0x336   :  { %10225 = vst [vmem:[#allocation22_spill] sm:$0xff] %v6546_v48  ;;  %v2059_v21 = vsel %vm242_vm4, %v2051_v10, %v10226_v40  ;;  %v1869_v60 = vrot.slane %v6270_v59, 7  ;;  %vm10228_vm11 = vcmask 64512   ;;  %v1162_v10 = vsel %vm1144_vm15, %v1137_v2, %v10210_v29  ;;  %2174 = vrot.lane.b32.xlu0 %v6546_v48, %s4010_s0  ;;  %v10235_v4 = vld [vmem:[#allocation65_spill] sm:$0xff] }
 0x337   :  { %v1065_v20 = vsel %vm10228_vm11, %v1040_v5, %v10199_v42  ;;  %v1811_v18 = vsel %vm9753_vm13, %v1234_v53, %v1753_v34  ;;  %v2044_v9 = vsel %vm224_vm2, %v2036_v14, %v6189_v62  ;;  %v1026_v57 = vsel %vm10220_vm7, %v1001_v15, %v10208_v13  ;;  %v10232_v5 = vld [vmem:[#allocation50_spill] sm:$0xff]  ;;  %vm10234_vm13 = vmmov %vm10220_vm7  ;;  %2226 = vrot.lane.b32.xlu2 %v5934_v43, %s4011_s1 }
 0x338   :  { %vm10230_vm10 = vcmask 72704   ;;  %vm10231_vm12 = vcmask 195584   ;;  %v2067_v42 = vsel %vm251_vm5, %v2059_v21, %v6422_v7  ;;  %v1996_v29 = vsel %vm224_vm2, %v1988_v25, %v6507_v11 }
 0x339   :  { %v1090_v41 = vsel %vm10230_vm10, %v1065_v20, %v10229_v49  ;;  %1836 = vst.msk [vmem:[#allocation7 + $0x70] sm:$0xff] %vm10231_vm12, %v1811_v18  ;;  %vm10233_vm11 = vcmask 39936   ;;  %v1043_v14 = vsel %vm10234_vm13, %v1018_v1, %v10215_v47  ;;  %v2019_v33 = vsel %vm251_vm5, %v2011_v31, %v6121_v3  ;;  %vm10236_vm12 = vmmov %vm10230_vm10  ;;  %v10238_v1 = vld [vmem:[#allocation66_spill] sm:$0xff]  ;;  %v10244_v20 = vld [vmem:[#allocation97_spill] sm:$0xff] }
 0x33a   :  { %v980_v2 = vsel %vm10233_vm11, %v5509_v36, %v10232_v5  ;;  %v6592_v15 = vrot.slane %v6270_v59, 6  ;;  %v1071_v40 = vsel %vm10236_vm12, %v5713_v32, %v10235_v4  ;;  %vm10237_vm7 = vcmask 105472   ;;  %vm10239_vm13 = vmmov %vm10230_vm10 }
 0x33b   :  { %v1187_v21 = vsel %vm10237_vm7, %v1162_v10, %v10221_v37  ;;  %v2052_v25 = vsel %vm233_vm3, %v2044_v9, %v6189_v62  ;;  %v1981_v36 = vsel %vm206_vm0, %v6270_v59, %v1869_v60  ;;  %v1070_v3 = vsel %vm10239_vm13, %v5759_v55, %v10238_v1  ;;  %vm10254_vm7 = vmmov %vm10239_vm13 }
 0x33c   :  { %v1115_v63 = vsel %vm1094_vm6, %v1090_v41, %v10229_v49  ;;  %vm10240_vm10 = vcmask 1046528   ;;  %v10242_v53 = vrot.slane %v6189_v62, 5  ;;  %vm10243_vm11 = vcmask 64512  }
 0x33d   :  { %v6612_v32 = vsel %vm10240_vm10, %v2067_v42, %v6422_v7  ;;  %v1068_v31 = vsel %vm10243_vm11, %v1043_v14, %v10215_v47  ;;  %v1140_v10 = vsel %vm1119_vm14, %v1115_v63, %v10244_v20  ;;  %v2037_v55 = vsel %vm215_vm1, %v6396_v50, %v1965_v28  ;;  %vm10246_vm0 = vmmov %vm10240_vm10  ;;  %v10253_v63 = vld [vmem:[#allocation76_spill] sm:$0xff] }
 0x33e   :  { %10241 = vst [vmem:[#allocation156_spill] sm:$0xff] %v6612_v32  ;;  %v2004_v34 = vsel %vm233_vm3, %v1996_v29, %v10242_v53  ;;  %v10245_v7 = vrot.slane %v6095_v30, 3  ;;  %v1096_v9 = vsel %vm1094_vm6, %v1071_v40, %v10235_v4  ;;  %v1212_v47 = vsel %vm1194_vm8, %v1187_v21, %v10221_v37  ;;  %v10248_v30 = vld [vmem:[#allocation89_spill] sm:$0xff]  ;;  %v10249_v29 = vld [vmem:[#allocation118_spill] sm:$0xff]  ;;  %2182 = vrot.lane.b32.xlu1 %v6612_v32, %s4010_s0  ;;  %v1759_v37 = vpop.permute.xlu2 %1758  ;;  %vm10252_vm12 = vmmov %vm10243_vm11 }
 0x33f   :  { %v2060_v41 = vsel %vm242_vm4, %v2052_v25, %v1868_v61  ;;  %v1989_v50 = vsel %vm215_vm1, %v1981_v36, %v6592_v15  ;;  %v1095_v28 = vsel %vm1094_vm6, %v1070_v3, %v10238_v1  ;;  %v1121_v42 = vsel %vm1119_vm14, %v1096_v9, %v10248_v30  ;;  %v10250_v61 = vld [vmem:[#allocation90_spill] sm:$0xff]  ;;  %vm10256_vm10 = vmmov %vm10243_vm11  ;;  %2232 = vrot.lane.b32.xlu2 %v6001_v35, %s4011_s1 }
 0x340   :  { %v6630_v18 = vsel %vm10246_vm0, %v2019_v33, %v10245_v7  ;;  %v1237_v14 = vsel %vm1219_vm9, %v1212_v47, %v10249_v29  ;;  %v2012_v33 = vsel %vm242_vm4, %v2004_v34, %v6212_v26  ;;  %v1120_v40 = vsel %vm1119_vm14, %v1095_v28, %v10250_v61  ;;  %v10257_v7 = vld [vmem:[#allocation26_spill] sm:$0xff]  ;;  %vm10260_vm0 = vmmov %vm10254_vm7  ;;  %v10268_v28 = vld [vmem:[#allocation11_spill] sm:$0xff] }
 0x341   :  { %10247 = vst [vmem:[#allocation135_spill] sm:$0xff] %v6630_v18  ;;  %v1165_v21 = vsel %vm1144_vm15, %v1140_v10, %v10229_v49  ;;  %2180 = vrot.lane.b32.xlu0 %v6630_v18, %s4010_s0  ;;  %vm10251_vm1 = vcmask 130048   ;;  %v2045_v36 = vsel %vm224_vm2, %v2037_v55, %v6270_v59  ;;  %v1052_v3 = vsel %vm10252_vm12, %v6511_v16, %v10192_v51 }
 0x342   :  { %v1814_v25 = vsel %vm10251_vm1, %v1237_v14, %v1759_v37  ;;  %v1093_v53 = vsel %vm10254_vm7, %v1068_v31, %v10253_v63  ;;  %vm10255_vm13 = vcmask 195584   ;;  %v2068_v49 = vsel %vm251_vm5, %v2060_v41, %v6507_v11  ;;  %v10259_v31 = vld [vmem:[#allocation68_spill] sm:$0xff]  ;;  %vm10263_vm1 = vmmov %vm10260_vm0 }
 0x343   :  { %1839 = vst.msk [vmem:[#allocation7 + $0x88] sm:$0xff] %vm10255_vm13, %v1814_v25  ;;  %v1997_v34 = vsel %vm224_vm2, %v1989_v50, %v6592_v15  ;;  %v1051_v10 = vsel %vm10256_vm10, %v1026_v57, %v10208_v13  ;;  %vm10258_vm11 = vcmask 48128   ;;  %v1146_v51 = vsel %vm1144_vm15, %v1121_v42, %v10235_v4  ;;  %v10262_v57 = vld [vmem:[#allocation69_spill] sm:$0xff]  ;;  %v10267_v50 = vld [vmem:[#allocation51_spill] sm:$0xff]  ;;  %v10271_v14 = vld [vmem:[#allocation100_spill] sm:$0xff] }
 0x344   :  { %v1005_v55 = vsel %vm10258_vm11, %v980_v2, %v10257_v7  ;;  %v2020_v16 = vsel %vm251_vm5, %v2012_v33, %v6212_v26  ;;  %v1074_v9 = vsel %vm10260_vm0, %v5841_v52, %v10259_v31  ;;  %v1145_v47 = vsel %vm1144_vm15, %v1120_v40, %v10238_v1 }
 0x345   :  { %vm10261_vm2 = vcmask 105472   ;;  %v2053_v13 = vsel %vm233_vm3, %v2045_v36, %v6270_v59  ;;  %v1073_v2 = vsel %vm10263_vm1, %v5852_v56, %v10262_v57  ;;  %v1118_v26 = vsel %vm1094_vm6, %v1093_v53, %v10253_v63 }
 0x346   :  { %v1190_v41 = vsel %vm10261_vm2, %v1165_v21, %v10244_v20  ;;  %vm10264_vm12 = vcmask 1046528   ;;  %v10266_v52 = vrot.slane %v6270_v59, 5  ;;  %vm10269_vm7 = vcmask 39936   ;;  %vm10270_vm13 = vmmov %vm10261_vm2  ;;  %v1765_v7 = vpop.permute.xlu2 %1764 }
 0x347   :  { %v6694_v4 = vsel %vm10264_vm12, %v2068_v49, %v6507_v11  ;;  %v979_v42 = vsel %vm10269_vm7, %v10268_v28, %v10267_v50  ;;  %v1171_v29 = vsel %vm10270_vm13, %v1146_v51, %v10248_v30  ;;  %v1143_v56 = vsel %vm1119_vm14, %v1118_v26, %v10271_v14  ;;  %vm10273_vm10 = vmmov %vm10264_vm12  ;;  %v10277_v49 = vld [vmem:[#allocation121_spill] sm:$0xff]  ;;  %v10284_v28 = vld [vmem:[#allocation114_spill] sm:$0xff]  ;;  %2238 = vrot.lane.b32.xlu2 %v6076_v22, %s4011_s1 }
 0x348   :  { %10265 = vst [vmem:[#allocation23_spill] sm:$0xff] %v6694_v4  ;;  %v2005_v1 = vsel %vm233_vm3, %v1997_v34, %v10266_v52  ;;  %v10272_v11 = vrot.slane %v6189_v62, 3  ;;  %v1099_v33 = vsel %vm1094_vm6, %v1074_v9, %v10259_v31  ;;  %vm10275_vm3 = vmmov %vm10261_vm2  ;;  %v1215_v21 = vsel %vm1194_vm8, %v1190_v41, %v10244_v20  ;;  %v10276_v62 = vld [vmem:[#allocation92_spill] sm:$0xff]  ;;  %2188 = vrot.lane.b32.xlu1 %v6694_v4, %s4010_s0  ;;  %v10278_v51 = vld [vmem:[#allocation93_spill] sm:$0xff] }
 0x349   :  { %v1170_v40 = vsel %vm10275_vm3, %v1145_v47, %v10250_v61  ;;  %v2061_v25 = vsel %vm242_vm4, %v2053_v13, %v1869_v60  ;;  %v1098_v36 = vsel %vm1094_vm6, %v1073_v2, %v10262_v57  ;;  %v1124_v53 = vsel %vm1119_vm14, %v1099_v33, %v10276_v62  ;;  %v10280_v41 = vld [vmem:[#allocation27_spill] sm:$0xff]  ;;  %v10282_v2 = vld [vmem:[#allocation113_spill] sm:$0xff]  ;;  %vm10287_vm12 = vmmov %vm10275_vm3 }
 0x34a   :  { %v6711_v37 = vsel %vm10273_vm10, %v2020_v16, %v10272_v11  ;;  %v1240_v34 = vsel %vm1219_vm9, %v1215_v21, %v10277_v49  ;;  %v2013_v20 = vsel %vm242_vm4, %v2005_v1, %v6300_v19  ;;  %v1123_v16 = vsel %vm1119_vm14, %v1098_v36, %v10278_v51  ;;  %v10286_v33 = vld [vmem:[#allocation71_spill] sm:$0xff]  ;;  %v10291_v36 = vld [vmem:[#allocation20_spill] sm:$0xff]  ;;  %vm10295_vm3 = vmmov %vm10263_vm1 }
 0x34b   :  { %10274 = vst [vmem:[#allocation24_spill] sm:$0xff] %v6711_v37  ;;  %v1168_v60 = vsel %vm1144_vm15, %v1143_v56, %v10253_v63  ;;  %v1196_v9 = vsel %vm1194_vm8, %v1171_v29, %v10248_v30  ;;  %2186 = vrot.lane.b32.xlu0 %v6711_v37, %s4010_s0  ;;  %vm10279_vm11 = vcmask 130048   ;;  %vm10281_vm0 = vcmask 48128   ;;  %v1727_v63 = vpop.permute.xlu1 %1726  ;;  %v1725_v56 = vpop.permute.xlu0 %1724  ;;  %v10294_v49 = vld [vmem:[#allocation72_spill] sm:$0xff] }
 0x34c   :  { %v1817_v47 = vsel %vm10279_vm11, %v1240_v34, %v1765_v7  ;;  %v1004_v13 = vsel %vm10281_vm0, %v979_v42, %v10280_v41  ;;  %v1221_v26 = vsel %vm1219_vm9, %v1196_v9, %v10282_v2  ;;  %v1195_v52 = vsel %vm1194_vm8, %v1170_v40, %v10250_v61  ;;  %vm10285_vm2 = vmmov %vm10279_vm11  ;;  %v10299_v34 = vld [vmem:[#allocation32_spill] sm:$0xff]  ;;  %v10309_v41 = vld [vmem:[#allocation53_spill] sm:$0xff] }
 0x34d   :  { %vm10283_vm4 = vcmask 195584   ;;  %v2069_v30 = vsel %vm251_vm5, %v2061_v25, %v6592_v15  ;;  %v1149_v1 = vsel %vm1144_vm15, %v1124_v53, %v10259_v31  ;;  %v1220_v29 = vsel %vm1219_vm9, %v1195_v52, %v10284_v28  ;;  %vm10289_vm13 = vmmov %vm10285_vm2  ;;  %v10290_v25 = vld [vmem:[#allocation29_spill] sm:$0xff]  ;;  %v10300_v7 = vld [vmem:[#allocation188_spill] sm:$0xff] }
 0x34e   :  { %1842 = vst.msk [vmem:[#allocation7 + $0xa0] sm:$0xff] %vm10283_vm4, %v1817_v47  ;;  %v1798_v42 = vsel %vm10285_vm2, %v1221_v26, %v1727_v63  ;;  %v2021_v11 = vsel %vm251_vm5, %v2013_v20, %v6300_v19  ;;  %v1077_v61 = vsel %vm10263_vm1, %v1052_v3, %v10286_v33  ;;  %v1148_v40 = vsel %vm1144_vm15, %v1123_v16, %v10262_v57  ;;  %vm10288_vm7 = vmmov %vm10283_vm4  ;;  %v10311_v26 = vld [vmem:[#allocation95_spill] sm:$0xff]  ;;  %v10312_v63 = vld [vmem:[#allocation124_spill] sm:$0xff] }
 0x34f   :  { %v1193_v21 = vsel %vm10287_vm12, %v1168_v60, %v10271_v14  ;;  %1823 = vst.msk [vmem:[#allocation7 + $0x8] sm:$0xff] %vm10288_vm7, %v1798_v42  ;;  %v1797_v31 = vsel %vm10289_vm13, %v1220_v29, %v1725_v56  ;;  %vm10292_vm10 = vcmask 31744   ;;  %v1076_v3 = vsel %vm10295_vm3, %v1051_v10, %v10294_v49  ;;  %vm10296_vm11 = vmmov %vm10283_vm4  ;;  %2244 = vrot.lane.b32.xlu2 %v6155_v44, %s4011_s1 }
 0x350   :  { %v958_v53 = vsel %vm10292_vm10, %v10291_v36, %v10290_v25  ;;  %vm10293_vm5 = vmmov %vm10292_vm10  ;;  %1822 = vst.msk [vmem:[#allocation7] sm:$0xff] %vm10296_vm11, %v1797_v31  ;;  %vm10297_vm0 = vcmask 1046528   ;;  %vm10301_vm4 = vcmask 23552   ;;  %vm10302_vm2 = vcmask 56320  }
 0x351   :  { %v957_v19 = vsel %vm10293_vm5, %v5564_v39, %v10097_v8  ;;  %v6776_v57 = vsel %vm10297_vm0, %v2069_v30, %v6592_v15  ;;  %v936_v20 = vsel %vm10301_vm4, %v10300_v7, %v10299_v34  ;;  %v1030_v16 = vsel %vm10302_vm2, %v1005_v55, %v10232_v5  ;;  %vm10303_vm1 = vmmov %vm10287_vm12  ;;  %v1771_v30 = vpop.permute.xlu2 %1770 }
 0x352   :  { %10298 = vst [vmem:[#allocation25_spill] sm:$0xff] %v6776_v57  ;;  %v1174_v60 = vsel %vm10303_vm1, %v1149_v1, %v10276_v62  ;;  %v10304_v39 = vrot.slane %v6270_v59, 3  ;;  %vm10305_vm12 = vmmov %vm10297_vm0  ;;  %v1102_v9 = vsel %vm1094_vm6, %v1077_v61, %v10286_v33  ;;  %v1218_v47 = vsel %vm1194_vm8, %v1193_v21, %v10271_v14  ;;  %2194 = vrot.lane.b32.xlu1 %v6776_v57, %s4010_s0  ;;  %v10313_v1 = vld [vmem:[#allocation54_spill] sm:$0xff]  ;;  %v10315_v14 = vld [vmem:[#allocation96_spill] sm:$0xff] }
 0x353   :  { %vm10307_vm7 = vmmov %vm10302_vm2  ;;  %vm10310_vm10 = vcmask 39936   ;;  %v1101_v59 = vsel %vm1094_vm6, %v1076_v3, %v10294_v49  ;;  %v1127_v52 = vsel %vm1119_vm14, %v1102_v9, %v10311_v26  ;;  %v1199_v42 = vsel %vm1194_vm8, %v1174_v60, %v10276_v62  ;;  %v1733_v62 = vpop.permute.xlu1 %1732  ;;  %v1731_v3 = vpop.permute.xlu0 %1730  ;;  %v10332_v9 = vld [vmem:[#allocation75_spill] sm:$0xff] }
 0x354   :  { %v6790_v10 = vsel %vm10305_vm12, %v2021_v11, %v10304_v39  ;;  %v1029_v15 = vsel %vm10307_vm7, %v1004_v13, %v10267_v50  ;;  %vm10308_vm13 = vmmov %vm10303_vm1  ;;  %v983_v2 = vsel %vm10310_vm10, %v958_v53, %v10309_v41  ;;  %v1243_v13 = vsel %vm1219_vm9, %v1218_v47, %v10312_v63  ;;  %v10330_v39 = vld [vmem:[#allocation189_spill] sm:$0xff]  ;;  %v10336_v47 = vld [vmem:[#allocation19_spill] sm:$0xff] }
 0x355   :  { %10306 = vst [vmem:[#allocation28_spill] sm:$0xff] %v6790_v10  ;;  %v1173_v55 = vsel %vm10308_vm13, %v1148_v40, %v10278_v51  ;;  %vm10314_vm5 = vmmov %vm10310_vm10  ;;  %v1126_v29 = vsel %vm1119_vm14, %v1101_v59, %v10315_v14  ;;  %2192 = vrot.lane.b32.xlu0 %v6790_v10, %s4010_s0  ;;  %vm10316_vm3 = vcmask 130048   ;;  %vm10317_vm11 = vcmask 64512   ;;  %v10319_v40 = vld [vmem:[#allocation116_spill] sm:$0xff] }
 0x356   :  { %v982_v28 = vsel %vm10314_vm5, %v957_v19, %v10313_v1  ;;  %v1820_v56 = vsel %vm10316_vm3, %v1243_v13, %v1771_v30  ;;  %v1055_v11 = vsel %vm10317_vm11, %v1030_v16, %v10232_v5  ;;  %vm10318_vm0 = vmmov %vm10317_vm11  ;;  %v1224_v21 = vsel %vm1219_vm9, %v1199_v42, %v10319_v40  ;;  %v10322_v19 = vld [vmem:[#allocation117_spill] sm:$0xff]  ;;  %v10325_v16 = vld [vmem:[#allocation74_spill] sm:$0xff] }
 0x357   :  { %v1054_v61 = vsel %vm10318_vm0, %v1029_v15, %v10267_v50  ;;  %v1198_v31 = vsel %vm1194_vm8, %v1173_v55, %v10278_v51  ;;  %vm10320_vm4 = vcmask 195584   ;;  %vm10321_vm2 = vcmask 48128   ;;  %vm10323_vm1 = vmmov %vm10316_vm3  ;;  %v10338_v59 = vld [vmem:[#allocation16_spill] sm:$0xff]  ;;  %v10349_v40 = vld [vmem:[#allocation98_spill] sm:$0xff]  ;;  %2250 = vrot.lane.b32.xlu2 %v6240_v46, %s4011_s1 }
 0x358   :  { %1845 = vst.msk [vmem:[#allocation7 + $0xb8] sm:$0xff] %vm10320_vm4, %v1820_v56  ;;  %v1008_v36 = vsel %vm10321_vm2, %v983_v2, %v10290_v25  ;;  %v1152_v53 = vsel %vm1144_vm15, %v1127_v52, %v10286_v33  ;;  %v1223_v5 = vsel %vm1219_vm9, %v1198_v31, %v10322_v19  ;;  %v1801_v50 = vsel %vm10323_vm1, %v1224_v21, %v1733_v62  ;;  %vm10324_vm12 = vmmov %vm10321_vm2  ;;  %v10329_v33 = vld [vmem:[#allocation33_spill] sm:$0xff]  ;;  %v10339_v52 = vld [vmem:[#allocation12_spill] sm:$0xff] }
 0x359   :  { %v1007_v7 = vsel %vm10324_vm12, %v982_v28, %v10097_v8  ;;  %vm10326_vm7 = vcmask 72704   ;;  %v1151_v60 = vsel %vm1144_vm15, %v1126_v29, %v10294_v49  ;;  %vm10327_vm13 = vmmov %vm10320_vm4  ;;  %vm10331_vm5 = vcmask 23552   ;;  %v10335_v8 = vld [vmem:[#allocation15_spill] sm:$0xff]  ;;  %v10347_v56 = vld [vmem:[#allocation56_spill] sm:$0xff]  ;;  %v6879_v31 = vpop.permute.xlu2 %2154 }
 0x35a   :  { %v1080_v51 = vsel %vm10326_vm7, %v1055_v11, %v10325_v16  ;;  %1826 = vst.msk [vmem:[#allocation7 + $0x20] sm:$0xff] %vm10327_vm13, %v1801_v50  ;;  %vm10328_vm10 = vmmov %vm10323_vm1  ;;  %v935_v15 = vsel %vm10331_vm5, %v10330_v39, %v10329_v33  ;;  %vm10337_vm0 = vcmask 15360   ;;  %vm10341_vm2 = vcmask 31744   ;;  %2224 = vrot.lane.b32.xlu1 %v6181_v54, %s4011_s1  ;;  %v10350_v62 = vld [vmem:[#allocation17_spill] sm:$0xff]  ;;  %v10355_v50 = vld [vmem:[#allocation99_spill] sm:$0xff] }
 0x35b   :  { %v1800_v25 = vsel %vm10328_vm10, %v1223_v5, %v1731_v3  ;;  %vm10333_vm3 = vmmov %vm10326_vm7  ;;  %v914_v2 = vsel %vm10337_vm0, %v10336_v47, %v10335_v8  ;;  %v961_v63 = vsel %vm10341_vm2, %v936_v20, %v10299_v34  ;;  %vm10342_vm1 = vcmask 105472   ;;  %v10353_v19 = vld [vmem:[#allocation57_spill] sm:$0xff]  ;;  %v10360_v47 = vld [vmem:[#allocation120_spill] sm:$0xff] }
 0x35c   :  { %v1079_v55 = vsel %vm10333_vm3, %v1054_v61, %v10332_v9  ;;  %vm10334_vm11 = vmmov %vm10320_vm4  ;;  %vm10340_vm4 = vcmask 7168   ;;  %v1177_v13 = vsel %vm10342_vm1, %v1152_v53, %v10311_v26  ;;  %vm10343_vm12 = vcmask 56320  }
 0x35d   :  { %1825 = vst.msk [vmem:[#allocation7 + $0x18] sm:$0xff] %vm10334_vm11, %v1800_v25  ;;  %v888_v49 = vsel %vm10340_vm4, %v10339_v52, %v10338_v59  ;;  %v1033_v30 = vsel %vm10343_vm12, %v1008_v36, %v10309_v41  ;;  %vm10344_vm7 = vmmov %vm10343_vm12  ;;  %v1105_v29 = vsel %vm1094_vm6, %v1080_v51, %v10325_v16  ;;  %vm10348_vm5 = vcmask 39936   ;;  %v10351_v36 = vld [vmem:[#allocation13_spill] sm:$0xff]  ;;  %2222 = vrot.lane.b32.xlu0 %v6186_v17, %s4011_s1  ;;  %v10358_v25 = vld [vmem:[#allocation119_spill] sm:$0xff] }
 0x35e   :  { %v1032_v28 = vsel %vm10344_vm7, %v1007_v7, %v10313_v1  ;;  %vm10345_vm13 = vmmov %vm10342_vm1  ;;  %v986_v11 = vsel %vm10348_vm5, %v961_v63, %v10347_v56  ;;  %v1104_v61 = vsel %vm1094_vm6, %v1079_v55, %v10332_v9  ;;  %v1130_v21 = vsel %vm1119_vm14, %v1105_v29, %v10349_v40  ;;  %v1739_v55 = vpop.permute.xlu1 %1738  ;;  %v1737_v63 = vpop.permute.xlu0 %1736 }
 0x35f   :  { %v1176_v42 = vsel %vm10345_vm13, %v1151_v60, %v10315_v14  ;;  %vm10346_vm10 = vmmov %vm10341_vm2  ;;  %v1129_v3 = vsel %vm1119_vm14, %v1104_v61, %v10355_v50  ;;  %v1202_v7 = vsel %vm1194_vm8, %v1177_v13, %v10311_v26  ;;  %vm10356_vm0 = vcmask 64512   ;;  %v10363_v13 = vld [vmem:[#allocation77_spill] sm:$0xff]  ;;  %2256 = vrot.lane.b32.xlu2 %v6329_v0, %s4011_s1 }
 0x360   :  { %v960_v20 = vsel %vm10346_vm10, %v935_v15, %v10329_v33  ;;  %vm10352_vm3 = vmmov %vm10340_vm4  ;;  %v1058_v51 = vsel %vm10356_vm0, %v1033_v30, %v10309_v41  ;;  %v1227_v39 = vsel %vm1219_vm9, %v1202_v7, %v10358_v25  ;;  %v1201_v15 = vsel %vm1194_vm8, %v1176_v42, %v10315_v14  ;;  %v10370_v42 = vld [vmem:[#allocation78_spill] sm:$0xff]  ;;  %v10384_v7 = vld [vmem:[#allocation101_spill] sm:$0xff] }
 0x361   :  { %v892_v53 = vsel %vm10352_vm3, %v10351_v36, %v10350_v62  ;;  %vm10354_vm11 = vmmov %vm10348_vm5  ;;  %vm10359_vm2 = vcmask 48128   ;;  %v1155_v26 = vsel %vm1144_vm15, %v1130_v21, %v10325_v16  ;;  %v1226_v52 = vsel %vm1219_vm9, %v1201_v15, %v10360_v47  ;;  %v10381_v36 = vld [vmem:[#allocation14_spill] sm:$0xff] }
 0x362   :  { %v985_v5 = vsel %vm10354_vm11, %v960_v20, %v10353_v19  ;;  %vm10357_vm4 = vmmov %vm10356_vm0  ;;  %v1011_v8 = vsel %vm10359_vm2, %v986_v11, %v10299_v34  ;;  %vm10361_vm1 = vcmask 130048   ;;  %vm10364_vm7 = vcmask 72704   ;;  %v10374_v11 = vld [vmem:[#allocation36_spill] sm:$0xff]  ;;  %2230 = vrot.lane.b32.xlu1 %v6265_v12, %s4011_s1  ;;  %v10389_v47 = vld [vmem:[#allocation154_spill] sm:$0xff] }
 0x363   :  { %v1057_v60 = vsel %vm10357_vm4, %v1032_v28, %v10313_v1  ;;  %v1804_v41 = vsel %vm10361_vm1, %v1227_v39, %v1739_v55  ;;  %vm10362_vm12 = vmmov %vm10359_vm2  ;;  %v1083_v30 = vsel %vm10364_vm7, %v1058_v51, %v10363_v13  ;;  %v1154_v14 = vsel %vm1144_vm15, %v1129_v3, %v10332_v9  ;;  %v10368_v28 = vld [vmem:[#allocation35_spill] sm:$0xff]  ;;  %v10388_v55 = vld [vmem:[#allocation102_spill] sm:$0xff] }
 0x364   :  { %v1010_v1 = vsel %vm10362_vm12, %v985_v5, %v10329_v33  ;;  %vm10365_vm13 = vcmask 195584   ;;  %vm10366_vm10 = vmmov %vm10361_vm1  ;;  %vm10367_vm5 = vcmask 15360   ;;  %vm10369_vm3 = vcmask 23552   ;;  %v10386_v39 = vld [vmem:[#allocation59_spill] sm:$0xff] }
 0x365   :  { %1829 = vst.msk [vmem:[#allocation7 + $0x38] sm:$0xff] %vm10365_vm13, %v1804_v41  ;;  %v1803_v34 = vsel %vm10366_vm10, %v1226_v52, %v1737_v63  ;;  %v913_v16 = vsel %vm10367_vm5, %v888_v49, %v10338_v59  ;;  %v939_v29 = vsel %vm10369_vm3, %v914_v2, %v10368_v28  ;;  %vm10371_vm11 = vmmov %vm10364_vm7  ;;  %vm10376_vm1 = vcmask 105472   ;;  %2228 = vrot.lane.b32.xlu0 %v10389_v47, %s4011_s1  ;;  %v10392_v63 = vld [vmem:[#allocation122_spill] sm:$0xff] }
 0x366   :  { %v1082_v20 = vsel %vm10371_vm11, %v1057_v60, %v10370_v42  ;;  %vm10372_vm0 = vmmov %vm10365_vm13  ;;  %v1180_v61 = vsel %vm10376_vm1, %v1155_v26, %v10349_v40  ;;  %vm10377_vm12 = vcmask 56320   ;;  %v1108_v49 = vsel %vm1094_vm6, %v1083_v30, %v10363_v13  ;;  %v6949_v60 = vpop.permute.xlu2 %2160 }
 0x367   :  { %1828 = vst.msk [vmem:[#allocation7 + $0x30] sm:$0xff] %vm10372_vm0, %v1803_v34  ;;  %vm10373_vm4 = vmmov %vm10367_vm5  ;;  %v1036_v2 = vsel %vm10377_vm12, %v1011_v8, %v10347_v56  ;;  %vm10382_vm10 = vcmask 7168   ;;  %vm10383_vm5 = vcmask 31744   ;;  %v1107_v3 = vsel %vm1094_vm6, %v1082_v20, %v10370_v42  ;;  %v10393_v34 = vld [vmem:[#allocation60_spill] sm:$0xff]  ;;  %2262 = vrot.lane.b32.xlu2 %v6417_v24, %s4011_s1 }
 0x368   :  { %v917_v33 = vsel %vm10373_vm4, %v892_v53, %v10350_v62  ;;  %vm10375_vm2 = vmmov %vm10369_vm3  ;;  %v10380_v62 = vld [vmem:[#allocation18_spill] sm:$0xff]  ;;  %v964_v5 = vsel %vm10383_vm5, %v939_v29, %v10368_v28  ;;  %v1133_v51 = vsel %vm1119_vm14, %v1108_v49, %v10384_v7  ;;  %vm10387_vm11 = vcmask 39936   ;;  %v10395_v29 = vld [vmem:[#allocation123_spill] sm:$0xff] }
 0x369   :  { %v938_v9 = vsel %vm10375_vm2, %v913_v16, %v10374_v11  ;;  %vm10378_vm7 = vmmov %vm10377_vm12  ;;  %v891_v53 = vsel %vm10382_vm10, %v10381_v36, %v10380_v62  ;;  %v989_v15 = vsel %vm10387_vm11, %v964_v5, %v10386_v39  ;;  %v1132_v8 = vsel %vm1119_vm14, %v1107_v3, %v10388_v55  ;;  %v10403_v49 = vld [vmem:[#allocation38_spill] sm:$0xff]  ;;  %v10405_v36 = vld [vmem:[#allocation81_spill] sm:$0xff] }
 0x36a   :  { %v1035_v59 = vsel %vm10378_vm7, %v1010_v1, %v10353_v19  ;;  %vm10379_vm13 = vmmov %vm10376_vm1  ;;  %v1205_v26 = vsel %vm1194_vm8, %v1180_v61, %v10349_v40  ;;  %vm10390_vm0 = vcmask 64512   ;;  %v1158_v40 = vsel %vm1144_vm15, %v1133_v51, %v10363_v13  ;;  %v10398_v61 = vld [vmem:[#allocation80_spill] sm:$0xff]  ;;  %2236 = vrot.lane.b32.xlu1 %v6352_v38, %s4011_s1 }
 0x36b   :  { %v1179_v21 = vsel %vm10379_vm13, %v1154_v14, %v10355_v50  ;;  %vm10385_vm3 = vmmov %vm10383_vm5  ;;  %v1061_v52 = vsel %vm10390_vm0, %v1036_v2, %v10347_v56  ;;  %v1230_v1 = vsel %vm1219_vm9, %v1205_v26, %v10392_v63  ;;  %v1745_v14 = vpop.permute.xlu1 %1744  ;;  %vm10396_vm1 = vcmask 130048   ;;  %v10419_v63 = vld [vmem:[#allocation105_spill] sm:$0xff] }
 0x36c   :  { %v963_v25 = vsel %vm10385_vm3, %v938_v9, %v10374_v11  ;;  %vm10391_vm4 = vmmov %vm10390_vm0  ;;  %v1204_v30 = vsel %vm1194_vm8, %v1179_v21, %v10355_v50  ;;  %v1807_v56 = vsel %vm10396_vm1, %v1230_v1, %v1745_v14  ;;  %v1743_v9 = vpop.permute.xlu0 %1742  ;;  %vm10397_vm12 = vcmask 48128  }
 0x36d   :  { %v1060_v41 = vsel %vm10391_vm4, %v1035_v59, %v10353_v19  ;;  %vm10394_vm2 = vmmov %vm10387_vm11  ;;  %v1229_v20 = vsel %vm1219_vm9, %v1204_v30, %v10395_v29  ;;  %v1014_v19 = vsel %vm10397_vm12, %v989_v15, %v10368_v28  ;;  %vm10399_vm7 = vcmask 72704   ;;  %v10408_v28 = vld [vmem:[#allocation39_spill] sm:$0xff]  ;;  %v10415_v15 = vld [vmem:[#allocation104_spill] sm:$0xff]  ;;  %2234 = vrot.lane.b32.xlu0 %v6370_v58, %s4011_s1 }
 0x36e   :  { %v988_v16 = vsel %vm10394_vm2, %v963_v25, %v10393_v34  ;;  %v1086_v2 = vsel %vm10399_vm7, %v1061_v52, %v10398_v61  ;;  %v1157_v50 = vsel %vm1144_vm15, %v1132_v8, %v10370_v42  ;;  %vm10400_vm13 = vcmask 195584   ;;  %vm10401_vm10 = vmmov %vm10396_vm1  ;;  %v7013_v26 = vpop.permute.xlu2 %2166  ;;  %v10423_v29 = vld [vmem:[#allocation125_spill] sm:$0xff] }
 0x36f   :  { %1832 = vst.msk [vmem:[#allocation7 + $0x50] sm:$0xff] %vm10400_vm13, %v1807_v56  ;;  %v1806_v59 = vsel %vm10401_vm10, %v1229_v20, %v1743_v9  ;;  %vm10402_vm5 = vcmask 15360   ;;  %vm10404_vm3 = vcmask 23552   ;;  %vm10406_vm11 = vmmov %vm10399_vm7  ;;  %vm10411_vm1 = vcmask 105472   ;;  %2268 = vrot.lane.b32.xlu2 %v6502_v6, %s4011_s1 }
 0x370   :  { %v916_v13 = vsel %vm10402_vm5, %v891_v53, %v10380_v62  ;;  %v942_v21 = vsel %vm10404_vm3, %v917_v33, %v10403_v49  ;;  %v1085_v5 = vsel %vm10406_vm11, %v1060_v41, %v10405_v36  ;;  %vm10407_vm0 = vmmov %vm10400_vm13  ;;  %v1183_v51 = vsel %vm10411_vm1, %v1158_v40, %v10384_v7  ;;  %10416 = vst [vmem:[#allocation157_spill] sm:$0xff] %v7013_v26 }
 0x371   :  { %1831 = vst.msk [vmem:[#allocation7 + $0x48] sm:$0xff] %vm10407_vm0, %v1806_v59  ;;  %vm10409_vm4 = vmmov %vm10404_vm3  ;;  %v1111_v62 = vsel %vm1094_vm6, %v1086_v2, %v10398_v61  ;;  %vm10414_vm13 = vcmask 31744   ;;  %v1208_v30 = vsel %vm1194_vm8, %v1183_v51, %v10384_v7  ;;  %vm10420_vm3 = vcmask 64512   ;;  %v10434_v51 = vld [vmem:[#allocation84_spill] sm:$0xff] }
 0x372   :  { %v941_v3 = vsel %vm10409_vm4, %v916_v13, %v10408_v28  ;;  %vm10410_vm2 = vmmov %vm10397_vm12  ;;  %vm10412_vm12 = vcmask 56320   ;;  %v967_v25 = vsel %vm10414_vm13, %v942_v21, %v10403_v49  ;;  %v1136_v8 = vsel %vm1119_vm14, %v1111_v62, %v10415_v15  ;;  %2242 = vrot.lane.b32.xlu1 %v6438_v45, %s4011_s1 }
 0x373   :  { %v1013_v42 = vsel %vm10410_vm2, %v988_v16, %v10374_v11  ;;  %v1039_v33 = vsel %vm10412_vm12, %v1014_v19, %v10386_v39  ;;  %vm10413_vm7 = vmmov %vm10411_vm1  ;;  %v1110_v11 = vsel %vm1094_vm6, %v1085_v5, %v10405_v36  ;;  %v10421_v16 = vld [vmem:[#allocation62_spill] sm:$0xff]  ;;  %vm10422_vm11 = vcmask 39936   ;;  %v1751_v9 = vpop.permute.xlu1 %1750  ;;  %v10424_v19 = vld [vmem:[#allocation63_spill] sm:$0xff] }
 0x374   :  { %v1182_v53 = vsel %vm10413_vm7, %v1157_v50, %v10388_v55  ;;  %vm10417_vm10 = vmmov %vm10414_vm13  ;;  %v1135_v1 = vsel %vm1119_vm14, %v1110_v11, %v10419_v63  ;;  %v1064_v14 = vsel %vm10420_vm3, %v1039_v33, %v10386_v39  ;;  %v992_v40 = vsel %vm10422_vm11, %v967_v25, %v10421_v16  ;;  %v10426_v50 = vld [vmem:[#allocation126_spill] sm:$0xff]  ;;  %v1749_v13 = vpop.permute.xlu0 %1748  ;;  %v10429_v5 = vld [vmem:[#allocation83_spill] sm:$0xff] }
 0x375   :  { %v966_v52 = vsel %vm10417_vm10, %v941_v3, %v10408_v28  ;;  %vm10418_vm5 = vmmov %vm10412_vm12  ;;  %v1233_v20 = vsel %vm1219_vm9, %v1208_v30, %v10423_v29  ;;  %v1207_v56 = vsel %vm1194_vm8, %v1182_v53, %v10388_v55  ;;  %v1161_v7 = vsel %vm1144_vm15, %v1136_v8, %v10398_v61  ;;  %v10441_v11 = vld [vmem:[#allocation107_spill] sm:$0xff]  ;;  %2240 = vrot.lane.b32.xlu0 %v6459_v27, %s4011_s1 }
 0x376   :  { %v1038_v41 = vsel %vm10418_vm5, %v1013_v42, %v10393_v34  ;;  %vm10425_vm0 = vmmov %vm10422_vm11  ;;  %v1232_v59 = vsel %vm1219_vm9, %v1207_v56, %v10426_v50  ;;  %vm10427_vm4 = vcmask 130048   ;;  %vm10430_vm1 = vcmask 72704   ;;  %v7071_v8 = vpop.permute.xlu2 %2172 }
 0x377   :  { %v991_v2 = vsel %vm10425_vm0, %v966_v52, %v10424_v19  ;;  %v1810_v39 = vsel %vm10427_vm4, %v1233_v20, %v1751_v9  ;;  %vm10428_vm2 = vmmov %vm10420_vm3  ;;  %v1089_v3 = vsel %vm10430_vm1, %v1064_v14, %v10429_v5  ;;  %v1160_v55 = vsel %vm1144_vm15, %v1135_v1, %v10405_v36  ;;  %10442 = vst [vmem:[#allocation136_spill] sm:$0xff] %v7071_v8  ;;  %v10445_v14 = vld [vmem:[#allocation127_spill] sm:$0xff] }
 0x378   :  { %v1063_v21 = vsel %vm10428_vm2, %v1038_v41, %v10393_v34  ;;  %vm10431_vm12 = vcmask 195584   ;;  %vm10432_vm7 = vmmov %vm10427_vm4  ;;  %vm10433_vm13 = vcmask 48128   ;;  %vm10438_vm11 = vcmask 105472   ;;  %v10444_v41 = vld [vmem:[#allocation108_spill] sm:$0xff]  ;;  %2298 = vrot.lane.b32.xlu2 %v5934_v43, %s4012_s24 }
 0x379   :  { %1835 = vst.msk [vmem:[#allocation7 + $0x68] sm:$0xff] %vm10431_vm12, %v1810_v39  ;;  %v1809_v42 = vsel %vm10432_vm7, %v1232_v59, %v1749_v13  ;;  %v1017_v61 = vsel %vm10433_vm13, %v992_v40, %v10403_v49  ;;  %vm10435_vm10 = vmmov %vm10430_vm1  ;;  %v1186_v62 = vsel %vm10438_vm11, %v1161_v7, %v10415_v15  ;;  %v1114_v36 = vsel %vm1094_vm6, %v1089_v3, %v10429_v5  ;;  %v10450_v39 = vld [vmem:[#allocation86_spill] sm:$0xff] }
 0x37a   :  { %v1088_v33 = vsel %vm10435_vm10, %v1063_v21, %v10434_v51  ;;  %vm10436_vm5 = vmmov %vm10431_vm12  ;;  %vm10440_vm4 = vcmask 56320   ;;  %v1211_v30 = vsel %vm1194_vm8, %v1186_v62, %v10415_v15  ;;  %vm10446_vm1 = vcmask 64512   ;;  %v10454_v21 = vld [vmem:[#allocation87_spill] sm:$0xff]  ;;  %2248 = vrot.lane.b32.xlu1 %v6528_v23, %s4011_s1 }
 0x37b   :  { %1834 = vst.msk [vmem:[#allocation7 + $0x60] sm:$0xff] %vm10436_vm5, %v1809_v42  ;;  %vm10437_vm3 = vmmov %vm10433_vm13  ;;  %v1042_v53 = vsel %vm10440_vm4, %v1017_v61, %v10421_v16  ;;  %v1113_v25 = vsel %vm1094_vm6, %v1088_v33, %v10434_v51  ;;  %v1236_v40 = vsel %vm1219_vm9, %v1211_v30, %v10445_v14  ;;  %v1757_v20 = vpop.permute.xlu1 %1756  ;;  %v10458_v61 = vld [vmem:[#allocation110_spill] sm:$0xff] }
 0x37c   :  { %v1016_v34 = vsel %vm10437_vm3, %v991_v2, %v10408_v28  ;;  %vm10439_vm0 = vmmov %vm10438_vm11  ;;  %v1139_v28 = vsel %vm1119_vm14, %v1114_v36, %v10441_v11  ;;  %v1138_v1 = vsel %vm1119_vm14, %v1113_v25, %v10444_v41  ;;  %v1067_v56 = vsel %vm10446_vm1, %v1042_v53, %v10421_v16  ;;  %v10447_v2 = vld [vmem:[#allocation128_spill] sm:$0xff]  ;;  %v1755_v50 = vpop.permute.xlu0 %1754 }
 0x37d   :  { %v1185_v49 = vsel %vm10439_vm0, %v1160_v55, %v10419_v63  ;;  %vm10443_vm2 = vmmov %vm10440_vm4  ;;  %v1164_v9 = vsel %vm1144_vm15, %v1139_v28, %v10429_v5  ;;  %2246 = vrot.lane.b32.xlu0 %v6546_v48, %s4011_s1 }
 0x37e   :  { %v1041_v52 = vsel %vm10443_vm2, %v1016_v34, %v10424_v19  ;;  %v1210_v29 = vsel %vm1194_vm8, %v1185_v49, %v10419_v63  ;;  %vm10448_vm12 = vmmov %vm10432_vm7  ;;  %v1163_v63 = vsel %vm1144_vm15, %v1138_v1, %v10434_v51  ;;  %v1189_v3 = vsel %vm10439_vm0, %v1164_v9, %v10441_v11  ;;  %v7117_v33 = vpop.permute.xlu2 %2178  ;;  %v10460_v34 = vld [vmem:[#allocation111_spill] sm:$0xff]  ;;  %v10461_v49 = vld [vmem:[#allocation129_spill] sm:$0xff] }
 0x37f   :  { %v1235_v7 = vsel %vm1219_vm9, %v1210_v29, %v10447_v2  ;;  %v1813_v15 = vsel %vm10448_vm12, %v1236_v40, %v1757_v20  ;;  %vm10449_vm7 = vmmov %vm10446_vm1  ;;  %10459 = vst [vmem:[#allocation31_spill] sm:$0xff] %v7117_v33  ;;  %v1214_v36 = vsel %vm1194_vm8, %v1189_v3, %v10441_v11  ;;  %v10462_v1 = vld [vmem:[#allocation130_spill] sm:$0xff]  ;;  %v10470_v2 = vld [vmem:[#allocation131_spill] sm:$0xff] }
 0x380   :  { %v1066_v59 = vsel %vm10449_vm7, %v1041_v52, %v10424_v19  ;;  %vm10451_vm13 = vmmov %vm10435_vm10  ;;  %v1239_v53 = vsel %vm1219_vm9, %v1214_v36, %v10461_v49  ;;  %2304 = vrot.lane.b32.xlu2 %v6001_v35, %s4012_s24 }
 0x381   :  { %v1092_v13 = vsel %vm10451_vm13, %v1067_v56, %v10450_v39  ;;  %vm10452_vm10 = vmmov %vm10436_vm5 }
 0x382   :  { %1838 = vst.msk [vmem:[#allocation7 + $0x80] sm:$0xff] %vm10452_vm10, %v1813_v15  ;;  %vm10453_vm5 = vmmov %vm10448_vm12  ;;  %v1117_v19 = vsel %vm1094_vm6, %v1092_v13, %v10450_v39  ;;  %2254 = vrot.lane.b32.xlu1 %v6612_v32, %s4011_s1 }
 0x383   :  { %v1812_v16 = vsel %vm10453_vm5, %v1235_v7, %v1755_v50  ;;  %vm10455_vm3 = vmmov %vm10451_vm13  ;;  %v1142_v51 = vsel %vm1119_vm14, %v1117_v19, %v10458_v61  ;;  %v1763_v28 = vpop.permute.xlu1 %1762 }
 0x384   :  { %v1091_v5 = vsel %vm10455_vm3, %v1066_v59, %v10454_v21  ;;  %vm10456_vm11 = vmmov %vm10452_vm10  ;;  %v1167_v52 = vsel %vm1144_vm15, %v1142_v51, %v10450_v39  ;;  %v1761_v40 = vpop.permute.xlu0 %1760  ;;  %v10471_v59 = vld [vmem:[#allocation132_spill] sm:$0xff] }
 0x385   :  { %1837 = vst.msk [vmem:[#allocation7 + $0x78] sm:$0xff] %vm10456_vm11, %v1812_v16  ;;  %vm10457_vm4 = vmmov %vm10439_vm0  ;;  %v1116_v42 = vsel %vm1094_vm6, %v1091_v5, %v10454_v21  ;;  %2252 = vrot.lane.b32.xlu0 %v6630_v18, %s4011_s1 }
 0x386   :  { %v1188_v55 = vsel %vm10457_vm4, %v1163_v63, %v10444_v41  ;;  %v1141_v62 = vsel %vm1119_vm14, %v1116_v42, %v10460_v34  ;;  %vm10463_vm2 = vmmov %vm10453_vm5  ;;  %v7147_v56 = vpop.permute.xlu2 %2184  ;;  %vm10705_vm4 = vcmask 7168  }
 0x387   :  { %v1213_v25 = vsel %vm1194_vm8, %v1188_v55, %v10444_v41  ;;  %v1816_v14 = vsel %vm10463_vm2, %v1239_v53, %v1763_v28  ;;  %v1166_v11 = vsel %vm1144_vm15, %v1141_v62, %v10454_v21  ;;  %vm10464_vm1 = vmmov %vm10452_vm10  ;;  %10469 = vst [vmem:[#allocation34_spill] sm:$0xff] %v7147_v56 }
 0x388   :  { %v1238_v30 = vsel %vm1219_vm9, %v1213_v25, %v10462_v1  ;;  %1841 = vst.msk [vmem:[#allocation7 + $0x98] sm:$0xff] %vm10464_vm1, %v1816_v14  ;;  %vm10465_vm12 = vmmov %vm10463_vm2  ;;  %2310 = vrot.lane.b32.xlu2 %v6076_v22, %s4012_s24 }
 0x389   :  { %v1815_v29 = vsel %vm10465_vm12, %v1238_v30, %v1761_v40  ;;  %vm10466_vm7 = vmmov %vm10464_vm1 }
 0x38a   :  { %1840 = vst.msk [vmem:[#allocation7 + $0x90] sm:$0xff] %vm10466_vm7, %v1815_v29  ;;  %vm10467_vm13 = vmmov %vm10439_vm0  ;;  %2260 = vrot.lane.b32.xlu1 %v6694_v4, %s4011_s1 }
 0x38b   :  { %v1192_v41 = vsel %vm10467_vm13, %v1167_v52, %v10458_v61  ;;  %vm10468_vm10 = vmmov %vm10439_vm0  ;;  %v1769_v50 = vpop.permute.xlu1 %1768 }
 0x38c   :  { %v1191_v20 = vsel %vm10468_vm10, %v1166_v11, %v10460_v34  ;;  %v1217_v9 = vsel %vm1194_vm8, %v1192_v41, %v10458_v61  ;;  %vm10472_vm5 = vmmov %vm10463_vm2  ;;  %v1767_v63 = vpop.permute.xlu0 %1766 }
 0x38d   :  { %v1242_v7 = vsel %vm1219_vm9, %v1217_v9, %v10470_v2  ;;  %v1216_v15 = vsel %vm1194_vm8, %v1191_v20, %v10460_v34  ;;  %vm10473_vm3 = vmmov %vm10464_vm1  ;;  %2258 = vrot.lane.b32.xlu0 %v6711_v37, %s4011_s1 }
 0x38e   :  { %v1241_v39 = vsel %vm1219_vm9, %v1216_v15, %v10471_v59  ;;  %v1819_v13 = vsel %vm10472_vm5, %v1242_v7, %v1769_v50  ;;  %vm10474_vm11 = vmmov %vm10463_vm2  ;;  %v7167_v21 = vpop.permute.xlu2 %2190  ;;  %vm10706_vm2 = vcmask 15360  }
 0x38f   :  { %1844 = vst.msk [vmem:[#allocation7 + $0xb0] sm:$0xff] %vm10473_vm3, %v1819_v13  ;;  %v1818_v16 = vsel %vm10474_vm11, %v1241_v39, %v1767_v63  ;;  %vm10475_vm0 = vmmov %vm10464_vm1 }
 0x390   :  { %1843 = vst.msk [vmem:[#allocation7 + $0xa8] sm:$0xff] %vm10475_vm0, %v1818_v16  ;;  %2316 = vrot.lane.b32.xlu2 %v6155_v44, %s4012_s24  ;;  %vm10707_vm1 = vmmov %vm10705_vm4 }
 0x391   :  { %10476 = vst [vmem:[#allocation158_spill] sm:$0xff] %v7167_v21  ;;  %vm10708_vm12 = vmmov %vm10706_vm2  ;;  %3892 = dma.vmem_to_hbm [thread:$0]  %s3885_s17, 3072, %s3887_s22, [#allocation4], %s4007_s20, %s4007_s20, %s4008_s21  }
 0x392   :  { %2266 = vrot.lane.b32.xlu1 %v6776_v57, %s4011_s1  ;;  %vm10709_vm7 = vmmov %vm10707_vm1 }
 0x393   :  { %v7171_v5 = vpop.permute.xlu1 %2152  ;;  %vm10710_vm13 = vmmov %vm10706_vm2 }
 0x394   :  { %10477 = vst [vmem:[#allocation137_spill] sm:$0xff] %v7171_v5  ;;  %v7173_v3 = vpop.permute.xlu0 %2150  ;;  %vm10711_vm10 = vmmov %vm10707_vm1 }
 0x395   :  { %10478 = vst [vmem:[#allocation176_spill] sm:$0xff] %v7173_v3  ;;  %2264 = vrot.lane.b32.xlu0 %v6790_v10, %s4011_s1  ;;  %vm10712_vm5 = vmmov %vm10706_vm2 }
 0x396   :  { %v7179_v19 = vpop.permute.xlu2 %2196  ;;  %vm10713_vm3 = vmmov %vm10707_vm1 }
 0x397   :  { %10479 = vst [vmem:[#allocation37_spill] sm:$0xff] %v7179_v19  ;;  %vm10714_vm11 = vmmov %vm10706_vm2 }
 0x398   :  { %2322 = vrot.lane.b32.xlu2 %v6240_v46, %s4012_s24  ;;  %vm10715_vm0 = vmmov %vm10707_vm1 }
 0x39a   :  { %2296 = vrot.lane.b32.xlu1 %v6181_v54, %s4012_s24 }
 0x39b   :  { %v7183_v55 = vpop.permute.xlu1 %2158 }
 0x39c   :  { %10480 = vst [vmem:[#allocation159_spill] sm:$0xff] %v7183_v55  ;;  %v7185_v42 = vpop.permute.xlu0 %2156 }
 0x39d   :  { %10481 = vst [vmem:[#allocation138_spill] sm:$0xff] %v7185_v42  ;;  %2294 = vrot.lane.b32.xlu0 %v6186_v17, %s4012_s24 }
 0x39e   :  { %v7191_v61 = vpop.permute.xlu2 %2226 }
 0x3a0   :  { %2328 = vrot.lane.b32.xlu2 %v6329_v0, %s4012_s24 }
 0x3a2   :  { %2302 = vrot.lane.b32.xlu1 %v6265_v12, %s4012_s24 }
 0x3a3   :  { %v7195_v51 = vpop.permute.xlu1 %2164 }
 0x3a4   :  { %10482 = vst [vmem:[#allocation177_spill] sm:$0xff] %v7195_v51  ;;  %v7197_v34 = vpop.permute.xlu0 %2162 }
 0x3a5   :  { %10483 = vst [vmem:[#allocation30_spill] sm:$0xff] %v7197_v34  ;;  %2300 = vrot.lane.b32.xlu0 %v10389_v47, %s4012_s24 }
 0x3a6   :  { %v7203_v62 = vpop.permute.xlu2 %2232 }
 0x3a8   :  { %2334 = vrot.lane.b32.xlu2 %v6417_v24, %s4012_s24 }
 0x3aa   :  { %2308 = vrot.lane.b32.xlu1 %v6352_v38, %s4012_s24 }
 0x3ab   :  { %v7207_v36 = vpop.permute.xlu1 %2170 }
 0x3ac   :  { %10484 = vst [vmem:[#allocation178_spill] sm:$0xff] %v7207_v36  ;;  %v7209_v49 = vpop.permute.xlu0 %2168 }
 0x3ad   :  { %10485 = vst [vmem:[#allocation160_spill] sm:$0xff] %v7209_v49  ;;  %2306 = vrot.lane.b32.xlu0 %v6370_v58, %s4012_s24 }
 0x3ae   :  { %v7215_v53 = vpop.permute.xlu2 %2238 }
 0x3af   :  { %10486 = vst [vmem:[#allocation139_spill] sm:$0xff] %v7215_v53 }
 0x3b0   :  { %2340 = vrot.lane.b32.xlu2 %v6502_v6, %s4012_s24 }
 0x3b2   :  { %2314 = vrot.lane.b32.xlu1 %v6438_v45, %s4012_s24 }
 0x3b3   :  { %v7219_v25 = vpop.permute.xlu1 %2176 }
 0x3b4   :  { %10487 = vst [vmem:[#allocation40_spill] sm:$0xff] %v7219_v25  ;;  %v7221_v28 = vpop.permute.xlu0 %2174 }
 0x3b5   :  { %10488 = vst [vmem:[#allocation161_spill] sm:$0xff] %v7221_v28  ;;  %2312 = vrot.lane.b32.xlu0 %v6459_v27, %s4012_s24 }
 0x3b6   :  { %v7227_v52 = vpop.permute.xlu2 %2244 }
 0x3b7   :  { %10489 = vst [vmem:[#allocation140_spill] sm:$0xff] %v7227_v52 }
 0x3b8   :  { %2370 = vrot.lane.b32.xlu2 %v5934_v43, %s4013_s25 }
 0x3ba   :  { %2320 = vrot.lane.b32.xlu1 %v6528_v23, %s4012_s24 }
 0x3bb   :  { %v7231_v1 = vpop.permute.xlu1 %2182 }
 0x3bc   :  { %10490 = vst [vmem:[#allocation162_spill] sm:$0xff] %v7231_v1  ;;  %v7233_v30 = vpop.permute.xlu0 %2180 }
 0x3bd   :  { %10491 = vst [vmem:[#allocation141_spill] sm:$0xff] %v7233_v30  ;;  %2318 = vrot.lane.b32.xlu0 %v6546_v48, %s4012_s24 }
 0x3be   :  { %v7239_v14 = vpop.permute.xlu2 %2250 }
 0x3bf   :  { %10492 = vst [vmem:[#allocation41_spill] sm:$0xff] %v7239_v14 }
 0x3c0   :  { %2376 = vrot.lane.b32.xlu2 %v6001_v35, %s4013_s25 }
 0x3c2   :  { %2326 = vrot.lane.b32.xlu1 %v6612_v32, %s4012_s24 }
 0x3c3   :  { %v7243_v40 = vpop.permute.xlu1 %2188 }
 0x3c4   :  { %10493 = vst [vmem:[#allocation179_spill] sm:$0xff] %v7243_v40  ;;  %v7245_v11 = vpop.permute.xlu0 %2186 }
 0x3c5   :  { %10494 = vst [vmem:[#allocation163_spill] sm:$0xff] %v7245_v11  ;;  %2324 = vrot.lane.b32.xlu0 %v6630_v18, %s4012_s24 }
 0x3c6   :  { %v7251_v29 = vpop.permute.xlu2 %2256 }
 0x3c7   :  { %10495 = vst [vmem:[#allocation142_spill] sm:$0xff] %v7251_v29 }
 0x3c8   :  { %2382 = vrot.lane.b32.xlu2 %v6076_v22, %s4013_s25 }
 0x3ca   :  { %2332 = vrot.lane.b32.xlu1 %v6694_v4, %s4012_s24 }
 0x3cb   :  { %v7255_v41 = vpop.permute.xlu1 %2194 }
 0x3cc   :  { %10496 = vst [vmem:[#allocation42_spill] sm:$0xff] %v7255_v41  ;;  %v7257_v20 = vpop.permute.xlu0 %2192 }
 0x3cd   :  { %10497 = vst [vmem:[#allocation43_spill] sm:$0xff] %v7257_v20  ;;  %2330 = vrot.lane.b32.xlu0 %v6711_v37, %s4012_s24 }
 0x3ce   :  { %v7263_v9 = vpop.permute.xlu2 %2262 }
 0x3cf   :  { %10498 = vst [vmem:[#allocation164_spill] sm:$0xff] %v7263_v9 }
 0x3d0   :  { %2388 = vrot.lane.b32.xlu2 %v6155_v44, %s4013_s25 }
 0x3d2   :  { %2338 = vrot.lane.b32.xlu1 %v6776_v57, %s4012_s24 }
 0x3d3   :  { %v7267_v2 = vpop.permute.xlu1 %2224 }
 0x3d4   :  { %10499 = vst [vmem:[#allocation143_spill] sm:$0xff] %v7267_v2  ;;  %v7269_v7 = vpop.permute.xlu0 %2222 }
 0x3d5   :  { %10500 = vst [vmem:[#allocation180_spill] sm:$0xff] %v7269_v7  ;;  %2336 = vrot.lane.b32.xlu0 %v6790_v10, %s4012_s24 }
 0x3d6   :  { %v7275_v15 = vpop.permute.xlu2 %2268 }
 0x3d7   :  { %10501 = vst [vmem:[#allocation44_spill] sm:$0xff] %v7275_v15 }
 0x3d8   :  { %2394 = vrot.lane.b32.xlu2 %v6240_v46, %s4013_s25 }
 0x3da   :  { %2368 = vrot.lane.b32.xlu1 %v6181_v54, %s4013_s25 }
 0x3db   :  { %v7279_v50 = vpop.permute.xlu1 %2230 }
 0x3dc   :  { %10502 = vst [vmem:[#allocation165_spill] sm:$0xff] %v7279_v50  ;;  %v7281_v59 = vpop.permute.xlu0 %2228 }
 0x3dd   :  { %10503 = vst [vmem:[#allocation144_spill] sm:$0xff] %v7281_v59  ;;  %2366 = vrot.lane.b32.xlu0 %v6186_v17, %s4013_s25 }
 0x3de   :  { %v7287_v39 = vpop.permute.xlu2 %2298 }
 0x3e0   :  { %2400 = vrot.lane.b32.xlu2 %v6329_v0, %s4013_s25 }
 0x3e2   :  { %2374 = vrot.lane.b32.xlu1 %v6265_v12, %s4013_s25 }
 0x3e3   :  { %v7291_v13 = vpop.permute.xlu1 %2236 }
 0x3e4   :  { %10504 = vst [vmem:[#allocation181_spill] sm:$0xff] %v7291_v13  ;;  %v7293_v63 = vpop.permute.xlu0 %2234 }
 0x3e5   :  { %10505 = vst [vmem:[#allocation182_spill] sm:$0xff] %v7293_v63  ;;  %2372 = vrot.lane.b32.xlu0 %v10389_v47, %s4013_s25 }
 0x3e6   :  { %v7299_v16 = vpop.permute.xlu2 %2304 }
 0x3e7   :  { %10506 = vst [vmem:[#allocation45_spill] sm:$0xff] %v7299_v16 }
 0x3e8   :  { %2406 = vrot.lane.b32.xlu2 %v6417_v24, %s4013_s25 }
 0x3ea   :  { %2380 = vrot.lane.b32.xlu1 %v6352_v38, %s4013_s25 }
 0x3eb   :  { %v7303_v20 = vpop.permute.xlu1 %2242 }
 0x3ec   :  { %10507 = vst [vmem:[#allocation166_spill] sm:$0xff] %v7303_v20  ;;  %v7305_v41 = vpop.permute.xlu0 %2240 }
 0x3ed   :  { %10508 = vst [vmem:[#allocation145_spill] sm:$0xff] %v7305_v41  ;;  %2378 = vrot.lane.b32.xlu0 %v6370_v58, %s4013_s25 }
 0x3ee   :  { %v7311_v11 = vpop.permute.xlu2 %2310 }
 0x3ef   :  { %10509 = vst [vmem:[#allocation167_spill] sm:$0xff] %v7311_v11 }
 0x3f0   :  { %2412 = vrot.lane.b32.xlu2 %v6502_v6, %s4013_s25 }
 0x3f2   :  { %2386 = vrot.lane.b32.xlu1 %v6438_v45, %s4013_s25 }
 0x3f3   :  { %v7315_v40 = vpop.permute.xlu1 %2248 }
 0x3f4   :  { %10510 = vst [vmem:[#allocation146_spill] sm:$0xff] %v7315_v40  ;;  %v7317_v30 = vpop.permute.xlu0 %2246 }
 0x3f5   :  { %10511 = vst [vmem:[#allocation168_spill] sm:$0xff] %v7317_v30  ;;  %2384 = vrot.lane.b32.xlu0 %v6459_v27, %s4013_s25 }
 0x3f6   :  { %v7323_v1 = vpop.permute.xlu2 %2316 }
 0x3f7   :  { %10512 = vst [vmem:[#allocation147_spill] sm:$0xff] %v7323_v1 }
 0x3f8   :  { %2442 = vrot.lane.b32.xlu2 %v5934_v43, %s4014_s26 }
 0x3fa   :  { %2392 = vrot.lane.b32.xlu1 %v6528_v23, %s4013_s25 }
 0x3fb   :  { %v7327_v28 = vpop.permute.xlu1 %2254 }
 0x3fc   :  { %10513 = vst [vmem:[#allocation183_spill] sm:$0xff] %v7327_v28  ;;  %v7329_v25 = vpop.permute.xlu0 %2252 }
 0x3fd   :  { %10514 = vst [vmem:[#allocation184_spill] sm:$0xff] %v7329_v25  ;;  %2390 = vrot.lane.b32.xlu0 %v6546_v48, %s4013_s25 }
 0x3fe   :  { %v7335_v30 = vpop.permute.xlu2 %2322 }
 0x3ff   :  { %10515 = vst [vmem:[#allocation185_spill] sm:$0xff] %v7335_v30 }
 0x400   :  { %2448 = vrot.lane.b32.xlu2 %v6001_v35, %s4014_s26 }
 0x402   :  { %2398 = vrot.lane.b32.xlu1 %v6612_v32, %s4013_s25 }
 0x403   :  { %v7339_v40 = vpop.permute.xlu1 %2260 }
 0x404   :  { %10516 = vst [vmem:[#allocation169_spill] sm:$0xff] %v7339_v40  ;;  %v7341_v41 = vpop.permute.xlu0 %2258 }
 0x405   :  { %10517 = vst [vmem:[#allocation148_spill] sm:$0xff] %v7341_v41  ;;  %2396 = vrot.lane.b32.xlu0 %v6630_v18, %s4013_s25 }
 0x406   :  { %v7347_v25 = vpop.permute.xlu2 %2328 }
 0x407   :  { %10518 = vst [vmem:[#allocation170_spill] sm:$0xff] %v7347_v25 }
 0x408   :  { %2454 = vrot.lane.b32.xlu2 %v6076_v22, %s4014_s26 }
 0x40a   :  { %2404 = vrot.lane.b32.xlu1 %v6694_v4, %s4013_s25 }
 0x40b   :  { %v7351_v28 = vpop.permute.xlu1 %2266 }
 0x40c   :  { %10519 = vst [vmem:[#allocation149_spill] sm:$0xff] %v7351_v28  ;;  %v7353_v20 = vpop.permute.xlu0 %2264 }
 0x40d   :  { %10520 = vst [vmem:[#allocation55_spill] sm:$0xff] %v7353_v20  ;;  %2402 = vrot.lane.b32.xlu0 %v6711_v37, %s4013_s25 }
 0x40e   :  { %v7359_v41 = vpop.permute.xlu2 %2334 }
 0x40f   :  { %10521 = vst [vmem:[#allocation186_spill] sm:$0xff] %v7359_v41 }
 0x410   :  { %2460 = vrot.lane.b32.xlu2 %v6155_v44, %s4014_s26 }
 0x412   :  { %2410 = vrot.lane.b32.xlu1 %v6776_v57, %s4013_s25 }
 0x413   :  { %v7363_v40 = vpop.permute.xlu1 %2296 }
 0x414   :  { %10522 = vst [vmem:[#allocation187_spill] sm:$0xff] %v7363_v40  ;;  %v7365_v49 = vpop.permute.xlu0 %2294 }
 0x415   :  { %10523 = vst [vmem:[#allocation171_spill] sm:$0xff] %v7365_v49  ;;  %2408 = vrot.lane.b32.xlu0 %v6790_v10, %s4013_s25 }
 0x416   :  { %v7371_v20 = vpop.permute.xlu2 %2340 }
 0x417   :  { %10524 = vst [vmem:[#allocation150_spill] sm:$0xff] %v7371_v20 }
 0x418   :  { %2466 = vrot.lane.b32.xlu2 %v6240_v46, %s4014_s26 }
 0x41a   :  { %2440 = vrot.lane.b32.xlu1 %v6181_v54, %s4014_s26 }
 0x41b   :  { %v7375_v28 = vpop.permute.xlu1 %2302 }
 0x41c   :  { %10525 = vst [vmem:[#allocation172_spill] sm:$0xff] %v7375_v28  ;;  %v7377_v63 = vpop.permute.xlu0 %2300 }
 0x41d   :  { %10526 = vst [vmem:[#allocation151_spill] sm:$0xff] %v7377_v63  ;;  %2438 = vrot.lane.b32.xlu0 %v6186_v17, %s4014_s26 }
 0x41e   :  { %v7383_v36 = vpop.permute.xlu2 %2370 }
 0x420   :  { %2472 = vrot.lane.b32.xlu2 %v6329_v0, %s4014_s26 }
 0x422   :  { %2446 = vrot.lane.b32.xlu1 %v6265_v12, %s4014_s26 }
 0x423   :  { %v7387_v13 = vpop.permute.xlu1 %2308 }
 0x424   :  { %10527 = vst [vmem:[#allocation46_spill] sm:$0xff] %v7387_v13  ;;  %v7389_v34 = vpop.permute.xlu0 %2306 }
 0x425   :  { %10528 = vst [vmem:[#allocation58_spill] sm:$0xff] %v7389_v34  ;;  %2444 = vrot.lane.b32.xlu0 %v10389_v47, %s4014_s26 }
 0x426   :  { %v7395_v51 = vpop.permute.xlu2 %2376 }
 0x427   :  { %10529 = vst [vmem:[#allocation174_spill] sm:$0xff] %v7395_v51 }
 0x428   :  { %2478 = vrot.lane.b32.xlu2 %v6417_v24, %s4014_s26 }
 0x42a   :  { %2452 = vrot.lane.b32.xlu1 %v6352_v38, %s4014_s26 }
 0x42b   :  { %v7399_v63 = vpop.permute.xlu1 %2314 }
 0x42c   :  { %10530 = vst [vmem:[#allocation152_spill] sm:$0xff] %v7399_v63  ;;  %v7401_v28 = vpop.permute.xlu0 %2312 }
 0x42d   :  { %10531 = vst [vmem:[#allocation175_spill] sm:$0xff] %v7401_v28  ;;  %2450 = vrot.lane.b32.xlu0 %v6370_v58, %s4014_s26 }
 0x42e   :  { %v7407_v34 = vpop.permute.xlu2 %2382 }
 0x42f   :  { %10532 = vst [vmem:[#allocation153_spill] sm:$0xff] %v7407_v34 }
 0x430   :  { %2484 = vrot.lane.b32.xlu2 %v6502_v6, %s4014_s26 }
 0x432   :  { %2458 = vrot.lane.b32.xlu1 %v6438_v45, %s4014_s26 }
 0x433   :  { %v7411_v13 = vpop.permute.xlu1 %2320 }
 0x434   :  { %10533 = vst [vmem:[#allocation79_spill] sm:$0xff] %v7411_v13  ;;  %v7413_v59 = vpop.permute.xlu0 %2318 }
 0x435   :  { %10534 = vst [vmem:[#allocation82_spill] sm:$0xff] %v7413_v59  ;;  %2456 = vrot.lane.b32.xlu0 %v6459_v27, %s4014_s26 }
 0x436   :  { %v7419_v28 = vpop.permute.xlu2 %2388 }
 0x437   :  { %10535 = vst [vmem:[#allocation61_spill] sm:$0xff] %v7419_v28 }
 0x438   :  { %2514 = vrot.lane.b32.xlu2 %v5934_v43, %s4015_s27 }
 0x43a   :  { %2464 = vrot.lane.b32.xlu1 %v6528_v23, %s4014_s26 }
 0x43b   :  { %v7423_v63 = vpop.permute.xlu1 %2326 }
 0x43c   :  { %10536 = vst [vmem:[#allocation103_spill] sm:$0xff] %v7423_v63  ;;  %v7425_v50 = vpop.permute.xlu0 %2324 }
 0x43d   :  { %10537 = vst [vmem:[#allocation85_spill] sm:$0xff] %v7425_v50  ;;  %2462 = vrot.lane.b32.xlu0 %v6546_v48, %s4014_s26 }
 0x43e   :  { %v7431_v59 = vpop.permute.xlu2 %2394 }
 0x43f   :  { %10538 = vst [vmem:[#allocation106_spill] sm:$0xff] %v7431_v59 }
 0x440   :  { %2520 = vrot.lane.b32.xlu2 %v6001_v35, %s4015_s27 }
 0x442   :  { %2470 = vrot.lane.b32.xlu1 %v6612_v32, %s4014_s26 }
 0x443   :  { %v7435_v13 = vpop.permute.xlu1 %2332 }
 0x444   :  { %10539 = vst [vmem:[#allocation64_spill] sm:$0xff] %v7435_v13  ;;  %v7437_v42 = vpop.permute.xlu0 %2330 }
 0x445   :  { %10540 = vst [vmem:[#allocation88_spill] sm:$0xff] %v7437_v42  ;;  %2468 = vrot.lane.b32.xlu0 %v6630_v18, %s4014_s26 }
 0x446   :  { %v7443_v50 = vpop.permute.xlu2 %2400 }
 0x447   :  { %10541 = vst [vmem:[#allocation109_spill] sm:$0xff] %v7443_v50 }
 0x448   :  { %2526 = vrot.lane.b32.xlu2 %v6076_v22, %s4015_s27 }
 0x44a   :  { %2476 = vrot.lane.b32.xlu1 %v6694_v4, %s4014_s26 }
 0x44b   :  { %v7447_v63 = vpop.permute.xlu1 %2338 }
 0x44c   :  { %10542 = vst [vmem:[#allocation67_spill] sm:$0xff] %v7447_v63  ;;  %v7449_v55 = vpop.permute.xlu0 %2336 }
 0x44d   :  { %10543 = vst [vmem:[#allocation47_spill] sm:$0xff] %v7449_v55  ;;  %2474 = vrot.lane.b32.xlu0 %v6711_v37, %s4014_s26 }
 0x44e   :  { %v7455_v42 = vpop.permute.xlu2 %2406 }
 0x44f   :  { %10544 = vst [vmem:[#allocation49_spill] sm:$0xff] %v7455_v42 }
 0x450   :  { %2532 = vrot.lane.b32.xlu2 %v6155_v44, %s4015_s27 }
 0x452   :  { %2482 = vrot.lane.b32.xlu1 %v6776_v57, %s4014_s26 }
 0x453   :  { %v7459_v13 = vpop.permute.xlu1 %2368 }
 0x454   :  { %10545 = vst [vmem:[#allocation91_spill] sm:$0xff] %v7459_v13  ;;  %v7461_v49 = vpop.permute.xlu0 %2366 }
 0x455   :  { %10546 = vst [vmem:[#allocation112_spill] sm:$0xff] %v7461_v49  ;;  %2480 = vrot.lane.b32.xlu0 %v6790_v10, %s4014_s26 }
 0x456   :  { %v7467_v55 = vpop.permute.xlu2 %2412 }
 0x457   :  { %10547 = vst [vmem:[#allocation48_spill] sm:$0xff] %v7467_v55 }
 0x458   :  { %2538 = vrot.lane.b32.xlu2 %v6240_v46, %s4015_s27 }
 0x45a   :  { %2512 = vrot.lane.b32.xlu1 %v6181_v54, %s4015_s27 }
 0x45b   :  { %v7471_v63 = vpop.permute.xlu1 %2374 }
 0x45c   :  { %10548 = vst [vmem:[#allocation70_spill] sm:$0xff] %v7471_v63  ;;  %v7473_v40 = vpop.permute.xlu0 %2372 }
 0x45d   :  { %10549 = vst [vmem:[#allocation52_spill] sm:$0xff] %v7473_v40  ;;  %2510 = vrot.lane.b32.xlu0 %v6186_v17, %s4015_s27 }
 0x45e   :  { %v7479_v49 = vpop.permute.xlu2 %2442 }
 0x460   :  { %2544 = vrot.lane.b32.xlu2 %v6329_v0, %s4015_s27 }
 0x462   :  { %2518 = vrot.lane.b32.xlu1 %v6265_v12, %s4015_s27 }
 0x463   :  { %v7483_v13 = vpop.permute.xlu1 %2380 }
 0x464   :  { %10550 = vst [vmem:[#allocation94_spill] sm:$0xff] %v7483_v13  ;;  %v7485_v7 = vpop.permute.xlu0 %2378 }
 0x465   :  { %10551 = vst [vmem:[#allocation115_spill] sm:$0xff] %v7485_v7  ;;  %2516 = vrot.lane.b32.xlu0 %v10389_v47, %s4015_s27 }
 0x466   :  { %v7491_v40 = vpop.permute.xlu2 %2448 }
 0x467   :  { %10552 = vst [vmem:[#allocation73_spill] sm:$0xff] %v7491_v40 }
 0x468   :  { %2550 = vrot.lane.b32.xlu2 %v6417_v24, %s4015_s27 }
 0x46a   :  { %2524 = vrot.lane.b32.xlu1 %v6352_v38, %s4015_s27 }
 0x46b   :  { %v7495_v63 = vpop.permute.xlu1 %2386 }
 0x46c   :  { %10553 = vst [vmem:[#allocation50_spill] sm:$0xff] %v7495_v63  ;;  %v7497_v2 = vpop.permute.xlu0 %2384 }
 0x46d   :  { %10554 = vst [vmem:[#allocation65_spill] sm:$0xff] %v7497_v2  ;;  %2522 = vrot.lane.b32.xlu0 %v6370_v58, %s4015_s27 }
 0x46e   :  { %v7503_v7 = vpop.permute.xlu2 %2454 }
 0x46f   :  { %10555 = vst [vmem:[#allocation66_spill] sm:$0xff] %v7503_v7 }
 0x470   :  { %2556 = vrot.lane.b32.xlu2 %v6502_v6, %s4015_s27 }
 0x472   :  { %2530 = vrot.lane.b32.xlu1 %v6438_v45, %s4015_s27 }
 0x473   :  { %v7507_v13 = vpop.permute.xlu1 %2392 }
 0x474   :  { %10556 = vst [vmem:[#allocation97_spill] sm:$0xff] %v7507_v13  ;;  %v7509_v3 = vpop.permute.xlu0 %2390 }
 0x475   :  { %10557 = vst [vmem:[#allocation89_spill] sm:$0xff] %v7509_v3  ;;  %2528 = vrot.lane.b32.xlu0 %v6459_v27, %s4015_s27 }
 0x476   :  { %v7515_v2 = vpop.permute.xlu2 %2460 }
 0x477   :  { %10558 = vst [vmem:[#allocation118_spill] sm:$0xff] %v7515_v2 }
 0x478   :  { %2586 = vrot.lane.b32.xlu2 %v5934_v43, %s4021_s6 }
 0x47a   :  { %2536 = vrot.lane.b32.xlu1 %v6528_v23, %s4015_s27 }
 0x47b   :  { %v7519_v63 = vpop.permute.xlu1 %2398 }
 0x47c   :  { %10559 = vst [vmem:[#allocation90_spill] sm:$0xff] %v7519_v63  ;;  %v7521_v5 = vpop.permute.xlu0 %2396 }
 0x47d   :  { %10560 = vst [vmem:[#allocation76_spill] sm:$0xff] %v7521_v5  ;;  %2534 = vrot.lane.b32.xlu0 %v6546_v48, %s4015_s27 }
 0x47e   :  { %v7527_v3 = vpop.permute.xlu2 %2466 }
 0x47f   :  { %10561 = vst [vmem:[#allocation26_spill] sm:$0xff] %v7527_v3 }
 0x480   :  { %2592 = vrot.lane.b32.xlu2 %v6001_v35, %s4021_s6 }
 0x482   :  { %2542 = vrot.lane.b32.xlu1 %v6612_v32, %s4015_s27 }
 0x483   :  { %v7531_v13 = vpop.permute.xlu1 %2404 }
 0x484   :  { %10562 = vst [vmem:[#allocation68_spill] sm:$0xff] %v7531_v13  ;;  %v7533_v55 = vpop.permute.xlu0 %2402 }
 0x485   :  { %10563 = vst [vmem:[#allocation69_spill] sm:$0xff] %v7533_v55  ;;  %2540 = vrot.lane.b32.xlu0 %v6630_v18, %s4015_s27 }
 0x486   :  { %v7539_v5 = vpop.permute.xlu2 %2472 }
 0x487   :  { %10564 = vst [vmem:[#allocation51_spill] sm:$0xff] %v7539_v5 }
 0x488   :  { %2598 = vrot.lane.b32.xlu2 %v6076_v22, %s4021_s6 }
 0x48a   :  { %2548 = vrot.lane.b32.xlu1 %v6694_v4, %s4015_s27 }
 0x48b   :  { %v7543_v63 = vpop.permute.xlu1 %2410 }
 0x48c   :  { %10565 = vst [vmem:[#allocation11_spill] sm:$0xff] %v7543_v63  ;;  %v7545_v20 = vpop.permute.xlu0 %2408 }
 0x48d   :  { %10566 = vst [vmem:[#allocation100_spill] sm:$0xff] %v7545_v20  ;;  %2546 = vrot.lane.b32.xlu0 %v6711_v37, %s4015_s27 }
 0x48e   :  { %v7551_v55 = vpop.permute.xlu2 %2478 }
 0x48f   :  { %10567 = vst [vmem:[#allocation92_spill] sm:$0xff] %v7551_v55 }
 0x490   :  { %2604 = vrot.lane.b32.xlu2 %v6155_v44, %s4021_s6 }
 0x492   :  { %2554 = vrot.lane.b32.xlu1 %v6776_v57, %s4015_s27 }
 0x493   :  { %v7555_v13 = vpop.permute.xlu1 %2440 }
 0x494   :  { %10568 = vst [vmem:[#allocation121_spill] sm:$0xff] %v7555_v13  ;;  %v7557_v15 = vpop.permute.xlu0 %2438 }
 0x495   :  { %10569 = vst [vmem:[#allocation93_spill] sm:$0xff] %v7557_v15  ;;  %2552 = vrot.lane.b32.xlu0 %v6790_v10, %s4015_s27 }
 0x496   :  { %v7563_v20 = vpop.permute.xlu2 %2484 }
 0x497   :  { %10570 = vst [vmem:[#allocation27_spill] sm:$0xff] %v7563_v20 }
 0x498   :  { %2610 = vrot.lane.b32.xlu2 %v6240_v46, %s4021_s6 }
 0x49a   :  { %2584 = vrot.lane.b32.xlu1 %v6181_v54, %s4021_s6 }
 0x49b   :  { %v7567_v63 = vpop.permute.xlu1 %2446 }
 0x49c   :  { %10571 = vst [vmem:[#allocation113_spill] sm:$0xff] %v7567_v63  ;;  %v7569_v55 = vpop.permute.xlu0 %2444 }
 0x49d   :  { %10572 = vst [vmem:[#allocation114_spill] sm:$0xff] %v7569_v55  ;;  %2582 = vrot.lane.b32.xlu0 %v6186_v17, %s4021_s6 }
 0x49e   :  { %v7575_v15 = vpop.permute.xlu2 %2514 }
 0x49f   :  { %10573 = vst [vmem:[#allocation71_spill] sm:$0xff] %v7575_v15 }
 0x4a0   :  { %2616 = vrot.lane.b32.xlu2 %v6329_v0, %s4021_s6 }
 0x4a2   :  { %2590 = vrot.lane.b32.xlu1 %v6265_v12, %s4021_s6 }
 0x4a3   :  { %v7579_v13 = vpop.permute.xlu1 %2452 }
 0x4a4   :  { %10574 = vst [vmem:[#allocation29_spill] sm:$0xff] %v7579_v13  ;;  %v7581_v20 = vpop.permute.xlu0 %2450 }
 0x4a5   :  { %10575 = vst [vmem:[#allocation20_spill] sm:$0xff] %v7581_v20  ;;  %2588 = vrot.lane.b32.xlu0 %v10389_v47, %s4021_s6 }
 0x4a6   :  { %v7587_v55 = vpop.permute.xlu2 %2520 }
 0x4a7   :  { %10576 = vst [vmem:[#allocation72_spill] sm:$0xff] %v7587_v55 }
 0x4a8   :  { %2622 = vrot.lane.b32.xlu2 %v6417_v24, %s4021_s6 }
 0x4aa   :  { %2596 = vrot.lane.b32.xlu1 %v6352_v38, %s4021_s6 }
 0x4ab   :  { %v7591_v63 = vpop.permute.xlu1 %2458 }
 0x4ac   :  { %10577 = vst [vmem:[#allocation32_spill] sm:$0xff] %v7591_v63  ;;  %v7593_v42 = vpop.permute.xlu0 %2456 }
 0x4ad   :  { %10578 = vst [vmem:[#allocation188_spill] sm:$0xff] %v7593_v42  ;;  %2594 = vrot.lane.b32.xlu0 %v6370_v58, %s4021_s6 }
 0x4ae   :  { %v7599_v20 = vpop.permute.xlu2 %2526 }
 0x4af   :  { %10579 = vst [vmem:[#allocation53_spill] sm:$0xff] %v7599_v20 }
 0x4b0   :  { %2628 = vrot.lane.b32.xlu2 %v6502_v6, %s4021_s6 }
 0x4b2   :  { %2602 = vrot.lane.b32.xlu1 %v6438_v45, %s4021_s6 }
 0x4b3   :  { %v7603_v13 = vpop.permute.xlu1 %2464 }
 0x4b4   :  { %10580 = vst [vmem:[#allocation95_spill] sm:$0xff] %v7603_v13  ;;  %v7605_v19 = vpop.permute.xlu0 %2462 }
 0x4b5   :  { %10581 = vst [vmem:[#allocation124_spill] sm:$0xff] %v7605_v19  ;;  %2600 = vrot.lane.b32.xlu0 %v6459_v27, %s4021_s6 }
 0x4b6   :  { %v7611_v42 = vpop.permute.xlu2 %2532 }
 0x4b7   :  { %10582 = vst [vmem:[#allocation54_spill] sm:$0xff] %v7611_v42 }
 0x4b8   :  { %2658 = vrot.lane.b32.xlu2 %v5934_v43, %s4008_s21 }
 0x4ba   :  { %2608 = vrot.lane.b32.xlu1 %v6528_v23, %s4021_s6 }
 0x4bb   :  { %v7615_v63 = vpop.permute.xlu1 %2470 }
 0x4bc   :  { %10583 = vst [vmem:[#allocation96_spill] sm:$0xff] %v7615_v63  ;;  %v7617_v41 = vpop.permute.xlu0 %2468 }
 0x4bd   :  { %10584 = vst [vmem:[#allocation116_spill] sm:$0xff] %v7617_v41  ;;  %2606 = vrot.lane.b32.xlu0 %v6546_v48, %s4021_s6 }
 0x4be   :  { %v7623_v19 = vpop.permute.xlu2 %2538 }
 0x4bf   :  { %10585 = vst [vmem:[#allocation117_spill] sm:$0xff] %v7623_v19 }
 0x4c0   :  { %2664 = vrot.lane.b32.xlu2 %v6001_v35, %s4008_s21 }
 0x4c2   :  { %2614 = vrot.lane.b32.xlu1 %v6612_v32, %s4021_s6 }
 0x4c3   :  { %v7627_v13 = vpop.permute.xlu1 %2476 }
 0x4c4   :  { %10586 = vst [vmem:[#allocation74_spill] sm:$0xff] %v7627_v13  ;;  %v7629_v5 = vpop.permute.xlu0 %2474 }
 0x4c5   :  { %10587 = vst [vmem:[#allocation33_spill] sm:$0xff] %v7629_v5  ;;  %2612 = vrot.lane.b32.xlu0 %v6630_v18, %s4021_s6 }
 0x4c6   :  { %v7635_v41 = vpop.permute.xlu2 %2544 }
 0x4c7   :  { %10588 = vst [vmem:[#allocation189_spill] sm:$0xff] %v7635_v41 }
 0x4c8   :  { %2670 = vrot.lane.b32.xlu2 %v6076_v22, %s4008_s21 }
 0x4ca   :  { %2620 = vrot.lane.b32.xlu1 %v6694_v4, %s4021_s6 }
 0x4cb   :  { %v7639_v63 = vpop.permute.xlu1 %2482 }
 0x4cc   :  { %10589 = vst [vmem:[#allocation75_spill] sm:$0xff] %v7639_v63  ;;  %v7641_v9 = vpop.permute.xlu0 %2480 }
 0x4cd   :  { %10590 = vst [vmem:[#allocation15_spill] sm:$0xff] %v7641_v9  ;;  %2618 = vrot.lane.b32.xlu0 %v6711_v37, %s4021_s6 }
 0x4ce   :  { %v7647_v5 = vpop.permute.xlu2 %2550 }
 0x4cf   :  { %10591 = vst [vmem:[#allocation19_spill] sm:$0xff] %v7647_v5 }
 0x4d0   :  { %2676 = vrot.lane.b32.xlu2 %v6155_v44, %s4008_s21 }
 0x4d2   :  { %2626 = vrot.lane.b32.xlu1 %v6776_v57, %s4021_s6 }
 0x4d3   :  { %v7651_v13 = vpop.permute.xlu1 %2512 }
 0x4d4   :  { %10592 = vst [vmem:[#allocation16_spill] sm:$0xff] %v7651_v13  ;;  %v7653_v41 = vpop.permute.xlu0 %2510 }
 0x4d5   :  { %10593 = vst [vmem:[#allocation12_spill] sm:$0xff] %v7653_v41  ;;  %2624 = vrot.lane.b32.xlu0 %v6790_v10, %s4021_s6 }
 0x4d6   :  { %v7659_v9 = vpop.permute.xlu2 %2556 }
 0x4d7   :  { %10594 = vst [vmem:[#allocation56_spill] sm:$0xff] %v7659_v9 }
 0x4d8   :  { %2682 = vrot.lane.b32.xlu2 %v6240_v46, %s4008_s21 }
 0x4da   :  { %2656 = vrot.lane.b32.xlu1 %v6181_v54, %s4008_s21 }
 0x4db   :  { %v7663_v63 = vpop.permute.xlu1 %2518 }
 0x4dc   :  { %10595 = vst [vmem:[#allocation98_spill] sm:$0xff] %v7663_v63  ;;  %v7665_v5 = vpop.permute.xlu0 %2516 }
 0x4dd   :  { %10596 = vst [vmem:[#allocation17_spill] sm:$0xff] %v7665_v5  ;;  %2654 = vrot.lane.b32.xlu0 %v6186_v17, %s4008_s21 }
 0x4de   :  { %v7671_v41 = vpop.permute.xlu2 %2586 }
 0x4df   :  { %10597 = vst [vmem:[#allocation13_spill] sm:$0xff] %v7671_v41 }
 0x4e0   :  { %2688 = vrot.lane.b32.xlu2 %v6329_v0, %s4008_s21 }
 0x4e2   :  { %2662 = vrot.lane.b32.xlu1 %v6265_v12, %s4008_s21 }
 0x4e3   :  { %v7675_v13 = vpop.permute.xlu1 %2524 }
 0x4e4   :  { %10598 = vst [vmem:[#allocation57_spill] sm:$0xff] %v7675_v13  ;;  %v7677_v9 = vpop.permute.xlu0 %2522 }
 0x4e5   :  { %10599 = vst [vmem:[#allocation99_spill] sm:$0xff] %v7677_v9  ;;  %2660 = vrot.lane.b32.xlu0 %v10389_v47, %s4008_s21 }
 0x4e6   :  { %v7683_v5 = vpop.permute.xlu2 %2592 }
 0x4e7   :  { %10600 = vst [vmem:[#allocation119_spill] sm:$0xff] %v7683_v5 }
 0x4e8   :  { %2694 = vrot.lane.b32.xlu2 %v6417_v24, %s4008_s21 }
 0x4ea   :  { %2668 = vrot.lane.b32.xlu1 %v6352_v38, %s4008_s21 }
 0x4eb   :  { %v7687_v63 = vpop.permute.xlu1 %2530 }
 0x4ec   :  { %10601 = vst [vmem:[#allocation120_spill] sm:$0xff] %v7687_v63  ;;  %v7689_v50 = vpop.permute.xlu0 %2528 }
 0x4ed   :  { %10602 = vst [vmem:[#allocation77_spill] sm:$0xff] %v7689_v50  ;;  %2666 = vrot.lane.b32.xlu0 %v6370_v58, %s4008_s21 }
 0x4ee   :  { %v7695_v9 = vpop.permute.xlu2 %2598 }
 0x4ef   :  { %10603 = vst [vmem:[#allocation35_spill] sm:$0xff] %v7695_v9 }
 0x4f0   :  { %2700 = vrot.lane.b32.xlu2 %v6502_v6, %s4008_s21 }
 0x4f2   :  { %2674 = vrot.lane.b32.xlu1 %v6438_v45, %s4008_s21 }
 0x4f3   :  { %v7699_v13 = vpop.permute.xlu1 %2536 }
 0x4f4   :  { %10604 = vst [vmem:[#allocation78_spill] sm:$0xff] %v7699_v13  ;;  %v7701_v21 = vpop.permute.xlu0 %2534 }
 0x4f5   :  { %10605 = vst [vmem:[#allocation36_spill] sm:$0xff] %v7701_v21  ;;  %2672 = vrot.lane.b32.xlu0 %v6459_v27, %s4008_s21 }
 0x4f6   :  { %v7707_v50 = vpop.permute.xlu2 %2604 }
 0x4f7   :  { %10606 = vst [vmem:[#allocation18_spill] sm:$0xff] %v7707_v50 }
 0x4f8   :  { %2730 = vrot.lane.b32.xlu2 %v5934_v43, %s4022_s7 }
 0x4fa   :  { %2680 = vrot.lane.b32.xlu1 %v6528_v23, %s4008_s21 }
 0x4fb   :  { %v7711_v63 = vpop.permute.xlu1 %2542 }
 0x4fc   :  { %10607 = vst [vmem:[#allocation14_spill] sm:$0xff] %v7711_v63  ;;  %v7713_v25 = vpop.permute.xlu0 %2540 }
 0x4fd   :  { %10608 = vst [vmem:[#allocation101_spill] sm:$0xff] %v7713_v25  ;;  %2678 = vrot.lane.b32.xlu0 %v6546_v48, %s4008_s21 }
 0x4fe   :  { %v7719_v21 = vpop.permute.xlu2 %2610 }
 0x4ff   :  { %10609 = vst [vmem:[#allocation59_spill] sm:$0xff] %v7719_v21 }
 0x500   :  { %2736 = vrot.lane.b32.xlu2 %v6001_v35, %s4022_s7 }
 0x502   :  { %2686 = vrot.lane.b32.xlu1 %v6612_v32, %s4008_s21 }
 0x503   :  { %v7723_v13 = vpop.permute.xlu1 %2548 }
 0x504   :  { %10610 = vst [vmem:[#allocation102_spill] sm:$0xff] %v7723_v13  ;;  %v7725_v19 = vpop.permute.xlu0 %2546 }
 0x505   :  { %10611 = vst [vmem:[#allocation122_spill] sm:$0xff] %v7725_v19  ;;  %2684 = vrot.lane.b32.xlu0 %v6630_v18, %s4008_s21 }
 0x506   :  { %v7731_v25 = vpop.permute.xlu2 %2616 }
 0x507   :  { %10612 = vst [vmem:[#allocation60_spill] sm:$0xff] %v7731_v25 }
 0x508   :  { %2742 = vrot.lane.b32.xlu2 %v6076_v22, %s4022_s7 }
 0x50a   :  { %2692 = vrot.lane.b32.xlu1 %v6694_v4, %s4008_s21 }
 0x50b   :  { %v7735_v63 = vpop.permute.xlu1 %2554 }
 0x50c   :  { %10613 = vst [vmem:[#allocation123_spill] sm:$0xff] %v7735_v63  ;;  %v7737_v21 = vpop.permute.xlu0 %2552 }
 0x50d   :  { %10614 = vst [vmem:[#allocation80_spill] sm:$0xff] %v7737_v21  ;;  %2690 = vrot.lane.b32.xlu0 %v6711_v37, %s4008_s21 }
 0x50e   :  { %v7743_v19 = vpop.permute.xlu2 %2622 }
 0x50f   :  { %10615 = vst [vmem:[#allocation38_spill] sm:$0xff] %v7743_v19 }
 0x510   :  { %2748 = vrot.lane.b32.xlu2 %v6155_v44, %s4022_s7 }
 0x512   :  { %2698 = vrot.lane.b32.xlu1 %v6776_v57, %s4008_s21 }
 0x513   :  { %v7747_v13 = vpop.permute.xlu1 %2584 }
 0x514   :  { %10616 = vst [vmem:[#allocation81_spill] sm:$0xff] %v7747_v13  ;;  %v7749_v25 = vpop.permute.xlu0 %2582 }
 0x515   :  { %10617 = vst [vmem:[#allocation39_spill] sm:$0xff] %v7749_v25  ;;  %2696 = vrot.lane.b32.xlu0 %v6790_v10, %s4008_s21 }
 0x516   :  { %v7755_v21 = vpop.permute.xlu2 %2628 }
 0x517   :  { %10618 = vst [vmem:[#allocation104_spill] sm:$0xff] %v7755_v21 }
 0x518   :  { %2754 = vrot.lane.b32.xlu2 %v6240_v46, %s4022_s7 }
 0x51a   :  { %2728 = vrot.lane.b32.xlu1 %v6181_v54, %s4022_s7 }
 0x51b   :  { %v7759_v63 = vpop.permute.xlu1 %2590 }
 0x51c   :  { %10619 = vst [vmem:[#allocation105_spill] sm:$0xff] %v7759_v63  ;;  %v7761_v19 = vpop.permute.xlu0 %2588 }
 0x51d   :  { %10620 = vst [vmem:[#allocation62_spill] sm:$0xff] %v7761_v19  ;;  %2726 = vrot.lane.b32.xlu0 %v6186_v17, %s4022_s7 }
 0x51e   :  { %v7767_v25 = vpop.permute.xlu2 %2658 }
 0x51f   :  { %10621 = vst [vmem:[#allocation125_spill] sm:$0xff] %v7767_v25 }
 0x520   :  { %2760 = vrot.lane.b32.xlu2 %v6329_v0, %s4022_s7 }
 0x522   :  { %2734 = vrot.lane.b32.xlu1 %v6265_v12, %s4022_s7 }
 0x523   :  { %v7771_v13 = vpop.permute.xlu1 %2596 }
 0x524   :  { %10622 = vst [vmem:[#allocation63_spill] sm:$0xff] %v7771_v13  ;;  %v7773_v21 = vpop.permute.xlu0 %2594 }
 0x525   :  { %10623 = vst [vmem:[#allocation126_spill] sm:$0xff] %v7773_v21  ;;  %2732 = vrot.lane.b32.xlu0 %v10389_v47, %s4022_s7 }
 0x526   :  { %v7779_v19 = vpop.permute.xlu2 %2664 }
 0x527   :  { %10624 = vst [vmem:[#allocation83_spill] sm:$0xff] %v7779_v19 }
 0x528   :  { %2766 = vrot.lane.b32.xlu2 %v6417_v24, %s4022_s7 }
 0x52a   :  { %2740 = vrot.lane.b32.xlu1 %v6352_v38, %s4022_s7 }
 0x52b   :  { %v7783_v63 = vpop.permute.xlu1 %2602 }
 0x52c   :  { %10625 = vst [vmem:[#allocation84_spill] sm:$0xff] %v7783_v63  ;;  %v7785_v3 = vpop.permute.xlu0 %2600 }
 0x52d   :  { %10626 = vst [vmem:[#allocation107_spill] sm:$0xff] %v7785_v3  ;;  %2738 = vrot.lane.b32.xlu0 %v6370_v58, %s4022_s7 }
 0x52e   :  { %v7791_v21 = vpop.permute.xlu2 %2670 }
 0x52f   :  { %10627 = vst [vmem:[#allocation108_spill] sm:$0xff] %v7791_v21 }
 0x530   :  { %2772 = vrot.lane.b32.xlu2 %v6502_v6, %s4022_s7 }
 0x532   :  { %2746 = vrot.lane.b32.xlu1 %v6438_v45, %s4022_s7 }
 0x533   :  { %v7795_v13 = vpop.permute.xlu1 %2608 }
 0x534   :  { %10628 = vst [vmem:[#allocation127_spill] sm:$0xff] %v7795_v13  ;;  %v7797_v29 = vpop.permute.xlu0 %2606 }
 0x535   :  { %10629 = vst [vmem:[#allocation128_spill] sm:$0xff] %v7797_v29  ;;  %2744 = vrot.lane.b32.xlu0 %v6459_v27, %s4022_s7 }
 0x536   :  { %v7803_v3 = vpop.permute.xlu2 %2676 }
 0x537   :  { %10630 = vst [vmem:[#allocation86_spill] sm:$0xff] %v7803_v3 }
 0x538   :  { %2802 = vrot.lane.b32.xlu2 %v5934_v43, %s4023_s8 }
 0x53a   :  { %2752 = vrot.lane.b32.xlu1 %v6528_v23, %s4022_s7 }
 0x53b   :  { %v7807_v63 = vpop.permute.xlu1 %2614 }
 0x53c   :  { %10631 = vst [vmem:[#allocation87_spill] sm:$0xff] %v7807_v63  ;;  %v7809_v50 = vpop.permute.xlu0 %2612 }
 0x53d   :  { %10632 = vst [vmem:[#allocation110_spill] sm:$0xff] %v7809_v50  ;;  %2750 = vrot.lane.b32.xlu0 %v6546_v48, %s4022_s7 }
 0x53e   :  { %v7815_v29 = vpop.permute.xlu2 %2682 }
 0x53f   :  { %10633 = vst [vmem:[#allocation111_spill] sm:$0xff] %v7815_v29 }
 0x540   :  { %2808 = vrot.lane.b32.xlu2 %v6001_v35, %s4023_s8 }
 0x542   :  { %2758 = vrot.lane.b32.xlu1 %v6612_v32, %s4022_s7 }
 0x543   :  { %v7819_v13 = vpop.permute.xlu1 %2620 }
 0x544   :  { %10634 = vst [vmem:[#allocation129_spill] sm:$0xff] %v7819_v13  ;;  %v7821_v3 = vpop.permute.xlu0 %2618 }
 0x545   :  { %10635 = vst [vmem:[#allocation130_spill] sm:$0xff] %v7821_v3  ;;  %2756 = vrot.lane.b32.xlu0 %v6630_v18, %s4022_s7 }
 0x546   :  { %v7827_v50 = vpop.permute.xlu2 %2688 }
 0x547   :  { %10636 = vst [vmem:[#allocation131_spill] sm:$0xff] %v7827_v50 }
 0x548   :  { %2814 = vrot.lane.b32.xlu2 %v6076_v22, %s4023_s8 }
 0x54a   :  { %2764 = vrot.lane.b32.xlu1 %v6694_v4, %s4022_s7 }
 0x54b   :  { %v7831_v63 = vpop.permute.xlu1 %2626 }
 0x54c   :  { %10637 = vst [vmem:[#allocation132_spill] sm:$0xff] %v7831_v63  ;;  %v7833_v29 = vpop.permute.xlu0 %2624 }
 0x54d   :  { %10638 = vst [vmem:[#allocation190_spill] sm:$0xff] %v7833_v29  ;;  %2762 = vrot.lane.b32.xlu0 %v6711_v37, %s4022_s7 }
 0x54e   :  { %v7839_v3 = vpop.permute.xlu2 %2694 }
 0x54f   :  { %10639 = vst [vmem:[#allocation191_spill] sm:$0xff] %v7839_v3 }
 0x550   :  { %2820 = vrot.lane.b32.xlu2 %v6155_v44, %s4023_s8 }
 0x552   :  { %2770 = vrot.lane.b32.xlu1 %v6776_v57, %s4022_s7 }
 0x553   :  { %v7843_v13 = vpop.permute.xlu1 %2656 }
 0x554   :  { %10640 = vst [vmem:[#allocation192_spill] sm:$0xff] %v7843_v13  ;;  %v7845_v50 = vpop.permute.xlu0 %2654 }
 0x555   :  { %10641 = vst [vmem:[#allocation193_spill] sm:$0xff] %v7845_v50  ;;  %2768 = vrot.lane.b32.xlu0 %v6790_v10, %s4022_s7 }
 0x556   :  { %v7851_v29 = vpop.permute.xlu2 %2700 }
 0x557   :  { %10642 = vst [vmem:[#allocation194_spill] sm:$0xff] %v7851_v29 }
 0x558   :  { %2826 = vrot.lane.b32.xlu2 %v6240_v46, %s4023_s8 }
 0x55a   :  { %2800 = vrot.lane.b32.xlu1 %v6181_v54, %s4023_s8 }
 0x55b   :  { %v7855_v63 = vpop.permute.xlu1 %2662 }
 0x55c   :  { %10643 = vst [vmem:[#allocation195_spill] sm:$0xff] %v7855_v63  ;;  %v7857_v3 = vpop.permute.xlu0 %2660 }
 0x55d   :  { %10644 = vst [vmem:[#allocation196_spill] sm:$0xff] %v7857_v3  ;;  %2798 = vrot.lane.b32.xlu0 %v6186_v17, %s4023_s8 }
 0x55e   :  { %v7863_v50 = vpop.permute.xlu2 %2730 }
 0x55f   :  { %10645 = vst [vmem:[#allocation197_spill] sm:$0xff] %v7863_v50 }
 0x560   :  { %2832 = vrot.lane.b32.xlu2 %v6329_v0, %s4023_s8 }
 0x562   :  { %2806 = vrot.lane.b32.xlu1 %v6265_v12, %s4023_s8 }
 0x563   :  { %v7867_v13 = vpop.permute.xlu1 %2668 }
 0x564   :  { %10646 = vst [vmem:[#allocation198_spill] sm:$0xff] %v7867_v13  ;;  %v7869_v29 = vpop.permute.xlu0 %2666 }
 0x565   :  { %10647 = vst [vmem:[#allocation199_spill] sm:$0xff] %v7869_v29  ;;  %2804 = vrot.lane.b32.xlu0 %v10389_v47, %s4023_s8 }
 0x566   :  { %v7875_v3 = vpop.permute.xlu2 %2736 }
 0x567   :  { %10648 = vst [vmem:[#allocation200_spill] sm:$0xff] %v7875_v3 }
 0x568   :  { %2838 = vrot.lane.b32.xlu2 %v6417_v24, %s4023_s8 }
 0x56a   :  { %2812 = vrot.lane.b32.xlu1 %v6352_v38, %s4023_s8 }
 0x56b   :  { %v7879_v63 = vpop.permute.xlu1 %2674 }
 0x56c   :  { %10649 = vst [vmem:[#allocation201_spill] sm:$0xff] %v7879_v63  ;;  %v7881_v59 = vpop.permute.xlu0 %2672 }
 0x56d   :  { %10650 = vst [vmem:[#allocation202_spill] sm:$0xff] %v7881_v59  ;;  %2810 = vrot.lane.b32.xlu0 %v6370_v58, %s4023_s8 }
 0x56e   :  { %v7887_v29 = vpop.permute.xlu2 %2742 }
 0x56f   :  { %10651 = vst [vmem:[#allocation203_spill] sm:$0xff] %v7887_v29 }
 0x570   :  { %2844 = vrot.lane.b32.xlu2 %v6502_v6, %s4023_s8 }
 0x572   :  { %2818 = vrot.lane.b32.xlu1 %v6438_v45, %s4023_s8 }
 0x573   :  { %v7891_v13 = vpop.permute.xlu1 %2680 }
 0x574   :  { %10652 = vst [vmem:[#allocation204_spill] sm:$0xff] %v7891_v13  ;;  %v7893_v56 = vpop.permute.xlu0 %2678 }
 0x575   :  { %10653 = vst [vmem:[#allocation205_spill] sm:$0xff] %v7893_v56  ;;  %2816 = vrot.lane.b32.xlu0 %v6459_v27, %s4023_s8 }
 0x576   :  { %v7899_v59 = vpop.permute.xlu2 %2748 }
 0x577   :  { %10654 = vst [vmem:[#allocation206_spill] sm:$0xff] %v7899_v59 }
 0x578   :  { %3234 = vrot.lane.b32.xlu2 %v5934_v43, %s4024_s9 }
 0x57a   :  { %2824 = vrot.lane.b32.xlu1 %v6528_v23, %s4023_s8 }
 0x57b   :  { %v7903_v63 = vpop.permute.xlu1 %2686 }
 0x57c   :  { %10655 = vst [vmem:[#allocation207_spill] sm:$0xff] %v7903_v63  ;;  %v7905_v30 = vpop.permute.xlu0 %2684 }
 0x57d   :  { %10656 = vst [vmem:[#allocation208_spill] sm:$0xff] %v7905_v30  ;;  %2822 = vrot.lane.b32.xlu0 %v6546_v48, %s4023_s8 }
 0x57e   :  { %v7911_v56 = vpop.permute.xlu2 %2754 }
 0x57f   :  { %10657 = vst [vmem:[#allocation209_spill] sm:$0xff] %v7911_v56 }
 0x580   :  { %3240 = vrot.lane.b32.xlu2 %v6001_v35, %s4024_s9 }
 0x582   :  { %2830 = vrot.lane.b32.xlu1 %v6612_v32, %s4023_s8 }
 0x583   :  { %v7915_v13 = vpop.permute.xlu1 %2692 }
 0x584   :  { %10658 = vst [vmem:[#allocation210_spill] sm:$0xff] %v7915_v13  ;;  %v7917_v59 = vpop.permute.xlu0 %2690 }
 0x585   :  { %10659 = vst [vmem:[#allocation211_spill] sm:$0xff] %v7917_v59  ;;  %2828 = vrot.lane.b32.xlu0 %v6630_v18, %s4023_s8 }
 0x586   :  { %v7923_v30 = vpop.permute.xlu2 %2760 }
 0x587   :  { %10660 = vst [vmem:[#allocation212_spill] sm:$0xff] %v7923_v30 }
 0x588   :  { %3246 = vrot.lane.b32.xlu2 %v6076_v22, %s4024_s9 }
 0x58a   :  { %2836 = vrot.lane.b32.xlu1 %v6694_v4, %s4023_s8 }
 0x58b   :  { %v7927_v63 = vpop.permute.xlu1 %2698 }
 0x58c   :  { %10661 = vst [vmem:[#allocation213_spill] sm:$0xff] %v7927_v63  ;;  %v7929_v56 = vpop.permute.xlu0 %2696 }
 0x58d   :  { %10662 = vst [vmem:[#allocation214_spill] sm:$0xff] %v7929_v56  ;;  %2834 = vrot.lane.b32.xlu0 %v6711_v37, %s4023_s8 }
 0x58e   :  { %v7935_v59 = vpop.permute.xlu2 %2766 }
 0x58f   :  { %10663 = vst [vmem:[#allocation215_spill] sm:$0xff] %v7935_v59 }
 0x590   :  { %3252 = vrot.lane.b32.xlu2 %v6155_v44, %s4024_s9 }
 0x592   :  { %2842 = vrot.lane.b32.xlu1 %v6776_v57, %s4023_s8 }
 0x593   :  { %v7939_v13 = vpop.permute.xlu1 %2728 }
 0x594   :  { %10664 = vst [vmem:[#allocation216_spill] sm:$0xff] %v7939_v13  ;;  %v7941_v30 = vpop.permute.xlu0 %2726 }
 0x595   :  { %10665 = vst [vmem:[#allocation217_spill] sm:$0xff] %v7941_v30  ;;  %2840 = vrot.lane.b32.xlu0 %v6790_v10, %s4023_s8 }
 0x596   :  { %v7947_v56 = vpop.permute.xlu2 %2772 }
 0x597   :  { %10666 = vst [vmem:[#allocation218_spill] sm:$0xff] %v7947_v56 }
 0x598   :  { %3258 = vrot.lane.b32.xlu2 %v6240_v46, %s4024_s9 }
 0x59a   :  { %3232 = vrot.lane.b32.xlu1 %v6181_v54, %s4024_s9 }
 0x59b   :  { %v7951_v63 = vpop.permute.xlu1 %2734 }
 0x59c   :  { %10667 = vst [vmem:[#allocation219_spill] sm:$0xff] %v7951_v63  ;;  %v7953_v59 = vpop.permute.xlu0 %2732 }
 0x59d   :  { %10668 = vst [vmem:[#allocation220_spill] sm:$0xff] %v7953_v59  ;;  %3230 = vrot.lane.b32.xlu0 %v6186_v17, %s4024_s9 }
 0x59e   :  { %v7959_v30 = vpop.permute.xlu2 %2802 }
 0x59f   :  { %10669 = vst [vmem:[#allocation221_spill] sm:$0xff] %v7959_v30 }
 0x5a0   :  { %3264 = vrot.lane.b32.xlu2 %v6329_v0, %s4024_s9 }
 0x5a2   :  { %3238 = vrot.lane.b32.xlu1 %v6265_v12, %s4024_s9 }
 0x5a3   :  { %v7963_v13 = vpop.permute.xlu1 %2740 }
 0x5a4   :  { %10670 = vst [vmem:[#allocation222_spill] sm:$0xff] %v7963_v13  ;;  %v7965_v56 = vpop.permute.xlu0 %2738 }
 0x5a5   :  { %10671 = vst [vmem:[#allocation223_spill] sm:$0xff] %v7965_v56  ;;  %3236 = vrot.lane.b32.xlu0 %v10389_v47, %s4024_s9 }
 0x5a6   :  { %v7971_v59 = vpop.permute.xlu2 %2808 }
 0x5a7   :  { %10672 = vst [vmem:[#allocation224_spill] sm:$0xff] %v7971_v59 }
 0x5a8   :  { %3270 = vrot.lane.b32.xlu2 %v6417_v24, %s4024_s9 }
 0x5aa   :  { %3244 = vrot.lane.b32.xlu1 %v6352_v38, %s4024_s9 }
 0x5ab   :  { %v7975_v63 = vpop.permute.xlu1 %2746 }
 0x5ac   :  { %10673 = vst [vmem:[#allocation225_spill] sm:$0xff] %v7975_v63  ;;  %v7977_v29 = vpop.permute.xlu0 %2744 }
 0x5ad   :  { %10674 = vst [vmem:[#allocation226_spill] sm:$0xff] %v7977_v29  ;;  %3242 = vrot.lane.b32.xlu0 %v6370_v58, %s4024_s9 }
 0x5ae   :  { %v7983_v56 = vpop.permute.xlu2 %2814 }
 0x5af   :  { %10675 = vst [vmem:[#allocation227_spill] sm:$0xff] %v7983_v56 }
 0x5b0   :  { %3276 = vrot.lane.b32.xlu2 %v6502_v6, %s4024_s9 }
 0x5b2   :  { %3250 = vrot.lane.b32.xlu1 %v6438_v45, %s4024_s9 }
 0x5b3   :  { %v7987_v13 = vpop.permute.xlu1 %2752 }
 0x5b4   :  { %10676 = vst [vmem:[#allocation228_spill] sm:$0xff] %v7987_v13  ;;  %v7989_v42 = vpop.permute.xlu0 %2750 }
 0x5b5   :  { %10677 = vst [vmem:[#allocation229_spill] sm:$0xff] %v7989_v42  ;;  %3248 = vrot.lane.b32.xlu0 %v6459_v27, %s4024_s9 }
 0x5b6   :  { %v7995_v29 = vpop.permute.xlu2 %2820 }
 0x5b7   :  { %10678 = vst [vmem:[#allocation230_spill] sm:$0xff] %v7995_v29 }
 0x5b8   :  { %3306 = vrot.lane.b32.xlu2 %v5934_v43, %s4025_s10 }
 0x5ba   :  { %3256 = vrot.lane.b32.xlu1 %v6528_v23, %s4024_s9 }
 0x5bb   :  { %v7999_v63 = vpop.permute.xlu1 %2758 }
 0x5bc   :  { %10679 = vst [vmem:[#allocation231_spill] sm:$0xff] %v7999_v63  ;;  %v8001_v56 = vpop.permute.xlu0 %2756 }
 0x5bd   :  { %10680 = vst [vmem:[#allocation232_spill] sm:$0xff] %v8001_v56  ;;  %3254 = vrot.lane.b32.xlu0 %v6546_v48, %s4024_s9 }
 0x5be   :  { %v8007_v42 = vpop.permute.xlu2 %2826 }
 0x5bf   :  { %10681 = vst [vmem:[#allocation233_spill] sm:$0xff] %v8007_v42 }
 0x5c0   :  { %3312 = vrot.lane.b32.xlu2 %v6001_v35, %s4025_s10 }
 0x5c2   :  { %3262 = vrot.lane.b32.xlu1 %v6612_v32, %s4024_s9 }
 0x5c3   :  { %v8011_v13 = vpop.permute.xlu1 %2764 }
 0x5c4   :  { %10682 = vst [vmem:[#allocation234_spill] sm:$0xff] %v8011_v13  ;;  %v8013_v29 = vpop.permute.xlu0 %2762 }
 0x5c5   :  { %10683 = vst [vmem:[#allocation235_spill] sm:$0xff] %v8013_v29  ;;  %3260 = vrot.lane.b32.xlu0 %v6630_v18, %s4024_s9 }
 0x5c6   :  { %v8019_v56 = vpop.permute.xlu2 %2832 }
 0x5c7   :  { %10684 = vst [vmem:[#allocation236_spill] sm:$0xff] %v8019_v56 }
 0x5c8   :  { %3318 = vrot.lane.b32.xlu2 %v6076_v22, %s4025_s10 }
 0x5ca   :  { %3268 = vrot.lane.b32.xlu1 %v6694_v4, %s4024_s9 }
 0x5cb   :  { %v8023_v63 = vpop.permute.xlu1 %2770 }
 0x5cc   :  { %10685 = vst [vmem:[#allocation237_spill] sm:$0xff] %v8023_v63  ;;  %v8025_v42 = vpop.permute.xlu0 %2768 }
 0x5cd   :  { %10686 = vst [vmem:[#allocation238_spill] sm:$0xff] %v8025_v42  ;;  %3266 = vrot.lane.b32.xlu0 %v6711_v37, %s4024_s9 }
 0x5ce   :  { %v8031_v29 = vpop.permute.xlu2 %2838 }
 0x5cf   :  { %10687 = vst [vmem:[#allocation239_spill] sm:$0xff] %v8031_v29 }
 0x5d0   :  { %3324 = vrot.lane.b32.xlu2 %v6155_v44, %s4025_s10 }
 0x5d2   :  { %3274 = vrot.lane.b32.xlu1 %v6776_v57, %s4024_s9 }
 0x5d3   :  { %v8035_v13 = vpop.permute.xlu1 %2800 }
 0x5d4   :  { %10688 = vst [vmem:[#allocation240_spill] sm:$0xff] %v8035_v13  ;;  %v8037_v56 = vpop.permute.xlu0 %2798 }
 0x5d5   :  { %10689 = vst [vmem:[#allocation241_spill] sm:$0xff] %v8037_v56  ;;  %3272 = vrot.lane.b32.xlu0 %v6790_v10, %s4024_s9 }
 0x5d6   :  { %v8043_v42 = vpop.permute.xlu2 %2844 }
 0x5d7   :  { %10690 = vst [vmem:[#allocation242_spill] sm:$0xff] %v8043_v42 }
 0x5d8   :  { %3330 = vrot.lane.b32.xlu2 %v6240_v46, %s4025_s10 }
 0x5da   :  { %3304 = vrot.lane.b32.xlu1 %v6181_v54, %s4025_s10 }
 0x5db   :  { %v8047_v63 = vpop.permute.xlu1 %2806 }
 0x5dc   :  { %10691 = vst [vmem:[#allocation243_spill] sm:$0xff] %v8047_v63  ;;  %v8049_v29 = vpop.permute.xlu0 %2804 }
 0x5dd   :  { %10692 = vst [vmem:[#allocation244_spill] sm:$0xff] %v8049_v29  ;;  %3302 = vrot.lane.b32.xlu0 %v6186_v17, %s4025_s10 }
 0x5de   :  { %v3235_v56 = vpop.permute.xlu2 %3234 }
 0x5e0   :  { %3336 = vrot.lane.b32.xlu2 %v6329_v0, %s4025_s10 }
 0x5e2   :  { %3310 = vrot.lane.b32.xlu1 %v6265_v12, %s4025_s10 }
 0x5e3   :  { %v8057_v13 = vpop.permute.xlu1 %2812 }
 0x5e4   :  { %10693 = vst [vmem:[#allocation245_spill] sm:$0xff] %v8057_v13  ;;  %v8059_v42 = vpop.permute.xlu0 %2810 }
 0x5e5   :  { %10694 = vst [vmem:[#allocation246_spill] sm:$0xff] %v8059_v42  ;;  %3308 = vrot.lane.b32.xlu0 %v10389_v47, %s4025_s10 }
 0x5e6   :  { %v3241_v29 = vpop.permute.xlu2 %3240 }
 0x5e8   :  { %3342 = vrot.lane.b32.xlu2 %v6417_v24, %s4025_s10 }
 0x5ea   :  { %3316 = vrot.lane.b32.xlu1 %v6352_v38, %s4025_s10 }
 0x5eb   :  { %v8067_v63 = vpop.permute.xlu1 %2818 }
 0x5ec   :  { %10695 = vst [vmem:[#allocation247_spill] sm:$0xff] %v8067_v63  ;;  %v8069_v2 = vpop.permute.xlu0 %2816 }
 0x5ed   :  { %10696 = vst [vmem:[#allocation248_spill] sm:$0xff] %v8069_v2  ;;  %3314 = vrot.lane.b32.xlu0 %v6370_v58, %s4025_s10 }
 0x5ee   :  { %v3247_v42 = vpop.permute.xlu2 %3246 }
 0x5f0   :  { %3348 = vrot.lane.b32.xlu2 %v6502_v6, %s4025_s10 }
 0x5f2   :  { %3322 = vrot.lane.b32.xlu1 %v6438_v45, %s4025_s10 }
 0x5f3   :  { %v8077_v13 = vpop.permute.xlu1 %2824 }
 0x5f4   :  { %10697 = vst [vmem:[#allocation249_spill] sm:$0xff] %v8077_v13  ;;  %v8079_v14 = vpop.permute.xlu0 %2822 }
 0x5f5   :  { %10698 = vst [vmem:[#allocation250_spill] sm:$0xff] %v8079_v14  ;;  %3320 = vrot.lane.b32.xlu0 %v6459_v27, %s4025_s10 }
 0x5f6   :  { %v3253_v2 = vpop.permute.xlu2 %3252 }
 0x5f8   :  { %3378 = vrot.lane.b32.xlu2 %v5934_v43, %s4026_s11 }
 0x5fa   :  { %3328 = vrot.lane.b32.xlu1 %v6528_v23, %s4025_s10 }
 0x5fb   :  { %v8087_v63 = vpop.permute.xlu1 %2830 }
 0x5fc   :  { %10699 = vst [vmem:[#allocation251_spill] sm:$0xff] %v8087_v63  ;;  %v8089_v21 = vpop.permute.xlu0 %2828 }
 0x5fd   :  { %10700 = vst [vmem:[#allocation252_spill] sm:$0xff] %v8089_v21  ;;  %3326 = vrot.lane.b32.xlu0 %v6546_v48, %s4025_s10 }
 0x5fe   :  { %v3259_v14 = vpop.permute.xlu2 %3258 }
 0x600   :  { %3384 = vrot.lane.b32.xlu2 %v6001_v35, %s4026_s11 }
 0x602   :  { %3334 = vrot.lane.b32.xlu1 %v6612_v32, %s4025_s10 }
 0x603   :  { %v8097_v13 = vpop.permute.xlu1 %2836 }
 0x604   :  { %10701 = vst [vmem:[#allocation253_spill] sm:$0xff] %v8097_v13  ;;  %v8099_v9 = vpop.permute.xlu0 %2834 }
 0x605   :  { %10702 = vst [vmem:[#allocation254_spill] sm:$0xff] %v8099_v9  ;;  %3332 = vrot.lane.b32.xlu0 %v6630_v18, %s4025_s10 }
 0x606   :  { %v3265_v21 = vpop.permute.xlu2 %3264 }
 0x608   :  { %3390 = vrot.lane.b32.xlu2 %v6076_v22, %s4026_s11 }
 0x60a   :  { %3340 = vrot.lane.b32.xlu1 %v6694_v4, %s4025_s10 }
 0x60b   :  { %v8107_v63 = vpop.permute.xlu1 %2842 }
 0x60c   :  { %10703 = vst [vmem:[#allocation255_spill] sm:$0xff] %v8107_v63  ;;  %v8109_v28 = vpop.permute.xlu0 %2840 }
 0x60d   :  { %10704 = vst [vmem:[#allocation256_spill] sm:$0xff] %v8109_v28  ;;  %3338 = vrot.lane.b32.xlu0 %v6711_v37, %s4025_s10 }
 0x60e   :  { %v8115_v9 = vpop.permute.xlu2 %3270 }
 0x610   :  { %3396 = vrot.lane.b32.xlu2 %v6155_v44, %s4026_s11 }
 0x612   :  { %3346 = vrot.lane.b32.xlu1 %v6776_v57, %s4025_s10 }
 0x613   :  { %v8119_v13 = vpop.permute.xlu1 %3232 }
 0x614   :  { %v8121_v33 = vpop.permute.xlu0 %3230 }
 0x615   :  { %3344 = vrot.lane.b32.xlu0 %v6790_v10, %s4025_s10 }
 0x616   :  { %v8127_v28 = vpop.permute.xlu2 %3276 }
 0x618   :  { %3402 = vrot.lane.b32.xlu2 %v6240_v46, %s4026_s11 }
 0x61a   :  { %3376 = vrot.lane.b32.xlu1 %v6181_v54, %s4026_s11 }
 0x61b   :  { %v8131_v63 = vpop.permute.xlu1 %3238 }
 0x61c   :  { %v8133_v59 = vpop.permute.xlu0 %3236 }
 0x61d   :  { %3374 = vrot.lane.b32.xlu0 %v6186_v17, %s4026_s11 }
 0x61e   :  { %v3307_v1 = vpop.permute.xlu2 %3306 }
 0x61f   :  { %v3592_v3 = vsel %vm10705_vm4, %v3235_v56, %v3307_v1  ;;  %vm10716_vm4 = vmmov %vm10706_vm2 }
 0x620   :  { %v8143_v20 = vsel %vm10706_vm2, %v3592_v3, %v3307_v1  ;;  %3408 = vrot.lane.b32.xlu2 %v6329_v0, %s4026_s11  ;;  %vm10717_vm2 = vmmov %vm10715_vm0 }
 0x622   :  { %3382 = vrot.lane.b32.xlu1 %v6265_v12, %s4026_s11 }
 0x623   :  { %v8145_v7 = vpop.permute.xlu1 %3244 }
 0x624   :  { %v8147_v52 = vpop.permute.xlu0 %3242 }
 0x625   :  { %3380 = vrot.lane.b32.xlu0 %v10389_v47, %s4026_s11 }
 0x626   :  { %v3313_v19 = vpop.permute.xlu2 %3312 }
 0x627   :  { %v3595_v5 = vsel %vm10707_vm1, %v3241_v29, %v3313_v19  ;;  %vm10718_vm1 = vmmov %vm10716_vm4 }
 0x628   :  { %v8157_v56 = vsel %vm10708_vm12, %v3595_v5, %v3313_v19  ;;  %3414 = vrot.lane.b32.xlu2 %v6417_v24, %s4026_s11  ;;  %vm10719_vm12 = vmmov %vm10715_vm0 }
 0x62a   :  { %3388 = vrot.lane.b32.xlu1 %v6352_v38, %s4026_s11 }
 0x62b   :  { %v8159_v3 = vpop.permute.xlu1 %3250 }
 0x62c   :  { %v8161_v1 = vpop.permute.xlu0 %3248 }
 0x62d   :  { %3386 = vrot.lane.b32.xlu0 %v6370_v58, %s4026_s11 }
 0x62e   :  { %v3319_v34 = vpop.permute.xlu2 %3318 }
 0x62f   :  { %v3598_v8 = vsel %vm10709_vm7, %v3247_v42, %v3319_v34  ;;  %vm10720_vm7 = vmmov %vm10718_vm1 }
 0x630   :  { %v8171_v29 = vsel %vm10710_vm13, %v3598_v8, %v3319_v34  ;;  %3420 = vrot.lane.b32.xlu2 %v6502_v6, %s4026_s11  ;;  %vm10721_vm13 = vmmov %vm10715_vm0 }
 0x632   :  { %3394 = vrot.lane.b32.xlu1 %v6438_v45, %s4026_s11 }
 0x633   :  { %v8173_v5 = vpop.permute.xlu1 %3256 }
 0x634   :  { %v8175_v19 = vpop.permute.xlu0 %3254 }
 0x635   :  { %3392 = vrot.lane.b32.xlu0 %v6459_v27, %s4026_s11 }
 0x636   :  { %v3325_v30 = vpop.permute.xlu2 %3324 }
 0x637   :  { %v3601_v11 = vsel %vm10711_vm10, %v3253_v2, %v3325_v30  ;;  %vm10722_vm10 = vmmov %vm10718_vm1 }
 0x638   :  { %v8185_v42 = vsel %vm10712_vm5, %v3601_v11, %v3325_v30  ;;  %3450 = vrot.lane.b32.xlu2 %v5934_v43, %s4027_s12  ;;  %vm10723_vm5 = vmmov %vm10715_vm0 }
 0x63a   :  { %3400 = vrot.lane.b32.xlu1 %v6528_v23, %s4026_s11 }
 0x63b   :  { %v8187_v8 = vpop.permute.xlu1 %3262 }
 0x63c   :  { %v8189_v34 = vpop.permute.xlu0 %3260 }
 0x63d   :  { %3398 = vrot.lane.b32.xlu0 %v6546_v48, %s4026_s11 }
 0x63e   :  { %v3331_v50 = vpop.permute.xlu2 %3330 }
 0x63f   :  { %v3604_v55 = vsel %vm10713_vm3, %v3259_v14, %v3331_v50  ;;  %vm10724_vm3 = vmmov %vm10718_vm1 }
 0x640   :  { %v8199_v2 = vsel %vm10714_vm11, %v3604_v55, %v3331_v50  ;;  %3456 = vrot.lane.b32.xlu2 %v6001_v35, %s4027_s12  ;;  %vm10725_vm11 = vmmov %vm10715_vm0 }
 0x642   :  { %3406 = vrot.lane.b32.xlu1 %v6612_v32, %s4026_s11 }
 0x643   :  { %v8201_v30 = vpop.permute.xlu1 %3268 }
 0x644   :  { %v8203_v11 = vpop.permute.xlu0 %3266 }
 0x645   :  { %3404 = vrot.lane.b32.xlu0 %v6630_v18, %s4026_s11 }
 0x646   :  { %v3337_v40 = vpop.permute.xlu2 %3336 }
 0x647   :  { %v3607_v14 = vsel %vm10715_vm0, %v3265_v21, %v3337_v40  ;;  %vm10726_vm0 = vmmov %vm10718_vm1 }
 0x648   :  { %v8213_v55 = vsel %vm10716_vm4, %v3607_v14, %v3337_v40  ;;  %3462 = vrot.lane.b32.xlu2 %v6076_v22, %s4027_s12  ;;  %vm10727_vm4 = vmmov %vm10717_vm2 }
 0x64a   :  { %3412 = vrot.lane.b32.xlu1 %v6694_v4, %s4026_s11 }
 0x64b   :  { %v8215_v50 = vpop.permute.xlu1 %3274 }
 0x64c   :  { %v8217_v53 = vpop.permute.xlu0 %3272 }
 0x64d   :  { %3410 = vrot.lane.b32.xlu0 %v6711_v37, %s4026_s11 }
 0x64e   :  { %v3343_v25 = vpop.permute.xlu2 %3342 }
 0x64f   :  { %v3610_v21 = vsel %vm10717_vm2, %v8115_v9, %v3343_v25  ;;  %vm10728_vm2 = vmmov %vm10726_vm0 }
 0x650   :  { %v8228_v40 = vsel %vm10718_vm1, %v3610_v21, %v3343_v25  ;;  %3468 = vrot.lane.b32.xlu2 %v6155_v44, %s4027_s12  ;;  %vm10729_vm1 = vcmask 23552  }
 0x652   :  { %3418 = vrot.lane.b32.xlu1 %v6776_v57, %s4026_s11 }
 0x653   :  { %v3305_v14 = vpop.permute.xlu1 %3304 }
 0x654   :  { %v3591_v41 = vsel %vm10719_vm12, %v8119_v13, %v3305_v14  ;;  %v3303_v51 = vpop.permute.xlu0 %3302  ;;  %vm10730_vm12 = vmmov %vm10727_vm4 }
 0x655   :  { %v8233_v26 = vsel %vm10720_vm7, %v3591_v41, %v3305_v14  ;;  %v3590_v16 = vsel %vm10721_vm13, %v8121_v33, %v3303_v51  ;;  %3416 = vrot.lane.b32.xlu0 %v6790_v10, %s4026_s11  ;;  %vm10731_vm7 = vmmov %vm10726_vm0 }
 0x656   :  { %v8238_v15 = vsel %vm10722_vm10, %v3590_v16, %v3303_v51  ;;  %v3349_v25 = vpop.permute.xlu2 %3348  ;;  %vm10732_vm13 = vmmov %vm10727_vm4 }
 0x657   :  { %v3613_v41 = vsel %vm10723_vm5, %v8127_v28, %v3349_v25  ;;  %vm10733_vm10 = vmmov %vm10726_vm0 }
 0x658   :  { %v8249_v9 = vsel %vm10724_vm3, %v3613_v41, %v3349_v25  ;;  %3474 = vrot.lane.b32.xlu2 %v6240_v46, %s4027_s12  ;;  %vm10734_vm5 = vmmov %vm10729_vm1 }
 0x659   :  { %vm10735_vm3 = vmmov %vm10727_vm4 }
 0x65a   :  { %3448 = vrot.lane.b32.xlu1 %v6181_v54, %s4027_s12 }
 0x65b   :  { %v3311_v33 = vpop.permute.xlu1 %3310 }
 0x65c   :  { %v3594_v51 = vsel %vm10725_vm11, %v8131_v63, %v3311_v33  ;;  %v3309_v13 = vpop.permute.xlu0 %3308  ;;  %vm10736_vm11 = vmmov %vm10726_vm0 }
 0x65d   :  { %v8254_v16 = vsel %vm10726_vm0, %v3594_v51, %v3311_v33  ;;  %v3593_v21 = vsel %vm10727_vm4, %v8133_v59, %v3309_v13  ;;  %3446 = vrot.lane.b32.xlu0 %v6186_v17, %s4027_s12  ;;  %vm10737_vm0 = vmmov %vm10735_vm3 }
 0x65e   :  { %v8259_v14 = vsel %vm10728_vm2, %v3593_v21, %v3309_v13  ;;  %v3379_v28 = vpop.permute.xlu2 %3378  ;;  %vm10738_vm4 = vmmov %vm10728_vm2 }
 0x65f   :  { %v8269_v63 = vsel %vm10729_vm1, %v8143_v20, %v3379_v28  ;;  %vm10739_vm2 = vmmov %vm10729_vm1 }
 0x660   :  { %3480 = vrot.lane.b32.xlu2 %v6329_v0, %s4027_s12  ;;  %vm10740_vm1 = vmmov %vm10737_vm0 }
 0x662   :  { %3454 = vrot.lane.b32.xlu1 %v6265_v12, %s4027_s12 }
 0x663   :  { %v3317_v25 = vpop.permute.xlu1 %3316 }
 0x664   :  { %v3597_v59 = vsel %vm10730_vm12, %v8145_v7, %v3317_v25  ;;  %v3315_v41 = vpop.permute.xlu0 %3314  ;;  %vm10741_vm12 = vmmov %vm10738_vm4 }
 0x665   :  { %v8274_v33 = vsel %vm10731_vm7, %v3597_v59, %v3317_v25  ;;  %v3596_v51 = vsel %vm10732_vm13, %v8147_v52, %v3315_v41  ;;  %3452 = vrot.lane.b32.xlu0 %v10389_v47, %s4027_s12  ;;  %vm10742_vm7 = vmmov %vm10737_vm0 }
 0x666   :  { %v8279_v13 = vsel %vm10733_vm10, %v3596_v51, %v3315_v41  ;;  %v3385_v20 = vpop.permute.xlu2 %3384  ;;  %vm10743_vm13 = vmmov %vm10738_vm4 }
 0x667   :  { %v8289_v7 = vsel %vm10734_vm5, %v8157_v56, %v3385_v20  ;;  %vm10744_vm10 = vmmov %vm10739_vm2 }
 0x668   :  { %3486 = vrot.lane.b32.xlu2 %v6417_v24, %s4027_s12  ;;  %vm10745_vm5 = vmmov %vm10737_vm0 }
 0x66a   :  { %3460 = vrot.lane.b32.xlu1 %v6352_v38, %s4027_s12 }
 0x66b   :  { %v3323_v21 = vpop.permute.xlu1 %3322 }
 0x66c   :  { %v3600_v52 = vsel %vm10735_vm3, %v8159_v3, %v3323_v21  ;;  %v3321_v28 = vpop.permute.xlu0 %3320  ;;  %vm10746_vm3 = vmmov %vm10738_vm4 }
 0x66d   :  { %v8294_v25 = vsel %vm10736_vm11, %v3600_v52, %v3323_v21  ;;  %v3599_v59 = vsel %vm10737_vm0, %v8161_v1, %v3321_v28  ;;  %3458 = vrot.lane.b32.xlu0 %v6370_v58, %s4027_s12  ;;  %vm10747_vm11 = vmmov %vm10737_vm0 }
 0x66e   :  { %v8299_v41 = vsel %vm10738_vm4, %v3599_v59, %v3321_v28  ;;  %v3391_v56 = vpop.permute.xlu2 %3390  ;;  %vm10748_vm0 = vmmov %vm10746_vm3 }
 0x66f   :  { %v8309_v3 = vsel %vm10739_vm2, %v8171_v29, %v3391_v56  ;;  %vm10749_vm4 = vmmov %vm10739_vm2 }
 0x670   :  { %3492 = vrot.lane.b32.xlu2 %v6502_v6, %s4027_s12  ;;  %vm10750_vm2 = vmmov %vm10740_vm1 }
 0x672   :  { %3466 = vrot.lane.b32.xlu1 %v6438_v45, %s4027_s12 }
 0x673   :  { %v3329_v51 = vpop.permute.xlu1 %3328 }
 0x674   :  { %v3603_v1 = vsel %vm10740_vm1, %v8173_v5, %v3329_v51  ;;  %v3327_v20 = vpop.permute.xlu0 %3326  ;;  %vm10751_vm1 = vmmov %vm10748_vm0 }
 0x675   :  { %v8314_v21 = vsel %vm10741_vm12, %v3603_v1, %v3329_v51  ;;  %v3602_v52 = vsel %vm10742_vm7, %v8175_v19, %v3327_v20  ;;  %3464 = vrot.lane.b32.xlu0 %v6459_v27, %s4027_s12  ;;  %vm10752_vm12 = vmmov %vm10750_vm2 }
 0x676   :  { %v8319_v28 = vsel %vm10743_vm13, %v3602_v52, %v3327_v20  ;;  %v3397_v29 = vpop.permute.xlu2 %3396  ;;  %vm10753_vm7 = vmmov %vm10748_vm0 }
 0x677   :  { %v8329_v5 = vsel %vm10744_vm10, %v8185_v42, %v3397_v29  ;;  %vm10754_vm13 = vmmov %vm10749_vm4 }
 0x678   :  { %3522 = vrot.lane.b32.xlu2 %v5934_v43, %s4028_s13  ;;  %vm10755_vm10 = vmmov %vm10750_vm2 }
 0x67a   :  { %3472 = vrot.lane.b32.xlu1 %v6528_v23, %s4027_s12 }
 0x67b   :  { %v3335_v59 = vpop.permute.xlu1 %3334 }
 0x67c   :  { %v3606_v19 = vsel %vm10745_vm5, %v8187_v8, %v3335_v59  ;;  %v3333_v56 = vpop.permute.xlu0 %3332  ;;  %vm10756_vm5 = vmmov %vm10748_vm0 }
 0x67d   :  { %v8334_v51 = vsel %vm10746_vm3, %v3606_v19, %v3335_v59  ;;  %v3605_v1 = vsel %vm10747_vm11, %v8189_v34, %v3333_v56  ;;  %3470 = vrot.lane.b32.xlu0 %v6546_v48, %s4027_s12  ;;  %vm10757_vm3 = vmmov %vm10750_vm2 }
 0x67e   :  { %v8339_v20 = vsel %vm10748_vm0, %v3605_v1, %v3333_v56  ;;  %v3403_v42 = vpop.permute.xlu2 %3402  ;;  %vm10758_vm11 = vmmov %vm10748_vm0 }
 0x67f   :  { %v8349_v8 = vsel %vm10749_vm4, %v8199_v2, %v3403_v42  ;;  %vm10759_vm0 = vmmov %vm10749_vm4 }
 0x680   :  { %3528 = vrot.lane.b32.xlu2 %v6001_v35, %s4028_s13  ;;  %vm10760_vm4 = vmmov %vm10759_vm0 }
 0x682   :  { %3478 = vrot.lane.b32.xlu1 %v6612_v32, %s4027_s12 }
 0x683   :  { %v3341_v52 = vpop.permute.xlu1 %3340 }
 0x684   :  { %v3609_v34 = vsel %vm10750_vm2, %v8201_v30, %v3341_v52  ;;  %v3339_v29 = vpop.permute.xlu0 %3338  ;;  %vm10761_vm2 = vmmov %vm10759_vm0 }
 0x685   :  { %v8354_v59 = vsel %vm10751_vm1, %v3609_v34, %v3341_v52  ;;  %v3608_v19 = vsel %vm10752_vm12, %v8203_v11, %v3339_v29  ;;  %3476 = vrot.lane.b32.xlu0 %v6630_v18, %s4027_s12  ;;  %vm10762_vm1 = vmmov %vm10759_vm0 }
 0x686   :  { %v8359_v56 = vsel %vm10753_vm7, %v3608_v19, %v3339_v29  ;;  %v3409_v2 = vpop.permute.xlu2 %3408  ;;  %vm10763_vm12 = vmmov %vm10759_vm0 }
 0x687   :  { %v8369_v30 = vsel %vm10754_vm13, %v8213_v55, %v3409_v2  ;;  %vm10764_vm7 = vmmov %vm10759_vm0 }
 0x688   :  { %3534 = vrot.lane.b32.xlu2 %v6076_v22, %s4028_s13  ;;  %vm10765_vm13 = vmmov %vm10759_vm0 }
 0x68a   :  { %3484 = vrot.lane.b32.xlu1 %v6694_v4, %s4027_s12 }
 0x68b   :  { %v3347_v1 = vpop.permute.xlu1 %3346 }
 0x68c   :  { %v3612_v11 = vsel %vm10755_vm10, %v8215_v50, %v3347_v1  ;;  %v3345_v42 = vpop.permute.xlu0 %3344  ;;  %vm10766_vm10 = vmmov %vm10759_vm0 }
 0x68d   :  { %v8374_v52 = vsel %vm10756_vm5, %v3612_v11, %v3347_v1  ;;  %v3611_v34 = vsel %vm10757_vm3, %v8217_v53, %v3345_v42  ;;  %3482 = vrot.lane.b32.xlu0 %v6711_v37, %s4027_s12  ;;  %vm10767_vm5 = vmmov %vm10759_vm0 }
 0x68e   :  { %v8379_v29 = vsel %vm10758_vm11, %v3611_v34, %v3345_v42  ;;  %v3415_v55 = vpop.permute.xlu2 %3414  ;;  %vm10768_vm3 = vmmov %vm10759_vm0 }
 0x68f   :  { %v8389_v50 = vsel %vm10759_vm0, %v8228_v40, %v3415_v55  ;;  %vm10769_vm11 = vmmov %vm10759_vm0 }
 0x690   :  { %3540 = vrot.lane.b32.xlu2 %v6155_v44, %s4028_s13 }
 0x692   :  { %3490 = vrot.lane.b32.xlu1 %v6776_v57, %s4027_s12 }
 0x693   :  { %v3377_v19 = vpop.permute.xlu1 %3376 }
 0x694   :  { %v8393_v53 = vsel %vm10760_vm4, %v8233_v26, %v3377_v19  ;;  %v3375_v2 = vpop.permute.xlu0 %3374  ;;  %vm10770_vm4 = vmmov %vm10759_vm0 }
 0x695   :  { %v8397_v1 = vsel %vm10761_vm2, %v8238_v15, %v3375_v2  ;;  %3488 = vrot.lane.b32.xlu0 %v6790_v10, %s4027_s12  ;;  %vm10771_vm2 = vmmov %vm10759_vm0 }
 0x696   :  { %v3421_v11 = vpop.permute.xlu2 %3420 }
 0x697   :  { %v8407_v40 = vsel %vm10762_vm1, %v8249_v9, %v3421_v11  ;;  %vm10772_vm1 = vmmov %vm10759_vm0 }
 0x698   :  { %3546 = vrot.lane.b32.xlu2 %v6240_v46, %s4028_s13 }
 0x69a   :  { %3520 = vrot.lane.b32.xlu1 %v6181_v54, %s4028_s13 }
 0x69b   :  { %v3383_v26 = vpop.permute.xlu1 %3382 }
 0x69c   :  { %v8411_v42 = vsel %vm10763_vm12, %v8254_v16, %v3383_v26  ;;  %v3381_v15 = vpop.permute.xlu0 %3380  ;;  %vm10773_vm12 = vmmov %vm10759_vm0 }
 0x69d   :  { %v8415_v34 = vsel %vm10764_vm7, %v8259_v14, %v3381_v15  ;;  %3518 = vrot.lane.b32.xlu0 %v6186_v17, %s4028_s13  ;;  %vm10774_vm7 = vmmov %vm10759_vm0 }
 0x69e   :  { %v3451_v55 = vpop.permute.xlu2 %3450 }
 0x6a0   :  { %3552 = vrot.lane.b32.xlu2 %v6329_v0, %s4028_s13 }
 0x6a2   :  { %3526 = vrot.lane.b32.xlu1 %v6265_v12, %s4028_s13 }
 0x6a3   :  { %v3389_v9 = vpop.permute.xlu1 %3388 }
 0x6a4   :  { %v8425_v16 = vsel %vm10765_vm13, %v8274_v33, %v3389_v9  ;;  %v3387_v19 = vpop.permute.xlu0 %3386  ;;  %vm10775_vm13 = vmmov %vm10759_vm0 }
 0x6a5   :  { %v8429_v14 = vsel %vm10766_vm10, %v8279_v13, %v3387_v19  ;;  %3524 = vrot.lane.b32.xlu0 %v10389_v47, %s4028_s13  ;;  %vm10776_vm10 = vcmask 31744  }
 0x6a6   :  { %v3457_v2 = vpop.permute.xlu2 %3456 }
 0x6a8   :  { %3558 = vrot.lane.b32.xlu2 %v6417_v24, %s4028_s13 }
 0x6aa   :  { %3532 = vrot.lane.b32.xlu1 %v6352_v38, %s4028_s13 }
 0x6ab   :  { %v3395_v11 = vpop.permute.xlu1 %3394 }
 0x6ac   :  { %v8439_v33 = vsel %vm10767_vm5, %v8294_v25, %v3395_v11  ;;  %v3393_v26 = vpop.permute.xlu0 %3392  ;;  %vm10777_vm5 = vcmask 39936  }
 0x6ad   :  { %v8443_v13 = vsel %vm10768_vm3, %v8299_v41, %v3393_v26  ;;  %3530 = vrot.lane.b32.xlu0 %v6370_v58, %s4028_s13  ;;  %vm10778_vm3 = vcmask 48128  }
 0x6ae   :  { %v3463_v15 = vpop.permute.xlu2 %3462 }
 0x6b0   :  { %3564 = vrot.lane.b32.xlu2 %v6502_v6, %s4028_s13 }
 0x6b2   :  { %3538 = vrot.lane.b32.xlu1 %v6438_v45, %s4028_s13 }
 0x6b3   :  { %v3401_v9 = vpop.permute.xlu1 %3400 }
 0x6b4   :  { %v8453_v25 = vsel %vm10769_vm11, %v8314_v21, %v3401_v9  ;;  %v3399_v19 = vpop.permute.xlu0 %3398  ;;  %vm10779_vm11 = vmmov %vm10776_vm10 }
 0x6b5   :  { %v8457_v41 = vsel %vm10759_vm0, %v8319_v28, %v3399_v19  ;;  %3536 = vrot.lane.b32.xlu0 %v6459_v27, %s4028_s13  ;;  %vm10780_vm0 = vmmov %vm10777_vm5 }
 0x6b6   :  { %v3469_v11 = vpop.permute.xlu2 %3468 }
 0x6ba   :  { %3544 = vrot.lane.b32.xlu1 %v6528_v23, %s4028_s13 }
 0x6bb   :  { %v3407_v26 = vpop.permute.xlu1 %3406 }
 0x6bc   :  { %v8467_v21 = vsel %vm10770_vm4, %v8334_v51, %v3407_v26  ;;  %v3405_v9 = vpop.permute.xlu0 %3404  ;;  %vm10781_vm4 = vmmov %vm10778_vm3 }
 0x6bd   :  { %v8471_v28 = vsel %vm10771_vm2, %v8339_v20, %v3405_v9  ;;  %3542 = vrot.lane.b32.xlu0 %v6546_v48, %s4028_s13  ;;  %vm10782_vm2 = vmmov %vm10776_vm10 }
 0x6be   :  { %v3475_v19 = vpop.permute.xlu2 %3474 }
 0x6c2   :  { %3550 = vrot.lane.b32.xlu1 %v6612_v32, %s4028_s13 }
 0x6c3   :  { %v3413_v27 = vpop.permute.xlu1 %3412 }
 0x6c4   :  { %v8481_v51 = vsel %vm10772_vm1, %v8354_v59, %v3413_v27  ;;  %v3411_v26 = vpop.permute.xlu0 %3410  ;;  %vm10783_vm1 = vmmov %vm10780_vm0 }
 0x6c5   :  { %v8485_v20 = vsel %vm10773_vm12, %v8359_v56, %v3411_v26  ;;  %3548 = vrot.lane.b32.xlu0 %v6630_v18, %s4028_s13  ;;  %vm10784_vm12 = vmmov %vm10778_vm3 }
 0x6c6   :  { %v3481_v9 = vpop.permute.xlu2 %3480 }
 0x6ca   :  { %3556 = vrot.lane.b32.xlu1 %v6694_v4, %s4028_s13 }
 0x6cb   :  { %v3419_v23 = vpop.permute.xlu1 %3418 }
 0x6cc   :  { %v8493_v48 = vsel %vm10774_vm7, %v8374_v52, %v3419_v23  ;;  %v3417_v45 = vpop.permute.xlu0 %3416  ;;  %v3664_v52 = vsel %vm10776_vm10, %v8269_v63, %v3451_v55  ;;  %vm10785_vm7 = vmmov %vm10782_vm2 }
 0x6cd   :  { %v8497_v27 = vsel %vm10775_vm13, %v8379_v29, %v3417_v45  ;;  %3554 = vrot.lane.b32.xlu0 %v6711_v37, %s4028_s13  ;;  %v3688_v29 = vsel %vm10777_vm5, %v3664_v52, %v3451_v55  ;;  %vm10786_vm13 = vmmov %vm10780_vm0 }
 0x6ce   :  { %v3487_v59 = vpop.permute.xlu2 %3486  ;;  %vm10787_vm10 = vmmov %vm10778_vm3 }
 0x6cf   :  { %vm10788_vm5 = vmmov %vm10782_vm2 }
 0x6d2   :  { %3562 = vrot.lane.b32.xlu1 %v6776_v57, %s4028_s13 }
 0x6d3   :  { %v3449_v56 = vpop.permute.xlu1 %3448 }
 0x6d4   :  { %v3447_v26 = vpop.permute.xlu0 %3446 }
 0x6d5   :  { %3560 = vrot.lane.b32.xlu0 %v6790_v10, %s4028_s13  ;;  %v3667_v10 = vsel %vm10779_vm11, %v8289_v7, %v3457_v2  ;;  %vm10790_vm11 = vmmov %vm10781_vm4 }
 0x6d6   :  { %v8505_v18 = vpop.permute.xlu2 %3492  ;;  %v3691_v58 = vsel %vm10780_vm0, %v3667_v10, %v3457_v2 }
 0x6db   :  { %v8509_v23 = vpop.permute.xlu1 %3454 }
 0x6dc   :  { %v8511_v45 = vpop.permute.xlu0 %3452 }
 0x6de   :  { %v3523_v37 = vpop.permute.xlu2 %3522 }
 0x6df   :  { %v3712_v4 = vsel %vm10778_vm3, %v3688_v29, %v3523_v37  ;;  %v3670_v37 = vsel %vm10782_vm2, %v8309_v3, %v3463_v15  ;;  %vm10789_vm3 = vmmov %vm10780_vm0 }
 0x6e0   :  { %3762 = vrot.lane.b32.xlu2 %v3712_v4, %s4020_s5  ;;  %v3694_v4 = vsel %vm10783_vm1, %v3670_v37, %v3463_v15  ;;  %v3676_v37 = vsel %vm10788_vm5, %v8349_v8, %v3475_v19  ;;  %vm10791_vm0 = vmmov %vm10782_vm2 }
 0x6e1   :  { %vm10793_vm2 = vmmov %vm10787_vm10 }
 0x6e2   :  { %vm10799_vm5 = vmmov %vm10789_vm3 }
 0x6e3   :  { %v8517_v32 = vpop.permute.xlu1 %3460 }
 0x6e4   :  { %v8520_v57 = vpop.permute.xlu0 %3458 }
 0x6e6   :  { %v3529_v38 = vpop.permute.xlu2 %3528 }
 0x6e7   :  { %v3715_v47 = vsel %vm10781_vm4, %v3691_v58, %v3529_v38  ;;  %v3673_v38 = vsel %vm10785_vm7, %v8329_v5, %v3469_v11  ;;  %vm10792_vm4 = vmmov %vm10783_vm1 }
 0x6e8   :  { %3768 = vrot.lane.b32.xlu2 %v3715_v47, %s4020_s5  ;;  %v3697_v58 = vsel %vm10786_vm13, %v3673_v38, %v3469_v11  ;;  %v3679_v38 = vsel %vm10791_vm0, %v8369_v30, %v3481_v9  ;;  %vm10794_vm1 = vmmov %vm10791_vm0 }
 0x6e9   :  { %vm10796_vm7 = vmmov %vm10789_vm3 }
 0x6ea   :  { %vm10797_vm13 = vmmov %vm10791_vm0 }
 0x6eb   :  { %v8526_v63 = vpop.permute.xlu1 %3466  ;;  %v3662_v30 = vsel %vm10797_vm13, %v8397_v1, %v3447_v26 }
 0x6ec   :  { %v8529_v55 = vpop.permute.xlu0 %3464 }
 0x6ee   :  { %v3535_v52 = vpop.permute.xlu2 %3534 }
 0x6ef   :  { %v3718_v29 = vsel %vm10784_vm12, %v3694_v4, %v3535_v52  ;;  %v3700_v4 = vsel %vm10789_vm3, %v3676_v37, %v3475_v19  ;;  %v3682_v37 = vsel %vm10794_vm1, %v8389_v50, %v3487_v59  ;;  %vm10795_vm12 = vmmov %vm10791_vm0 }
 0x6f0   :  { %3774 = vrot.lane.b32.xlu2 %v3718_v29, %s4020_s5  ;;  %vm10801_vm0 = vmmov %vm10793_vm2 }
 0x6f3   :  { %v8535_v7 = vpop.permute.xlu1 %3472 }
 0x6f4   :  { %v8538_v10 = vpop.permute.xlu0 %3470 }
 0x6f6   :  { %v3541_v47 = vpop.permute.xlu2 %3540 }
 0x6f7   :  { %v3721_v2 = vsel %vm10787_vm10, %v3697_v58, %v3541_v47  ;;  %v3703_v58 = vsel %vm10792_vm4, %v3679_v38, %v3481_v9  ;;  %vm10798_vm10 = vmmov %vm10793_vm2 }
 0x6f8   :  { %3780 = vrot.lane.b32.xlu2 %v3721_v2, %s4020_s5  ;;  %vm10802_vm4 = vmmov %vm10794_vm1 }
 0x6f9   :  { %v3685_v1 = vsel %vm10802_vm4, %v8407_v40, %v8505_v18  ;;  %vm10813_vm4 = vcmask 7168  }
 0x6fb   :  { %v8544_v3 = vpop.permute.xlu1 %3478 }
 0x6fc   :  { %v8547_v15 = vpop.permute.xlu0 %3476 }
 0x6fe   :  { %v3547_v52 = vpop.permute.xlu2 %3546 }
 0x6ff   :  { %v3724_v29 = vsel %vm10790_vm11, %v3700_v4, %v3547_v52  ;;  %v3663_v4 = vsel %vm10795_vm12, %v8393_v53, %v3449_v56  ;;  %v3706_v52 = vsel %vm10796_vm7, %v3682_v37, %v3487_v59  ;;  %vm10800_vm11 = vmmov %vm10793_vm2 }
 0x700   :  { %3786 = vrot.lane.b32.xlu2 %v3724_v29, %s4020_s5  ;;  %v3687_v38 = vsel %vm10799_vm5, %v3663_v4, %v3449_v56  ;;  %vm10806_vm7 = vmmov %vm10801_vm0 }
 0x701   :  { %vm10809_vm5 = vmmov %vm10801_vm0 }
 0x703   :  { %v8553_v5 = vpop.permute.xlu1 %3484 }
 0x704   :  { %v8556_v11 = vpop.permute.xlu0 %3482 }
 0x706   :  { %v3553_v47 = vpop.permute.xlu2 %3552 }
 0x707   :  { %v3727_v2 = vsel %vm10793_vm2, %v3703_v58, %v3553_v47  ;;  %v3686_v47 = vsel %vm10789_vm3, %v3662_v30, %v3447_v26  ;;  %vm10803_vm2 = vmmov %vm10794_vm1 }
 0x708   :  { %3792 = vrot.lane.b32.xlu2 %v3727_v2, %s4020_s5  ;;  %v3666_v59 = vsel %vm10803_vm2, %v8411_v42, %v8509_v23  ;;  %vm10804_vm1 = vmmov %vm10789_vm3 }
 0x709   :  { %v3709_v56 = vsel %vm10804_vm1, %v3685_v1, %v8505_v18  ;;  %vm10805_vm12 = vmmov %vm10803_vm2 }
 0x70a   :  { %v3665_v26 = vsel %vm10805_vm12, %v8415_v34, %v8511_v45  ;;  %vm10807_vm13 = vmmov %vm10804_vm1 }
 0x70b   :  { %v8562_v8 = vpop.permute.xlu1 %3490  ;;  %vm10810_vm3 = vmmov %vm10801_vm0 }
 0x70c   :  { %v8565_v19 = vpop.permute.xlu0 %3488  ;;  %vm10815_vm12 = vmmov %vm10810_vm3 }
 0x70e   :  { %v3559_v9 = vpop.permute.xlu2 %3558 }
 0x70f   :  { %v3730_v29 = vsel %vm10798_vm10, %v3706_v52, %v3559_v9  ;;  %v3690_v52 = vsel %vm10807_vm13, %v3666_v59, %v8509_v23  ;;  %vm10808_vm10 = vmmov %vm10804_vm1  ;;  %vm10817_vm13 = vcmask 15360  }
 0x710   :  { %3798 = vrot.lane.b32.xlu2 %v3730_v29, %s4020_s5  ;;  %v3689_v30 = vsel %vm10808_vm10, %v3665_v26, %v8511_v45  ;;  %v2872_v45 = vsel %vm10813_vm4, %v5934_v43, %v6879_v31 }
 0x713   :  { %v3521_v58 = vpop.permute.xlu1 %3520 }
 0x714   :  { %v3711_v50 = vsel %vm10800_vm11, %v3687_v38, %v3521_v58  ;;  %v3519_v2 = vpop.permute.xlu0 %3518  ;;  %vm10811_vm11 = vmmov %vm10803_vm2 }
 0x715   :  { %v3710_v53 = vsel %vm10801_vm0, %v3686_v47, %v3519_v2  ;;  %3760 = vrot.lane.b32.xlu1 %v3711_v50, %s4020_s5  ;;  %v3669_v34 = vsel %vm10811_vm11, %v8425_v16, %v8517_v32  ;;  %vm10812_vm0 = vmmov %vm10803_vm2 }
 0x716   :  { %3758 = vrot.lane.b32.xlu0 %v3710_v53, %s4020_s5  ;;  %v3565_v37 = vpop.permute.xlu2 %3564  ;;  %v3668_v23 = vsel %vm10812_vm0, %v8429_v14, %v8520_v57  ;;  %vm10814_vm2 = vmmov %vm10804_vm1  ;;  %v2896_v14 = vsel %vm10817_vm13, %v2872_v45, %v7191_v61 }
 0x717   :  { %v3733_v4 = vsel %vm10806_vm7, %v3709_v56, %v3565_v37  ;;  %v3693_v29 = vsel %vm10814_vm2, %v3669_v34, %v8517_v32  ;;  %v3692_v58 = vsel %vm10804_vm1, %v3668_v23, %v8520_v57  ;;  %vm10816_vm7 = vmmov %vm10810_vm3 }
 0x718   :  { %3804 = vrot.lane.b32.xlu2 %v3733_v4, %s4020_s5  ;;  %vm10818_vm10 = vmmov %vm10812_vm0 }
 0x719   :  { %v3672_v43 = vsel %vm10818_vm10, %v8439_v33, %v8526_v63  ;;  %vm10821_vm11 = vmmov %vm10812_vm0 }
 0x71a   :  { %vm10824_vm2 = vmmov %vm10804_vm1  ;;  %v3675_v26 = vsel %vm10821_vm11, %v8453_v25, %v8535_v7 }
 0x71b   :  { %v3527_v40 = vpop.permute.xlu1 %3526  ;;  %v3696_v33 = vsel %vm10824_vm2, %v3672_v43, %v8526_v63  ;;  %vm10826_vm10 = vmmov %vm10816_vm7  ;;  %v10828_v63 = vld [vmem:[#allocation71_spill] sm:$0xff] }
 0x71c   :  { %v3714_v42 = vsel %vm10809_vm5, %v3690_v52, %v3527_v40  ;;  %v3525_v9 = vpop.permute.xlu0 %3524  ;;  %vm10819_vm5 = vcmask 23552   ;;  %v10834_v40 = vld [vmem:[#allocation157_spill] sm:$0xff] }
 0x71d   :  { %v3713_v18 = vsel %vm10810_vm3, %v3689_v30, %v3525_v9  ;;  %3766 = vrot.lane.b32.xlu1 %v3714_v42, %s4020_s5  ;;  %v2920_v32 = vsel %vm10819_vm5, %v2896_v14, %v7191_v61  ;;  %vm10820_vm3 = vmmov %vm10812_vm0  ;;  %vm10827_vm5 = vcmask 56320   ;;  %v10836_v30 = vld [vmem:[#allocation174_spill] sm:$0xff] }
 0x71e   :  { %3764 = vrot.lane.b32.xlu0 %v3713_v18, %s4020_s5  ;;  %v3671_v57 = vsel %vm10820_vm3, %v8443_v13, %v8529_v55  ;;  %v2944_v31 = vsel %vm10821_vm11, %v2920_v32, %v7287_v39  ;;  %vm10822_vm0 = vmmov %vm10813_vm4  ;;  %vm10829_vm3 = vcmask 64512   ;;  %v10840_v18 = vld [vmem:[#allocation13_spill] sm:$0xff] }
 0x71f   :  { %v2875_v2 = vsel %vm10822_vm0, %v6001_v35, %v6949_v60  ;;  %vm10823_vm4 = vmmov %vm10804_vm1  ;;  %v3695_v61 = vsel %vm10804_vm1, %v3671_v57, %v8529_v55  ;;  %vm10830_vm0 = vcmask 23552   ;;  %vm10835_vm1 = vcmask 7168  }
 0x720   :  { %v2968_v53 = vsel %vm10823_vm4, %v2944_v31, %v7383_v36  ;;  %v2899_v35 = vsel %vm10817_vm13, %v2875_v2, %v7203_v62  ;;  %vm10831_vm4 = vmmov %vm10821_vm11  ;;  %vm10846_vm11 = vcmask 15360   ;;  %v10854_v31 = vld [vmem:[#allocation197_spill] sm:$0xff] }
 0x721   :  { %v2992_v60 = vsel %vm10826_vm10, %v2968_v53, %v7383_v36  ;;  %v2923_v37 = vsel %vm10830_vm0, %v2899_v35, %v7203_v62  ;;  %v3674_v4 = vsel %vm10831_vm4, %v8457_v41, %v8538_v10  ;;  %v10832_v36 = vld [vmem:[#allocation45_spill] sm:$0xff]  ;;  %vm10833_vm2 = vmmov %vm10831_vm4  ;;  %vm10849_vm4 = vcmask 56320  }
 0x722   :  { %v3016_v39 = vsel %vm10827_vm5, %v2992_v60, %v7479_v49  ;;  %v2947_v52 = vsel %vm10833_vm2, %v2923_v37, %v10832_v36  ;;  %v2878_v49 = vsel %vm10835_vm1, %v6076_v22, %v10834_v40  ;;  %vm10842_vm5 = vcmask 48128   ;;  %v10843_v22 = vld [vmem:[#allocation125_spill] sm:$0xff] }
 0x723   :  { %v3533_v38 = vpop.permute.xlu1 %3532  ;;  %v3040_v55 = vsel %vm10829_vm3, %v3016_v39, %v10828_v63  ;;  %vm10844_vm3 = vmmov %vm10842_vm5  ;;  %vm10851_vm2 = vcmask 64512   ;;  %vm10852_vm1 = vcmask 31744  }
 0x724   :  { %v3717_v47 = vsel %vm10815_vm12, %v3693_v29, %v3533_v38  ;;  %v3531_v50 = vpop.permute.xlu0 %3530  ;;  %vm10825_vm12 = vmmov %vm10816_vm7  ;;  %v3678_v32 = vsel %vm10852_vm1, %v8467_v21, %v8544_v3 }
 0x725   :  { %v3716_v16 = vsel %vm10816_vm7, %v3692_v58, %v3531_v50  ;;  %3772 = vrot.lane.b32.xlu1 %v3717_v47, %s4020_s5  ;;  %v10845_v58 = vld [vmem:[#allocation139_spill] sm:$0xff]  ;;  %vm10847_vm0 = vmmov %vm10844_vm3  ;;  %v10848_v50 = vld [vmem:[#allocation73_spill] sm:$0xff] }
 0x726   :  { %3770 = vrot.lane.b32.xlu0 %v3716_v16, %s4020_s5  ;;  %v10850_v16 = vld [vmem:[#allocation72_spill] sm:$0xff] }
 0x72b   :  { %v3539_v1 = vpop.permute.xlu1 %3538 }
 0x72c   :  { %v3720_v59 = vsel %vm10825_vm12, %v3696_v33, %v3539_v1  ;;  %v3537_v13 = vpop.permute.xlu0 %3536  ;;  %vm10837_vm12 = vcmask 39936   ;;  %v10857_v33 = vld [vmem:[#allocation167_spill] sm:$0xff] }
 0x72d   :  { %v3719_v56 = vsel %vm10816_vm7, %v3695_v61, %v3537_v13  ;;  %3778 = vrot.lane.b32.xlu1 %v3720_v59, %s4020_s5  ;;  %v2971_v42 = vsel %vm10837_vm12, %v2947_v52, %v10836_v30  ;;  %vm10838_vm7 = vcmask 72704   ;;  %vm10839_vm13 = vmmov %vm10837_vm12  ;;  %v10859_v61 = vld [vmem:[#allocation221_spill] sm:$0xff]  ;;  %v10860_v13 = vld [vmem:[#allocation136_spill] sm:$0xff] }
 0x72e   :  { %3776 = vrot.lane.b32.xlu0 %v3719_v56, %s4020_s5  ;;  %v3064_v25 = vsel %vm10838_vm7, %v3040_v55, %v10828_v63  ;;  %v3699_v62 = vsel %vm10839_vm13, %v3675_v26, %v8535_v7  ;;  %vm10841_vm10 = vmmov %vm10837_vm12  ;;  %v2902_v7 = vsel %vm10846_vm11, %v2878_v49, %v10845_v58  ;;  %v2995_v47 = vsel %vm10847_vm0, %v2971_v42, %v10836_v30  ;;  %v10862_v56 = vld [vmem:[#allocation153_spill] sm:$0xff]  ;;  %v10866_v63 = vld [vmem:[#allocation119_spill] sm:$0xff] }
 0x72f   :  { %v3088_v41 = vsel %vm1094_vm6, %v3064_v25, %v10840_v18  ;;  %v3698_v34 = vsel %vm10841_vm10, %v3674_v4, %v8538_v10  ;;  %v3019_v10 = vsel %vm10849_vm4, %v2995_v47, %v10848_v50  ;;  %vm10853_vm12 = vcmask 23552   ;;  %vm10856_vm13 = vmmov %vm10852_vm1  ;;  %v10871_v49 = vld [vmem:[#allocation140_spill] sm:$0xff]  ;;  %v10875_v25 = vld [vmem:[#allocation66_spill] sm:$0xff] }
 0x730   :  { %v3112_v29 = vsel %vm1119_vm14, %v3088_v41, %v10843_v22  ;;  %v3043_v14 = vsel %vm10851_vm2, %v3019_v10, %v10850_v16  ;;  %v2926_v57 = vsel %vm10853_vm12, %v2902_v7, %v10845_v58  ;;  %vm10855_vm7 = vcmask 105472   ;;  %vm10858_vm10 = vmmov %vm10852_vm1  ;;  %v10886_v58 = vld [vmem:[#allocation224_spill] sm:$0xff]  ;;  %v10887_v47 = vld [vmem:[#allocation31_spill] sm:$0xff] }
 0x731   :  { %v3136_v43 = vsel %vm1144_vm15, %v3112_v29, %v10843_v22  ;;  %v3677_v53 = vsel %vm10856_vm13, %v8471_v28, %v8547_v15  ;;  %v2950_v1 = vsel %vm10858_vm10, %v2926_v57, %v10857_v33  ;;  %vm10864_vm11 = vcmask 72704   ;;  %v10889_v10 = vld [vmem:[#allocation61_spill] sm:$0xff] }
 0x732   :  { %v3160_v2 = vsel %vm10855_vm7, %v3136_v43, %v10854_v31  ;;  %v3067_v60 = vsel %vm10864_vm11, %v3043_v14, %v10850_v16  ;;  %vm10868_vm2 = vcmask 48128   ;;  %vm3857_vm1 = vcmask 186368  }
 0x733   :  { %v3545_v9 = vpop.permute.xlu1 %3544  ;;  %v3184_v59 = vsel %vm1194_vm8, %v3160_v2, %v10859_v61  ;;  %v3091_v55 = vsel %vm1094_vm6, %v3067_v60, %v10866_v63  ;;  %vm10870_vm12 = vmmov %vm10868_vm2  ;;  %vm10872_vm7 = vcmask 15360   ;;  %vm10874_vm10 = vcmask 130048   ;;  %v10904_v60 = vld [vmem:[#allocation54_spill] sm:$0xff] }
 0x734   :  { %v3723_v23 = vsel %vm10842_vm5, %v3699_v62, %v3545_v9  ;;  %v3543_v45 = vpop.permute.xlu0 %3542  ;;  %vm10861_vm5 = vcmask 7168   ;;  %v3208_v52 = vsel %vm1219_vm9, %v3184_v59, %v10859_v61  ;;  %vm10873_vm13 = vmmov %vm10868_vm2  ;;  %v10877_v9 = vld [vmem:[#allocation53_spill] sm:$0xff]  ;;  %vm10879_vm11 = vcmask 31744  }
 0x735   :  { %v3722_v38 = vsel %vm10844_vm3, %v3698_v34, %v3543_v45  ;;  %3784 = vrot.lane.b32.xlu1 %v3723_v23, %s4020_s5  ;;  %v2881_v21 = vsel %vm10861_vm5, %v6155_v44, %v10860_v13  ;;  %vm10863_vm3 = vcmask 39936   ;;  %v10869_v44 = vld [vmem:[#allocation83_spill] sm:$0xff]  ;;  %vm10876_vm5 = vcmask 56320   ;;  %v10881_v45 = vld [vmem:[#allocation200_spill] sm:$0xff]  ;;  %v10898_v59 = vld [vmem:[#allocation41_spill] sm:$0xff] }
 0x736   :  { %3782 = vrot.lane.b32.xlu0 %v3722_v38, %s4020_s5  ;;  %v2974_v35 = vsel %vm10863_vm3, %v2950_v1, %v10862_v56  ;;  %vm10865_vm0 = vmmov %vm10863_vm3  ;;  %v3115_v36 = vsel %vm1119_vm14, %v3091_v55, %v10869_v44  ;;  %v2905_v30 = vsel %vm10872_vm7, %v2881_v21, %v10871_v49  ;;  %vm10878_vm3 = vcmask 64512   ;;  %v10884_v38 = vld [vmem:[#allocation147_spill] sm:$0xff] }
 0x737   :  { %v3702_v39 = vsel %vm10865_vm0, %v3678_v32, %v8544_v3  ;;  %vm10867_vm4 = vmmov %vm10865_vm0  ;;  %v3139_v41 = vsel %vm1144_vm15, %v3115_v36, %v10869_v44  ;;  %v3681_v34 = vsel %vm10879_vm11, %v8481_v51, %v8553_v5  ;;  %vm10880_vm0 = vcmask 23552   ;;  %v10893_v32 = vld [vmem:[#allocation35_spill] sm:$0xff]  ;;  %v10911_v44 = vld [vmem:[#allocation185_spill] sm:$0xff] }
 0x738   :  { %v3701_v26 = vsel %vm10867_vm4, %v3677_v53, %v8547_v15  ;;  %v2998_v15 = vsel %vm10873_vm13, %v2974_v35, %v10862_v56  ;;  %v2929_v23 = vsel %vm10880_vm0, %v2905_v30, %v10871_v49  ;;  %vm10882_vm4 = vcmask 105472   ;;  %v10902_v56 = vld [vmem:[#allocation118_spill] sm:$0xff] }
 0x739   :  { %v3022_v62 = vsel %vm10876_vm5, %v2998_v15, %v10875_v25  ;;  %v3163_v22 = vsel %vm10882_vm4, %v3139_v41, %v10881_v45  ;;  %vm10888_vm7 = vcmask 7168   ;;  %vm10890_vm13 = vcmask 39936   ;;  %v10916_v49 = vld [vmem:[#allocation106_spill] sm:$0xff] }
 0x73a   :  { %v3763_v3 = vpop.permute.xlu2 %3762  ;;  %v3046_v18 = vsel %vm10878_vm3, %v3022_v62, %v10877_v9  ;;  %v3187_v7 = vsel %vm1194_vm8, %v3163_v22, %v10886_v58  ;;  %v2884_v50 = vsel %vm10888_vm7, %v6240_v46, %v10887_v47  ;;  %vm10892_vm5 = vmmov %vm10890_vm13  ;;  %v10896_v46 = vld [vmem:[#allocation108_spill] sm:$0xff]  ;;  %vm10899_vm4 = vcmask 15360   ;;  %v10920_v25 = vld [vmem:[#allocation18_spill] sm:$0xff] }
 0x73b   :  { %v3551_v28 = vpop.permute.xlu1 %3550  ;;  %v3832_v42 = vsel %vm10874_vm10, %v3208_v52, %v3763_v3  ;;  %vm10891_vm10 = vcmask 72704   ;;  %v3705_v14 = vsel %vm10892_vm5, %v3681_v34, %v8553_v5  ;;  %vm10894_vm3 = vmmov %vm10892_vm5  ;;  %v3211_v1 = vsel %vm1219_vm9, %v3187_v7, %v10886_v58  ;;  %v10913_v52 = vld [vmem:[#allocation227_spill] sm:$0xff]  ;;  %v10914_v3 = vld [vmem:[#allocation34_spill] sm:$0xff] }
 0x73c   :  { %v3726_v37 = vsel %vm10868_vm2, %v3702_v39, %v3551_v28  ;;  %v3549_v4 = vpop.permute.xlu0 %3548  ;;  %3858 = vst.msk [vmem:[%s9560_s3 + $0x10] sm:$0x7f] %vm3857_vm1, %v3832_v42  ;;  %vm10883_vm2 = vmmov %vm10879_vm11  ;;  %vm10895_vm11 = vcmask 48128   ;;  %v2908_v13 = vsel %vm10899_vm4, %v2884_v50, %v10898_v59  ;;  %vm10903_vm7 = vcmask 56320   ;;  %v10925_v22 = vld [vmem:[#allocation142_spill] sm:$0xff]  ;;  %v10931_v7 = vld [vmem:[#allocation117_spill] sm:$0xff] }
 0x73d   :  { %v3725_v40 = vsel %vm10870_vm12, %v3701_v26, %v3549_v4  ;;  %3790 = vrot.lane.b32.xlu1 %v3726_v37, %s4020_s5  ;;  %v3680_v29 = vsel %vm10883_vm2, %v8485_v20, %v8556_v11  ;;  %vm10885_vm12 = vmmov %vm10883_vm2  ;;  %v3070_v20 = vsel %vm10891_vm10, %v3046_v18, %v10877_v9  ;;  %vm10906_vm10 = vcmask 31744   ;;  %v10908_v26 = vld [vmem:[#allocation203_spill] sm:$0xff] }
 0x73e   :  { %3788 = vrot.lane.b32.xlu0 %v3725_v40, %s4020_s5  ;;  %v2953_v51 = vsel %vm10885_vm12, %v2929_v23, %v10884_v38  ;;  %v3094_v57 = vsel %vm1094_vm6, %v3070_v20, %v10893_v32  ;;  %v3704_v31 = vsel %vm10894_vm3, %v3680_v29, %v8556_v11  ;;  %vm10897_vm0 = vmmov %vm10895_vm11  ;;  %vm10901_vm12 = vcmask 130048   ;;  %v10938_v32 = vld [vmem:[#allocation230_spill] sm:$0xff] }
 0x73f   :  { %v2977_v16 = vsel %vm10890_vm13, %v2953_v51, %v10889_v10  ;;  %v3118_v33 = vsel %vm1119_vm14, %v3094_v57, %v10896_v46  ;;  %vm10900_vm2 = vmmov %vm10897_vm0  ;;  %vm10905_vm13 = vcmask 64512   ;;  %v3684_v63 = vsel %vm10906_vm10, %v8493_v48, %v8562_v8  ;;  %v10929_v51 = vld [vmem:[#allocation26_spill] sm:$0xff] }
 0x740   :  { %v3001_v11 = vsel %vm10900_vm2, %v2977_v16, %v10889_v10  ;;  %v3142_v28 = vsel %vm1144_vm15, %v3118_v33, %v10896_v46  ;;  %vm10907_vm5 = vcmask 23552   ;;  %vm10909_vm3 = vcmask 105472   ;;  %v10934_v16 = vld [vmem:[#allocation206_spill] sm:$0xff] }
 0x741   :  { %v3025_v35 = vsel %vm10903_vm7, %v3001_v11, %v10902_v56  ;;  %v2932_v55 = vsel %vm10907_vm5, %v2908_v13, %v10898_v59  ;;  %v3166_v37 = vsel %vm10909_vm3, %v3142_v28, %v10908_v26  ;;  %vm10915_vm4 = vcmask 7168   ;;  %v10952_v28 = vld [vmem:[#allocation189_spill] sm:$0xff] }
 0x742   :  { %v3769_v5 = vpop.permute.xlu2 %3768  ;;  %v3049_v39 = vsel %vm10905_vm13, %v3025_v35, %v10904_v60  ;;  %v3190_v40 = vsel %vm1194_vm8, %v3166_v37, %v10913_v52  ;;  %v2887_v48 = vsel %vm10915_vm4, %v6329_v0, %v10914_v3  ;;  %vm10917_vm2 = vcmask 39936   ;;  %v10923_v0 = vld [vmem:[#allocation86_spill] sm:$0xff]  ;;  %v10955_v37 = vld [vmem:[#allocation209_spill] sm:$0xff] }
 0x743   :  { %v3557_v43 = vpop.permute.xlu1 %3556  ;;  %v3835_v21 = vsel %vm10901_vm12, %v3211_v1, %v3769_v5  ;;  %vm10918_vm12 = vcmask 72704   ;;  %vm10919_vm7 = vmmov %vm10917_vm2  ;;  %v3214_v23 = vsel %vm1219_vm9, %v3190_v40, %v10913_v52  ;;  %vm10926_vm3 = vcmask 15360   ;;  %v10944_v1 = vld [vmem:[#allocation59_spill] sm:$0xff]  ;;  %v10959_v52 = vld [vmem:[#allocation233_spill] sm:$0xff] }
 0x744   :  { %v3729_v2 = vsel %vm10895_vm11, %v3705_v14, %v3557_v43  ;;  %v3555_v53 = vpop.permute.xlu0 %3554  ;;  %3861 = vst.msk [vmem:[%s9560_s3 + $0x28] sm:$0x7f] %vm3857_vm1, %v3835_v21  ;;  %vm10910_vm11 = vmmov %vm10906_vm10  ;;  %v3073_v15 = vsel %vm10918_vm12, %v3049_v39, %v10904_v60  ;;  %v3708_v42 = vsel %vm10919_vm7, %v3684_v63, %v8562_v8  ;;  %v2911_v29 = vsel %vm10926_vm3, %v2887_v48, %v10925_v22  ;;  %v10936_v14 = vld [vmem:[#allocation170_spill] sm:$0xff]  ;;  %v10945_v5 = vld [vmem:[#allocation111_spill] sm:$0xff] }
 0x745   :  { %v3728_v61 = vsel %vm10897_vm0, %v3704_v31, %v3555_v53  ;;  %3796 = vrot.lane.b32.xlu1 %v3729_v2, %s4020_s5  ;;  %v3683_v4 = vsel %vm10910_vm11, %v8497_v27, %v8565_v19  ;;  %vm10912_vm0 = vmmov %vm10906_vm10  ;;  %v3097_v62 = vsel %vm1094_vm6, %v3073_v15, %v10920_v25  ;;  %vm10922_vm10 = vcmask 48128   ;;  %v10939_v31 = vld [vmem:[#allocation158_spill] sm:$0xff]  ;;  %v10941_v53 = vld [vmem:[#allocation109_spill] sm:$0xff] }
 0x746   :  { %3794 = vrot.lane.b32.xlu0 %v3728_v61, %s4020_s5  ;;  %v2956_v36 = vsel %vm10912_vm0, %v2932_v55, %v10911_v44  ;;  %vm10921_vm13 = vmmov %vm10917_vm2  ;;  %v3121_v34 = vsel %vm1119_vm14, %v3097_v62, %v10923_v0  ;;  %vm10928_vm0 = vcmask 130048   ;;  %vm10930_vm4 = vcmask 56320   ;;  %v10946_v21 = vld [vmem:[#allocation164_spill] sm:$0xff]  ;;  %v10950_v60 = vld [vmem:[#allocation51_spill] sm:$0xff] }
 0x747   :  { %v2980_v30 = vsel %vm10917_vm2, %v2956_v36, %v10916_v49  ;;  %v3707_v9 = vsel %vm10921_vm13, %v3683_v4, %v8565_v19  ;;  %vm10924_vm5 = vmmov %vm10922_vm10  ;;  %vm10932_vm2 = vcmask 64512   ;;  %v3145_v50 = vsel %vm1144_vm15, %v3121_v34, %v10923_v0  ;;  %v10957_v44 = vld [vmem:[#allocation186_spill] sm:$0xff]  ;;  %v10960_v3 = vld [vmem:[#allocation37_spill] sm:$0xff] }
 0x748   :  { %vm10927_vm11 = vmmov %vm10924_vm5  ;;  %vm10933_vm12 = vcmask 23552   ;;  %vm10935_vm7 = vcmask 105472   ;;  %vm10937_vm13 = vcmask 31744   ;;  %vm10943_vm3 = vcmask 72704   ;;  %v10966_v25 = vld [vmem:[#allocation131_spill] sm:$0xff] }
 0x749   :  { %v3004_v19 = vsel %vm10927_vm11, %v2980_v30, %v10916_v49  ;;  %v2935_v10 = vsel %vm10933_vm12, %v2911_v29, %v10925_v22  ;;  %v3169_v20 = vsel %vm10935_vm7, %v3145_v50, %v10934_v16  ;;  %vm10947_vm11 = vcmask 15360   ;;  %v10962_v49 = vld [vmem:[#allocation49_spill] sm:$0xff] }
 0x74a   :  { %v3775_v8 = vpop.permute.xlu2 %3774  ;;  %v3028_v58 = vsel %vm10930_vm4, %v3004_v19, %v10929_v51  ;;  %v2959_v43 = vsel %vm10937_vm13, %v2935_v10, %v10936_v14  ;;  %v3193_v57 = vsel %vm1194_vm8, %v3169_v20, %v10938_v32  ;;  %vm10949_vm4 = vcmask 130048   ;;  %v10981_v10 = vld [vmem:[#allocation48_spill] sm:$0xff]  ;;  %v10982_v14 = vld [vmem:[#allocation38_spill] sm:$0xff] }
 0x74b   :  { %v3563_v27 = vpop.permute.xlu1 %3562  ;;  %v3838_v38 = vsel %vm10928_vm0, %v3214_v23, %v3775_v8  ;;  %v3052_v47 = vsel %vm10932_vm2, %v3028_v58, %v10931_v7  ;;  %v3217_v13 = vsel %vm1219_vm9, %v3193_v57, %v10938_v32  ;;  %vm10948_vm0 = vcmask 48128   ;;  %v10971_v23 = vld [vmem:[#allocation92_spill] sm:$0xff]  ;;  %v10973_v8 = vld [vmem:[#allocation19_spill] sm:$0xff]  ;;  %v10978_v58 = vld [vmem:[#allocation150_spill] sm:$0xff] }
 0x74c   :  { %v3732_v18 = vsel %vm10922_vm10, %v3708_v42, %v3563_v27  ;;  %v3561_v41 = vpop.permute.xlu0 %3560  ;;  %3864 = vst.msk [vmem:[%s9560_s3 + $0x40] sm:$0x7f] %vm3857_vm1, %v3838_v38  ;;  %vm10940_vm10 = vcmask 7168   ;;  %v3076_v33 = vsel %vm10943_vm3, %v3052_v47, %v10931_v7  ;;  %vm10951_vm2 = vcmask 56320   ;;  %v10965_v42 = vld [vmem:[#allocation60_spill] sm:$0xff]  ;;  %v10983_v32 = vld [vmem:[#allocation191_spill] sm:$0xff] }
 0x74d   :  { %v3731_v45 = vsel %vm10924_vm5, %v3707_v9, %v3561_v41  ;;  %3802 = vrot.lane.b32.xlu1 %v3732_v18, %s4020_s5  ;;  %v2890_v2 = vsel %vm10940_vm10, %v6417_v24, %v10939_v31  ;;  %vm10942_vm5 = vcmask 39936   ;;  %v3100_v61 = vsel %vm1094_vm6, %v3076_v33, %v10944_v1  ;;  %v10967_v41 = vld [vmem:[#allocation44_spill] sm:$0xff]  ;;  %v10986_v33 = vld [vmem:[#allocation27_spill] sm:$0xff] }
 0x74e   :  { %3800 = vrot.lane.b32.xlu0 %v3731_v45, %s4020_s5  ;;  %v2983_v46 = vsel %vm10942_vm5, %v2959_v43, %v10941_v53  ;;  %v3124_v59 = vsel %vm1119_vm14, %v3100_v61, %v10945_v5  ;;  %v2914_v56 = vsel %vm10947_vm11, %v2890_v2, %v10946_v21  ;;  %vm10953_vm12 = vcmask 64512   ;;  %v10976_v38 = vld [vmem:[#allocation212_spill] sm:$0xff] }
 0x74f   :  { %v3007_v24 = vsel %vm10948_vm0, %v2983_v46, %v10941_v53  ;;  %v3148_v55 = vsel %vm1144_vm15, %v3124_v59, %v10945_v5  ;;  %vm10954_vm7 = vcmask 23552   ;;  %vm10956_vm13 = vcmask 105472   ;;  %v10980_v47 = vld [vmem:[#allocation236_spill] sm:$0xff] }
 0x750   :  { %v3031_v39 = vsel %vm10951_vm2, %v3007_v24, %v10950_v60  ;;  %v2938_v26 = vsel %vm10954_vm7, %v2914_v56, %v10946_v21  ;;  %v3172_v4 = vsel %vm10956_vm13, %v3148_v55, %v10955_v37  ;;  %vm10958_vm10 = vcmask 31744   ;;  %v10988_v61 = vld [vmem:[#allocation56_spill] sm:$0xff]  ;;  %v10992_v21 = vld [vmem:[#allocation239_spill] sm:$0xff]  ;;  %v10997_v37 = vld [vmem:[#allocation137_spill] sm:$0xff] }
 0x751   :  { %v3055_v63 = vsel %vm10953_vm12, %v3031_v39, %v10952_v28  ;;  %v2962_v36 = vsel %vm10958_vm10, %v2938_v26, %v10957_v44  ;;  %v3196_v40 = vsel %vm1194_vm8, %v3172_v4, %v10959_v52  ;;  %vm10961_vm5 = vcmask 7168   ;;  %v10995_v39 = vld [vmem:[#allocation194_spill] sm:$0xff]  ;;  %v10999_v44 = vld [vmem:[#allocation176_spill] sm:$0xff] }
 0x752   :  { %v3781_v11 = vpop.permute.xlu2 %3780  ;;  %v2893_v48 = vsel %vm10961_vm5, %v6502_v6, %v10960_v3  ;;  %vm10963_vm3 = vcmask 39936   ;;  %vm10964_vm11 = vcmask 72704   ;;  %v3220_v9 = vsel %vm1219_vm9, %v3196_v40, %v10959_v52  ;;  %v11001_v52 = vld [vmem:[#allocation143_spill] sm:$0xff] }
 0x753   :  { %v3841_v35 = vsel %vm10949_vm4, %v3217_v13, %v3781_v11  ;;  %v2986_v30 = vsel %vm10963_vm3, %v2962_v36, %v10962_v49  ;;  %v3079_v15 = vsel %vm10964_vm11, %v3055_v63, %v10952_v28  ;;  %vm10968_vm0 = vcmask 15360   ;;  %v10990_v13 = vld [vmem:[#allocation215_spill] sm:$0xff] }
 0x754   :  { %3867 = vst.msk [vmem:[%s9560_s3 + $0x58] sm:$0x7f] %vm3857_vm1, %v3841_v35  ;;  %v3103_v27 = vsel %vm1094_vm6, %v3079_v15, %v10965_v42  ;;  %v2917_v0 = vsel %vm10968_vm0, %v2893_v48, %v10967_v41  ;;  %vm10969_vm4 = vcmask 48128   ;;  %vm10970_vm2 = vcmask 130048   ;;  %v10994_v35 = vld [vmem:[#allocation104_spill] sm:$0xff]  ;;  %v11007_v15 = vld [vmem:[#allocation242_spill] sm:$0xff] }
 0x755   :  { %v3127_v62 = vsel %vm1119_vm14, %v3103_v27, %v10966_v25  ;;  %v3010_v6 = vsel %vm10969_vm4, %v2986_v30, %v10962_v49  ;;  %vm10972_vm12 = vcmask 56320   ;;  %vm10974_vm7 = vcmask 64512   ;;  %vm10984_vm0 = vmmov %vm10969_vm4  ;;  %v11003_v48 = vld [vmem:[#allocation180_spill] sm:$0xff]  ;;  %v11005_v30 = vld [vmem:[#allocation218_spill] sm:$0xff] }
 0x756   :  { %v3034_v45 = vsel %vm10972_vm12, %v3010_v6, %v10971_v23  ;;  %v3151_v29 = vsel %vm1144_vm15, %v3127_v62, %v10966_v25  ;;  %vm10975_vm13 = vcmask 23552   ;;  %vm10977_vm10 = vcmask 105472   ;;  %vm10985_vm4 = vmmov %vm10970_vm2  ;;  %v11010_v25 = vld [vmem:[#allocation187_spill] sm:$0xff]  ;;  %v11016_v23 = vld [vmem:[#allocation112_spill] sm:$0xff] }
 0x757   :  { %v3058_v22 = vsel %vm10974_vm7, %v3034_v45, %v10973_v8  ;;  %v2941_v19 = vsel %vm10975_vm13, %v2917_v0, %v10967_v41  ;;  %v3175_v51 = vsel %vm10977_vm10, %v3151_v29, %v10976_v38  ;;  %vm10979_vm5 = vcmask 31744   ;;  %vm10993_vm13 = vmmov %vm10964_vm11  ;;  %v11014_v41 = vld [vmem:[#allocation91_spill] sm:$0xff]  ;;  %v11022_v38 = vld [vmem:[#allocation154_spill] sm:$0xff] }
 0x758   :  { %v2965_v7 = vsel %vm10979_vm5, %v2941_v19, %v10978_v58  ;;  %v3199_v50 = vsel %vm1194_vm8, %v3175_v51, %v10980_v47  ;;  %v3082_v20 = vsel %vm10964_vm11, %v3058_v22, %v10973_v8  ;;  %vm10998_vm5 = vcmask 7168   ;;  %v11019_v22 = vld [vmem:[#allocation159_spill] sm:$0xff]  ;;  %v11021_v19 = vld [vmem:[#allocation138_spill] sm:$0xff]  ;;  %v11024_v58 = vld [vmem:[#allocation165_spill] sm:$0xff] }
 0x759   :  { %v2989_v16 = vsel %vm10963_vm3, %v2965_v7, %v10981_v10  ;;  %v3106_v43 = vsel %vm1094_vm6, %v3082_v20, %v10982_v14  ;;  %v3223_v31 = vsel %vm1219_vm9, %v3199_v50, %v10980_v47  ;;  %v2871_v4 = vsel %vm10998_vm5, %v6181_v54, %v10997_v37  ;;  %vm11000_vm3 = vmmov %vm10998_vm5  ;;  %v11027_v50 = vld [vmem:[#allocation144_spill] sm:$0xff]  ;;  %v11032_v14 = vld [vmem:[#allocation93_spill] sm:$0xff] }
 0x75a   :  { %v3787_v18 = vpop.permute.xlu2 %3786  ;;  %v3130_v57 = vsel %vm1119_vm14, %v3106_v43, %v10983_v32  ;;  %v3013_v53 = vsel %vm10984_vm0, %v2989_v16, %v10981_v10  ;;  %v2870_v36 = vsel %vm11000_vm3, %v6186_v17, %v10999_v44  ;;  %vm11002_vm11 = vcmask 15360   ;;  %v11030_v16 = vld [vmem:[#allocation121_spill] sm:$0xff]  ;;  %v11055_v37 = vld [vmem:[#allocation192_spill] sm:$0xff]  ;;  %v11056_v44 = vld [vmem:[#allocation30_spill] sm:$0xff] }
 0x75b   :  { %v3844_v34 = vsel %vm10970_vm2, %v3220_v9, %v3787_v18  ;;  %vm10987_vm2 = vmmov %vm10972_vm12  ;;  %v3154_v59 = vsel %vm1144_vm15, %v3130_v57, %v10983_v32  ;;  %v2895_v40 = vsel %vm11002_vm11, %v2871_v4, %v11001_v52  ;;  %v11012_v9 = vld [vmem:[#allocation171_spill] sm:$0xff]  ;;  %vm11018_vm3 = vcmask 130048   ;;  %v11034_v32 = vld [vmem:[#allocation16_spill] sm:$0xff] }
 0x75c   :  { %3870 = vst.msk [vmem:[%s9560_s3 + $0x70] sm:$0x7f] %vm3857_vm1, %v3844_v34  ;;  %v3037_v1 = vsel %vm10987_vm2, %v3013_v53, %v10986_v33  ;;  %vm10989_vm12 = vmmov %vm10974_vm7  ;;  %vm11008_vm2 = vcmask 23552   ;;  %v11040_v33 = vld [vmem:[#allocation172_spill] sm:$0xff] }
 0x75d   :  { %v3061_v5 = vsel %vm10989_vm12, %v3037_v1, %v10988_v61  ;;  %vm10991_vm7 = vmmov %vm10977_vm10  ;;  %v2919_v27 = vsel %vm11008_vm2, %v2895_v40, %v11001_v52  ;;  %v11059_v40 = vld [vmem:[#allocation181_spill] sm:$0xff] }
 0x75e   :  { %v3178_v11 = vsel %vm10991_vm7, %v3154_v59, %v10990_v13  ;;  %v3085_v24 = vsel %vm10993_vm13, %v3061_v5, %v10988_v61  ;;  %vm10996_vm10 = vmmov %vm10985_vm4  ;;  %v11042_v61 = vld [vmem:[#allocation151_spill] sm:$0xff]  ;;  %v11044_v59 = vld [vmem:[#allocation70_spill] sm:$0xff] }
 0x75f   :  { %v3202_v56 = vsel %vm1194_vm8, %v3178_v11, %v10992_v21  ;;  %v3109_v60 = vsel %vm1094_vm6, %v3085_v24, %v10994_v35  ;;  %vm11004_vm0 = vmmov %vm11002_vm11  ;;  %vm11020_vm11 = vcmask 7168   ;;  %v11050_v35 = vld [vmem:[#allocation81_spill] sm:$0xff] }
 0x760   :  { %v3133_v28 = vsel %vm1119_vm14, %v3109_v60, %v10995_v39  ;;  %v3226_v63 = vsel %vm1219_vm9, %v3202_v56, %v10992_v21  ;;  %v2894_v49 = vsel %vm11004_vm0, %v2870_v36, %v11003_v48  ;;  %vm11009_vm12 = vmmov %vm11008_vm2  ;;  %v2874_v29 = vsel %vm11020_vm11, %v6265_v12, %v11019_v22  ;;  %v11047_v21 = vld [vmem:[#allocation52_spill] sm:$0xff]  ;;  %v11057_v36 = vld [vmem:[#allocation21_spill] sm:$0xff] }
 0x761   :  { %v3157_v3 = vsel %vm1144_vm15, %v3133_v28, %v10995_v39  ;;  %v2918_v17 = vsel %vm11009_vm12, %v2894_v49, %v11003_v48  ;;  %vm11023_vm0 = vmmov %vm11020_vm11  ;;  %vm11026_vm2 = vcmask 48128   ;;  %v11051_v39 = vld [vmem:[#allocation177_spill] sm:$0xff] }
 0x762   :  { %v3793_v2 = vpop.permute.xlu2 %3792  ;;  %v2873_v51 = vsel %vm11023_vm0, %v11022_v38, %v11021_v19  ;;  %vm11041_vm0 = vcmask 31744   ;;  %v11052_v28 = vld [vmem:[#allocation133_spill] sm:$0xff] }
 0x763   :  { %v3847_v46 = vsel %vm10985_vm4, %v3223_v31, %v3793_v2  ;;  %vm11006_vm4 = vmmov %vm10991_vm7  ;;  %vm11011_vm7 = vcmask 31744   ;;  %v11037_v2 = vld [vmem:[#allocation12_spill] sm:$0xff]  ;;  %v11062_v49 = vld [vmem:[#allocation193_spill] sm:$0xff] }
 0x764   :  { %3873 = vst.msk [vmem:[%s9560_s3 + $0x88] sm:$0x7f] %vm3857_vm1, %v3847_v46  ;;  %v3181_v54 = vsel %vm11006_vm4, %v3157_v3, %v11005_v30  ;;  %v2943_v62 = vsel %vm11011_vm7, %v2919_v27, %v11010_v25  ;;  %vm11013_vm13 = vmmov %vm11011_vm7  ;;  %vm11025_vm4 = vcmask 15360   ;;  %v11066_v27 = vld [vmem:[#allocation182_spill] sm:$0xff] }
 0x765   :  { %v3205_v42 = vsel %vm1194_vm8, %v3181_v54, %v11007_v15  ;;  %v2942_v18 = vsel %vm11013_vm13, %v2918_v17, %v11012_v9  ;;  %v2898_v7 = vsel %vm11025_vm4, %v2874_v29, %v11024_v58  ;;  %vm11028_vm12 = vmmov %vm11025_vm4  ;;  %vm11031_vm13 = vcmask 56320   ;;  %v11063_v54 = vld [vmem:[#allocation178_spill] sm:$0xff]  ;;  %v11079_v29 = vld [vmem:[#allocation17_spill] sm:$0xff] }
 0x766   :  { %v3229_v6 = vsel %vm1219_vm9, %v3205_v42, %v11007_v15  ;;  %v2897_v10 = vsel %vm11028_vm12, %v2873_v51, %v11027_v50  ;;  %vm11029_vm7 = vmmov %vm11026_vm2  ;;  %vm11046_vm12 = vcmask 72704   ;;  %v11064_v15 = vld [vmem:[#allocation155_spill] sm:$0xff]  ;;  %v11081_v51 = vld [vmem:[#allocation216_spill] sm:$0xff] }
 0x767   :  { %vm11043_vm4 = vmmov %vm11041_vm0 }
 0x76a   :  { %v3799_v55 = vpop.permute.xlu2 %3798 }
 0x76b   :  { %v3850_v26 = vsel %vm10996_vm10, %v3226_v63, %v3799_v55  ;;  %vm11015_vm10 = vcmask 39936   ;;  %v11054_v55 = vld [vmem:[#allocation39_spill] sm:$0xff] }
 0x76c   :  { %3876 = vst.msk [vmem:[%s9560_s3 + $0xa0] sm:$0x7f] %vm3857_vm1, %v3850_v26  ;;  %v2967_v0 = vsel %vm11015_vm10, %v2943_v62, %v11014_v41  ;;  %vm11017_vm5 = vmmov %vm11015_vm10  ;;  %vm11035_vm10 = vcmask 64512   ;;  %v11069_v62 = vld [vmem:[#allocation113_spill] sm:$0xff] }
 0x76d   :  { %v2966_v45 = vsel %vm11017_vm5, %v2942_v18, %v11016_v23  ;;  %v2991_v47 = vsel %vm11026_vm2, %v2967_v0, %v11014_v41  ;;  %vm11036_vm5 = vcmask 23552   ;;  %vm11045_vm2 = vcmask 39936   ;;  %v11071_v18 = vld [vmem:[#allocation160_spill] sm:$0xff]  ;;  %v11072_v41 = vld [vmem:[#allocation134_spill] sm:$0xff] }
 0x76e   :  { %v2990_v12 = vsel %vm11029_vm7, %v2966_v45, %v11016_v23  ;;  %v3015_v20 = vsel %vm11031_vm13, %v2991_v47, %v11030_v16  ;;  %v2922_v31 = vsel %vm11036_vm5, %v2898_v7, %v11024_v58  ;;  %vm11039_vm11 = vmmov %vm11036_vm5  ;;  %vm11060_vm5 = vcmask 15360   ;;  %v11076_v23 = vld [vmem:[#allocation98_spill] sm:$0xff]  ;;  %v11088_v16 = vld [vmem:[#allocation240_spill] sm:$0xff] }
 0x76f   :  { %v3039_v57 = vsel %vm11035_vm10, %v3015_v20, %v11034_v32  ;;  %v2921_v46 = vsel %vm11039_vm11, %v2897_v10, %v11027_v50  ;;  %v2946_v1 = vsel %vm11041_vm0, %v2922_v31, %v11040_v33  ;;  %vm11048_vm7 = vmmov %vm11045_vm2  ;;  %v11084_v47 = vld [vmem:[#allocation46_spill] sm:$0xff]  ;;  %v11086_v10 = vld [vmem:[#allocation217_spill] sm:$0xff] }
 0x770   :  { %v2945_v5 = vsel %vm11043_vm4, %v2921_v46, %v11042_v61  ;;  %v2970_v13 = vsel %vm11045_vm2, %v2946_v1, %v11044_v59  ;;  %v3063_v11 = vsel %vm11046_vm12, %v3039_v57, %v11034_v32  ;;  %vm11067_vm0 = vmmov %vm11060_vm5  ;;  %vm11070_vm2 = vcmask 56320   ;;  %v11091_v32 = vld [vmem:[#allocation94_spill] sm:$0xff]  ;;  %v11095_v46 = vld [vmem:[#allocation115_spill] sm:$0xff] }
 0x771   :  { %v2969_v56 = vsel %vm11048_vm7, %v2945_v5, %v11047_v21  ;;  %v3087_v60 = vsel %vm1094_vm6, %v3063_v11, %v11050_v35  ;;  %vm11075_vm7 = vmmov %vm11070_vm2  ;;  %v11098_v61 = vld [vmem:[#allocation105_spill] sm:$0xff]  ;;  %v11101_v11 = vld [vmem:[#allocation62_spill] sm:$0xff] }
 0x772   :  { %v3805_v34 = vpop.permute.xlu2 %3804  ;;  %v3111_v4 = vsel %vm1119_vm14, %v3087_v60, %v11055_v37 }
 0x773   :  { %v3853_v8 = vsel %vm11018_vm3, %v3229_v6, %v3805_v34  ;;  %vm11038_vm3 = vmmov %vm11035_vm10  ;;  %v11074_v6 = vld [vmem:[#allocation114_spill] sm:$0xff] }
 0x774   :  { %3879 = vst.msk [vmem:[%s9560_s3 + $0xb8] sm:$0x7f] %vm3857_vm1, %v3853_v8  ;;  %vm11033_vm1 = vmmov %vm11031_vm13  ;;  %v3135_v8 = vsel %vm1144_vm15, %v3111_v4, %v11055_v37  ;;  %v11106_v4 = vld [vmem:[#allocation145_spill] sm:$0xff] }
 0x775   :  { %v3014_v43 = vsel %vm11033_vm1, %v2990_v12, %v11032_v14  ;;  %vm11049_vm13 = vmmov %vm11046_vm12  ;;  %vm11053_vm1 = vcmask 7168   ;;  %v11089_v14 = vld [vmem:[#allocation58_spill] sm:$0xff] }
 0x776   :  { %v3038_v53 = vsel %vm11038_vm3, %v3014_v43, %v11037_v2  ;;  %v2877_v63 = vsel %vm11053_vm1, %v11052_v28, %v11051_v39  ;;  %vm11058_vm10 = vmmov %vm11053_vm1  ;;  %vm11061_vm3 = vcmask 48128   ;;  %v11104_v28 = vld [vmem:[#allocation196_spill] sm:$0xff] }
 0x777   :  { %v3062_v24 = vsel %vm11049_vm13, %v3038_v53, %v11037_v2  ;;  %v2876_v52 = vsel %vm11058_vm10, %v11057_v36, %v11056_v44  ;;  %v2901_v3 = vsel %vm11060_vm5, %v2877_v63, %v11059_v40  ;;  %v2994_v48 = vsel %vm11061_vm3, %v2970_v13, %v11044_v59  ;;  %vm11065_vm11 = vmmov %vm11053_vm1  ;;  %v11094_v2 = vld [vmem:[#allocation241_spill] sm:$0xff]  ;;  %v11099_v59 = vld [vmem:[#allocation166_spill] sm:$0xff] }
 0x778   :  { %v3086_v26 = vsel %vm1094_vm6, %v3062_v24, %v11054_v55  ;;  %v2880_v42 = vsel %vm11065_vm11, %v11064_v15, %v11063_v54  ;;  %v2900_v17 = vsel %vm11067_vm0, %v2876_v52, %v11066_v27  ;;  %vm11068_vm4 = vmmov %vm11061_vm3  ;;  %v3018_v9 = vsel %vm11070_vm2, %v2994_v48, %v11069_v62  ;;  %v11109_v52 = vld [vmem:[#allocation29_spill] sm:$0xff]  ;;  %v11112_v48 = vld [vmem:[#allocation40_spill] sm:$0xff] }
 0x779   :  { %v3110_v30 = vsel %vm1119_vm14, %v3086_v26, %v11062_v49  ;;  %v2993_v25 = vsel %vm11068_vm4, %v2969_v56, %v11047_v21  ;;  %vm11073_vm12 = vmmov %vm11053_vm1  ;;  %vm11077_vm13 = vcmask 64512   ;;  %vm11078_vm1 = vcmask 23552   ;;  %v11102_v56 = vld [vmem:[#allocation195_spill] sm:$0xff]  ;;  %v11115_v54 = vld [vmem:[#allocation20_spill] sm:$0xff] }
 0x77a   :  { %v2879_v0 = vsel %vm11073_vm12, %v11072_v41, %v11071_v18  ;;  %v3017_v34 = vsel %vm11075_vm7, %v2993_v25, %v11074_v6  ;;  %v3042_v45 = vsel %vm11077_vm13, %v3018_v9, %v11076_v23  ;;  %v2925_v22 = vsel %vm11078_vm1, %v2901_v3, %v11059_v40  ;;  %vm11080_vm10 = vmmov %vm11077_vm13  ;;  %v11120_v62 = vld [vmem:[#allocation99_spill] sm:$0xff] }
 0x77b   :  { %v3041_v19 = vsel %vm11080_vm10, %v3017_v34, %v11079_v29  ;;  %v3134_v38 = vsel %vm1144_vm15, %v3110_v30, %v11062_v49  ;;  %vm11082_vm5 = vcmask 105472   ;;  %vm11083_vm3 = vmmov %vm11078_vm1  ;;  %vm11085_vm11 = vcmask 31744   ;;  %v11113_v49 = vld [vmem:[#allocation173_spill] sm:$0xff]  ;;  %v11122_v41 = vld [vmem:[#allocation219_spill] sm:$0xff] }
 0x77c   :  { %v3159_v58 = vsel %vm11082_vm5, %v3135_v8, %v11081_v51  ;;  %v2924_v7 = vsel %vm11083_vm3, %v2900_v17, %v11066_v27  ;;  %v2949_v50 = vsel %vm11085_vm11, %v2925_v22, %v11084_v47  ;;  %vm11087_vm0 = vmmov %vm11082_vm5  ;;  %vm11092_vm2 = vcmask 39936   ;;  %v11125_v34 = vld [vmem:[#allocation152_spill] sm:$0xff]  ;;  %v11129_v22 = vld [vmem:[#allocation243_spill] sm:$0xff] }
 0x77d   :  { %v3158_v12 = vsel %vm11087_vm0, %v3134_v38, %v11086_v10  ;;  %v3183_v20 = vsel %vm1194_vm8, %v3159_v58, %v11088_v16  ;;  %vm11090_vm4 = vmmov %vm11085_vm11  ;;  %v2973_v57 = vsel %vm11092_vm2, %v2949_v50, %v11091_v32  ;;  %vm11093_vm12 = vcmask 72704   ;;  %v11132_v51 = vld [vmem:[#allocation50_spill] sm:$0xff]  ;;  %v11135_v47 = vld [vmem:[#allocation244_spill] sm:$0xff] }
 0x77e   :  { %v2948_v43 = vsel %vm11090_vm4, %v2924_v7, %v11089_v14  ;;  %v3066_v31 = vsel %vm11093_vm12, %v3042_v45, %v11076_v23  ;;  %v3182_v53 = vsel %vm1194_vm8, %v3158_v12, %v11094_v2  ;;  %vm11096_vm7 = vmmov %vm11092_vm2  ;;  %vm3854_vm1 = vcmask 187392   ;;  %v11127_v45 = vld [vmem:[#allocation220_spill] sm:$0xff]  ;;  %v11136_v10 = vld [vmem:[#allocation161_spill] sm:$0xff] }
 0x77f   :  { %v2972_v33 = vsel %vm11096_vm7, %v2948_v43, %v11095_v46  ;;  %vm11097_vm13 = vmmov %vm11093_vm12  ;;  %v3090_v5 = vsel %vm1094_vm6, %v3066_v31, %v11098_v61  ;;  %vm11100_vm10 = vcmask 15360   ;;  %v3207_v35 = vsel %vm1219_vm9, %v3183_v20, %v11088_v16  ;;  %v11137_v12 = vld [vmem:[#allocation22_spill] sm:$0xff]  ;;  %v11139_v20 = vld [vmem:[#allocation65_spill] sm:$0xff] }
 0x780   :  { %v3065_v1 = vsel %vm11097_vm13, %v3041_v19, %v11079_v29  ;;  %v2904_v13 = vsel %vm11100_vm10, %v2880_v42, %v11099_v59  ;;  %v3114_v24 = vsel %vm1119_vm14, %v3090_v5, %v11102_v56  ;;  %vm11103_vm5 = vcmask 48128   ;;  %vm11107_vm11 = vmmov %vm11100_vm10  ;;  %v11117_v42 = vld [vmem:[#allocation57_spill] sm:$0xff]  ;;  %v11130_v19 = vld [vmem:[#allocation175_spill] sm:$0xff] }
 0x781   :  { %v3089_v21 = vsel %vm1094_vm6, %v3065_v1, %v11101_v11  ;;  %v2997_v39 = vsel %vm11103_vm5, %v2973_v57, %v11091_v32  ;;  %v3206_v55 = vsel %vm1219_vm9, %v3182_v53, %v11094_v2  ;;  %vm11105_vm3 = vcmask 130048   ;;  %vm11108_vm0 = vmmov %vm11103_vm5  ;;  %v11142_v32 = vld [vmem:[#allocation63_spill] sm:$0xff]  ;;  %v11143_v31 = vld [vmem:[#allocation146_spill] sm:$0xff] }
 0x782   :  { %v3113_v63 = vsel %vm1119_vm14, %v3089_v21, %v11104_v28  ;;  %v2903_v44 = vsel %vm11107_vm11, %v2879_v0, %v11106_v4  ;;  %v2996_v36 = vsel %vm11108_vm0, %v2972_v33, %v11095_v46  ;;  %vm11110_vm4 = vcmask 56320   ;;  %vm11111_vm2 = vmmov %vm11105_vm3  ;;  %v11145_v53 = vld [vmem:[#allocation126_spill] sm:$0xff] }
 0x783   :  { %v3021_v40 = vsel %vm11110_vm4, %v2997_v39, %v11109_v52  ;;  %vm11114_vm12 = vcmask 7168   ;;  %vm11116_vm7 = vmmov %vm11110_vm4  ;;  %vm11118_vm13 = vcmask 64512   ;;  %v3138_v17 = vsel %vm1144_vm15, %v3114_v24, %v11102_v56  ;;  %v11146_v33 = vld [vmem:[#allocation198_spill] sm:$0xff]  ;;  %v11160_v52 = vld [vmem:[#allocation120_spill] sm:$0xff] }
 0x784   :  { %v2883_v30 = vsel %vm11114_vm12, %v11113_v49, %v11112_v48  ;;  %v3020_v15 = vsel %vm11116_vm7, %v2996_v36, %v11115_v54  ;;  %v3045_v27 = vsel %vm11118_vm13, %v3021_v40, %v11117_v42  ;;  %vm11119_vm10 = vcmask 23552   ;;  %vm11121_vm5 = vmmov %vm11118_vm13  ;;  %v11163_v49 = vld [vmem:[#allocation77_spill] sm:$0xff] }
 0x785   :  { %v2928_v25 = vsel %vm11119_vm10, %v2904_v13, %v11099_v59  ;;  %v3044_v9 = vsel %vm11121_vm5, %v3020_v15, %v11120_v62  ;;  %v3137_v18 = vsel %vm1144_vm15, %v3113_v63, %v11104_v28  ;;  %vm11124_vm11 = vmmov %vm11119_vm10  ;;  %vm11126_vm0 = vcmask 31744   ;;  %v11148_v13 = vld [vmem:[#allocation199_spill] sm:$0xff]  ;;  %v11153_v28 = vld [vmem:[#allocation32_spill] sm:$0xff] }
 0x786   :  { %v2927_v6 = vsel %vm11124_vm11, %v2903_v44, %v11106_v4  ;;  %v2952_v23 = vsel %vm11126_vm0, %v2928_v25, %v11125_v34  ;;  %vm11133_vm12 = vcmask 39936   ;;  %vm11134_vm7 = vcmask 72704   ;;  %v11158_v44 = vld [vmem:[#allocation188_spill] sm:$0xff]  ;;  %v11165_v15 = vld [vmem:[#allocation222_spill] sm:$0xff]  ;;  %v11175_v34 = vld [vmem:[#allocation97_spill] sm:$0xff] }
 0x787   :  { %v3761_v60 = vpop.permute.xlu1 %3760  ;;  %v2976_v58 = vsel %vm11133_vm12, %v2952_v23, %v11132_v51  ;;  %v3069_v7 = vsel %vm11134_vm7, %v3045_v27, %v11117_v42  ;;  %vm11138_vm13 = vcmask 7168   ;;  %vm11140_vm10 = vmmov %vm11133_vm12  ;;  %vm11147_vm11 = vcmask 48128  }
 0x788   :  { %v3831_v26 = vsel %vm11105_vm3, %v3207_v35, %v3761_v60  ;;  %v3759_v37 = vpop.permute.xlu0 %3758  ;;  %vm11123_vm3 = vcmask 105472   ;;  %v2882_v16 = vsel %vm11138_vm13, %v11137_v12, %v11136_v10  ;;  %vm11141_vm5 = vmmov %vm11134_vm7  ;;  %v3093_v57 = vsel %vm1094_vm6, %v3069_v7, %v11142_v32  ;;  %v11150_v35 = vld [vmem:[#allocation168_spill] sm:$0xff]  ;;  %v11186_v10 = vld [vmem:[#allocation183_spill] sm:$0xff] }
 0x789   :  { %3856 = vst.msk [vmem:[%s9560_s3 + $0x8] sm:$0xff] %vm3854_vm1, %v3831_v26  ;;  %v3830_v3 = vsel %vm11111_vm2, %v3206_v55, %v3759_v37  ;;  %v3162_v0 = vsel %vm11123_vm3, %v3138_v17, %v11122_v41  ;;  %vm11128_vm4 = vmmov %vm11123_vm3  ;;  %v3068_v43 = vsel %vm11141_vm5, %v3044_v9, %v11120_v62  ;;  %vm11144_vm3 = vcmask 15360   ;;  %v11156_v26 = vld [vmem:[#allocation162_spill] sm:$0xff]  ;;  %v11157_v37 = vld [vmem:[#allocation156_spill] sm:$0xff] }
 0x78a   :  { %3855 = vst.msk [vmem:[%s9560_s3] sm:$0xff] %vm3854_vm1, %v3830_v3  ;;  %v3161_v8 = vsel %vm11128_vm4, %v3137_v18, %v11127_v45  ;;  %v3186_v29 = vsel %vm1194_vm8, %v3162_v0, %v11129_v22  ;;  %vm11131_vm2 = vmmov %vm11126_vm0  ;;  %v2907_v2 = vsel %vm11144_vm3, %v2883_v30, %v11143_v31  ;;  %v3092_v46 = vsel %vm1094_vm6, %v3068_v43, %v11145_v53  ;;  %v11168_v17 = vld [vmem:[#allocation79_spill] sm:$0xff]  ;;  %v11172_v18 = vld [vmem:[#allocation245_spill] sm:$0xff] }
 0x78b   :  { %v2951_v38 = vsel %vm11131_vm2, %v2927_v6, %v11130_v19  ;;  %v3185_v50 = vsel %vm1194_vm8, %v3161_v8, %v11135_v47  ;;  %v3117_v1 = vsel %vm1119_vm14, %v3093_v57, %v11146_v33  ;;  %v3210_v61 = vsel %vm1219_vm9, %v3186_v29, %v11129_v22  ;;  %vm11151_vm4 = vmmov %vm11144_vm3  ;;  %v11170_v62 = vld [vmem:[#allocation223_spill] sm:$0xff]  ;;  %v11173_v0 = vld [vmem:[#allocation82_spill] sm:$0xff] }
 0x78c   :  { %v2975_v14 = vsel %vm11140_vm10, %v2951_v38, %v11139_v20  ;;  %v3000_v59 = vsel %vm11147_vm11, %v2976_v58, %v11132_v51  ;;  %v3116_v11 = vsel %vm1119_vm14, %v3092_v46, %v11148_v13  ;;  %v3209_v21 = vsel %vm1219_vm9, %v3185_v50, %v11135_v47  ;;  %vm11152_vm2 = vmmov %vm11147_vm11  ;;  %v11178_v8 = vld [vmem:[#allocation246_spill] sm:$0xff]  ;;  %v11179_v29 = vld [vmem:[#allocation141_spill] sm:$0xff] }
 0x78d   :  { %vm11149_vm0 = vcmask 130048   ;;  %v2906_v60 = vsel %vm11151_vm4, %v2882_v16, %v11150_v35  ;;  %v2999_v39 = vsel %vm11152_vm2, %v2975_v14, %v11139_v20  ;;  %vm11154_vm12 = vcmask 56320   ;;  %v11180_v19 = vld [vmem:[#allocation135_spill] sm:$0xff]  ;;  %v11182_v51 = vld [vmem:[#allocation89_spill] sm:$0xff]  ;;  %v11185_v47 = vld [vmem:[#allocation84_spill] sm:$0xff] }
 0x78e   :  { %v3024_v63 = vsel %vm11154_vm12, %v3000_v59, %v11153_v28  ;;  %vm11155_vm7 = vmmov %vm11149_vm0  ;;  %v2886_v4 = vsel %vm11138_vm13, %v11157_v37, %v11156_v26  ;;  %vm11161_vm5 = vcmask 64512   ;;  %v3141_v3 = vsel %vm1144_vm15, %v3117_v1, %v11146_v33  ;;  %v11188_v16 = vld [vmem:[#allocation107_spill] sm:$0xff]  ;;  %v11189_v14 = vld [vmem:[#allocation201_spill] sm:$0xff] }
 0x78f   :  { %v3767_v5 = vpop.permute.xlu1 %3766  ;;  %vm11159_vm10 = vmmov %vm11154_vm12  ;;  %v3048_v40 = vsel %vm11161_vm5, %v3024_v63, %v11160_v52  ;;  %vm11162_vm3 = vcmask 23552   ;;  %v3140_v54 = vsel %vm1144_vm15, %v3116_v11, %v11148_v13  ;;  %vm11169_vm2 = vcmask 31744   ;;  %v11196_v13 = vld [vmem:[#allocation95_spill] sm:$0xff]  ;;  %v11203_v28 = vld [vmem:[#allocation78_spill] sm:$0xff] }
 0x790   :  { %v3834_v56 = vsel %vm11149_vm0, %v3210_v61, %v3767_v5  ;;  %v3765_v24 = vpop.permute.xlu0 %3764  ;;  %v3023_v36 = vsel %vm11159_vm10, %v2999_v39, %v11158_v44  ;;  %v2931_v48 = vsel %vm11162_vm3, %v2907_v2, %v11143_v31  ;;  %vm11164_vm11 = vmmov %vm11161_vm5  ;;  %vm11166_vm0 = vcmask 105472   ;;  %v11191_v2 = vld [vmem:[#allocation202_spill] sm:$0xff]  ;;  %v11193_v61 = vld [vmem:[#allocation184_spill] sm:$0xff] }
 0x791   :  { %3860 = vst.msk [vmem:[%s9560_s3 + $0x20] sm:$0xff] %vm3854_vm1, %v3834_v56  ;;  %v3833_v55 = vsel %vm11155_vm7, %v3209_v21, %v3765_v24  ;;  %v3047_v30 = vsel %vm11164_vm11, %v3023_v36, %v11163_v49  ;;  %v3165_v42 = vsel %vm11166_vm0, %v3141_v3, %v11165_v15  ;;  %vm11167_vm4 = vmmov %vm11162_vm3  ;;  %v2955_v25 = vsel %vm11169_vm2, %v2931_v48, %v11168_v17  ;;  %v11199_v56 = vld [vmem:[#allocation179_spill] sm:$0xff]  ;;  %v11206_v37 = vld [vmem:[#allocation36_spill] sm:$0xff] }
 0x792   :  { %3859 = vst.msk [vmem:[%s9560_s3 + $0x18] sm:$0xff] %vm3854_vm1, %v3833_v55  ;;  %v2930_v27 = vsel %vm11167_vm4, %v2906_v60, %v11150_v35  ;;  %vm11171_vm12 = vmmov %vm11166_vm0  ;;  %v3189_v41 = vsel %vm1194_vm8, %v3165_v42, %v11172_v18  ;;  %vm11176_vm13 = vcmask 39936   ;;  %vm11177_vm10 = vcmask 72704   ;;  %v11200_v24 = vld [vmem:[#allocation23_spill] sm:$0xff]  ;;  %v11201_v60 = vld [vmem:[#allocation124_spill] sm:$0xff] }
 0x793   :  { %v3164_v9 = vsel %vm11171_vm12, %v3140_v54, %v11170_v62  ;;  %vm11174_vm7 = vmmov %vm11169_vm2  ;;  %v2979_v23 = vsel %vm11176_vm13, %v2955_v25, %v11175_v34  ;;  %v3072_v45 = vsel %vm11177_vm10, %v3048_v40, %v11160_v52  ;;  %vm11181_vm5 = vcmask 7168   ;;  %v11208_v36 = vld [vmem:[#allocation225_spill] sm:$0xff]  ;;  %v11211_v3 = vld [vmem:[#allocation103_spill] sm:$0xff] }
 0x794   :  { %v2954_v6 = vsel %vm11174_vm7, %v2930_v27, %v11173_v0  ;;  %v3188_v22 = vsel %vm1194_vm8, %v3164_v9, %v11178_v8  ;;  %v2885_v38 = vsel %vm11181_vm5, %v11180_v19, %v11179_v29  ;;  %vm11183_vm3 = vmmov %vm11176_vm13  ;;  %v3096_v50 = vsel %vm1094_vm6, %v3072_v45, %v11185_v47  ;;  %v11215_v54 = vld [vmem:[#allocation247_spill] sm:$0xff]  ;;  %v11216_v42 = vld [vmem:[#allocation85_spill] sm:$0xff] }
 0x795   :  { %v2978_v58 = vsel %vm11183_vm3, %v2954_v6, %v11182_v51  ;;  %vm11184_vm11 = vmmov %vm11177_vm10  ;;  %vm11187_vm0 = vcmask 15360   ;;  %v3120_v43 = vsel %vm1119_vm14, %v3096_v50, %v11189_v14  ;;  %v3213_v32 = vsel %vm1219_vm9, %v3189_v41, %v11172_v18  ;;  %v11218_v17 = vld [vmem:[#allocation90_spill] sm:$0xff]  ;;  %v11221_v9 = vld [vmem:[#allocation248_spill] sm:$0xff] }
 0x796   :  { %v3071_v7 = vsel %vm11184_vm11, %v3047_v30, %v11163_v49  ;;  %v2910_v12 = vsel %vm11187_vm0, %v2886_v4, %v11186_v10  ;;  %vm11190_vm4 = vcmask 48128   ;;  %v3212_v46 = vsel %vm1219_vm9, %v3188_v22, %v11178_v8  ;;  %vm11194_vm12 = vmmov %vm11187_vm0  ;;  %v11213_v49 = vld [vmem:[#allocation226_spill] sm:$0xff]  ;;  %v11222_v41 = vld [vmem:[#allocation163_spill] sm:$0xff] }
 0x797   :  { %v3095_v20 = vsel %vm1094_vm6, %v3071_v7, %v11188_v16  ;;  %v3773_v57 = vpop.permute.xlu1 %3772  ;;  %v3003_v31 = vsel %vm11190_vm4, %v2979_v23, %v11175_v34  ;;  %vm11192_vm2 = vcmask 130048   ;;  %v2909_v5 = vsel %vm11194_vm12, %v2885_v38, %v11193_v61  ;;  %vm11195_vm7 = vmmov %vm11190_vm4  ;;  %v11223_v0 = vld [vmem:[#allocation24_spill] sm:$0xff]  ;;  %v11228_v8 = vld [vmem:[#allocation127_spill] sm:$0xff] }
 0x798   :  { %v3119_v53 = vsel %vm1119_vm14, %v3095_v20, %v11191_v2  ;;  %v3837_v33 = vsel %vm11192_vm2, %v3213_v32, %v3773_v57  ;;  %v3771_v1 = vpop.permute.xlu0 %3770  ;;  %v3002_v59 = vsel %vm11195_vm7, %v2978_v58, %v11182_v51  ;;  %vm11197_vm13 = vcmask 56320   ;;  %vm11198_vm10 = vmmov %vm11192_vm2  ;;  %v11225_v34 = vld [vmem:[#allocation76_spill] sm:$0xff]  ;;  %v11229_v29 = vld [vmem:[#allocation169_spill] sm:$0xff] }
 0x799   :  { %v3027_v11 = vsel %vm11197_vm13, %v3003_v31, %v11196_v13  ;;  %3863 = vst.msk [vmem:[%s9560_s3 + $0x38] sm:$0xff] %vm3854_vm1, %v3837_v33  ;;  %v3836_v21 = vsel %vm11198_vm10, %v3212_v46, %v3771_v1  ;;  %v2889_v35 = vsel %vm11181_vm5, %v11200_v24, %v11199_v56  ;;  %vm11202_vm3 = vmmov %vm11197_vm13  ;;  %vm11204_vm11 = vcmask 64512   ;;  %v11231_v38 = vld [vmem:[#allocation128_spill] sm:$0xff]  ;;  %v11242_v33 = vld [vmem:[#allocation42_spill] sm:$0xff] }
 0x79a   :  { %v3026_v39 = vsel %vm11202_vm3, %v3002_v59, %v11201_v60  ;;  %v3051_v63 = vsel %vm11204_vm11, %v3027_v11, %v11203_v28  ;;  %v3144_v55 = vsel %vm1144_vm15, %v3120_v43, %v11189_v14  ;;  %3862 = vst.msk [vmem:[%s9560_s3 + $0x30] sm:$0xff] %vm3854_vm1, %v3836_v21  ;;  %vm11205_vm0 = vcmask 23552   ;;  %vm11207_vm4 = vmmov %vm11204_vm11  ;;  %v11232_v58 = vld [vmem:[#allocation204_spill] sm:$0xff]  ;;  %v11243_v1 = vld [vmem:[#allocation25_spill] sm:$0xff] }
 0x79b   :  { %v2934_v26 = vsel %vm11205_vm0, %v2910_v12, %v11186_v10  ;;  %v3050_v4 = vsel %vm11207_vm4, %v3026_v39, %v11206_v37  ;;  %v3143_v44 = vsel %vm1144_vm15, %v3119_v53, %v11191_v2  ;;  %vm11209_vm2 = vcmask 105472   ;;  %vm11210_vm12 = vmmov %vm11205_vm0  ;;  %v11234_v12 = vld [vmem:[#allocation205_spill] sm:$0xff]  ;;  %v11236_v32 = vld [vmem:[#allocation148_spill] sm:$0xff] }
 0x79c   :  { %v3168_v52 = vsel %vm11209_vm2, %v3144_v55, %v11208_v36  ;;  %v2933_v40 = vsel %vm11210_vm12, %v2909_v5, %v11193_v61  ;;  %vm11212_vm7 = vcmask 31744   ;;  %vm11214_vm13 = vmmov %vm11209_vm2  ;;  %vm11219_vm5 = vcmask 39936   ;;  %v11239_v2 = vld [vmem:[#allocation96_spill] sm:$0xff]  ;;  %v11246_v13 = vld [vmem:[#allocation14_spill] sm:$0xff] }
 0x79d   :  { %v2958_v48 = vsel %vm11212_vm7, %v2934_v26, %v11211_v3  ;;  %v3167_v30 = vsel %vm11214_vm13, %v3143_v44, %v11213_v49  ;;  %v3192_v15 = vsel %vm1194_vm8, %v3168_v52, %v11215_v54  ;;  %vm11217_vm10 = vmmov %vm11212_vm7  ;;  %vm11220_vm3 = vcmask 72704   ;;  %v11244_v5 = vld [vmem:[#allocation116_spill] sm:$0xff]  ;;  %v11249_v24 = vld [vmem:[#allocation101_spill] sm:$0xff] }
 0x79e   :  { %v2957_v27 = vsel %vm11217_vm10, %v2933_v40, %v11216_v42  ;;  %v2982_v25 = vsel %vm11219_vm5, %v2958_v48, %v11218_v17  ;;  %v3075_v62 = vsel %vm11220_vm3, %v3051_v63, %v11203_v28  ;;  %v3191_v18 = vsel %vm1194_vm8, %v3167_v30, %v11221_v9  ;;  %vm11226_vm0 = vmmov %vm11219_vm5  ;;  %v11251_v39 = vld [vmem:[#allocation228_spill] sm:$0xff]  ;;  %v11258_v44 = vld [vmem:[#allocation249_spill] sm:$0xff] }
 0x79f   :  { %vm11224_vm11 = vcmask 7168   ;;  %v2981_v23 = vsel %vm11226_vm0, %v2957_v27, %v11225_v34  ;;  %vm11227_vm4 = vmmov %vm11220_vm3  ;;  %v3099_v22 = vsel %vm1094_vm6, %v3075_v62, %v11228_v8  ;;  %vm11230_vm2 = vcmask 15360   ;;  %v3779_v50 = vpop.permute.xlu1 %3778  ;;  %v11254_v55 = vld [vmem:[#allocation64_spill] sm:$0xff]  ;;  %v11264_v30 = vld [vmem:[#allocation250_spill] sm:$0xff] }
 0x7a0   :  { %v2888_v6 = vsel %vm11224_vm11, %v11223_v0, %v11222_v41  ;;  %v3074_v45 = vsel %vm11227_vm4, %v3050_v4, %v11206_v37  ;;  %v2913_v19 = vsel %vm11230_vm2, %v2889_v35, %v11229_v29  ;;  %v3123_v7 = vsel %vm1119_vm14, %v3099_v22, %v11232_v58  ;;  %v3777_v43 = vpop.permute.xlu0 %3776  ;;  %vm11237_vm13 = vmmov %vm11230_vm2  ;;  %v11256_v37 = vld [vmem:[#allocation229_spill] sm:$0xff]  ;;  %v11259_v52 = vld [vmem:[#allocation88_spill] sm:$0xff] }
 0x7a1   :  { %v3098_v51 = vsel %vm1094_vm6, %v3074_v45, %v11231_v38  ;;  %v3216_v47 = vsel %vm1219_vm9, %v3192_v15, %v11215_v54  ;;  %vm11233_vm12 = vcmask 48128   ;;  %v3215_v20 = vsel %vm1219_vm9, %v3191_v18, %v11221_v9  ;;  %v11261_v3 = vld [vmem:[#allocation68_spill] sm:$0xff]  ;;  %v11265_v15 = vld [vmem:[#allocation43_spill] sm:$0xff]  ;;  %v11272_v41 = vld [vmem:[#allocation149_spill] sm:$0xff] }
 0x7a2   :  { %v3006_v10 = vsel %vm11233_vm12, %v2982_v25, %v11218_v17  ;;  %v3122_v16 = vsel %vm1119_vm14, %v3098_v51, %v11234_v12  ;;  %vm11235_vm7 = vcmask 130048   ;;  %v2912_v57 = vsel %vm11237_vm13, %v2888_v6, %v11236_v32  ;;  %vm11238_vm10 = vmmov %vm11233_vm12  ;;  %v11266_v42 = vld [vmem:[#allocation28_spill] sm:$0xff]  ;;  %v11268_v17 = vld [vmem:[#allocation69_spill] sm:$0xff] }
 0x7a3   :  { %v3840_v14 = vsel %vm11235_vm7, %v3216_v47, %v3779_v50  ;;  %v3005_v31 = vsel %vm11238_vm10, %v2981_v23, %v11225_v34  ;;  %vm11240_vm5 = vcmask 56320   ;;  %vm11241_vm3 = vmmov %vm11235_vm7  ;;  %v2892_v61 = vsel %vm11224_vm11, %v11243_v1, %v11242_v33  ;;  %v11271_v9 = vld [vmem:[#allocation87_spill] sm:$0xff]  ;;  %v11274_v6 = vld [vmem:[#allocation110_spill] sm:$0xff] }
 0x7a4   :  { %v3030_v53 = vsel %vm11240_vm5, %v3006_v10, %v11239_v2  ;;  %3866 = vst.msk [vmem:[%s9560_s3 + $0x50] sm:$0xff] %vm3854_vm1, %v3840_v14  ;;  %v3839_v46 = vsel %vm11241_vm3, %v3215_v20, %v3777_v43  ;;  %vm11245_vm0 = vmmov %vm11240_vm5  ;;  %vm11247_vm4 = vcmask 64512   ;;  %v3147_v21 = vsel %vm1144_vm15, %v3123_v7, %v11232_v58  ;;  %v11275_v23 = vld [vmem:[#allocation207_spill] sm:$0xff]  ;;  %v11285_v14 = vld [vmem:[#allocation33_spill] sm:$0xff] }
 0x7a5   :  { %v3029_v59 = vsel %vm11245_vm0, %v3005_v31, %v11244_v5  ;;  %v3054_v11 = vsel %vm11247_vm4, %v3030_v53, %v11246_v13  ;;  %3865 = vst.msk [vmem:[%s9560_s3 + $0x48] sm:$0xff] %vm3854_vm1, %v3839_v46  ;;  %vm11248_vm2 = vcmask 23552   ;;  %vm11250_vm12 = vmmov %vm11247_vm4  ;;  %v3146_v60 = vsel %vm1144_vm15, %v3122_v16, %v11234_v12  ;;  %v11279_v47 = vld [vmem:[#allocation55_spill] sm:$0xff]  ;;  %v11282_v12 = vld [vmem:[#allocation74_spill] sm:$0xff] }
 0x7a6   :  { %v2937_v56 = vsel %vm11248_vm2, %v2913_v19, %v11229_v29  ;;  %v3053_v35 = vsel %vm11250_vm12, %v3029_v59, %v11249_v24  ;;  %vm11252_vm7 = vcmask 105472   ;;  %vm11253_vm13 = vmmov %vm11248_vm2  ;;  %vm11255_vm10 = vcmask 31744   ;;  %v11277_v19 = vld [vmem:[#allocation208_spill] sm:$0xff]  ;;  %v11290_v53 = vld [vmem:[#allocation122_spill] sm:$0xff] }
 0x7a7   :  { %v3171_v28 = vsel %vm11252_vm7, %v3147_v21, %v11251_v39  ;;  %v2936_v63 = vsel %vm11253_vm13, %v2912_v57, %v11236_v32  ;;  %v2961_v26 = vsel %vm11255_vm10, %v2937_v56, %v11254_v55  ;;  %vm11257_vm5 = vmmov %vm11252_vm7  ;;  %vm11262_vm11 = vcmask 39936   ;;  %v3785_v22 = vpop.permute.xlu1 %3784  ;;  %v11287_v32 = vld [vmem:[#allocation102_spill] sm:$0xff]  ;;  %v11292_v1 = vld [vmem:[#allocation231_spill] sm:$0xff] }
 0x7a8   :  { %v3170_v4 = vsel %vm11257_vm5, %v3146_v60, %v11256_v37  ;;  %v3195_v36 = vsel %vm1194_vm8, %v3171_v28, %v11258_v44  ;;  %vm11260_vm3 = vmmov %vm11255_vm10  ;;  %v2985_v48 = vsel %vm11262_vm11, %v2961_v26, %v11261_v3  ;;  %vm11263_vm0 = vcmask 72704   ;;  %v3783_v7 = vpop.permute.xlu0 %3782  ;;  %v11295_v59 = vld [vmem:[#allocation67_spill] sm:$0xff]  ;;  %v11305_v55 = vld [vmem:[#allocation252_spill] sm:$0xff] }
 0x7a9   :  { %v2960_v40 = vsel %vm11260_vm3, %v2936_v63, %v11259_v52  ;;  %v3078_v49 = vsel %vm11263_vm0, %v3054_v11, %v11246_v13  ;;  %v3194_v54 = vsel %vm1194_vm8, %v3170_v4, %v11264_v30  ;;  %vm11267_vm4 = vcmask 7168   ;;  %vm11269_vm2 = vmmov %vm11262_vm11  ;;  %v11297_v11 = vld [vmem:[#allocation232_spill] sm:$0xff]  ;;  %v11299_v56 = vld [vmem:[#allocation251_spill] sm:$0xff] }
 0x7aa   :  { %v2891_v27 = vsel %vm11267_vm4, %v11266_v42, %v11265_v15  ;;  %v2984_v25 = vsel %vm11269_vm2, %v2960_v40, %v11268_v17  ;;  %vm11270_vm12 = vmmov %vm11263_vm0  ;;  %v3102_v18 = vsel %vm1094_vm6, %v3078_v49, %v11271_v9  ;;  %vm11273_vm7 = vcmask 15360   ;;  %v11302_v39 = vld [vmem:[#allocation11_spill] sm:$0xff]  ;;  %v11306_v37 = vld [vmem:[#allocation100_spill] sm:$0xff] }
 0x7ab   :  { %v3077_v62 = vsel %vm11270_vm12, %v3053_v35, %v11249_v24  ;;  %v2916_v0 = vsel %vm11273_vm7, %v2892_v61, %v11272_v41  ;;  %v3126_v45 = vsel %vm1119_vm14, %v3102_v18, %v11275_v23  ;;  %v3219_v8 = vsel %vm1219_vm9, %v3195_v36, %v11258_v44  ;;  %vm11280_vm5 = vmmov %vm11273_vm7  ;;  %v11300_v35 = vld [vmem:[#allocation47_spill] sm:$0xff]  ;;  %v11309_v36 = vld [vmem:[#allocation129_spill] sm:$0xff] }
 0x7ac   :  { %v3101_v34 = vsel %vm1094_vm6, %v3077_v62, %v11274_v6  ;;  %vm11276_vm13 = vcmask 48128   ;;  %v3218_v51 = vsel %vm1219_vm9, %v3194_v54, %v11264_v30  ;;  %vm11278_vm10 = vcmask 130048   ;;  %v11310_v40 = vld [vmem:[#allocation130_spill] sm:$0xff]  ;;  %v11313_v42 = vld [vmem:[#allocation211_spill] sm:$0xff] }
 0x7ad   :  { %v3009_v29 = vsel %vm11276_vm13, %v2985_v48, %v11261_v3  ;;  %v3125_v38 = vsel %vm1119_vm14, %v3101_v34, %v11277_v19  ;;  %v3843_v58 = vsel %vm11278_vm10, %v3219_v8, %v3785_v22  ;;  %v2915_v50 = vsel %vm11280_vm5, %v2891_v27, %v11279_v47  ;;  %vm11281_vm3 = vmmov %vm11276_vm13  ;;  %v11311_v48 = vld [vmem:[#allocation210_spill] sm:$0xff]  ;;  %v11316_v18 = vld [vmem:[#allocation75_spill] sm:$0xff] }
 0x7ae   :  { %v3008_v10 = vsel %vm11281_vm3, %v2984_v25, %v11268_v17  ;;  %vm11283_vm11 = vcmask 56320   ;;  %3869 = vst.msk [vmem:[%s9560_s3 + $0x68] sm:$0xff] %vm3854_vm1, %v3843_v58  ;;  %vm11284_vm0 = vmmov %vm11278_vm10  ;;  %vm11288_vm2 = vcmask 64512   ;;  %v3150_v31 = vsel %vm1144_vm15, %v3126_v45, %v11275_v23  ;;  %v11319_v6 = vld [vmem:[#allocation15_spill] sm:$0xff]  ;;  %v11323_v22 = vld [vmem:[#allocation80_spill] sm:$0xff] }
 0x7af   :  { %v3033_v16 = vsel %vm11283_vm11, %v3009_v29, %v11282_v12  ;;  %v3842_v20 = vsel %vm11284_vm0, %v3218_v51, %v3783_v7  ;;  %vm11286_vm4 = vmmov %vm11283_vm11  ;;  %vm11289_vm12 = vcmask 23552   ;;  %v3149_v33 = vsel %vm1144_vm15, %v3125_v38, %v11277_v19  ;;  %v3791_v54 = vpop.permute.xlu1 %3790  ;;  %v11321_v23 = vld [vmem:[#allocation123_spill] sm:$0xff]  ;;  %v11325_v38 = vld [vmem:[#allocation234_spill] sm:$0xff] }
 0x7b0   :  { %v3032_v43 = vsel %vm11286_vm4, %v3008_v10, %v11285_v14  ;;  %v3057_v57 = vsel %vm11288_vm2, %v3033_v16, %v11287_v32  ;;  %3868 = vst.msk [vmem:[%s9560_s3 + $0x60] sm:$0xff] %vm3854_vm1, %v3842_v20  ;;  %v2940_v2 = vsel %vm11289_vm12, %v2916_v0, %v11272_v41  ;;  %vm11291_vm7 = vmmov %vm11288_vm2  ;;  %vm11293_vm13 = vcmask 105472   ;;  %v3789_v62 = vpop.permute.xlu0 %3788  ;;  %v11327_v58 = vld [vmem:[#allocation235_spill] sm:$0xff]  ;;  %v11331_v12 = vld [vmem:[#allocation254_spill] sm:$0xff] }
 0x7b1   :  { %v3056_v46 = vsel %vm11291_vm7, %v3032_v43, %v11290_v53  ;;  %v3174_v61 = vsel %vm11293_vm13, %v3150_v31, %v11292_v1  ;;  %vm11294_vm10 = vmmov %vm11289_vm12  ;;  %vm11296_vm5 = vcmask 31744   ;;  %vm11303_vm0 = vcmask 39936   ;;  %v11333_v14 = vld [vmem:[#allocation132_spill] sm:$0xff]  ;;  %v11335_v31 = vld [vmem:[#allocation213_spill] sm:$0xff] }
 0x7b2   :  { %v2939_v5 = vsel %vm11294_vm10, %v2915_v50, %v11279_v47  ;;  %v2964_v13 = vsel %vm11296_vm5, %v2940_v2, %v11295_v59  ;;  %vm11298_vm3 = vmmov %vm11293_vm13  ;;  %v3198_v24 = vsel %vm1194_vm8, %v3174_v61, %v11299_v56  ;;  %vm11304_vm4 = vcmask 72704   ;;  %v11329_v47 = vld [vmem:[#allocation253_spill] sm:$0xff] }
 0x7b3   :  { %v3173_v21 = vsel %vm11298_vm3, %v3149_v33, %v11297_v11  ;;  %vm11301_vm11 = vmmov %vm11296_vm5  ;;  %v2988_v28 = vsel %vm11303_vm0, %v2964_v13, %v11302_v39  ;;  %v3081_v63 = vsel %vm11304_vm4, %v3057_v57, %v11287_v32  ;;  %v3222_v30 = vsel %vm1219_vm9, %v3198_v24, %v11299_v56  ;;  %v11334_v32 = vld [vmem:[#allocation190_spill] sm:$0xff]  ;;  %v11339_v56 = vld [vmem:[#allocation237_spill] sm:$0xff] }
 0x7b4   :  { %v2963_v60 = vsel %vm11301_vm11, %v2939_v5, %v11300_v35  ;;  %v3197_v26 = vsel %vm1194_vm8, %v3173_v21, %v11305_v55  ;;  %vm11307_vm2 = vmmov %vm11303_vm0  ;;  %v3105_v52 = vsel %vm1094_vm6, %v3081_v63, %v11309_v36  ;;  %vm11312_vm7 = vcmask 48128   ;;  %v11336_v33 = vld [vmem:[#allocation214_spill] sm:$0xff]  ;;  %v11344_v63 = vld [vmem:[#allocation256_spill] sm:$0xff] }
 0x7b5   :  { %v2987_v4 = vsel %vm11307_vm2, %v2963_v60, %v11306_v37  ;;  %vm11308_vm12 = vmmov %vm11304_vm4  ;;  %v3129_v49 = vsel %vm1119_vm14, %v3105_v52, %v11311_v48  ;;  %v3012_v15 = vsel %vm11312_vm7, %v2988_v28, %v11302_v39  ;;  %v3221_v17 = vsel %vm1219_vm9, %v3197_v26, %v11305_v55  ;;  %v11341_v35 = vld [vmem:[#allocation238_spill] sm:$0xff]  ;;  %v11343_v39 = vld [vmem:[#allocation255_spill] sm:$0xff] }
 0x7b6   :  { %v3080_v44 = vsel %vm11308_vm12, %v3056_v46, %v11290_v53  ;;  %vm11314_vm13 = vcmask 130048   ;;  %vm11315_vm10 = vmmov %vm11312_vm7  ;;  %vm11317_vm5 = vcmask 56320   ;;  %vm11322_vm0 = vcmask 64512  }
 0x7b7   :  { %v3104_v3 = vsel %vm1094_vm6, %v3080_v44, %v11310_v40  ;;  %v3846_v25 = vsel %vm11314_vm13, %v3222_v30, %v3791_v54  ;;  %v3011_v9 = vsel %vm11315_vm10, %v2987_v4, %v11306_v37  ;;  %v3036_v41 = vsel %vm11317_vm5, %v3012_v15, %v11316_v18  ;;  %vm11318_vm3 = vmmov %vm11314_vm13  ;;  %v3797_v46 = vpop.permute.xlu1 %3796 }
 0x7b8   :  { %v3128_v27 = vsel %vm1119_vm14, %v3104_v3, %v11313_v42  ;;  %3872 = vst.msk [vmem:[%s9560_s3 + $0x80] sm:$0xff] %vm3854_vm1, %v3846_v25  ;;  %v3845_v0 = vsel %vm11318_vm3, %v3221_v17, %v3789_v62  ;;  %vm11320_vm11 = vmmov %vm11317_vm5  ;;  %v3060_v45 = vsel %vm11322_vm0, %v3036_v41, %v11321_v23  ;;  %v3153_v8 = vsel %vm1144_vm15, %v3129_v49, %v11311_v48  ;;  %v3795_v59 = vpop.permute.xlu0 %3794 }
 0x7b9   :  { %v3035_v34 = vsel %vm11320_vm11, %v3011_v9, %v11319_v6  ;;  %3871 = vst.msk [vmem:[%s9560_s3 + $0x78] sm:$0xff] %vm3854_vm1, %v3845_v0  ;;  %vm11324_vm4 = vmmov %vm11322_vm0  ;;  %v3152_v19 = vsel %vm1144_vm15, %v3128_v27, %v11313_v42  ;;  %vm11326_vm2 = vcmask 105472   ;;  %vm11330_vm7 = vcmask 72704  }
 0x7ba   :  { %v3059_v29 = vsel %vm11324_vm4, %v3035_v34, %v11323_v22  ;;  %v3177_v51 = vsel %vm11326_vm2, %v3153_v8, %v11325_v38  ;;  %vm11328_vm12 = vmmov %vm11326_vm2  ;;  %v3084_v10 = vsel %vm11330_vm7, %v3060_v45, %v11321_v23 }
 0x7bb   :  { %v3176_v7 = vsel %vm11328_vm12, %v3152_v19, %v11327_v58  ;;  %v3201_v50 = vsel %vm1194_vm8, %v3177_v51, %v11329_v47  ;;  %vm11332_vm13 = vmmov %vm11330_vm7  ;;  %v3108_v43 = vsel %vm1094_vm6, %v3084_v10, %v11333_v14 }
 0x7bc   :  { %v3200_v16 = vsel %vm1194_vm8, %v3176_v7, %v11331_v12  ;;  %v3083_v20 = vsel %vm11332_vm13, %v3059_v29, %v11323_v22  ;;  %v3132_v2 = vsel %vm1119_vm14, %v3108_v43, %v11335_v31  ;;  %v3225_v53 = vsel %vm1219_vm9, %v3201_v50, %v11329_v47  ;;  %vm11337_vm10 = vmmov %vm11318_vm3 }
 0x7bd   :  { %v3107_v57 = vsel %vm1094_vm6, %v3083_v20, %v11334_v32  ;;  %v3224_v61 = vsel %vm1219_vm9, %v3200_v16, %v11331_v12  ;;  %v3849_v5 = vsel %vm11337_vm10, %v3225_v53, %v3797_v46  ;;  %vm11338_vm6 = vmmov %vm11318_vm3  ;;  %v3156_v11 = vsel %vm1144_vm15, %v3132_v2, %v11335_v31 }
 0x7be   :  { %v3131_v1 = vsel %vm1119_vm14, %v3107_v57, %v11336_v33  ;;  %3875 = vst.msk [vmem:[%s9560_s3 + $0x98] sm:$0xff] %vm3854_vm1, %v3849_v5  ;;  %v3848_v13 = vsel %vm11338_vm6, %v3224_v61, %v3795_v59  ;;  %vm11340_vm14 = vmmov %vm11326_vm2 }
 0x7bf   :  { %3874 = vst.msk [vmem:[%s9560_s3 + $0x90] sm:$0xff] %vm3854_vm1, %v3848_v13  ;;  %v3155_v21 = vsel %vm1144_vm15, %v3131_v1, %v11336_v33  ;;  %v3180_v24 = vsel %vm11340_vm14, %v3156_v11, %v11339_v56  ;;  %vm11342_vm5 = vmmov %vm11326_vm2  ;;  %v3803_v37 = vpop.permute.xlu1 %3802 }
 0x7c0   :  { %v3179_v60 = vsel %vm11342_vm5, %v3155_v21, %v11341_v35  ;;  %v3204_v28 = vsel %vm1194_vm8, %v3180_v24, %v11343_v39  ;;  %vm11345_vm15 = vmmov %vm11318_vm3  ;;  %v3801_v36 = vpop.permute.xlu0 %3800 }
 0x7c1   :  { %v3203_v55 = vsel %vm1194_vm8, %v3179_v60, %v11344_v63  ;;  %v3228_v26 = vsel %vm1219_vm9, %v3204_v28, %v11343_v39 }
 0x7c2   :  { %v3227_v4 = vsel %vm1219_vm9, %v3203_v55, %v11344_v63  ;;  %v3852_v44 = vsel %vm11345_vm15, %v3228_v26, %v3803_v37 }
 0x7c3   :  { %3878 = vst.msk [vmem:[%s9560_s3 + $0xb0] sm:$0xff] %vm3854_vm1, %v3852_v44  ;;  %v3851_v52 = vsel %vm11318_vm3, %v3227_v4, %v3801_v36 }
 0x7c4   :  { %3877 = vst.msk [vmem:[%s9560_s3 + $0xa8] sm:$0xff] %vm3854_vm1, %v3851_v52 }
 0x7c5   :  { %4004 = dma.done.wait [#allocation4], 3072  }
 0x7c6   :  { %4005 = vsyncadd [#allocation4], 4294964224 }
 0x7c7   :  { %3901 = vsyncpa [#allocation3], 1 }
 0x7c8   :  { %3902 = vsyncpa [#allocation6], 1 }
 0x7c9   :  { %3903 = vsyncpa [#allocation4], 1 }

</bundles_post_ra>
